<compile_context>
chip_gen: v7x
topology: tpu7x:2x2x1
jax: 0.10.0
libtpu: 0.0.40
codegen_flags: <defaults>
</compile_context>

<pallas_src>
import functools

import jax
import jax.numpy as jnp
from jax.experimental import pallas as pl
from jax.experimental.pallas import tpu as pltpu


IN_CHANNELS = 64      # backbone.out_channels (small synthetic backbone)
OUT_CHANNELS = 64     # BaseNet out_channels (kept small for the demo)
NUM_ANCHORS = 6
NUM_CLASSES = 21


# --------------------- backbone conv: stride-2 3x3 as s2d 2x2 ----------------

def _conv2x2_kernel(x_ref, w_ref, b_ref, o_ref, *, relu):
    """Stride-1 'valid' 2x2 conv over a space-to-depth NHWC tile.

    x_ref: (1, Hs, Ws, C)   bf16, pre-padded + space-to-depth input
    w_ref: (4, C, Cout)     bf16, tap-major folded weights
    b_ref: (1, Cout)        f32
    o_ref: (1, Ho, Wo, Cout) f32, Ho = Hs-1, Wo = Ws-1
    """
    _, Ho, Wo, Cout = o_ref.shape
    C = x_ref.shape[3]
    acc = jnp.zeros((Ho * Wo, Cout), jnp.float32)
    for t, (dr, dc) in enumerate(((0, 0), (0, 1), (1, 0), (1, 1))):
        win = x_ref[0, dr:dr + Ho, dc:dc + Wo, :].reshape(Ho * Wo, C)
        acc = acc + jnp.dot(win, w_ref[t], preferred_element_type=jnp.float32)
    acc = acc + b_ref[...]
    if relu:
        acc = jnp.maximum(acc, 0.0)
    o_ref[...] = acc.reshape(1, Ho, Wo, Cout)


def conv3x3_s2(x, w4, b, *, relu=True):
    """nn.Conv2d(Cin, Cout, 3, stride=2, padding=1)[ + ReLU] on NHWC input.

    Implemented as pad + space-to-depth (cheap XLA reshape/transpose on the
    *input-sized* tensor) followed by a stride-1 2x2 Pallas conv, so the kernel
    only does contiguous slices and exactly the strided conv's FLOPs.
    """
    N, H, W, C = x.shape
    Ho, Wo = H // 2, W // 2
    Hs, Ws = (H + 2) // 2, (W + 2) // 2
    xp = jnp.pad(x, ((0, 0), (1, 1), (1, 1), (0, 0)))
    xs = (xp.reshape(N, Hs, 2, Ws, 2, C)
            .transpose(0, 1, 3, 2, 4, 5)
            .reshape(N, Hs, Ws, 4 * C)
            .astype(jnp.bfloat16))
    Cout = w4.shape[2]
    kernel = functools.partial(_conv2x2_kernel, relu=relu)
    return pl.pallas_call(
        kernel,
        out_shape=jax.ShapeDtypeStruct((N, Ho, Wo, Cout), jnp.float32),
        grid=(N,),
        in_specs=[
            pl.BlockSpec((1, Hs, Ws, 4 * C), lambda n: (n, 0, 0, 0)),
            pl.BlockSpec((4, 4 * C, Cout), lambda n: (0, 0, 0)),
            pl.BlockSpec((1, Cout), lambda n: (0, 0)),
        ],
        out_specs=pl.BlockSpec((1, Ho, Wo, Cout), lambda n: (n, 0, 0, 0)),
        compiler_params=pltpu.CompilerParams(
            dimension_semantics=("parallel",),
            vmem_limit_bytes=32 * 1024 * 1024),
    )(xs, w4, b)


# ----------------------- fused RPN tail (one pallas_call) --------------------

def _rpn_tail_kernel(f_ref, w1_ref, b1_ref, w2_ref, b2_ref, w3_ref, b3_ref,
                     wsc_ref, bsc_ref, wr_ref, br_ref, o_ref, pad_ref):
    """Dropout(id) -> detnet bottleneck -> final 3x3 conv, all in VMEM.

    f_ref:  (1, H, W, C) bf16 (res4 feature)
    w*_ref: bf16 weights, b*_ref: (1, Cout) f32 biases
    pad_ref: (H+4, W+4, C) bf16 scratch reused as the zero-padded buffer for
             both 3x3 convs (dilated p=2 and plain p=1).
    """
    _, H, W, C = f_ref.shape
    Cout = o_ref.shape[3]
    M = H * W
    f2 = f_ref[0].reshape(M, C)                                   # bf16

    # detnet 1x1 conv + ReLU
    y = jnp.dot(f2, w1_ref[...], preferred_element_type=jnp.float32) + b1_ref[...]
    y = jnp.maximum(y, 0.0)

    # zero the shared padded buffer once; only its interior is ever written.
    pad_ref[...] = jnp.zeros(pad_ref.shape, pad_ref.dtype)

    def conv3x3_from_pad(offset, dil, w_ref, b_ref):
        cout = w_ref.shape[2]
        acc = jnp.zeros((M, cout), jnp.float32)
        for kh in range(3):
            for kw in range(3):
                r0 = offset + kh * dil
                c0 = offset + kw * dil
                win = pad_ref[r0:r0 + H, c0:c0 + W, :].reshape(M, C)
                acc = acc + jnp.dot(win, w_ref[kh * 3 + kw],
                                    preferred_element_type=jnp.float32)
        return acc + b_ref[...]

    # detnet 3x3, dilation=2, padding=2, + ReLU (data interior at [2:2+H, 2:2+W])
    pad_ref[2:2 + H, 2:2 + W, :] = y.reshape(H, W, C).astype(jnp.bfloat16)
    y = jnp.maximum(conv3x3_from_pad(0, 2, w2_ref, b2_ref), 0.0)

    # detnet 1x1 (no ReLU) + 1x1 shortcut, residual add + ReLU
    y = jnp.dot(y.astype(jnp.bfloat16), w3_ref[...],
                preferred_element_type=jnp.float32) + b3_ref[...]
    sc = jnp.dot(f2, wsc_ref[...], preferred_element_type=jnp.float32) + bsc_ref[...]
    y = jnp.maximum(y + sc, 0.0)

    # final RPN 3x3, padding=1 (ring of width 1 around interior is still zero)
    pad_ref[2:2 + H, 2:2 + W, :] = y.reshape(H, W, C).astype(jnp.bfloat16)
    out = conv3x3_from_pad(1, 1, wr_ref, br_ref)
    o_ref[...] = out.reshape(1, H, W, Cout)


def rpn_tail(f, det_c1, det_c2, det_c3, det_sc, rpn_out):
    N, H, W, C = f.shape
    (w1, b1), (w2, b2), (w3, b3) = det_c1, det_c2, det_c3
    (wsc, bsc), (wr, br) = det_sc, rpn_out
    Cout = wr.shape[-1]
    weights = (w1, b1, w2, b2, w3, b3, wsc, bsc, wr, br)

    def full_spec(a):
        nd = a.ndim
        return pl.BlockSpec(a.shape, lambda n, _nd=nd: (0,) * _nd)

    return pl.pallas_call(
        _rpn_tail_kernel,
        out_shape=jax.ShapeDtypeStruct((N, H, W, Cout), jnp.float32),
        grid=(N,),
        in_specs=[pl.BlockSpec((1, H, W, C), lambda n: (n, 0, 0, 0))]
                 + [full_spec(a) for a in weights],
        out_specs=pl.BlockSpec((1, H, W, Cout), lambda n: (n, 0, 0, 0)),
        scratch_shapes=[pltpu.VMEM((H + 4, W + 4, C), jnp.bfloat16)],
        compiler_params=pltpu.CompilerParams(
            dimension_semantics=("parallel",),
            vmem_limit_bytes=32 * 1024 * 1024),
    )(f.astype(jnp.bfloat16), *weights)


# ----------------------------- parameters -----------------------------------

def _kaiming(key, kh, kw, cin, cout):
    # deterministic kaiming-normal-ish init (stand-in for _initParmas), zero bias
    fan_in = kh * kw * cin
    w = jax.random.normal(key, (kh, kw, cin, cout), jnp.float32) * (2.0 / fan_in) ** 0.5
    b = jnp.zeros((cout,), jnp.float32)
    return w, b


def _fold_s2_weight(w):
    """Fold a (3,3,Cin,Cout) stride-2 conv weight into the (4, 4*Cin, Cout)
    weight of the equivalent stride-1 2x2 conv over the space-to-depth input."""
    KH, KW, Cin, Cout = w.shape
    wp = jnp.pad(w, ((0, 4 - KH), (0, 4 - KW), (0, 0), (0, 0)))     # taps 3 -> zero
    wp = wp.reshape(2, 2, 2, 2, Cin, Cout).transpose(0, 2, 1, 3, 4, 5)
    return wp.reshape(4, 4 * Cin, Cout)                             # (dr*2+dc, (pr,pc,ci), co)


def init_params(key):
    ks = jax.random.split(key, 10)
    p = {}
    # TODO(synk): BackboneV2('resnet18') is not defined in the snippet; a small
    # synthetic strided-conv backbone producing res2..res5 stands in for it.
    backbone = [('stem', 3, 16), ('res2', 16, 16), ('res3', 16, 32),
                ('res4', 32, IN_CHANNELS), ('res5', IN_CHANNELS, IN_CHANNELS)]
    for i, (name, ci, co) in enumerate(backbone):
        w, b = _kaiming(ks[i], 3, 3, ci, co)
        p[name] = (_fold_s2_weight(w).astype(jnp.bfloat16), b.reshape(1, co))

    # TODO(synk): _make_detnet_layer is not defined in the snippet; implemented as a
    # single detnet bottleneck (1x1 -> dilated 3x3 -> 1x1, 1x1 shortcut, BN omitted).
    def c1x1(k, ci, co):
        w, b = _kaiming(k, 1, 1, ci, co)
        return w.reshape(ci, co).astype(jnp.bfloat16), b.reshape(1, co)

    def c3x3(k, ci, co):
        w, b = _kaiming(k, 3, 3, ci, co)
        return w.reshape(9, ci, co).astype(jnp.bfloat16), b.reshape(1, co)

    p['det_c1'] = c1x1(ks[5], IN_CHANNELS, OUT_CHANNELS)
    p['det_c2'] = c3x3(ks[6], OUT_CHANNELS, OUT_CHANNELS)            # dilation=2 in fwd
    p['det_c3'] = c1x1(ks[7], OUT_CHANNELS, OUT_CHANNELS)
    p['det_sc'] = c1x1(ks[8], IN_CHANNELS, OUT_CHANNELS)
    p['rpn_out'] = c3x3(ks[9], OUT_CHANNELS, NUM_ANCHORS * (NUM_CLASSES + 4))
    return p


# ------------------------------ forward -------------------------------------

def basenet_forward(params, x_nchw):
    # NCHW -> NHWC for the kernels
    x = jnp.transpose(x_nchw, (0, 2, 3, 1))

    # backbone (synthetic resnet18 stand-in): features dict res2..res5
    feats = {}
    h = conv3x3_s2(x, *params['stem'])
    h = conv3x3_s2(h, *params['res2']); feats['res2'] = h
    h = conv3x3_s2(h, *params['res3']); feats['res3'] = h
    h = conv3x3_s2(h, *params['res4']); feats['res4'] = h
    feats['res5'] = conv3x3_s2(h, *params['res5'])   # unused downstream (DCE'd by XLA)

    # useFPN=False / usePAN=False -> no res6/res7, no fpn/pan loop.
    # rpn(features['res4']): Dropout is identity at inference; detnet bottleneck,
    # residual add+ReLU and the final 3x3 conv run as ONE fused Pallas kernel.
    y = rpn_tail(feats['res4'], params['det_c1'], params['det_c2'],
                 params['det_c3'], params['det_sc'], params['rpn_out'])

    # back to NCHW (matches PyTorch output layout)
    return jnp.transpose(y, (0, 3, 1, 2))


# ------------------------------- main ----------------------------------------

if __name__ == "__main__":
    key = jax.random.PRNGKey(0)
    k_param, k_x = jax.random.split(key)
    params = init_params(k_param)

    # small input consistent with the module: batch=2, 3-channel 64x64 image
    x = jax.random.normal(k_x, (2, 3, 64, 64), jnp.float32)

    fwd = jax.jit(basenet_forward)
    y = jax.block_until_ready(fwd(params, x))

    expected = (2, NUM_ANCHORS * (NUM_CLASSES + 4), 4, 4)  # (N, 150, H/16, W/16)
    assert y.shape == expected, (y.shape, expected)
    assert bool(jnp.isfinite(y).all())
    print("KERNEL_OK")
</pallas_src>

<mosaic_0001>
module attributes {stable_mosaic.version = 11 : i64} {
  func.func @_conv2x2_kernel(%arg0: i32, %arg1: memref<1x33x33x12xbf16, #tpu.memory_space<vmem>>, %arg2: memref<4x12x16xbf16, #tpu.memory_space<vmem>>, %arg3: memref<1x16xf32, #tpu.memory_space<vmem>>, %arg4: memref<1x32x32x16xf32, #tpu.memory_space<vmem>>) attributes {dimension_semantics = [#tpu.dimension_semantics<parallel>], iteration_bounds = array<i64: 2>, scalar_prefetch = 0 : i64, scratch_operands = 0 : i64, tpu.core_type = #tpu.core_type<tc>, window_params = [{transform_indices = @transform_0, window_bounds = array<i64: 1, 33, 33, 12>}, {pipeline_mode = #tpu.pipeline_mode<synchronous>, transform_indices = @transform_1, window_bounds = array<i64: 4, 12, 16>}, {pipeline_mode = #tpu.pipeline_mode<synchronous>, transform_indices = @transform_2, window_bounds = array<i64: 1, 16>}, {transform_indices = @transform_3, window_bounds = array<i64: 1, 32, 32, 16>}]} {
    %cst = arith.constant 0.000000e+00 : f32
    %0 = vector.broadcast %cst : f32 to vector<1024x16xf32>
    %c0 = arith.constant 0 : index
    %c0_0 = arith.constant 0 : index
    %c0_1 = arith.constant 0 : index
    %c0_2 = arith.constant 0 : index
    %1 = vector.load %arg1[%c0, %c0_0, %c0_1, %c0_2] : memref<1x33x33x12xbf16, #tpu.memory_space<vmem>>, vector<1x32x32x12xbf16>
    %2 = vector.shape_cast %1 : vector<1x32x32x12xbf16> to vector<32x32x12xbf16>
    %3 = vector.shape_cast %2 : vector<32x32x12xbf16> to vector<1024x12xbf16>
    %c0_3 = arith.constant 0 : index
    %c0_4 = arith.constant 0 : index
    %c0_5 = arith.constant 0 : index
    %4 = vector.load %arg2[%c0_3, %c0_4, %c0_5] : memref<4x12x16xbf16, #tpu.memory_space<vmem>>, vector<1x12x16xbf16>
    %5 = vector.shape_cast %4 : vector<1x12x16xbf16> to vector<12x16xbf16>
    %cst_6 = arith.constant dense<0.000000e+00> : vector<1024x16xf32>
    %6 = tpu.matmul %3, %5, %cst_6 {dimension_numbers = #tpu.dot_dimension_numbers<[1], [0], [0], [1], [0, 0, 1, 1], [], []>} : vector<1024x12xbf16>, vector<12x16xbf16>, vector<1024x16xf32> -> vector<1024x16xf32>
    %7 = arith.addf %0, %6 : vector<1024x16xf32>
    %c0_7 = arith.constant 0 : index
    %c0_8 = arith.constant 0 : index
    %c1 = arith.constant 1 : index
    %c0_9 = arith.constant 0 : index
    %8 = vector.load %arg1[%c0_7, %c0_8, %c1, %c0_9] : memref<1x33x33x12xbf16, #tpu.memory_space<vmem>>, vector<1x32x32x12xbf16>
    %9 = vector.shape_cast %8 : vector<1x32x32x12xbf16> to vector<32x32x12xbf16>
    %10 = vector.shape_cast %9 : vector<32x32x12xbf16> to vector<1024x12xbf16>
    %c1_10 = arith.constant 1 : index
    %c0_11 = arith.constant 0 : index
    %c0_12 = arith.constant 0 : index
    %11 = vector.load %arg2[%c1_10, %c0_11, %c0_12] : memref<4x12x16xbf16, #tpu.memory_space<vmem>>, vector<1x12x16xbf16>
    %12 = vector.shape_cast %11 : vector<1x12x16xbf16> to vector<12x16xbf16>
    %cst_13 = arith.constant dense<0.000000e+00> : vector<1024x16xf32>
    %13 = tpu.matmul %10, %12, %cst_13 {dimension_numbers = #tpu.dot_dimension_numbers<[1], [0], [0], [1], [0, 0, 1, 1], [], []>} : vector<1024x12xbf16>, vector<12x16xbf16>, vector<1024x16xf32> -> vector<1024x16xf32>
    %14 = arith.addf %7, %13 : vector<1024x16xf32>
    %c0_14 = arith.constant 0 : index
    %c1_15 = arith.constant 1 : index
    %c0_16 = arith.constant 0 : index
    %c0_17 = arith.constant 0 : index
    %15 = vector.load %arg1[%c0_14, %c1_15, %c0_16, %c0_17] : memref<1x33x33x12xbf16, #tpu.memory_space<vmem>>, vector<1x32x32x12xbf16>
    %16 = vector.shape_cast %15 : vector<1x32x32x12xbf16> to vector<32x32x12xbf16>
    %17 = vector.shape_cast %16 : vector<32x32x12xbf16> to vector<1024x12xbf16>
    %c2 = arith.constant 2 : index
    %c0_18 = arith.constant 0 : index
    %c0_19 = arith.constant 0 : index
    %18 = vector.load %arg2[%c2, %c0_18, %c0_19] : memref<4x12x16xbf16, #tpu.memory_space<vmem>>, vector<1x12x16xbf16>
    %19 = vector.shape_cast %18 : vector<1x12x16xbf16> to vector<12x16xbf16>
    %cst_20 = arith.constant dense<0.000000e+00> : vector<1024x16xf32>
    %20 = tpu.matmul %17, %19, %cst_20 {dimension_numbers = #tpu.dot_dimension_numbers<[1], [0], [0], [1], [0, 0, 1, 1], [], []>} : vector<1024x12xbf16>, vector<12x16xbf16>, vector<1024x16xf32> -> vector<1024x16xf32>
    %21 = arith.addf %14, %20 : vector<1024x16xf32>
    %c0_21 = arith.constant 0 : index
    %c1_22 = arith.constant 1 : index
    %c1_23 = arith.constant 1 : index
    %c0_24 = arith.constant 0 : index
    %22 = vector.load %arg1[%c0_21, %c1_22, %c1_23, %c0_24] : memref<1x33x33x12xbf16, #tpu.memory_space<vmem>>, vector<1x32x32x12xbf16>
    %23 = vector.shape_cast %22 : vector<1x32x32x12xbf16> to vector<32x32x12xbf16>
    %24 = vector.shape_cast %23 : vector<32x32x12xbf16> to vector<1024x12xbf16>
    %c3 = arith.constant 3 : index
    %c0_25 = arith.constant 0 : index
    %c0_26 = arith.constant 0 : index
    %25 = vector.load %arg2[%c3, %c0_25, %c0_26] : memref<4x12x16xbf16, #tpu.memory_space<vmem>>, vector<1x12x16xbf16>
    %26 = vector.shape_cast %25 : vector<1x12x16xbf16> to vector<12x16xbf16>
    %cst_27 = arith.constant dense<0.000000e+00> : vector<1024x16xf32>
    %27 = tpu.matmul %24, %26, %cst_27 {dimension_numbers = #tpu.dot_dimension_numbers<[1], [0], [0], [1], [0, 0, 1, 1], [], []>} : vector<1024x12xbf16>, vector<12x16xbf16>, vector<1024x16xf32> -> vector<1024x16xf32>
    %28 = arith.addf %21, %27 : vector<1024x16xf32>
    %c0_28 = arith.constant 0 : index
    %c0_29 = arith.constant 0 : index
    %29 = vector.load %arg3[%c0_28, %c0_29] : memref<1x16xf32, #tpu.memory_space<vmem>>, vector<1x16xf32>
    %30 = vector.broadcast %29 : vector<1x16xf32> to vector<1024x16xf32>
    %31 = arith.addf %28, %30 : vector<1024x16xf32>
    %cst_30 = arith.constant 0.000000e+00 : f32
    %32 = vector.broadcast %cst_30 : f32 to vector<1024x16xf32>
    %33 = arith.maximumf %31, %32 : vector<1024x16xf32>
    %34 = vector.shape_cast %33 : vector<1024x16xf32> to vector<1x32x32x16xf32>
    %c0_31 = arith.constant 0 : index
    %c0_32 = arith.constant 0 : index
    %c0_33 = arith.constant 0 : index
    %c0_34 = arith.constant 0 : index
    %35 = vector.load %arg4[%c0_31, %c0_32, %c0_33, %c0_34] : memref<1x32x32x16xf32, #tpu.memory_space<vmem>>, vector<1x32x32x16xf32>
    tpu.vector_store %arg4[%c0_31, %c0_32, %c0_33, %c0_34], %34 {strides = array<i32>} : memref<1x32x32x16xf32, #tpu.memory_space<vmem>>, vector<1x32x32x16xf32>,
    return
  }
  func.func @transform_0(%arg0: i32) -> (i32, i32, i32, i32) {
    %c0_i32 = arith.constant 0 : i32
    %c0_i32_0 = arith.constant 0 : i32
    %c0_i32_1 = arith.constant 0 : i32
    %c0_i32_2 = arith.constant 0 : i32
    return %arg0, %c0_i32, %c0_i32_0, %c0_i32_1 : i32, i32, i32, i32
  }
  func.func @transform_1(%arg0: i32) -> (i32, i32, i32) {
    %c0_i32 = arith.constant 0 : i32
    %c0_i32_0 = arith.constant 0 : i32
    %c0_i32_1 = arith.constant 0 : i32
    %c0_i32_2 = arith.constant 0 : i32
    return %c0_i32, %c0_i32_0, %c0_i32_1 : i32, i32, i32
  }
  func.func @transform_2(%arg0: i32) -> (i32, i32) {
    %c0_i32 = arith.constant 0 : i32
    %c0_i32_0 = arith.constant 0 : i32
    %c0_i32_1 = arith.constant 0 : i32
    return %c0_i32, %c0_i32_0 : i32, i32
  }
  func.func @transform_3(%arg0: i32) -> (i32, i32, i32, i32) {
    %c0_i32 = arith.constant 0 : i32
    %c0_i32_0 = arith.constant 0 : i32
    %c0_i32_1 = arith.constant 0 : i32
    %c0_i32_2 = arith.constant 0 : i32
    return %arg0, %c0_i32, %c0_i32_0, %c0_i32_1 : i32, i32, i32, i32
  }
}

module attributes {stable_mosaic.version = 11 : i64} {
  func.func @_conv2x2_kernel(%arg0: i32, %arg1: memref<1x17x17x64xbf16, #tpu.memory_space<vmem>>, %arg2: memref<4x64x16xbf16, #tpu.memory_space<vmem>>, %arg3: memref<1x16xf32, #tpu.memory_space<vmem>>, %arg4: memref<1x16x16x16xf32, #tpu.memory_space<vmem>>) attributes {dimension_semantics = [#tpu.dimension_semantics<parallel>], iteration_bounds = array<i64: 2>, scalar_prefetch = 0 : i64, scratch_operands = 0 : i64, tpu.core_type = #tpu.core_type<tc>, window_params = [{transform_indices = @transform_0, window_bounds = array<i64: 1, 17, 17, 64>}, {pipeline_mode = #tpu.pipeline_mode<synchronous>, transform_indices = @transform_1, window_bounds = array<i64: 4, 64, 16>}, {pipeline_mode = #tpu.pipeline_mode<synchronous>, transform_indices = @transform_2, window_bounds = array<i64: 1, 16>}, {transform_indices = @transform_3, window_bounds = array<i64: 1, 16, 16, 16>}]} {
    %cst = arith.constant 0.000000e+00 : f32
    %0 = vector.broadcast %cst : f32 to vector<256x16xf32>
    %c0 = arith.constant 0 : index
    %c0_0 = arith.constant 0 : index
    %c0_1 = arith.constant 0 : index
    %c0_2 = arith.constant 0 : index
    %1 = vector.load %arg1[%c0, %c0_0, %c0_1, %c0_2] : memref<1x17x17x64xbf16, #tpu.memory_space<vmem>>, vector<1x16x16x64xbf16>
    %2 = vector.shape_cast %1 : vector<1x16x16x64xbf16> to vector<16x16x64xbf16>
    %3 = vector.shape_cast %2 : vector<16x16x64xbf16> to vector<256x64xbf16>
    %c0_3 = arith.constant 0 : index
    %c0_4 = arith.constant 0 : index
    %c0_5 = arith.constant 0 : index
    %4 = vector.load %arg2[%c0_3, %c0_4, %c0_5] : memref<4x64x16xbf16, #tpu.memory_space<vmem>>, vector<1x64x16xbf16>
    %5 = vector.shape_cast %4 : vector<1x64x16xbf16> to vector<64x16xbf16>
    %cst_6 = arith.constant dense<0.000000e+00> : vector<256x16xf32>
    %6 = tpu.matmul %3, %5, %cst_6 {dimension_numbers = #tpu.dot_dimension_numbers<[1], [0], [0], [1], [0, 0, 1, 1], [], []>} : vector<256x64xbf16>, vector<64x16xbf16>, vector<256x16xf32> -> vector<256x16xf32>
    %7 = arith.addf %0, %6 : vector<256x16xf32>
    %c0_7 = arith.constant 0 : index
    %c0_8 = arith.constant 0 : index
    %c1 = arith.constant 1 : index
    %c0_9 = arith.constant 0 : index
    %8 = vector.load %arg1[%c0_7, %c0_8, %c1, %c0_9] : memref<1x17x17x64xbf16, #tpu.memory_space<vmem>>, vector<1x16x16x64xbf16>
    %9 = vector.shape_cast %8 : vector<1x16x16x64xbf16> to vector<16x16x64xbf16>
    %10 = vector.shape_cast %9 : vector<16x16x64xbf16> to vector<256x64xbf16>
    %c1_10 = arith.constant 1 : index
    %c0_11 = arith.constant 0 : index
    %c0_12 = arith.constant 0 : index
    %11 = vector.load %arg2[%c1_10, %c0_11, %c0_12] : memref<4x64x16xbf16, #tpu.memory_space<vmem>>, vector<1x64x16xbf16>
    %12 = vector.shape_cast %11 : vector<1x64x16xbf16> to vector<64x16xbf16>
    %cst_13 = arith.constant dense<0.000000e+00> : vector<256x16xf32>
    %13 = tpu.matmul %10, %12, %cst_13 {dimension_numbers = #tpu.dot_dimension_numbers<[1], [0], [0], [1], [0, 0, 1, 1], [], []>} : vector<256x64xbf16>, vector<64x16xbf16>, vector<256x16xf32> -> vector<256x16xf32>
    %14 = arith.addf %7, %13 : vector<256x16xf32>
    %c0_14 = arith.constant 0 : index
    %c1_15 = arith.constant 1 : index
    %c0_16 = arith.constant 0 : index
    %c0_17 = arith.constant 0 : index
    %15 = vector.load %arg1[%c0_14, %c1_15, %c0_16, %c0_17] : memref<1x17x17x64xbf16, #tpu.memory_space<vmem>>, vector<1x16x16x64xbf16>
    %16 = vector.shape_cast %15 : vector<1x16x16x64xbf16> to vector<16x16x64xbf16>
    %17 = vector.shape_cast %16 : vector<16x16x64xbf16> to vector<256x64xbf16>
    %c2 = arith.constant 2 : index
    %c0_18 = arith.constant 0 : index
    %c0_19 = arith.constant 0 : index
    %18 = vector.load %arg2[%c2, %c0_18, %c0_19] : memref<4x64x16xbf16, #tpu.memory_space<vmem>>, vector<1x64x16xbf16>
    %19 = vector.shape_cast %18 : vector<1x64x16xbf16> to vector<64x16xbf16>
    %cst_20 = arith.constant dense<0.000000e+00> : vector<256x16xf32>
    %20 = tpu.matmul %17, %19, %cst_20 {dimension_numbers = #tpu.dot_dimension_numbers<[1], [0], [0], [1], [0, 0, 1, 1], [], []>} : vector<256x64xbf16>, vector<64x16xbf16>, vector<256x16xf32> -> vector<256x16xf32>
    %21 = arith.addf %14, %20 : vector<256x16xf32>
    %c0_21 = arith.constant 0 : index
    %c1_22 = arith.constant 1 : index
    %c1_23 = arith.constant 1 : index
    %c0_24 = arith.constant 0 : index
    %22 = vector.load %arg1[%c0_21, %c1_22, %c1_23, %c0_24] : memref<1x17x17x64xbf16, #tpu.memory_space<vmem>>, vector<1x16x16x64xbf16>
    %23 = vector.shape_cast %22 : vector<1x16x16x64xbf16> to vector<16x16x64xbf16>
    %24 = vector.shape_cast %23 : vector<16x16x64xbf16> to vector<256x64xbf16>
    %c3 = arith.constant 3 : index
    %c0_25 = arith.constant 0 : index
    %c0_26 = arith.constant 0 : index
    %25 = vector.load %arg2[%c3, %c0_25, %c0_26] : memref<4x64x16xbf16, #tpu.memory_space<vmem>>, vector<1x64x16xbf16>
    %26 = vector.shape_cast %25 : vector<1x64x16xbf16> to vector<64x16xbf16>
    %cst_27 = arith.constant dense<0.000000e+00> : vector<256x16xf32>
    %27 = tpu.matmul %24, %26, %cst_27 {dimension_numbers = #tpu.dot_dimension_numbers<[1], [0], [0], [1], [0, 0, 1, 1], [], []>} : vector<256x64xbf16>, vector<64x16xbf16>, vector<256x16xf32> -> vector<256x16xf32>
    %28 = arith.addf %21, %27 : vector<256x16xf32>
    %c0_28 = arith.constant 0 : index
    %c0_29 = arith.constant 0 : index
    %29 = vector.load %arg3[%c0_28, %c0_29] : memref<1x16xf32, #tpu.memory_space<vmem>>, vector<1x16xf32>
    %30 = vector.broadcast %29 : vector<1x16xf32> to vector<256x16xf32>
    %31 = arith.addf %28, %30 : vector<256x16xf32>
    %cst_30 = arith.constant 0.000000e+00 : f32
    %32 = vector.broadcast %cst_30 : f32 to vector<256x16xf32>
    %33 = arith.maximumf %31, %32 : vector<256x16xf32>
    %34 = vector.shape_cast %33 : vector<256x16xf32> to vector<1x16x16x16xf32>
    %c0_31 = arith.constant 0 : index
    %c0_32 = arith.constant 0 : index
    %c0_33 = arith.constant 0 : index
    %c0_34 = arith.constant 0 : index
    %35 = vector.load %arg4[%c0_31, %c0_32, %c0_33, %c0_34] : memref<1x16x16x16xf32, #tpu.memory_space<vmem>>, vector<1x16x16x16xf32>
    tpu.vector_store %arg4[%c0_31, %c0_32, %c0_33, %c0_34], %34 {strides = array<i32>} : memref<1x16x16x16xf32, #tpu.memory_space<vmem>>, vector<1x16x16x16xf32>,
    return
  }
  func.func @transform_0(%arg0: i32) -> (i32, i32, i32, i32) {
    %c0_i32 = arith.constant 0 : i32
    %c0_i32_0 = arith.constant 0 : i32
    %c0_i32_1 = arith.constant 0 : i32
    %c0_i32_2 = arith.constant 0 : i32
    return %arg0, %c0_i32, %c0_i32_0, %c0_i32_1 : i32, i32, i32, i32
  }
  func.func @transform_1(%arg0: i32) -> (i32, i32, i32) {
    %c0_i32 = arith.constant 0 : i32
    %c0_i32_0 = arith.constant 0 : i32
    %c0_i32_1 = arith.constant 0 : i32
    %c0_i32_2 = arith.constant 0 : i32
    return %c0_i32, %c0_i32_0, %c0_i32_1 : i32, i32, i32
  }
  func.func @transform_2(%arg0: i32) -> (i32, i32) {
    %c0_i32 = arith.constant 0 : i32
    %c0_i32_0 = arith.constant 0 : i32
    %c0_i32_1 = arith.constant 0 : i32
    return %c0_i32, %c0_i32_0 : i32, i32
  }
  func.func @transform_3(%arg0: i32) -> (i32, i32, i32, i32) {
    %c0_i32 = arith.constant 0 : i32
    %c0_i32_0 = arith.constant 0 : i32
    %c0_i32_1 = arith.constant 0 : i32
    %c0_i32_2 = arith.constant 0 : i32
    return %arg0, %c0_i32, %c0_i32_0, %c0_i32_1 : i32, i32, i32, i32
  }
}

module attributes {stable_mosaic.version = 11 : i64} {
  func.func @_conv2x2_kernel(%arg0: i32, %arg1: memref<1x9x9x64xbf16, #tpu.memory_space<vmem>>, %arg2: memref<4x64x32xbf16, #tpu.memory_space<vmem>>, %arg3: memref<1x32xf32, #tpu.memory_space<vmem>>, %arg4: memref<1x8x8x32xf32, #tpu.memory_space<vmem>>) attributes {dimension_semantics = [#tpu.dimension_semantics<parallel>], iteration_bounds = array<i64: 2>, scalar_prefetch = 0 : i64, scratch_operands = 0 : i64, tpu.core_type = #tpu.core_type<tc>, window_params = [{transform_indices = @transform_0, window_bounds = array<i64: 1, 9, 9, 64>}, {pipeline_mode = #tpu.pipeline_mode<synchronous>, transform_indices = @transform_1, window_bounds = array<i64: 4, 64, 32>}, {pipeline_mode = #tpu.pipeline_mode<synchronous>, transform_indices = @transform_2, window_bounds = array<i64: 1, 32>}, {transform_indices = @transform_3, window_bounds = array<i64: 1, 8, 8, 32>}]} {
    %cst = arith.constant 0.000000e+00 : f32
    %0 = vector.broadcast %cst : f32 to vector<64x32xf32>
    %c0 = arith.constant 0 : index
    %c0_0 = arith.constant 0 : index
    %c0_1 = arith.constant 0 : index
    %c0_2 = arith.constant 0 : index
    %1 = vector.load %arg1[%c0, %c0_0, %c0_1, %c0_2] : memref<1x9x9x64xbf16, #tpu.memory_space<vmem>>, vector<1x8x8x64xbf16>
    %2 = vector.shape_cast %1 : vector<1x8x8x64xbf16> to vector<8x8x64xbf16>
    %3 = vector.shape_cast %2 : vector<8x8x64xbf16> to vector<64x64xbf16>
    %c0_3 = arith.constant 0 : index
    %c0_4 = arith.constant 0 : index
    %c0_5 = arith.constant 0 : index
    %4 = vector.load %arg2[%c0_3, %c0_4, %c0_5] : memref<4x64x32xbf16, #tpu.memory_space<vmem>>, vector<1x64x32xbf16>
    %5 = vector.shape_cast %4 : vector<1x64x32xbf16> to vector<64x32xbf16>
    %cst_6 = arith.constant dense<0.000000e+00> : vector<64x32xf32>
    %6 = tpu.matmul %3, %5, %cst_6 {dimension_numbers = #tpu.dot_dimension_numbers<[1], [0], [0], [1], [0, 0, 1, 1], [], []>} : vector<64x64xbf16>, vector<64x32xbf16>, vector<64x32xf32> -> vector<64x32xf32>
    %7 = arith.addf %0, %6 : vector<64x32xf32>
    %c0_7 = arith.constant 0 : index
    %c0_8 = arith.constant 0 : index
    %c1 = arith.constant 1 : index
    %c0_9 = arith.constant 0 : index
    %8 = vector.load %arg1[%c0_7, %c0_8, %c1, %c0_9] : memref<1x9x9x64xbf16, #tpu.memory_space<vmem>>, vector<1x8x8x64xbf16>
    %9 = vector.shape_cast %8 : vector<1x8x8x64xbf16> to vector<8x8x64xbf16>
    %10 = vector.shape_cast %9 : vector<8x8x64xbf16> to vector<64x64xbf16>
    %c1_10 = arith.constant 1 : index
    %c0_11 = arith.constant 0 : index
    %c0_12 = arith.constant 0 : index
    %11 = vector.load %arg2[%c1_10, %c0_11, %c0_12] : memref<4x64x32xbf16, #tpu.memory_space<vmem>>, vector<1x64x32xbf16>
    %12 = vector.shape_cast %11 : vector<1x64x32xbf16> to vector<64x32xbf16>
    %cst_13 = arith.constant dense<0.000000e+00> : vector<64x32xf32>
    %13 = tpu.matmul %10, %12, %cst_13 {dimension_numbers = #tpu.dot_dimension_numbers<[1], [0], [0], [1], [0, 0, 1, 1], [], []>} : vector<64x64xbf16>, vector<64x32xbf16>, vector<64x32xf32> -> vector<64x32xf32>
    %14 = arith.addf %7, %13 : vector<64x32xf32>
    %c0_14 = arith.constant 0 : index
    %c1_15 = arith.constant 1 : index
    %c0_16 = arith.constant 0 : index
    %c0_17 = arith.constant 0 : index
    %15 = vector.load %arg1[%c0_14, %c1_15, %c0_16, %c0_17] : memref<1x9x9x64xbf16, #tpu.memory_space<vmem>>, vector<1x8x8x64xbf16>
    %16 = vector.shape_cast %15 : vector<1x8x8x64xbf16> to vector<8x8x64xbf16>
    %17 = vector.shape_cast %16 : vector<8x8x64xbf16> to vector<64x64xbf16>
    %c2 = arith.constant 2 : index
    %c0_18 = arith.constant 0 : index
    %c0_19 = arith.constant 0 : index
    %18 = vector.load %arg2[%c2, %c0_18, %c0_19] : memref<4x64x32xbf16, #tpu.memory_space<vmem>>, vector<1x64x32xbf16>
    %19 = vector.shape_cast %18 : vector<1x64x32xbf16> to vector<64x32xbf16>
    %cst_20 = arith.constant dense<0.000000e+00> : vector<64x32xf32>
    %20 = tpu.matmul %17, %19, %cst_20 {dimension_numbers = #tpu.dot_dimension_numbers<[1], [0], [0], [1], [0, 0, 1, 1], [], []>} : vector<64x64xbf16>, vector<64x32xbf16>, vector<64x32xf32> -> vector<64x32xf32>
    %21 = arith.addf %14, %20 : vector<64x32xf32>
    %c0_21 = arith.constant 0 : index
    %c1_22 = arith.constant 1 : index
    %c1_23 = arith.constant 1 : index
    %c0_24 = arith.constant 0 : index
    %22 = vector.load %arg1[%c0_21, %c1_22, %c1_23, %c0_24] : memref<1x9x9x64xbf16, #tpu.memory_space<vmem>>, vector<1x8x8x64xbf16>
    %23 = vector.shape_cast %22 : vector<1x8x8x64xbf16> to vector<8x8x64xbf16>
    %24 = vector.shape_cast %23 : vector<8x8x64xbf16> to vector<64x64xbf16>
    %c3 = arith.constant 3 : index
    %c0_25 = arith.constant 0 : index
    %c0_26 = arith.constant 0 : index
    %25 = vector.load %arg2[%c3, %c0_25, %c0_26] : memref<4x64x32xbf16, #tpu.memory_space<vmem>>, vector<1x64x32xbf16>
    %26 = vector.shape_cast %25 : vector<1x64x32xbf16> to vector<64x32xbf16>
    %cst_27 = arith.constant dense<0.000000e+00> : vector<64x32xf32>
    %27 = tpu.matmul %24, %26, %cst_27 {dimension_numbers = #tpu.dot_dimension_numbers<[1], [0], [0], [1], [0, 0, 1, 1], [], []>} : vector<64x64xbf16>, vector<64x32xbf16>, vector<64x32xf32> -> vector<64x32xf32>
    %28 = arith.addf %21, %27 : vector<64x32xf32>
    %c0_28 = arith.constant 0 : index
    %c0_29 = arith.constant 0 : index
    %29 = vector.load %arg3[%c0_28, %c0_29] : memref<1x32xf32, #tpu.memory_space<vmem>>, vector<1x32xf32>
    %30 = vector.broadcast %29 : vector<1x32xf32> to vector<64x32xf32>
    %31 = arith.addf %28, %30 : vector<64x32xf32>
    %cst_30 = arith.constant 0.000000e+00 : f32
    %32 = vector.broadcast %cst_30 : f32 to vector<64x32xf32>
    %33 = arith.maximumf %31, %32 : vector<64x32xf32>
    %34 = vector.shape_cast %33 : vector<64x32xf32> to vector<1x8x8x32xf32>
    %c0_31 = arith.constant 0 : index
    %c0_32 = arith.constant 0 : index
    %c0_33 = arith.constant 0 : index
    %c0_34 = arith.constant 0 : index
    %35 = vector.load %arg4[%c0_31, %c0_32, %c0_33, %c0_34] : memref<1x8x8x32xf32, #tpu.memory_space<vmem>>, vector<1x8x8x32xf32>
    tpu.vector_store %arg4[%c0_31, %c0_32, %c0_33, %c0_34], %34 {strides = array<i32>} : memref<1x8x8x32xf32, #tpu.memory_space<vmem>>, vector<1x8x8x32xf32>,
    return
  }
  func.func @transform_0(%arg0: i32) -> (i32, i32, i32, i32) {
    %c0_i32 = arith.constant 0 : i32
    %c0_i32_0 = arith.constant 0 : i32
    %c0_i32_1 = arith.constant 0 : i32
    %c0_i32_2 = arith.constant 0 : i32
    return %arg0, %c0_i32, %c0_i32_0, %c0_i32_1 : i32, i32, i32, i32
  }
  func.func @transform_1(%arg0: i32) -> (i32, i32, i32) {
    %c0_i32 = arith.constant 0 : i32
    %c0_i32_0 = arith.constant 0 : i32
    %c0_i32_1 = arith.constant 0 : i32
    %c0_i32_2 = arith.constant 0 : i32
    return %c0_i32, %c0_i32_0, %c0_i32_1 : i32, i32, i32
  }
  func.func @transform_2(%arg0: i32) -> (i32, i32) {
    %c0_i32 = arith.constant 0 : i32
    %c0_i32_0 = arith.constant 0 : i32
    %c0_i32_1 = arith.constant 0 : i32
    return %c0_i32, %c0_i32_0 : i32, i32
  }
  func.func @transform_3(%arg0: i32) -> (i32, i32, i32, i32) {
    %c0_i32 = arith.constant 0 : i32
    %c0_i32_0 = arith.constant 0 : i32
    %c0_i32_1 = arith.constant 0 : i32
    %c0_i32_2 = arith.constant 0 : i32
    return %arg0, %c0_i32, %c0_i32_0, %c0_i32_1 : i32, i32, i32, i32
  }
}

module attributes {stable_mosaic.version = 11 : i64} {
  func.func @_conv2x2_kernel(%arg0: i32, %arg1: memref<1x5x5x128xbf16, #tpu.memory_space<vmem>>, %arg2: memref<4x128x64xbf16, #tpu.memory_space<vmem>>, %arg3: memref<1x64xf32, #tpu.memory_space<vmem>>, %arg4: memref<1x4x4x64xf32, #tpu.memory_space<vmem>>) attributes {dimension_semantics = [#tpu.dimension_semantics<parallel>], iteration_bounds = array<i64: 2>, scalar_prefetch = 0 : i64, scratch_operands = 0 : i64, tpu.core_type = #tpu.core_type<tc>, window_params = [{transform_indices = @transform_0, window_bounds = array<i64: 1, 5, 5, 128>}, {pipeline_mode = #tpu.pipeline_mode<synchronous>, transform_indices = @transform_1, window_bounds = array<i64: 4, 128, 64>}, {pipeline_mode = #tpu.pipeline_mode<synchronous>, transform_indices = @transform_2, window_bounds = array<i64: 1, 64>}, {transform_indices = @transform_3, window_bounds = array<i64: 1, 4, 4, 64>}]} {
    %cst = arith.constant 0.000000e+00 : f32
    %0 = vector.broadcast %cst : f32 to vector<16x64xf32>
    %c0 = arith.constant 0 : index
    %c0_0 = arith.constant 0 : index
    %c0_1 = arith.constant 0 : index
    %c0_2 = arith.constant 0 : index
    %1 = vector.load %arg1[%c0, %c0_0, %c0_1, %c0_2] : memref<1x5x5x128xbf16, #tpu.memory_space<vmem>>, vector<1x4x4x128xbf16>
    %2 = vector.shape_cast %1 : vector<1x4x4x128xbf16> to vector<4x4x128xbf16>
    %3 = vector.shape_cast %2 : vector<4x4x128xbf16> to vector<16x128xbf16>
    %c0_3 = arith.constant 0 : index
    %c0_4 = arith.constant 0 : index
    %c0_5 = arith.constant 0 : index
    %4 = vector.load %arg2[%c0_3, %c0_4, %c0_5] : memref<4x128x64xbf16, #tpu.memory_space<vmem>>, vector<1x128x64xbf16>
    %5 = vector.shape_cast %4 : vector<1x128x64xbf16> to vector<128x64xbf16>
    %cst_6 = arith.constant dense<0.000000e+00> : vector<16x64xf32>
    %6 = tpu.matmul %3, %5, %cst_6 {dimension_numbers = #tpu.dot_dimension_numbers<[1], [0], [0], [1], [0, 0, 1, 1], [], []>} : vector<16x128xbf16>, vector<128x64xbf16>, vector<16x64xf32> -> vector<16x64xf32>
    %7 = arith.addf %0, %6 : vector<16x64xf32>
    %c0_7 = arith.constant 0 : index
    %c0_8 = arith.constant 0 : index
    %c1 = arith.constant 1 : index
    %c0_9 = arith.constant 0 : index
    %8 = vector.load %arg1[%c0_7, %c0_8, %c1, %c0_9] : memref<1x5x5x128xbf16, #tpu.memory_space<vmem>>, vector<1x4x4x128xbf16>
    %9 = vector.shape_cast %8 : vector<1x4x4x128xbf16> to vector<4x4x128xbf16>
    %10 = vector.shape_cast %9 : vector<4x4x128xbf16> to vector<16x128xbf16>
    %c1_10 = arith.constant 1 : index
    %c0_11 = arith.constant 0 : index
    %c0_12 = arith.constant 0 : index
    %11 = vector.load %arg2[%c1_10, %c0_11, %c0_12] : memref<4x128x64xbf16, #tpu.memory_space<vmem>>, vector<1x128x64xbf16>
    %12 = vector.shape_cast %11 : vector<1x128x64xbf16> to vector<128x64xbf16>
    %cst_13 = arith.constant dense<0.000000e+00> : vector<16x64xf32>
    %13 = tpu.matmul %10, %12, %cst_13 {dimension_numbers = #tpu.dot_dimension_numbers<[1], [0], [0], [1], [0, 0, 1, 1], [], []>} : vector<16x128xbf16>, vector<128x64xbf16>, vector<16x64xf32> -> vector<16x64xf32>
    %14 = arith.addf %7, %13 : vector<16x64xf32>
    %c0_14 = arith.constant 0 : index
    %c1_15 = arith.constant 1 : index
    %c0_16 = arith.constant 0 : index
    %c0_17 = arith.constant 0 : index
    %15 = vector.load %arg1[%c0_14, %c1_15, %c0_16, %c0_17] : memref<1x5x5x128xbf16, #tpu.memory_space<vmem>>, vector<1x4x4x128xbf16>
    %16 = vector.shape_cast %15 : vector<1x4x4x128xbf16> to vector<4x4x128xbf16>
    %17 = vector.shape_cast %16 : vector<4x4x128xbf16> to vector<16x128xbf16>
    %c2 = arith.constant 2 : index
    %c0_18 = arith.constant 0 : index
    %c0_19 = arith.constant 0 : index
    %18 = vector.load %arg2[%c2, %c0_18, %c0_19] : memref<4x128x64xbf16, #tpu.memory_space<vmem>>, vector<1x128x64xbf16>
    %19 = vector.shape_cast %18 : vector<1x128x64xbf16> to vector<128x64xbf16>
    %cst_20 = arith.constant dense<0.000000e+00> : vector<16x64xf32>
    %20 = tpu.matmul %17, %19, %cst_20 {dimension_numbers = #tpu.dot_dimension_numbers<[1], [0], [0], [1], [0, 0, 1, 1], [], []>} : vector<16x128xbf16>, vector<128x64xbf16>, vector<16x64xf32> -> vector<16x64xf32>
    %21 = arith.addf %14, %20 : vector<16x64xf32>
    %c0_21 = arith.constant 0 : index
    %c1_22 = arith.constant 1 : index
    %c1_23 = arith.constant 1 : index
    %c0_24 = arith.constant 0 : index
    %22 = vector.load %arg1[%c0_21, %c1_22, %c1_23, %c0_24] : memref<1x5x5x128xbf16, #tpu.memory_space<vmem>>, vector<1x4x4x128xbf16>
    %23 = vector.shape_cast %22 : vector<1x4x4x128xbf16> to vector<4x4x128xbf16>
    %24 = vector.shape_cast %23 : vector<4x4x128xbf16> to vector<16x128xbf16>
    %c3 = arith.constant 3 : index
    %c0_25 = arith.constant 0 : index
    %c0_26 = arith.constant 0 : index
    %25 = vector.load %arg2[%c3, %c0_25, %c0_26] : memref<4x128x64xbf16, #tpu.memory_space<vmem>>, vector<1x128x64xbf16>
    %26 = vector.shape_cast %25 : vector<1x128x64xbf16> to vector<128x64xbf16>
    %cst_27 = arith.constant dense<0.000000e+00> : vector<16x64xf32>
    %27 = tpu.matmul %24, %26, %cst_27 {dimension_numbers = #tpu.dot_dimension_numbers<[1], [0], [0], [1], [0, 0, 1, 1], [], []>} : vector<16x128xbf16>, vector<128x64xbf16>, vector<16x64xf32> -> vector<16x64xf32>
    %28 = arith.addf %21, %27 : vector<16x64xf32>
    %c0_28 = arith.constant 0 : index
    %c0_29 = arith.constant 0 : index
    %29 = vector.load %arg3[%c0_28, %c0_29] : memref<1x64xf32, #tpu.memory_space<vmem>>, vector<1x64xf32>
    %30 = vector.broadcast %29 : vector<1x64xf32> to vector<16x64xf32>
    %31 = arith.addf %28, %30 : vector<16x64xf32>
    %cst_30 = arith.constant 0.000000e+00 : f32
    %32 = vector.broadcast %cst_30 : f32 to vector<16x64xf32>
    %33 = arith.maximumf %31, %32 : vector<16x64xf32>
    %34 = vector.shape_cast %33 : vector<16x64xf32> to vector<1x4x4x64xf32>
    %c0_31 = arith.constant 0 : index
    %c0_32 = arith.constant 0 : index
    %c0_33 = arith.constant 0 : index
    %c0_34 = arith.constant 0 : index
    %35 = vector.load %arg4[%c0_31, %c0_32, %c0_33, %c0_34] : memref<1x4x4x64xf32, #tpu.memory_space<vmem>>, vector<1x4x4x64xf32>
    tpu.vector_store %arg4[%c0_31, %c0_32, %c0_33, %c0_34], %34 {strides = array<i32>} : memref<1x4x4x64xf32, #tpu.memory_space<vmem>>, vector<1x4x4x64xf32>,
    return
  }
  func.func @transform_0(%arg0: i32) -> (i32, i32, i32, i32) {
    %c0_i32 = arith.constant 0 : i32
    %c0_i32_0 = arith.constant 0 : i32
    %c0_i32_1 = arith.constant 0 : i32
    %c0_i32_2 = arith.constant 0 : i32
    return %arg0, %c0_i32, %c0_i32_0, %c0_i32_1 : i32, i32, i32, i32
  }
  func.func @transform_1(%arg0: i32) -> (i32, i32, i32) {
    %c0_i32 = arith.constant 0 : i32
    %c0_i32_0 = arith.constant 0 : i32
    %c0_i32_1 = arith.constant 0 : i32
    %c0_i32_2 = arith.constant 0 : i32
    return %c0_i32, %c0_i32_0, %c0_i32_1 : i32, i32, i32
  }
  func.func @transform_2(%arg0: i32) -> (i32, i32) {
    %c0_i32 = arith.constant 0 : i32
    %c0_i32_0 = arith.constant 0 : i32
    %c0_i32_1 = arith.constant 0 : i32
    return %c0_i32, %c0_i32_0 : i32, i32
  }
  func.func @transform_3(%arg0: i32) -> (i32, i32, i32, i32) {
    %c0_i32 = arith.constant 0 : i32
    %c0_i32_0 = arith.constant 0 : i32
    %c0_i32_1 = arith.constant 0 : i32
    %c0_i32_2 = arith.constant 0 : i32
    return %arg0, %c0_i32, %c0_i32_0, %c0_i32_1 : i32, i32, i32, i32
  }
}

module attributes {stable_mosaic.version = 11 : i64} {
  func.func @_rpn_tail_kernel(%arg0: i32, %arg1: memref<1x4x4x64xbf16, #tpu.memory_space<vmem>>, %arg2: memref<64x64xbf16, #tpu.memory_space<vmem>>, %arg3: memref<1x64xf32, #tpu.memory_space<vmem>>, %arg4: memref<9x64x64xbf16, #tpu.memory_space<vmem>>, %arg5: memref<1x64xf32, #tpu.memory_space<vmem>>, %arg6: memref<64x64xbf16, #tpu.memory_space<vmem>>, %arg7: memref<1x64xf32, #tpu.memory_space<vmem>>, %arg8: memref<64x64xbf16, #tpu.memory_space<vmem>>, %arg9: memref<1x64xf32, #tpu.memory_space<vmem>>, %arg10: memref<9x64x150xbf16, #tpu.memory_space<vmem>>, %arg11: memref<1x150xf32, #tpu.memory_space<vmem>>, %arg12: memref<1x4x4x150xf32, #tpu.memory_space<vmem>>, %arg13: memref<8x8x64xbf16, #tpu.memory_space<vmem>>) attributes {dimension_semantics = [#tpu.dimension_semantics<parallel>], iteration_bounds = array<i64: 2>, scalar_prefetch = 0 : i64, scratch_operands = 1 : i64, tpu.core_type = #tpu.core_type<tc>, window_params = [{transform_indices = @transform_0, window_bounds = array<i64: 1, 4, 4, 64>}, {pipeline_mode = #tpu.pipeline_mode<synchronous>, transform_indices = @transform_1, window_bounds = array<i64: 64, 64>}, {pipeline_mode = #tpu.pipeline_mode<synchronous>, transform_indices = @transform_2, window_bounds = array<i64: 1, 64>}, {pipeline_mode = #tpu.pipeline_mode<synchronous>, transform_indices = @transform_3, window_bounds = array<i64: 9, 64, 64>}, {pipeline_mode = #tpu.pipeline_mode<synchronous>, transform_indices = @transform_4, window_bounds = array<i64: 1, 64>}, {pipeline_mode = #tpu.pipeline_mode<synchronous>, transform_indices = @transform_5, window_bounds = array<i64: 64, 64>}, {pipeline_mode = #tpu.pipeline_mode<synchronous>, transform_indices = @transform_6, window_bounds = array<i64: 1, 64>}, {pipeline_mode = #tpu.pipeline_mode<synchronous>, transform_indices = @transform_7, window_bounds = array<i64: 64, 64>}, {pipeline_mode = #tpu.pipeline_mode<synchronous>, transform_indices = @transform_8, window_bounds = array<i64: 1, 64>}, {pipeline_mode = #tpu.pipeline_mode<synchronous>, transform_indices = @transform_9, window_bounds = array<i64: 9, 64, 150>}, {pipeline_mode = #tpu.pipeline_mode<synchronous>, transform_indices = @transform_10, window_bounds = array<i64: 1, 150>}, {transform_indices = @transform_11, window_bounds = array<i64: 1, 4, 4, 150>}]} {
    %c0 = arith.constant 0 : index
    %c0_0 = arith.constant 0 : index
    %c0_1 = arith.constant 0 : index
    %c0_2 = arith.constant 0 : index
    %0 = vector.load %arg1[%c0, %c0_0, %c0_1, %c0_2] : memref<1x4x4x64xbf16, #tpu.memory_space<vmem>>, vector<1x4x4x64xbf16>
    %1 = vector.shape_cast %0 : vector<1x4x4x64xbf16> to vector<4x4x64xbf16>
    %2 = vector.shape_cast %1 : vector<4x4x64xbf16> to vector<16x64xbf16>
    %c0_3 = arith.constant 0 : index
    %c0_4 = arith.constant 0 : index
    %3 = vector.load %arg2[%c0_3, %c0_4] : memref<64x64xbf16, #tpu.memory_space<vmem>>, vector<64x64xbf16>
    %cst = arith.constant dense<0.000000e+00> : vector<16x64xf32>
    %4 = tpu.matmul %2, %3, %cst {dimension_numbers = #tpu.dot_dimension_numbers<[1], [0], [0], [1], [0, 0, 1, 1], [], []>} : vector<16x64xbf16>, vector<64x64xbf16>, vector<16x64xf32> -> vector<16x64xf32>
    %c0_5 = arith.constant 0 : index
    %c0_6 = arith.constant 0 : index
    %5 = vector.load %arg3[%c0_5, %c0_6] : memref<1x64xf32, #tpu.memory_space<vmem>>, vector<1x64xf32>
    %6 = vector.broadcast %5 : vector<1x64xf32> to vector<16x64xf32>
    %7 = arith.addf %4, %6 : vector<16x64xf32>
    %cst_7 = arith.constant 0.000000e+00 : f32
    %8 = vector.broadcast %cst_7 : f32 to vector<16x64xf32>
    %9 = arith.maximumf %7, %8 : vector<16x64xf32>
    %cst_8 = arith.constant 0.000000e+00 : bf16
    %10 = vector.broadcast %cst_8 : bf16 to vector<8x8x64xbf16>
    %c0_9 = arith.constant 0 : index
    %c0_10 = arith.constant 0 : index
    %c0_11 = arith.constant 0 : index
    %11 = vector.load %arg13[%c0_9, %c0_10, %c0_11] : memref<8x8x64xbf16, #tpu.memory_space<vmem>>, vector<8x8x64xbf16>
    tpu.vector_store %arg13[%c0_9, %c0_10, %c0_11], %10 {strides = array<i32>} : memref<8x8x64xbf16, #tpu.memory_space<vmem>>, vector<8x8x64xbf16>,
    %12 = vector.shape_cast %9 : vector<16x64xf32> to vector<4x4x64xf32>
    %13 = arith.truncf %12 : vector<4x4x64xf32> to vector<4x4x64xbf16>
    %c2 = arith.constant 2 : index
    %c2_12 = arith.constant 2 : index
    %c0_13 = arith.constant 0 : index
    %14 = vector.load %arg13[%c2, %c2_12, %c0_13] : memref<8x8x64xbf16, #tpu.memory_space<vmem>>, vector<4x4x64xbf16>
    tpu.vector_store %arg13[%c2, %c2_12, %c0_13], %13 {strides = array<i32>} : memref<8x8x64xbf16, #tpu.memory_space<vmem>>, vector<4x4x64xbf16>,
    %cst_14 = arith.constant 0.000000e+00 : f32
    %15 = vector.broadcast %cst_14 : f32 to vector<16x64xf32>
    %c0_15 = arith.constant 0 : index
    %c0_16 = arith.constant 0 : index
    %c0_17 = arith.constant 0 : index
    %16 = vector.load %arg13[%c0_15, %c0_16, %c0_17] : memref<8x8x64xbf16, #tpu.memory_space<vmem>>, vector<4x4x64xbf16>
    %17 = vector.shape_cast %16 : vector<4x4x64xbf16> to vector<16x64xbf16>
    %c0_18 = arith.constant 0 : index
    %c0_19 = arith.constant 0 : index
    %c0_20 = arith.constant 0 : index
    %18 = vector.load %arg4[%c0_18, %c0_19, %c0_20] : memref<9x64x64xbf16, #tpu.memory_space<vmem>>, vector<1x64x64xbf16>
    %19 = vector.shape_cast %18 : vector<1x64x64xbf16> to vector<64x64xbf16>
    %cst_21 = arith.constant dense<0.000000e+00> : vector<16x64xf32>
    %20 = tpu.matmul %17, %19, %cst_21 {dimension_numbers = #tpu.dot_dimension_numbers<[1], [0], [0], [1], [0, 0, 1, 1], [], []>} : vector<16x64xbf16>, vector<64x64xbf16>, vector<16x64xf32> -> vector<16x64xf32>
    %21 = arith.addf %15, %20 : vector<16x64xf32>
    %c0_22 = arith.constant 0 : index
    %c2_23 = arith.constant 2 : index
    %c0_24 = arith.constant 0 : index
    %22 = vector.load %arg13[%c0_22, %c2_23, %c0_24] : memref<8x8x64xbf16, #tpu.memory_space<vmem>>, vector<4x4x64xbf16>
    %23 = vector.shape_cast %22 : vector<4x4x64xbf16> to vector<16x64xbf16>
    %c1 = arith.constant 1 : index
    %c0_25 = arith.constant 0 : index
    %c0_26 = arith.constant 0 : index
    %24 = vector.load %arg4[%c1, %c0_25, %c0_26] : memref<9x64x64xbf16, #tpu.memory_space<vmem>>, vector<1x64x64xbf16>
    %25 = vector.shape_cast %24 : vector<1x64x64xbf16> to vector<64x64xbf16>
    %cst_27 = arith.constant dense<0.000000e+00> : vector<16x64xf32>
    %26 = tpu.matmul %23, %25, %cst_27 {dimension_numbers = #tpu.dot_dimension_numbers<[1], [0], [0], [1], [0, 0, 1, 1], [], []>} : vector<16x64xbf16>, vector<64x64xbf16>, vector<16x64xf32> -> vector<16x64xf32>
    %27 = arith.addf %21, %26 : vector<16x64xf32>
    %c0_28 = arith.constant 0 : index
    %c4 = arith.constant 4 : index
    %c0_29 = arith.constant 0 : index
    %28 = vector.load %arg13[%c0_28, %c4, %c0_29] : memref<8x8x64xbf16, #tpu.memory_space<vmem>>, vector<4x4x64xbf16>
    %29 = vector.shape_cast %28 : vector<4x4x64xbf16> to vector<16x64xbf16>
    %c2_30 = arith.constant 2 : index
    %c0_31 = arith.constant 0 : index
    %c0_32 = arith.constant 0 : index
    %30 = vector.load %arg4[%c2_30, %c0_31, %c0_32] : memref<9x64x64xbf16, #tpu.memory_space<vmem>>, vector<1x64x64xbf16>
    %31 = vector.shape_cast %30 : vector<1x64x64xbf16> to vector<64x64xbf16>
    %cst_33 = arith.constant dense<0.000000e+00> : vector<16x64xf32>
    %32 = tpu.matmul %29, %31, %cst_33 {dimension_numbers = #tpu.dot_dimension_numbers<[1], [0], [0], [1], [0, 0, 1, 1], [], []>} : vector<16x64xbf16>, vector<64x64xbf16>, vector<16x64xf32> -> vector<16x64xf32>
    %33 = arith.addf %27, %32 : vector<16x64xf32>
    %c2_34 = arith.constant 2 : index
    %c0_35 = arith.constant 0 : index
    %c0_36 = arith.constant 0 : index
    %34 = vector.load %arg13[%c2_34, %c0_35, %c0_36] : memref<8x8x64xbf16, #tpu.memory_space<vmem>>, vector<4x4x64xbf16>
    %35 = vector.shape_cast %34 : vector<4x4x64xbf16> to vector<16x64xbf16>
    %c3 = arith.constant 3 : index
    %c0_37 = arith.constant 0 : index
    %c0_38 = arith.constant 0 : index
    %36 = vector.load %arg4[%c3, %c0_37, %c0_38] : memref<9x64x64xbf16, #tpu.memory_space<vmem>>, vector<1x64x64xbf16>
    %37 = vector.shape_cast %36 : vector<1x64x64xbf16> to vector<64x64xbf16>
    %cst_39 = arith.constant dense<0.000000e+00> : vector<16x64xf32>
    %38 = tpu.matmul %35, %37, %cst_39 {dimension_numbers = #tpu.dot_dimension_numbers<[1], [0], [0], [1], [0, 0, 1, 1], [], []>} : vector<16x64xbf16>, vector<64x64xbf16>, vector<16x64xf32> -> vector<16x64xf32>
    %39 = arith.addf %33, %38 : vector<16x64xf32>
    %c2_40 = arith.constant 2 : index
    %c2_41 = arith.constant 2 : index
    %c0_42 = arith.constant 0 : index
    %40 = vector.load %arg13[%c2_40, %c2_41, %c0_42] : memref<8x8x64xbf16, #tpu.memory_space<vmem>>, vector<4x4x64xbf16>
    %41 = vector.shape_cast %40 : vector<4x4x64xbf16> to vector<16x64xbf16>
    %c4_43 = arith.constant 4 : index
    %c0_44 = arith.constant 0 : index
    %c0_45 = arith.constant 0 : index
    %42 = vector.load %arg4[%c4_43, %c0_44, %c0_45] : memref<9x64x64xbf16, #tpu.memory_space<vmem>>, vector<1x64x64xbf16>
    %43 = vector.shape_cast %42 : vector<1x64x64xbf16> to vector<64x64xbf16>
    %cst_46 = arith.constant dense<0.000000e+00> : vector<16x64xf32>
    %44 = tpu.matmul %41, %43, %cst_46 {dimension_numbers = #tpu.dot_dimension_numbers<[1], [0], [0], [1], [0, 0, 1, 1], [], []>} : vector<16x64xbf16>, vector<64x64xbf16>, vector<16x64xf32> -> vector<16x64xf32>
    %45 = arith.addf %39, %44 : vector<16x64xf32>
    %c2_47 = arith.constant 2 : index
    %c4_48 = arith.constant 4 : index
    %c0_49 = arith.constant 0 : index
    %46 = vector.load %arg13[%c2_47, %c4_48, %c0_49] : memref<8x8x64xbf16, #tpu.memory_space<vmem>>, vector<4x4x64xbf16>
    %47 = vector.shape_cast %46 : vector<4x4x64xbf16> to vector<16x64xbf16>
    %c5 = arith.constant 5 : index
    %c0_50 = arith.constant 0 : index
    %c0_51 = arith.constant 0 : index
    %48 = vector.load %arg4[%c5, %c0_50, %c0_51] : memref<9x64x64xbf16, #tpu.memory_space<vmem>>, vector<1x64x64xbf16>
    %49 = vector.shape_cast %48 : vector<1x64x64xbf16> to vector<64x64xbf16>
    %cst_52 = arith.constant dense<0.000000e+00> : vector<16x64xf32>
    %50 = tpu.matmul %47, %49, %cst_52 {dimension_numbers = #tpu.dot_dimension_numbers<[1], [0], [0], [1], [0, 0, 1, 1], [], []>} : vector<16x64xbf16>, vector<64x64xbf16>, vector<16x64xf32> -> vector<16x64xf32>
    %51 = arith.addf %45, %50 : vector<16x64xf32>
    %c4_53 = arith.constant 4 : index
    %c0_54 = arith.constant 0 : index
    %c0_55 = arith.constant 0 : index
    %52 = vector.load %arg13[%c4_53, %c0_54, %c0_55] : memref<8x8x64xbf16, #tpu.memory_space<vmem>>, vector<4x4x64xbf16>
    %53 = vector.shape_cast %52 : vector<4x4x64xbf16> to vector<16x64xbf16>
    %c6 = arith.constant 6 : index
    %c0_56 = arith.constant 0 : index
    %c0_57 = arith.constant 0 : index
    %54 = vector.load %arg4[%c6, %c0_56, %c0_57] : memref<9x64x64xbf16, #tpu.memory_space<vmem>>, vector<1x64x64xbf16>
    %55 = vector.shape_cast %54 : vector<1x64x64xbf16> to vector<64x64xbf16>
    %cst_58 = arith.constant dense<0.000000e+00> : vector<16x64xf32>
    %56 = tpu.matmul %53, %55, %cst_58 {dimension_numbers = #tpu.dot_dimension_numbers<[1], [0], [0], [1], [0, 0, 1, 1], [], []>} : vector<16x64xbf16>, vector<64x64xbf16>, vector<16x64xf32> -> vector<16x64xf32>
    %57 = arith.addf %51, %56 : vector<16x64xf32>
    %c4_59 = arith.constant 4 : index
    %c2_60 = arith.constant 2 : index
    %c0_61 = arith.constant 0 : index
    %58 = vector.load %arg13[%c4_59, %c2_60, %c0_61] : memref<8x8x64xbf16, #tpu.memory_space<vmem>>, vector<4x4x64xbf16>
    %59 = vector.shape_cast %58 : vector<4x4x64xbf16> to vector<16x64xbf16>
    %c7 = arith.constant 7 : index
    %c0_62 = arith.constant 0 : index
    %c0_63 = arith.constant 0 : index
    %60 = vector.load %arg4[%c7, %c0_62, %c0_63] : memref<9x64x64xbf16, #tpu.memory_space<vmem>>, vector<1x64x64xbf16>
    %61 = vector.shape_cast %60 : vector<1x64x64xbf16> to vector<64x64xbf16>
    %cst_64 = arith.constant dense<0.000000e+00> : vector<16x64xf32>
    %62 = tpu.matmul %59, %61, %cst_64 {dimension_numbers = #tpu.dot_dimension_numbers<[1], [0], [0], [1], [0, 0, 1, 1], [], []>} : vector<16x64xbf16>, vector<64x64xbf16>, vector<16x64xf32> -> vector<16x64xf32>
    %63 = arith.addf %57, %62 : vector<16x64xf32>
    %c4_65 = arith.constant 4 : index
    %c4_66 = arith.constant 4 : index
    %c0_67 = arith.constant 0 : index
    %64 = vector.load %arg13[%c4_65, %c4_66, %c0_67] : memref<8x8x64xbf16, #tpu.memory_space<vmem>>, vector<4x4x64xbf16>
    %65 = vector.shape_cast %64 : vector<4x4x64xbf16> to vector<16x64xbf16>
    %c8 = arith.constant 8 : index
    %c0_68 = arith.constant 0 : index
    %c0_69 = arith.constant 0 : index
    %66 = vector.load %arg4[%c8, %c0_68, %c0_69] : memref<9x64x64xbf16, #tpu.memory_space<vmem>>, vector<1x64x64xbf16>
    %67 = vector.shape_cast %66 : vector<1x64x64xbf16> to vector<64x64xbf16>
    %cst_70 = arith.constant dense<0.000000e+00> : vector<16x64xf32>
    %68 = tpu.matmul %65, %67, %cst_70 {dimension_numbers = #tpu.dot_dimension_numbers<[1], [0], [0], [1], [0, 0, 1, 1], [], []>} : vector<16x64xbf16>, vector<64x64xbf16>, vector<16x64xf32> -> vector<16x64xf32>
    %69 = arith.addf %63, %68 : vector<16x64xf32>
    %c0_71 = arith.constant 0 : index
    %c0_72 = arith.constant 0 : index
    %70 = vector.load %arg5[%c0_71, %c0_72] : memref<1x64xf32, #tpu.memory_space<vmem>>, vector<1x64xf32>
    %71 = vector.broadcast %70 : vector<1x64xf32> to vector<16x64xf32>
    %72 = arith.addf %69, %71 : vector<16x64xf32>
    %cst_73 = arith.constant 0.000000e+00 : f32
    %73 = vector.broadcast %cst_73 : f32 to vector<16x64xf32>
    %74 = arith.maximumf %72, %73 : vector<16x64xf32>
    %75 = arith.truncf %74 : vector<16x64xf32> to vector<16x64xbf16>
    %c0_74 = arith.constant 0 : index
    %c0_75 = arith.constant 0 : index
    %76 = vector.load %arg6[%c0_74, %c0_75] : memref<64x64xbf16, #tpu.memory_space<vmem>>, vector<64x64xbf16>
    %cst_76 = arith.constant dense<0.000000e+00> : vector<16x64xf32>
    %77 = tpu.matmul %75, %76, %cst_76 {dimension_numbers = #tpu.dot_dimension_numbers<[1], [0], [0], [1], [0, 0, 1, 1], [], []>} : vector<16x64xbf16>, vector<64x64xbf16>, vector<16x64xf32> -> vector<16x64xf32>
    %c0_77 = arith.constant 0 : index
    %c0_78 = arith.constant 0 : index
    %78 = vector.load %arg7[%c0_77, %c0_78] : memref<1x64xf32, #tpu.memory_space<vmem>>, vector<1x64xf32>
    %79 = vector.broadcast %78 : vector<1x64xf32> to vector<16x64xf32>
    %80 = arith.addf %77, %79 : vector<16x64xf32>
    %c0_79 = arith.constant 0 : index
    %c0_80 = arith.constant 0 : index
    %81 = vector.load %arg8[%c0_79, %c0_80] : memref<64x64xbf16, #tpu.memory_space<vmem>>, vector<64x64xbf16>
    %cst_81 = arith.constant dense<0.000000e+00> : vector<16x64xf32>
    %82 = tpu.matmul %2, %81, %cst_81 {dimension_numbers = #tpu.dot_dimension_numbers<[1], [0], [0], [1], [0, 0, 1, 1], [], []>} : vector<16x64xbf16>, vector<64x64xbf16>, vector<16x64xf32> -> vector<16x64xf32>
    %c0_82 = arith.constant 0 : index
    %c0_83 = arith.constant 0 : index
    %83 = vector.load %arg9[%c0_82, %c0_83] : memref<1x64xf32, #tpu.memory_space<vmem>>, vector<1x64xf32>
    %84 = vector.broadcast %83 : vector<1x64xf32> to vector<16x64xf32>
    %85 = arith.addf %82, %84 : vector<16x64xf32>
    %86 = arith.addf %80, %85 : vector<16x64xf32>
    %cst_84 = arith.constant 0.000000e+00 : f32
    %87 = vector.broadcast %cst_84 : f32 to vector<16x64xf32>
    %88 = arith.maximumf %86, %87 : vector<16x64xf32>
    %89 = vector.shape_cast %88 : vector<16x64xf32> to vector<4x4x64xf32>
    %90 = arith.truncf %89 : vector<4x4x64xf32> to vector<4x4x64xbf16>
    %c2_85 = arith.constant 2 : index
    %c2_86 = arith.constant 2 : index
    %c0_87 = arith.constant 0 : index
    %91 = vector.load %arg13[%c2_85, %c2_86, %c0_87] : memref<8x8x64xbf16, #tpu.memory_space<vmem>>, vector<4x4x64xbf16>
    tpu.vector_store %arg13[%c2_85, %c2_86, %c0_87], %90 {strides = array<i32>} : memref<8x8x64xbf16, #tpu.memory_space<vmem>>, vector<4x4x64xbf16>,
    %cst_88 = arith.constant 0.000000e+00 : f32
    %92 = vector.broadcast %cst_88 : f32 to vector<16x150xf32>
    %c1_89 = arith.constant 1 : index
    %c1_90 = arith.constant 1 : index
    %c0_91 = arith.constant 0 : index
    %93 = vector.load %arg13[%c1_89, %c1_90, %c0_91] : memref<8x8x64xbf16, #tpu.memory_space<vmem>>, vector<4x4x64xbf16>
    %94 = vector.shape_cast %93 : vector<4x4x64xbf16> to vector<16x64xbf16>
    %c0_92 = arith.constant 0 : index
    %c0_93 = arith.constant 0 : index
    %c0_94 = arith.constant 0 : index
    %95 = vector.load %arg10[%c0_92, %c0_93, %c0_94] : memref<9x64x150xbf16, #tpu.memory_space<vmem>>, vector<1x64x150xbf16>
    %96 = vector.shape_cast %95 : vector<1x64x150xbf16> to vector<64x150xbf16>
    %cst_95 = arith.constant dense<0.000000e+00> : vector<16x150xf32>
    %97 = tpu.matmul %94, %96, %cst_95 {dimension_numbers = #tpu.dot_dimension_numbers<[1], [0], [0], [1], [0, 0, 1, 1], [], []>} : vector<16x64xbf16>, vector<64x150xbf16>, vector<16x150xf32> -> vector<16x150xf32>
    %98 = arith.addf %92, %97 : vector<16x150xf32>
    %c1_96 = arith.constant 1 : index
    %c2_97 = arith.constant 2 : index
    %c0_98 = arith.constant 0 : index
    %99 = vector.load %arg13[%c1_96, %c2_97, %c0_98] : memref<8x8x64xbf16, #tpu.memory_space<vmem>>, vector<4x4x64xbf16>
    %100 = vector.shape_cast %99 : vector<4x4x64xbf16> to vector<16x64xbf16>
    %c1_99 = arith.constant 1 : index
    %c0_100 = arith.constant 0 : index
    %c0_101 = arith.constant 0 : index
    %101 = vector.load %arg10[%c1_99, %c0_100, %c0_101] : memref<9x64x150xbf16, #tpu.memory_space<vmem>>, vector<1x64x150xbf16>
    %102 = vector.shape_cast %101 : vector<1x64x150xbf16> to vector<64x150xbf16>
    %cst_102 = arith.constant dense<0.000000e+00> : vector<16x150xf32>
    %103 = tpu.matmul %100, %102, %cst_102 {dimension_numbers = #tpu.dot_dimension_numbers<[1], [0], [0], [1], [0, 0, 1, 1], [], []>} : vector<16x64xbf16>, vector<64x150xbf16>, vector<16x150xf32> -> vector<16x150xf32>
    %104 = arith.addf %98, %103 : vector<16x150xf32>
    %c1_103 = arith.constant 1 : index
    %c3_104 = arith.constant 3 : index
    %c0_105 = arith.constant 0 : index
    %105 = vector.load %arg13[%c1_103, %c3_104, %c0_105] : memref<8x8x64xbf16, #tpu.memory_space<vmem>>, vector<4x4x64xbf16>
    %106 = vector.shape_cast %105 : vector<4x4x64xbf16> to vector<16x64xbf16>
    %c2_106 = arith.constant 2 : index
    %c0_107 = arith.constant 0 : index
    %c0_108 = arith.constant 0 : index
    %107 = vector.load %arg10[%c2_106, %c0_107, %c0_108] : memref<9x64x150xbf16, #tpu.memory_space<vmem>>, vector<1x64x150xbf16>
    %108 = vector.shape_cast %107 : vector<1x64x150xbf16> to vector<64x150xbf16>
    %cst_109 = arith.constant dense<0.000000e+00> : vector<16x150xf32>
    %109 = tpu.matmul %106, %108, %cst_109 {dimension_numbers = #tpu.dot_dimension_numbers<[1], [0], [0], [1], [0, 0, 1, 1], [], []>} : vector<16x64xbf16>, vector<64x150xbf16>, vector<16x150xf32> -> vector<16x150xf32>
    %110 = arith.addf %104, %109 : vector<16x150xf32>
    %c2_110 = arith.constant 2 : index
    %c1_111 = arith.constant 1 : index
    %c0_112 = arith.constant 0 : index
    %111 = vector.load %arg13[%c2_110, %c1_111, %c0_112] : memref<8x8x64xbf16, #tpu.memory_space<vmem>>, vector<4x4x64xbf16>
    %112 = vector.shape_cast %111 : vector<4x4x64xbf16> to vector<16x64xbf16>
    %c3_113 = arith.constant 3 : index
    %c0_114 = arith.constant 0 : index
    %c0_115 = arith.constant 0 : index
    %113 = vector.load %arg10[%c3_113, %c0_114, %c0_115] : memref<9x64x150xbf16, #tpu.memory_space<vmem>>, vector<1x64x150xbf16>
    %114 = vector.shape_cast %113 : vector<1x64x150xbf16> to vector<64x150xbf16>
    %cst_116 = arith.constant dense<0.000000e+00> : vector<16x150xf32>
    %115 = tpu.matmul %112, %114, %cst_116 {dimension_numbers = #tpu.dot_dimension_numbers<[1], [0], [0], [1], [0, 0, 1, 1], [], []>} : vector<16x64xbf16>, vector<64x150xbf16>, vector<16x150xf32> -> vector<16x150xf32>
    %116 = arith.addf %110, %115 : vector<16x150xf32>
    %c2_117 = arith.constant 2 : index
    %c2_118 = arith.constant 2 : index
    %c0_119 = arith.constant 0 : index
    %117 = vector.load %arg13[%c2_117, %c2_118, %c0_119] : memref<8x8x64xbf16, #tpu.memory_space<vmem>>, vector<4x4x64xbf16>
    %118 = vector.shape_cast %117 : vector<4x4x64xbf16> to vector<16x64xbf16>
    %c4_120 = arith.constant 4 : index
    %c0_121 = arith.constant 0 : index
    %c0_122 = arith.constant 0 : index
    %119 = vector.load %arg10[%c4_120, %c0_121, %c0_122] : memref<9x64x150xbf16, #tpu.memory_space<vmem>>, vector<1x64x150xbf16>
    %120 = vector.shape_cast %119 : vector<1x64x150xbf16> to vector<64x150xbf16>
    %cst_123 = arith.constant dense<0.000000e+00> : vector<16x150xf32>
    %121 = tpu.matmul %118, %120, %cst_123 {dimension_numbers = #tpu.dot_dimension_numbers<[1], [0], [0], [1], [0, 0, 1, 1], [], []>} : vector<16x64xbf16>, vector<64x150xbf16>, vector<16x150xf32> -> vector<16x150xf32>
    %122 = arith.addf %116, %121 : vector<16x150xf32>
    %c2_124 = arith.constant 2 : index
    %c3_125 = arith.constant 3 : index
    %c0_126 = arith.constant 0 : index
    %123 = vector.load %arg13[%c2_124, %c3_125, %c0_126] : memref<8x8x64xbf16, #tpu.memory_space<vmem>>, vector<4x4x64xbf16>
    %124 = vector.shape_cast %123 : vector<4x4x64xbf16> to vector<16x64xbf16>
    %c5_127 = arith.constant 5 : index
    %c0_128 = arith.constant 0 : index
    %c0_129 = arith.constant 0 : index
    %125 = vector.load %arg10[%c5_127, %c0_128, %c0_129] : memref<9x64x150xbf16, #tpu.memory_space<vmem>>, vector<1x64x150xbf16>
    %126 = vector.shape_cast %125 : vector<1x64x150xbf16> to vector<64x150xbf16>
    %cst_130 = arith.constant dense<0.000000e+00> : vector<16x150xf32>
    %127 = tpu.matmul %124, %126, %cst_130 {dimension_numbers = #tpu.dot_dimension_numbers<[1], [0], [0], [1], [0, 0, 1, 1], [], []>} : vector<16x64xbf16>, vector<64x150xbf16>, vector<16x150xf32> -> vector<16x150xf32>
    %128 = arith.addf %122, %127 : vector<16x150xf32>
    %c3_131 = arith.constant 3 : index
    %c1_132 = arith.constant 1 : index
    %c0_133 = arith.constant 0 : index
    %129 = vector.load %arg13[%c3_131, %c1_132, %c0_133] : memref<8x8x64xbf16, #tpu.memory_space<vmem>>, vector<4x4x64xbf16>
    %130 = vector.shape_cast %129 : vector<4x4x64xbf16> to vector<16x64xbf16>
    %c6_134 = arith.constant 6 : index
    %c0_135 = arith.constant 0 : index
    %c0_136 = arith.constant 0 : index
    %131 = vector.load %arg10[%c6_134, %c0_135, %c0_136] : memref<9x64x150xbf16, #tpu.memory_space<vmem>>, vector<1x64x150xbf16>
    %132 = vector.shape_cast %131 : vector<1x64x150xbf16> to vector<64x150xbf16>
    %cst_137 = arith.constant dense<0.000000e+00> : vector<16x150xf32>
    %133 = tpu.matmul %130, %132, %cst_137 {dimension_numbers = #tpu.dot_dimension_numbers<[1], [0], [0], [1], [0, 0, 1, 1], [], []>} : vector<16x64xbf16>, vector<64x150xbf16>, vector<16x150xf32> -> vector<16x150xf32>
    %134 = arith.addf %128, %133 : vector<16x150xf32>
    %c3_138 = arith.constant 3 : index
    %c2_139 = arith.constant 2 : index
    %c0_140 = arith.constant 0 : index
    %135 = vector.load %arg13[%c3_138, %c2_139, %c0_140] : memref<8x8x64xbf16, #tpu.memory_space<vmem>>, vector<4x4x64xbf16>
    %136 = vector.shape_cast %135 : vector<4x4x64xbf16> to vector<16x64xbf16>
    %c7_141 = arith.constant 7 : index
    %c0_142 = arith.constant 0 : index
    %c0_143 = arith.constant 0 : index
    %137 = vector.load %arg10[%c7_141, %c0_142, %c0_143] : memref<9x64x150xbf16, #tpu.memory_space<vmem>>, vector<1x64x150xbf16>
    %138 = vector.shape_cast %137 : vector<1x64x150xbf16> to vector<64x150xbf16>
    %cst_144 = arith.constant dense<0.000000e+00> : vector<16x150xf32>
    %139 = tpu.matmul %136, %138, %cst_144 {dimension_numbers = #tpu.dot_dimension_numbers<[1], [0], [0], [1], [0, 0, 1, 1], [], []>} : vector<16x64xbf16>, vector<64x150xbf16>, vector<16x150xf32> -> vector<16x150xf32>
    %140 = arith.addf %134, %139 : vector<16x150xf32>
    %c3_145 = arith.constant 3 : index
    %c3_146 = arith.constant 3 : index
    %c0_147 = arith.constant 0 : index
    %141 = vector.load %arg13[%c3_145, %c3_146, %c0_147] : memref<8x8x64xbf16, #tpu.memory_space<vmem>>, vector<4x4x64xbf16>
    %142 = vector.shape_cast %141 : vector<4x4x64xbf16> to vector<16x64xbf16>
    %c8_148 = arith.constant 8 : index
    %c0_149 = arith.constant 0 : index
    %c0_150 = arith.constant 0 : index
    %143 = vector.load %arg10[%c8_148, %c0_149, %c0_150] : memref<9x64x150xbf16, #tpu.memory_space<vmem>>, vector<1x64x150xbf16>
    %144 = vector.shape_cast %143 : vector<1x64x150xbf16> to vector<64x150xbf16>
    %cst_151 = arith.constant dense<0.000000e+00> : vector<16x150xf32>
    %145 = tpu.matmul %142, %144, %cst_151 {dimension_numbers = #tpu.dot_dimension_numbers<[1], [0], [0], [1], [0, 0, 1, 1], [], []>} : vector<16x64xbf16>, vector<64x150xbf16>, vector<16x150xf32> -> vector<16x150xf32>
    %146 = arith.addf %140, %145 : vector<16x150xf32>
    %c0_152 = arith.constant 0 : index
    %c0_153 = arith.constant 0 : index
    %147 = vector.load %arg11[%c0_152, %c0_153] : memref<1x150xf32, #tpu.memory_space<vmem>>, vector<1x150xf32>
    %148 = vector.broadcast %147 : vector<1x150xf32> to vector<16x150xf32>
    %149 = arith.addf %146, %148 : vector<16x150xf32>
    %150 = vector.shape_cast %149 : vector<16x150xf32> to vector<1x4x4x150xf32>
    %c0_154 = arith.constant 0 : index
    %c0_155 = arith.constant 0 : index
    %c0_156 = arith.constant 0 : index
    %c0_157 = arith.constant 0 : index
    %151 = vector.load %arg12[%c0_154, %c0_155, %c0_156, %c0_157] : memref<1x4x4x150xf32, #tpu.memory_space<vmem>>, vector<1x4x4x150xf32>
    tpu.vector_store %arg12[%c0_154, %c0_155, %c0_156, %c0_157], %150 {strides = array<i32>} : memref<1x4x4x150xf32, #tpu.memory_space<vmem>>, vector<1x4x4x150xf32>,
    return
  }
  func.func @transform_0(%arg0: i32) -> (i32, i32, i32, i32) {
    %c0_i32 = arith.constant 0 : i32
    %c0_i32_0 = arith.constant 0 : i32
    %c0_i32_1 = arith.constant 0 : i32
    %c0_i32_2 = arith.constant 0 : i32
    return %arg0, %c0_i32, %c0_i32_0, %c0_i32_1 : i32, i32, i32, i32
  }
  func.func @transform_1(%arg0: i32) -> (i32, i32) {
    %c0_i32 = arith.constant 0 : i32
    %c0_i32_0 = arith.constant 0 : i32
    %c0_i32_1 = arith.constant 0 : i32
    return %c0_i32, %c0_i32_0 : i32, i32
  }
  func.func @transform_2(%arg0: i32) -> (i32, i32) {
    %c0_i32 = arith.constant 0 : i32
    %c0_i32_0 = arith.constant 0 : i32
    %c0_i32_1 = arith.constant 0 : i32
    return %c0_i32, %c0_i32_0 : i32, i32
  }
  func.func @transform_3(%arg0: i32) -> (i32, i32, i32) {
    %c0_i32 = arith.constant 0 : i32
    %c0_i32_0 = arith.constant 0 : i32
    %c0_i32_1 = arith.constant 0 : i32
    %c0_i32_2 = arith.constant 0 : i32
    return %c0_i32, %c0_i32_0, %c0_i32_1 : i32, i32, i32
  }
  func.func @transform_4(%arg0: i32) -> (i32, i32) {
    %c0_i32 = arith.constant 0 : i32
    %c0_i32_0 = arith.constant 0 : i32
    %c0_i32_1 = arith.constant 0 : i32
    return %c0_i32, %c0_i32_0 : i32, i32
  }
  func.func @transform_5(%arg0: i32) -> (i32, i32) {
    %c0_i32 = arith.constant 0 : i32
    %c0_i32_0 = arith.constant 0 : i32
    %c0_i32_1 = arith.constant 0 : i32
    return %c0_i32, %c0_i32_0 : i32, i32
  }
  func.func @transform_6(%arg0: i32) -> (i32, i32) {
    %c0_i32 = arith.constant 0 : i32
    %c0_i32_0 = arith.constant 0 : i32
    %c0_i32_1 = arith.constant 0 : i32
    return %c0_i32, %c0_i32_0 : i32, i32
  }
  func.func @transform_7(%arg0: i32) -> (i32, i32) {
    %c0_i32 = arith.constant 0 : i32
    %c0_i32_0 = arith.constant 0 : i32
    %c0_i32_1 = arith.constant 0 : i32
    return %c0_i32, %c0_i32_0 : i32, i32
  }
  func.func @transform_8(%arg0: i32) -> (i32, i32) {
    %c0_i32 = arith.constant 0 : i32
    %c0_i32_0 = arith.constant 0 : i32
    %c0_i32_1 = arith.constant 0 : i32
    return %c0_i32, %c0_i32_0 : i32, i32
  }
  func.func @transform_9(%arg0: i32) -> (i32, i32, i32) {
    %c0_i32 = arith.constant 0 : i32
    %c0_i32_0 = arith.constant 0 : i32
    %c0_i32_1 = arith.constant 0 : i32
    %c0_i32_2 = arith.constant 0 : i32
    return %c0_i32, %c0_i32_0, %c0_i32_1 : i32, i32, i32
  }
  func.func @transform_10(%arg0: i32) -> (i32, i32) {
    %c0_i32 = arith.constant 0 : i32
    %c0_i32_0 = arith.constant 0 : i32
    %c0_i32_1 = arith.constant 0 : i32
    return %c0_i32, %c0_i32_0 : i32, i32
  }
  func.func @transform_11(%arg0: i32) -> (i32, i32, i32, i32) {
    %c0_i32 = arith.constant 0 : i32
    %c0_i32_0 = arith.constant 0 : i32
    %c0_i32_1 = arith.constant 0 : i32
    %c0_i32_2 = arith.constant 0 : i32
    return %arg0, %c0_i32, %c0_i32_0, %c0_i32_1 : i32, i32, i32, i32
  }
}

</mosaic_0001>

<bundles_post_ra>
// kernel: basenet_forward.5
= control target key start
LH: loop header
LB: loop body
LE: loop exit
PB: predicated region body
PF: predicated region fallthrough
CT: control target
= control target key end

     0   :  { %s10436_s12 = smov 0   ;;  %s12295_s0 = inlined_call_operand.vmem [shape: bf16[2,33,33,12], index: 0, kind: input, shape index: {}]   ;;  %s12296_s1 = inlined_call_operand.vmem [shape: bf16[4,12,16], index: 1, kind: input, shape index: {}]   ;;  %s12297_s2 = inlined_call_operand.vmem [shape: f32[1,16], index: 2, kind: input, shape index: {}]   ;;  %s12298_s3 = inlined_call_operand.vmem [shape: f32[2,32,32,16], index: 3, kind: output, shape index: {}]  }
   0x1 LB: > { %s8160_s13 = sadd.s32 4294967295, %s10414_s12   ;;  %p8164_p0 = scmp.ge.s32.totalorder %s10414_s12, 1  ;;  %s10414_s12 = sphi %s10436_s12, %s13_s12  }
   0x2   : > { %p137_p1 = scmp.lt.s32.totalorder %s10414_s12, 3 }
   0x4   : > { %p138_p2 = pnand %p8164_p0, %p137_p1 }
   0x5   : > { %vm2138_vm0 = vcmask (!%p138_p2), 1045504   ;;  %p161_p3 = scmp.lt.s32.totalorder (!%p138_p2), %s8160_s13, 1  ;;  %v10159_v0 = vld [vmem:[%s12296_s1 + $0x10] sm:$0x3f] (!%p138_p2)   ;;  %v10162_v1 = vld [vmem:[%s12296_s1 + $0x8] sm:$0x3f] (!%p138_p2)  }
   0x6   : > { %141 = sbr.rel (%p138_p2) target bundleno = 786 (0x312), region = 32  ;;  %10148 = vmatprep.subr.msk.bf16.mxu0 (!%p138_p2), %vm2138_vm0, %v10159_v0  ;;  %v4402_v2 = vsel (!%p138_p2), %vm2138_vm0, %v10159_v0, 0  ;;  %vm1945_vm1 = vcmask (!%p138_p2), 97280   ;;  %10146 = vmatprep.subr.msk.bf16.mxu1 (!%p138_p2), %vm2138_vm0, %v10162_v1  ;;  %v2140_v3 = vsel (!%p138_p2), %vm2138_vm0, %v10162_v1, 0  ;;  %v10165_v4 = vld [vmem:[%s12296_s1] sm:$0x3f] (!%p138_p2)  }
   0x7   : > { %9503 = vmatpush3.bf16.msra.mxu0 (!%p138_p2), %v4402_v2  ;;  %9243 = vmatpush3.bf16.msra.mxu1 (!%p138_p2), %v2140_v3  ;;  %vm334_vm2 = vsmask.f32 (!%p138_p2), 3328  ;;  %vm335_vm3 = vsmask.f32 (!%p138_p2), 7440  ;;  %v10167_v5 = vld [vmem:[%s12296_s1 + $0x18] sm:$0x3f] (!%p138_p2)  }
   0x8   : > { %10147 = vmatprep.subr.msk.bf16.mxu1 (!%p138_p2), %vm2138_vm0, %v10165_v4  ;;  %10149 = vmatprep.subr.msk.bf16.mxu0 (!%p138_p2), %vm2138_vm0, %v10167_v5  ;;  %v7038_v8 = vsel (!%p138_p2), %vm2138_vm0, %v10167_v5, 0  ;;  %v10476_v10 = vsel (!%p138_p2), %vm2138_vm0, %v10165_v4, 0  ;;  %vm10499_vm4 = vmor (!%p138_p2), %vm334_vm2, %vm335_vm3  ;;  %vm7976_vm5 = vcmask (!%p138_p2), 130048  }
   0xd   : > { %s12302_s13 = smov (!%p161_p3, %s8160_s13), 1 }
   0xe   : > { %s10150_s18 = smul.u32 660, %s12302_s13  ;;  %s8981_s28 = sshll.u32 %s12302_s13, 10 }
   0xf   : > { %s11703_s4 = scalar_lea.vmem %s12298_s3, %s8981_s28 }
  0x10   : > { %s10463_s23 = scalar_lea.vmem %s12295_s0, %s10150_s18 }
  0x11   : > { %v10160_v6 = vld [vmem:[%s10463_s23 + $0x14] sm:$0xff]   ;;  %v10161_v7 = vld [vmem:[%s10463_s23 + $0x1c] sm:$0xff]   ;;  %v10163_v9 = vld [vmem:[%s10463_s23 + $0x28] sm:$0xff]  }
  0x12   : > { %9504 = vmatprep.mubr.msk.bf16.mxu0 %vm1945_vm1, %v10160_v6  ;;  %v172_v11 = vld [vmem:[%s10463_s23] sm:$0xf]  ;;  %v173_v12 = vld [vmem:[%s10463_s23 + $0x4] sm:$0xf]  ;;  %v10482_v13 = vld [vmem:[%s10463_s23 + $0x8] sm:$0xf] }
  0x13   : > { %9505 = vmatmul.mubr.msk.bf16.vlgmr.msra.gmra.mrb[0].mxu0 %vm1945_vm1, %v10161_v7  ;;  %v10486_v14 = vld [vmem:[%s10463_s23 + $0xc] sm:$0xf]  ;;  %v338_v15 = vshrl.u32 %v172_v11, 16  ;;  %v341_v16 = vshll.u32 %v172_v11, 16  ;;  %v347_v17 = vshll.u32 %v173_v12, 16  ;;  %v351_v18 = vshrl.u32 %v173_v12, 16 }
  0x14   : > { %9508 = vmatprep.mubr.msk.bf16.mxu0 %vm1945_vm1, %v10163_v9  ;;  %9633 = vmatpush3.bf16.msra.mxu0 %v7038_v8  ;;  %v357_v19 = vshll.u32 %v10482_v13, 16  ;;  %v361_v20 = vshrl.u32 %v10482_v13, 16  ;;  %v8300_v21 = vcombine.low %v10482_v13, %v10486_v14  ;;  %v10166_v26 = vld [vmem:[%s10463_s23 + $0x30] sm:$0xff]   ;;  %v367_v30 = vshll.u32 %v10486_v14, 16  ;;  %v10168_v35 = vld [vmem:[%s10463_s23 + $0x3c] sm:$0xff]   ;;  %v10169_v3 = vld [vmem:[%s10463_s23 + $0x44] sm:$0xff]  }
  0x15   : > { %v340_v22 = vrot.slane %v338_v15, 4  ;;  %v343_v23 = vrot.slane %v341_v16, 5  ;;  %v349_v24 = vrot.slane %v347_v17, 5  ;;  %v353_v25 = vrot.slane %v351_v18, 4  ;;  %v302_v29 = vld [vmem:[%s10463_s23 + $0x10] sm:$0x1] }
  0x16   : > { %v359_v27 = vrot.slane %v357_v19, 5  ;;  %v363_v28 = vrot.slane %v361_v20, 4  ;;  %v371_v31 = vshrl.u32 %v10486_v14, 16  ;;  %v377_v34 = vshll.u32 %v302_v29, 16  ;;  %v176_v40 = vld [vmem:[%s10463_s23 + $0x14] sm:$0xf] }
  0x17   : > { %v344_v32 = vor.u32 %v343_v23, %v340_v22  ;;  %v354_v33 = vor.u32 %v353_v25, %v349_v24  ;;  %v369_v38 = vrot.slane %v367_v30, 5  ;;  %v177_v41 = vld [vmem:[%s10463_s23 + $0x18] sm:$0xf]  ;;  %v178_v45 = vld [vmem:[%s10463_s23 + $0x1c] sm:$0xf]  ;;  %v382_v46 = vshrl.u32 %v176_v40, 16 }
  0x18   : > { %v364_v37 = vor.u32 %v363_v28, %v359_v27  ;;  %v373_v39 = vrot.slane %v371_v31, 4  ;;  %v379_v44 = vrot.slane %v377_v34, 5  ;;  %v385_v49 = vshll.u32 %v176_v40, 16  ;;  %v179_v55 = vld [vmem:[%s10463_s23 + $0x20] sm:$0xf]  ;;  %v10170_v6 = vld [vmem:[%s10463_s23 + $0x50] sm:$0xff]  }
  0x19   : > { %v345_v42 = vrot.slane %v344_v32, 4  ;;  %v355_v43 = vrot.slane %v354_v33, 4  ;;  %v391_v50 = vshll.u32 %v177_v41, 16  ;;  %v384_v53 = vrot.slane %v382_v46, 4  ;;  %v303_v60 = vld [vmem:[%s10463_s23 + $0x24] sm:$0x1] }
  0x1a   : > { %v365_v47 = vrot.slane %v364_v37, 4  ;;  %v374_v48 = vor.u32 %v373_v39, %v369_v38  ;;  %v395_v54 = vshrl.u32 %v177_v41, 16  ;;  %v387_v59 = vrot.slane %v385_v49, 5  ;;  %v180_v7 = vld [vmem:[%s10463_s23 + $0x28] sm:$0xf] }
  0x1b   : > { %9509 = vmatmul.mubr.msk.bf16.gmra.mrb[4].mxu0 %vm1945_vm1, %v10166_v26  ;;  %v350_v51 = vsel %vm10499_vm4, %v345_v42, %v349_v24  ;;  %v360_v52 = vsel %vm10499_vm4, %v355_v43, %v359_v27  ;;  %v393_v61 = vrot.slane %v391_v50, 5  ;;  %v401_v63 = vshll.u32 %v178_v45, 16  ;;  %v181_v15 = vld [vmem:[%s10463_s23 + $0x2c] sm:$0xf]  ;;  %v182_v23 = vld [vmem:[%s10463_s23 + $0x30] sm:$0xf] }
  0x1c   : > { %9512 = vmatprep.mubr.msk.bf16.mxu0 %vm1945_vm1, %v10168_v35  ;;  %v8170_v56 = vcombine.low %v350_v51, %v360_v52  ;;  %v370_v57 = vsel %vm10499_vm4, %v365_v47, %v369_v38  ;;  %v375_v58 = vrot.slane %v374_v48, 4  ;;  %v397_v62 = vrot.slane %v395_v54, 4  ;;  %v183_v30 = vld [vmem:[%s10463_s23 + $0x34] sm:$0xf]  ;;  %v304_v39 = vld [vmem:[%s10463_s23 + $0x38] sm:$0x1] }
  0x1d   : > { %v405_v0 = vshrl.u32 %v178_v45, 16  ;;  %v388_v2 = vor.u32 %v387_v59, %v384_v53  ;;  %v411_v4 = vshll.u32 %v179_v55, 16  ;;  %v415_v5 = vshrl.u32 %v179_v55, 16  ;;  %v185_v45 = vld [vmem:[%s10463_s23 + $0x40] sm:$0xf]  ;;  %v10171_v48 = vld [vmem:[%s10463_s23 + $0x58] sm:$0xff]  }
  0x1e   : > { %9244 = vmatprep.mubr.msk.bf16.mxu1 %vm1945_vm1, %v8170_v56  ;;  %v380_v1 = vsel %vm10499_vm4, %v375_v58, %v379_v44  ;;  %v398_v9 = vor.u32 %v397_v62, %v393_v61  ;;  %v403_v11 = vrot.slane %v401_v63, 5  ;;  %v421_v19 = vshll.u32 %v303_v60, 16  ;;  %v184_v44 = vld [vmem:[%s10463_s23 + $0x3c] sm:$0xf]  ;;  %v10172_v55 = vld [vmem:[%s10463_s23 + $0x64] sm:$0xff]  }
  0x1f   : > { %v8171_v8 = vcombine.low %v370_v57, %v380_v1  ;;  %v407_v12 = vrot.slane %v405_v0, 4  ;;  %v389_v16 = vrot.slane %v388_v2, 4  ;;  %v413_v17 = vrot.slane %v411_v4, 5  ;;  %v186_v62 = vld [vmem:[%s10463_s23 + $0x44] sm:$0xf] }
  0x20   : > { %v417_v18 = vrot.slane %v415_v5, 4  ;;  %v399_v20 = vrot.slane %v398_v9, 4  ;;  %v426_v24 = vshrl.u32 %v180_v7, 16  ;;  %v429_v25 = vshll.u32 %v180_v7, 16  ;;  %v187_v9 = vld [vmem:[%s10463_s23 + $0x48] sm:$0xf] }
  0x21   : > { %9245 = vmatmul.mubr.msk.bf16.vlgmr.msra.gmra.mrb[0].mxu1 %vm1945_vm1, %v8171_v8  ;;  %v408_v22 = vor.u32 %v407_v12, %v403_v11  ;;  %v394_v26 = vsel %vm10499_vm4, %v389_v16, %v393_v61  ;;  %v423_v28 = vrot.slane %v421_v19, 5  ;;  %v435_v29 = vshll.u32 %v181_v15, 16 }
  0x22   : > { %9373 = vmatpush3.bf16.msra.mxu1 %v10476_v10  ;;  %v418_v27 = vor.u32 %v417_v18, %v413_v17  ;;  %v404_v31 = vsel %vm10499_vm4, %v399_v20, %v403_v11  ;;  %v428_v33 = vrot.slane %v426_v24, 4  ;;  %v431_v10 = vrot.slane %v429_v25, 5  ;;  %v188_v24 = vld [vmem:[%s10463_s23 + $0x50] sm:$0xf] }
  0x23   : > { %9513 = vmatmul.mubr.msk.bf16.gmra.mrb[8].mxu0 %vm1945_vm1, %v10169_v3  ;;  %v409_v32 = vrot.slane %v408_v22, 4  ;;  %v8172_v34 = vcombine.low %v394_v26, %v404_v31  ;;  %v437_v37 = vrot.slane %v435_v29, 5  ;;  %v439_v38 = vshrl.u32 %v181_v15, 16  ;;  %v10174_v29 = vld [vmem:[%s10463_s23 + $0x78] sm:$0xff]  }
  0x24   : > { %9516 = vmatprep.mubr.msk.bf16.mxu0 %vm1945_vm1, %v10170_v6  ;;  %v419_v35 = vrot.slane %v418_v27, 4  ;;  %v432_v41 = vor.u32 %v431_v10, %v428_v33  ;;  %v445_v42 = vshll.u32 %v182_v23, 16  ;;  %v449_v43 = vshrl.u32 %v182_v23, 16  ;;  %v10173_v23 = vld [vmem:[%s10463_s23 + $0x6c] sm:$0xff]   ;;  %v189_v10 = vld [vmem:[%s10463_s23 + $0x54] sm:$0xf] }
  0x25   : > { %v414_v40 = vsel %vm10499_vm4, %v409_v32, %v413_v17  ;;  %9248 = vmatprep.mubr.msk.bf16.mxu1 %vm1945_vm1, %v8172_v34  ;;  %v441_v47 = vrot.slane %v439_v38, 4  ;;  %v455_v49 = vshll.u32 %v183_v30, 16  ;;  %v459_v50 = vshrl.u32 %v183_v30, 16  ;;  %v305_v17 = vld [vmem:[%s10463_s23 + $0x4c] sm:$0x1] }
  0x26   : > { %v424_v46 = vsel %vm10499_vm4, %v419_v35, %v423_v28  ;;  %v433_v52 = vrot.slane %v432_v41, 4  ;;  %v447_v53 = vrot.slane %v445_v42, 5  ;;  %v451_v54 = vrot.slane %v449_v43, 4  ;;  %v190_v34 = vld [vmem:[%s10463_s23 + $0x58] sm:$0xf] }
  0x27   : > { %v8173_v51 = vcombine.low %v414_v40, %v424_v46  ;;  %v442_v56 = vor.u32 %v441_v47, %v437_v37  ;;  %v457_v57 = vrot.slane %v455_v49, 5  ;;  %v461_v58 = vrot.slane %v459_v50, 4 }
  0x28   : > { %v465_v59 = vshll.u32 %v304_v39, 16  ;;  %v438_v60 = vsel %vm10499_vm4, %v433_v52, %v437_v37  ;;  %v452_v61 = vor.u32 %v451_v54, %v447_v53  ;;  %v470_v63 = vshrl.u32 %v184_v44, 16  ;;  %v191_v52 = vld [vmem:[%s10463_s23 + $0x5c] sm:$0xf] }
  0x29   : > { %9249 = vmatmul.mubr.msk.bf16.gmra.mrb[4].mxu1 %vm1945_vm1, %v8173_v51  ;;  %v473_v0 = vshll.u32 %v184_v44, 16  ;;  %v443_v1 = vrot.slane %v442_v56, 4  ;;  %v462_v2 = vor.u32 %v461_v58, %v457_v57  ;;  %v479_v4 = vshll.u32 %v185_v45, 16 }
  0x2a   : > { %v467_v3 = vrot.slane %v465_v59, 5  ;;  %v453_v5 = vrot.slane %v452_v61, 4  ;;  %v472_v6 = vrot.slane %v470_v63, 4  ;;  %v483_v8 = vshrl.u32 %v185_v45, 16  ;;  %v10175_v61 = vld [vmem:[%s10463_s23 + $0x80] sm:$0xff]  }
  0x2b   : > { %9517 = vmatmul.mubr.msk.bf16.gmra.mrb[12].mxu0 %vm1945_vm1, %v10171_v48  ;;  %v475_v7 = vrot.slane %v473_v0, 5  ;;  %v448_v11 = vsel %vm10499_vm4, %v443_v1, %v447_v53  ;;  %v463_v12 = vrot.slane %v462_v2, 4  ;;  %v481_v15 = vrot.slane %v479_v4, 5  ;;  %v306_v53 = vld [vmem:[%s10463_s23 + $0x60] sm:$0x1] }
  0x2c   : > { %9520 = vmatprep.mubr.msk.bf16.mxu0 %vm1945_vm1, %v10172_v55  ;;  %v489_v16 = vshll.u32 %v186_v62, 16  ;;  %v8174_v18 = vcombine.low %v438_v60, %v448_v11  ;;  %v458_v19 = vsel %vm10499_vm4, %v453_v5, %v457_v57  ;;  %v485_v22 = vrot.slane %v483_v8, 4  ;;  %v192_v4 = vld [vmem:[%s10463_s23 + $0x64] sm:$0xf] }
  0x2d   : > { %v476_v20 = vor.u32 %v475_v7, %v472_v6  ;;  %v468_v25 = vsel %vm10499_vm4, %v463_v12, %v467_v3  ;;  %v493_v27 = vshrl.u32 %v186_v62, 16  ;;  %v499_v28 = vshll.u32 %v187_v9, 16  ;;  %v10176_v3 = vld [vmem:[%s10463_s23 + $0x8c] sm:$0xff]  }
  0x2e   : > { %v491_v26 = vrot.slane %v489_v16, 5  ;;  %9252 = vmatprep.mubr.msk.bf16.mxu1 %vm1945_vm1, %v8174_v18  ;;  %v8175_v30 = vcombine.low %v458_v19, %v468_v25  ;;  %v486_v32 = vor.u32 %v485_v22, %v481_v15  ;;  %v503_v33 = vshrl.u32 %v187_v9, 16  ;;  %v193_v9 = vld [vmem:[%s10463_s23 + $0x68] sm:$0xf] }
  0x2f   : > { %v477_v31 = vrot.slane %v476_v20, 4  ;;  %v495_v35 = vrot.slane %v493_v27, 4  ;;  %v501_v37 = vrot.slane %v499_v28, 5  ;;  %v509_v38 = vshll.u32 %v305_v17, 16  ;;  %v194_v20 = vld [vmem:[%s10463_s23 + $0x6c] sm:$0xf] }
  0x30   : > { %v514_v39 = vshrl.u32 %v188_v24, 16  ;;  %v487_v41 = vrot.slane %v486_v32, 4  ;;  %v505_v42 = vrot.slane %v503_v33, 4  ;;  %v517_v43 = vshll.u32 %v188_v24, 16  ;;  %v195_v27 = vld [vmem:[%s10463_s23 + $0x70] sm:$0xf] }
  0x31   : > { %9253 = vmatmul.mubr.msk.bf16.gmra.mrb[8].mxu1 %vm1945_vm1, %v8175_v30  ;;  %v482_v40 = vsel %vm10499_vm4, %v477_v31, %v481_v15  ;;  %v496_v44 = vor.u32 %v495_v35, %v491_v26  ;;  %v511_v45 = vrot.slane %v509_v38, 5  ;;  %v523_v47 = vshll.u32 %v189_v10, 16  ;;  %v10177_v35 = vld [vmem:[%s10463_s23 + $0x94] sm:$0xff]  }
  0x32   : > { %v516_v46 = vrot.slane %v514_v39, 4  ;;  %v492_v48 = vsel %vm10499_vm4, %v487_v41, %v491_v26  ;;  %v506_v49 = vor.u32 %v505_v42, %v501_v37  ;;  %v519_v50 = vrot.slane %v517_v43, 5  ;;  %v10178_v42 = vld [vmem:[%s10463_s23 + $0xa0] sm:$0xff]  }
  0x33   : > { %9521 = vmatmul.mubr.msk.bf16.gmra.mrb[16].mxu0 %vm1945_vm1, %v10173_v23  ;;  %v527_v51 = vshrl.u32 %v189_v10, 16  ;;  %v8176_v54 = vcombine.low %v482_v40, %v492_v48  ;;  %v497_v55 = vrot.slane %v496_v44, 4  ;;  %v525_v56 = vrot.slane %v523_v47, 5  ;;  %v307_v40 = vld [vmem:[%s10463_s23 + $0x74] sm:$0x1] }
  0x34   : > { %9524 = vmatprep.mubr.msk.bf16.mxu0 %vm1945_vm1, %v10174_v29  ;;  %v533_v57 = vshll.u32 %v190_v34, 16  ;;  %v507_v58 = vrot.slane %v506_v49, 4  ;;  %v520_v59 = vor.u32 %v519_v50, %v516_v46  ;;  %v537_v62 = vshrl.u32 %v190_v34, 16  ;;  %v196_v47 = vld [vmem:[%s10463_s23 + $0x78] sm:$0xf] }
  0x35   : > { %v529_v60 = vrot.slane %v527_v51, 4  ;;  %9256 = vmatprep.mubr.msk.bf16.mxu1 %vm1945_vm1, %v8176_v54  ;;  %v502_v63 = vsel %vm10499_vm4, %v497_v55, %v501_v37  ;;  %v543_v1 = vshll.u32 %v191_v52, 16  ;;  %v547_v2 = vshrl.u32 %v191_v52, 16  ;;  %v197_v52 = vld [vmem:[%s10463_s23 + $0x7c] sm:$0xf] }
  0x36   : > { %v535_v0 = vrot.slane %v533_v57, 5  ;;  %v512_v5 = vsel %vm10499_vm4, %v507_v58, %v511_v45  ;;  %v521_v6 = vrot.slane %v520_v59, 4  ;;  %v539_v8 = vrot.slane %v537_v62, 4  ;;  %v198_v59 = vld [vmem:[%s10463_s23 + $0x80] sm:$0xf] }
  0x37   : > { %v530_v7 = vor.u32 %v529_v60, %v525_v56  ;;  %v8177_v11 = vcombine.low %v502_v63, %v512_v5  ;;  %v545_v12 = vrot.slane %v543_v1, 5  ;;  %v549_v15 = vrot.slane %v547_v2, 4 }
  0x38   : > { %v553_v16 = vshll.u32 %v306_v53, 16  ;;  %v526_v17 = vsel %vm10499_vm4, %v521_v6, %v525_v56  ;;  %v540_v19 = vor.u32 %v539_v8, %v535_v0  ;;  %v558_v22 = vshrl.u32 %v192_v4, 16  ;;  %v199_v6 = vld [vmem:[%s10463_s23 + $0x84] sm:$0xf] }
  0x39   : > { %v531_v18 = vrot.slane %v530_v7, 4  ;;  %9257 = vmatmul.mubr.msk.bf16.gmra.mrb[12].mxu1 %vm1945_vm1, %v8177_v11  ;;  %v550_v23 = vor.u32 %v549_v15, %v545_v12  ;;  %v561_v25 = vshll.u32 %v192_v4, 16  ;;  %v567_v26 = vshll.u32 %v193_v9, 16 }
  0x3a   : > { %v555_v24 = vrot.slane %v553_v16, 5  ;;  %v541_v29 = vrot.slane %v540_v19, 4  ;;  %v560_v30 = vrot.slane %v558_v22, 4  ;;  %v571_v31 = vshrl.u32 %v193_v9, 16  ;;  %v10179_v22 = vld [vmem:[%s10463_s23 + $0xa8] sm:$0xff]  }
  0x3b   : > { %9525 = vmatmul.mubr.msk.bf16.gmra.mrb[20].mxu0 %vm1945_vm1, %v10175_v61  ;;  %v536_v28 = vsel %vm10499_vm4, %v531_v18, %v535_v0  ;;  %v551_v33 = vrot.slane %v550_v23, 4  ;;  %v563_v10 = vrot.slane %v561_v25, 5  ;;  %v569_v34 = vrot.slane %v567_v26, 5  ;;  %v200_v25 = vld [vmem:[%s10463_s23 + $0x8c] sm:$0xf] }
  0x3c   : > { %9528 = vmatprep.mubr.msk.bf16.mxu0 %vm1945_vm1, %v10176_v3  ;;  %v8178_v32 = vcombine.low %v526_v17, %v536_v28  ;;  %v546_v37 = vsel %vm10499_vm4, %v541_v29, %v545_v12  ;;  %v573_v38 = vrot.slane %v571_v31, 4  ;;  %v577_v39 = vshll.u32 %v194_v20, 16  ;;  %v308_v12 = vld [vmem:[%s10463_s23 + $0x88] sm:$0x1]  ;;  %v201_v31 = vld [vmem:[%s10463_s23 + $0x90] sm:$0xf] }
  0x3d   : > { %v581_v41 = vshrl.u32 %v194_v20, 16  ;;  %v556_v43 = vsel %vm10499_vm4, %v551_v33, %v555_v24  ;;  %v564_v44 = vor.u32 %v563_v10, %v560_v30  ;;  %v587_v45 = vshll.u32 %v195_v27, 16  ;;  %v10180_v30 = vld [vmem:[%s10463_s23 + $0xb4] sm:$0xff]  }
  0x3e   : > { %9260 = vmatprep.mubr.msk.bf16.mxu1 %vm1945_vm1, %v8178_v32  ;;  %v591_v46 = vshrl.u32 %v195_v27, 16  ;;  %v8179_v48 = vcombine.low %v546_v37, %v556_v43  ;;  %v574_v49 = vor.u32 %v573_v38, %v569_v34  ;;  %v579_v50 = vrot.slane %v577_v39, 5 }
  0x3f   : > { %v583_v51 = vrot.slane %v581_v41, 4  ;;  %v565_v53 = vrot.slane %v564_v44, 4  ;;  %v589_v54 = vrot.slane %v587_v45, 5  ;;  %v597_v56 = vshll.u32 %v307_v40, 16  ;;  %v203_v45 = vld [vmem:[%s10463_s23 + $0x98] sm:$0xf] }
  0x40   : > { %v593_v55 = vrot.slane %v591_v46, 4  ;;  %v575_v57 = vrot.slane %v574_v49, 4  ;;  %v602_v60 = vshrl.u32 %v196_v47, 16  ;;  %v605_v61 = vshll.u32 %v196_v47, 16 }
  0x41   : > { %v584_v58 = vor.u32 %v583_v51, %v579_v50  ;;  %9261 = vmatmul.mubr.msk.bf16.gmra.mrb[16].mxu1 %vm1945_vm1, %v8179_v48  ;;  %v570_v62 = vsel %vm10499_vm4, %v565_v53, %v569_v34  ;;  %v599_v0 = vrot.slane %v597_v56, 5  ;;  %v611_v1 = vshll.u32 %v197_v52, 16 }
  0x42   : > { %v594_v63 = vor.u32 %v593_v55, %v589_v54  ;;  %v580_v2 = vsel %vm10499_vm4, %v575_v57, %v579_v50  ;;  %v604_v4 = vrot.slane %v602_v60, 4  ;;  %v607_v5 = vrot.slane %v605_v61, 5  ;;  %v309_v50 = vld [vmem:[%s10463_s23 + $0x9c] sm:$0x1] }
  0x43   : > { %9529 = vmatmul.mubr.msk.bf16.gmra.mrb[24].mxu0 %vm1945_vm1, %v10177_v35  ;;  %v585_v3 = vrot.slane %v584_v58, 4  ;;  %v8180_v7 = vcombine.low %v570_v62, %v580_v2  ;;  %v613_v9 = vrot.slane %v611_v1, 5  ;;  %v615_v11 = vshrl.u32 %v197_v52, 16  ;;  %v202_v35 = vld [vmem:[%s10463_s23 + $0x94] sm:$0xf]  ;;  %v10181_v62 = vld [vmem:[%s10463_s23 + $0xbc] sm:$0xff]  }
  0x44   : > { %9532 = vmatprep.mubr.msk.bf16.mxu0 %vm1945_vm1, %v10178_v42  ;;  %v595_v8 = vrot.slane %v594_v63, 4  ;;  %v608_v16 = vor.u32 %v607_v5, %v604_v4  ;;  %v621_v17 = vshll.u32 %v198_v59, 16  ;;  %v625_v18 = vshrl.u32 %v198_v59, 16  ;;  %v204_v59 = vld [vmem:[%s10463_s23 + $0xa0] sm:$0xf]  ;;  %v10182_v1 = vld [vmem:[%s10463_s23 + $0xc8] sm:$0xff]  }
  0x45   : > { %v590_v15 = vsel %vm10499_vm4, %v585_v3, %v589_v54  ;;  %9264 = vmatprep.mubr.msk.bf16.mxu1 %vm1945_vm1, %v8180_v7  ;;  %v617_v20 = vrot.slane %v615_v11, 4  ;;  %v631_v23 = vshll.u32 %v199_v6, 16  ;;  %v635_v24 = vshrl.u32 %v199_v6, 16  ;;  %v205_v6 = vld [vmem:[%s10463_s23 + $0xa4] sm:$0xf] }
  0x46   : > { %v600_v19 = vsel %vm10499_vm4, %v595_v8, %v599_v0  ;;  %v609_v27 = vrot.slane %v608_v16, 4  ;;  %v623_v28 = vrot.slane %v621_v17, 5  ;;  %v627_v29 = vrot.slane %v625_v18, 4  ;;  %v206_v17 = vld [vmem:[%s10463_s23 + $0xa8] sm:$0xf] }
  0x47   : > { %v8181_v26 = vcombine.low %v590_v15, %v600_v19  ;;  %v618_v32 = vor.u32 %v617_v20, %v613_v9  ;;  %v633_v33 = vrot.slane %v631_v23, 5  ;;  %v637_v10 = vrot.slane %v635_v24, 4  ;;  %v207_v24 = vld [vmem:[%s10463_s23 + $0xac] sm:$0xf] }
  0x48   : > { %v641_v34 = vshll.u32 %v308_v12, 16  ;;  %v614_v37 = vsel %vm10499_vm4, %v609_v27, %v613_v9  ;;  %v628_v38 = vor.u32 %v627_v29, %v623_v28  ;;  %v646_v39 = vshrl.u32 %v200_v25, 16 }
  0x49   : > { %v649_v40 = vshll.u32 %v200_v25, 16  ;;  %9265 = vmatmul.mubr.msk.bf16.gmra.mrb[20].mxu1 %vm1945_vm1, %v8181_v26  ;;  %v619_v41 = vrot.slane %v618_v32, 4  ;;  %v638_v42 = vor.u32 %v637_v10, %v633_v33  ;;  %v655_v44 = vshll.u32 %v201_v31, 16 }
  0x4a   : > { %v643_v43 = vrot.slane %v641_v34, 5  ;;  %v629_v46 = vrot.slane %v628_v38, 4  ;;  %v648_v47 = vrot.slane %v646_v39, 4  ;;  %v659_v49 = vshrl.u32 %v201_v31, 16  ;;  %v208_v39 = vld [vmem:[%s10463_s23 + $0xb4] sm:$0xf] }
  0x4b   : > { %9533 = vmatmul.mubr.msk.bf16.gmra.mrb[28].mxu0 %vm1945_vm1, %v10179_v22  ;;  %v651_v48 = vrot.slane %v649_v40, 5  ;;  %v624_v51 = vsel %vm10499_vm4, %v619_v41, %v623_v28  ;;  %v639_v52 = vrot.slane %v638_v42, 4  ;;  %v657_v53 = vrot.slane %v655_v44, 5  ;;  %v10184_v44 = vld [vmem:[%s10463_s23 + $0xdc] sm:$0xff]  }
  0x4c   : > { %9536 = vmatprep.mubr.msk.bf16.mxu0 %vm1945_vm1, %v10180_v30  ;;  %v665_v54 = vshll.u32 %v202_v35, 16  ;;  %v8182_v55 = vcombine.low %v614_v37, %v624_v51  ;;  %v634_v56 = vsel %vm10499_vm4, %v629_v46, %v633_v33  ;;  %v661_v58 = vrot.slane %v659_v49, 4  ;;  %v310_v33 = vld [vmem:[%s10463_s23 + $0xb0] sm:$0x1] }
  0x4d   : > { %v652_v57 = vor.u32 %v651_v48, %v648_v47  ;;  %v644_v60 = vsel %vm10499_vm4, %v639_v52, %v643_v43  ;;  %v669_v63 = vshrl.u32 %v202_v35, 16  ;;  %v675_v0 = vshll.u32 %v203_v45, 16  ;;  %v10183_v37 = vld [vmem:[%s10463_s23 + $0xd0] sm:$0xff]  }
  0x4e   : > { %v667_v61 = vrot.slane %v665_v54, 5  ;;  %9268 = vmatprep.mubr.msk.bf16.mxu1 %vm1945_vm1, %v8182_v55  ;;  %v8183_v2 = vcombine.low %v634_v56, %v644_v60  ;;  %v662_v4 = vor.u32 %v661_v58, %v657_v53  ;;  %v679_v5 = vshrl.u32 %v203_v45, 16  ;;  %v209_v45 = vld [vmem:[%s10463_s23 + $0xb8] sm:$0xf] }
  0x4f   : > { %v653_v3 = vrot.slane %v652_v57, 4  ;;  %v671_v7 = vrot.slane %v669_v63, 4  ;;  %v677_v8 = vrot.slane %v675_v0, 5  ;;  %v685_v9 = vshll.u32 %v309_v50, 16  ;;  %v210_v57 = vld [vmem:[%s10463_s23 + $0xbc] sm:$0xf] }
  0x50   : > { %v690_v11 = vshrl.u32 %v204_v59, 16  ;;  %v663_v15 = vrot.slane %v662_v4, 4  ;;  %v681_v16 = vrot.slane %v679_v5, 4  ;;  %v693_v18 = vshll.u32 %v204_v59, 16 }
  0x51   : > { %v658_v12 = vsel %vm10499_vm4, %v653_v3, %v657_v53  ;;  %9269 = vmatmul.mubr.msk.bf16.gmra.mrb[24].mxu1 %vm1945_vm1, %v8183_v2  ;;  %v672_v19 = vor.u32 %v671_v7, %v667_v61  ;;  %v687_v20 = vrot.slane %v685_v9, 5  ;;  %v699_v23 = vshll.u32 %v205_v6, 16  ;;  %v211_v3 = vld [vmem:[%s10463_s23 + $0xc0] sm:$0xf] }
  0x52   : > { %v692_v22 = vrot.slane %v690_v11, 4  ;;  %v668_v25 = vsel %vm10499_vm4, %v663_v15, %v667_v61  ;;  %v682_v26 = vor.u32 %v681_v16, %v677_v8  ;;  %v695_v27 = vrot.slane %v693_v18, 5  ;;  %v10185_v15 = vld [vmem:[%s10463_s23 + $0xe4] sm:$0xff]  }
  0x53   : > { %9537 = vmatmul.mubr.msk.bf16.gmra.mrb[32].mxu0 %vm1945_vm1, %v10181_v62  ;;  %v703_v28 = vshrl.u32 %v205_v6, 16  ;;  %v8184_v29 = vcombine.low %v658_v12, %v668_v25  ;;  %v673_v30 = vrot.slane %v672_v19, 4  ;;  %v701_v31 = vrot.slane %v699_v23, 5 }
  0x54   : > { %9540 = vmatprep.mubr.msk.bf16.mxu0 %vm1945_vm1, %v10182_v1  ;;  %v709_v32 = vshll.u32 %v206_v17, 16  ;;  %v683_v10 = vrot.slane %v682_v26, 4  ;;  %v696_v34 = vor.u32 %v695_v27, %v692_v22  ;;  %v713_v38 = vshrl.u32 %v206_v17, 16  ;;  %v212_v17 = vld [vmem:[%s10463_s23 + $0xc8] sm:$0xf]  ;;  %v10186_v27 = vld [vmem:[%s10463_s23 + $0xf0] sm:$0xff]  }
  0x55   : > { %v705_v35 = vrot.slane %v703_v28, 4  ;;  %9272 = vmatprep.mubr.msk.bf16.mxu1 %vm1945_vm1, %v8184_v29  ;;  %v678_v40 = vsel %vm10499_vm4, %v673_v30, %v677_v8  ;;  %v719_v42 = vshll.u32 %v207_v24, 16  ;;  %v723_v43 = vshrl.u32 %v207_v24, 16  ;;  %v311_v8 = vld [vmem:[%s10463_s23 + $0xc4] sm:$0x1] }
  0x56   : > { %v711_v41 = vrot.slane %v709_v32, 5  ;;  %v688_v46 = vsel %vm10499_vm4, %v683_v10, %v687_v20  ;;  %v697_v47 = vrot.slane %v696_v34, 4  ;;  %v715_v49 = vrot.slane %v713_v38, 4  ;;  %v213_v28 = vld [vmem:[%s10463_s23 + $0xcc] sm:$0xf] }
  0x57   : > { %v706_v48 = vor.u32 %v705_v35, %v701_v31  ;;  %v8185_v50 = vcombine.low %v678_v40, %v688_v46  ;;  %v721_v51 = vrot.slane %v719_v42, 5  ;;  %v725_v52 = vrot.slane %v723_v43, 4  ;;  %v214_v40 = vld [vmem:[%s10463_s23 + $0xd0] sm:$0xf]  ;;  %v215_v42 = vld [vmem:[%s10463_s23 + $0xd4] sm:$0xf] }
  0x58   : > { %v729_v53 = vshll.u32 %v310_v33, 16  ;;  %v702_v54 = vsel %vm10499_vm4, %v697_v47, %v701_v31  ;;  %v716_v56 = vor.u32 %v715_v49, %v711_v41  ;;  %v734_v58 = vshrl.u32 %v208_v39, 16  ;;  %v312_v47 = vld [vmem:[%s10463_s23 + $0xd8] sm:$0x1] }
  0x59   : > { %v707_v55 = vrot.slane %v706_v48, 4  ;;  %9273 = vmatmul.mubr.msk.bf16.gmra.mrb[28].mxu1 %vm1945_vm1, %v8185_v50  ;;  %v726_v59 = vor.u32 %v725_v52, %v721_v51  ;;  %v737_v61 = vshll.u32 %v208_v39, 16  ;;  %v743_v62 = vshll.u32 %v209_v45, 16 }
  0x5a   : > { %v731_v60 = vrot.slane %v729_v53, 5  ;;  %v717_v0 = vrot.slane %v716_v56, 4  ;;  %v736_v1 = vrot.slane %v734_v58, 4  ;;  %v747_v2 = vshrl.u32 %v209_v45, 16  ;;  %v216_v56 = vld [vmem:[%s10463_s23 + $0xdc] sm:$0xf] }
  0x5b   : > { %9541 = vmatmul.mubr.msk.bf16.gmra.mrb[36].mxu0 %vm1945_vm1, %v10183_v37  ;;  %v712_v63 = vsel %vm10499_vm4, %v707_v55, %v711_v41  ;;  %v727_v5 = vrot.slane %v726_v59, 4  ;;  %v739_v6 = vrot.slane %v737_v61, 5  ;;  %v745_v7 = vrot.slane %v743_v62, 5  ;;  %v10187_v59 = vld [vmem:[%s10463_s23 + $0xf8] sm:$0xff]   ;;  %v217_v62 = vld [vmem:[%s10463_s23 + $0xe0] sm:$0xf] }
  0x5c   : > { %9544 = vmatprep.mubr.msk.bf16.mxu0 %vm1945_vm1, %v10184_v44  ;;  %v8186_v4 = vcombine.low %v702_v54, %v712_v63  ;;  %v722_v9 = vsel %vm10499_vm4, %v717_v0, %v721_v51  ;;  %v749_v11 = vrot.slane %v747_v2, 4  ;;  %v753_v12 = vshll.u32 %v210_v57, 16 }
  0x5d   : > { %v757_v16 = vshrl.u32 %v210_v57, 16  ;;  %v732_v18 = vsel %vm10499_vm4, %v727_v5, %v731_v60  ;;  %v740_v19 = vor.u32 %v739_v6, %v736_v1  ;;  %v763_v20 = vshll.u32 %v211_v3, 16 }
  0x5e   : > { %9276 = vmatprep.mubr.msk.bf16.mxu1 %vm1945_vm1, %v8186_v4  ;;  %v767_v22 = vshrl.u32 %v211_v3, 16  ;;  %v8187_v23 = vcombine.low %v722_v9, %v732_v18  ;;  %v750_v24 = vor.u32 %v749_v11, %v745_v7  ;;  %v755_v25 = vrot.slane %v753_v12, 5  ;;  %v10188_v3 = vld [vmem:[%s10463_s23 + $0x104] sm:$0xff]  }
  0x5f   : > { %v759_v26 = vrot.slane %v757_v16, 4  ;;  %v741_v29 = vrot.slane %v740_v19, 4  ;;  %v765_v30 = vrot.slane %v763_v20, 5  ;;  %v773_v32 = vshll.u32 %v311_v8, 16  ;;  %v218_v11 = vld [vmem:[%s10463_s23 + $0xe4] sm:$0xf] }
  0x60   : > { %v769_v31 = vrot.slane %v767_v22, 4  ;;  %v751_v33 = vrot.slane %v750_v24, 4  ;;  %v778_v34 = vshrl.u32 %v212_v17, 16  ;;  %v781_v35 = vshll.u32 %v212_v17, 16  ;;  %v219_v20 = vld [vmem:[%s10463_s23 + $0xe8] sm:$0xf] }
  0x61   : > { %v760_v10 = vor.u32 %v759_v26, %v755_v25  ;;  %9277 = vmatmul.mubr.msk.bf16.gmra.mrb[32].mxu1 %vm1945_vm1, %v8187_v23  ;;  %v746_v37 = vsel %vm10499_vm4, %v741_v29, %v745_v7  ;;  %v775_v39 = vrot.slane %v773_v32, 5  ;;  %v787_v41 = vshll.u32 %v213_v28, 16 }
  0x62   : > { %v770_v38 = vor.u32 %v769_v31, %v765_v30  ;;  %v756_v43 = vsel %vm10499_vm4, %v751_v33, %v755_v25  ;;  %v780_v45 = vrot.slane %v778_v34, 4  ;;  %v783_v46 = vrot.slane %v781_v35, 5  ;;  %v313_v34 = vld [vmem:[%s10463_s23 + $0xec] sm:$0x1]  ;;  %v220_v35 = vld [vmem:[%s10463_s23 + $0xf0] sm:$0xf] }
  0x63   : > { %9545 = vmatmul.mubr.msk.bf16.gmra.mrb[40].mxu0 %vm1945_vm1, %v10185_v15  ;;  %v761_v44 = vrot.slane %v760_v10, 4  ;;  %v8188_v48 = vcombine.low %v746_v37, %v756_v43  ;;  %v789_v50 = vrot.slane %v787_v41, 5  ;;  %v791_v51 = vshrl.u32 %v213_v28, 16  ;;  %v10189_v10 = vld [vmem:[%s10463_s23 + $0x10c] sm:$0xff]   ;;  %v10190_v41 = vld [vmem:[%s10463_s23 + $0x118] sm:$0xff]  }
  0x64   : > { %9548 = vmatprep.mubr.msk.bf16.mxu0 %vm1945_vm1, %v10186_v27  ;;  %v771_v49 = vrot.slane %v770_v38, 4  ;;  %v784_v53 = vor.u32 %v783_v46, %v780_v45  ;;  %v797_v54 = vshll.u32 %v214_v40, 16  ;;  %v801_v55 = vshrl.u32 %v214_v40, 16  ;;  %v221_v46 = vld [vmem:[%s10463_s23 + $0xf4] sm:$0xf] }
  0x65   : > { %v766_v52 = vsel %vm10499_vm4, %v761_v44, %v765_v30  ;;  %9280 = vmatprep.mubr.msk.bf16.mxu1 %vm1945_vm1, %v8188_v48  ;;  %v793_v58 = vrot.slane %v791_v51, 4  ;;  %v807_v60 = vshll.u32 %v215_v42, 16  ;;  %v811_v61 = vshrl.u32 %v215_v42, 16 }
  0x66   : > { %v776_v57 = vsel %vm10499_vm4, %v771_v49, %v775_v39  ;;  %v785_v0 = vrot.slane %v784_v53, 4  ;;  %v799_v1 = vrot.slane %v797_v54, 5  ;;  %v803_v2 = vrot.slane %v801_v55, 4 }
  0x67   : > { %v8189_v63 = vcombine.low %v766_v52, %v776_v57  ;;  %v794_v4 = vor.u32 %v793_v58, %v789_v50  ;;  %v809_v5 = vrot.slane %v807_v60, 5  ;;  %v813_v6 = vrot.slane %v811_v61, 4 }
  0x68   : > { %v817_v7 = vshll.u32 %v312_v47, 16  ;;  %v790_v8 = vsel %vm10499_vm4, %v785_v0, %v789_v50  ;;  %v804_v9 = vor.u32 %v803_v2, %v799_v1  ;;  %v822_v12 = vshrl.u32 %v216_v56, 16  ;;  %v222_v50 = vld [vmem:[%s10463_s23 + $0xf8] sm:$0xf] }
  0x69   : > { %v825_v15 = vshll.u32 %v216_v56, 16  ;;  %9281 = vmatmul.mubr.msk.bf16.gmra.mrb[36].mxu1 %vm1945_vm1, %v8189_v63  ;;  %v795_v16 = vrot.slane %v794_v4, 4  ;;  %v814_v17 = vor.u32 %v813_v6, %v809_v5  ;;  %v831_v19 = vshll.u32 %v217_v62, 16  ;;  %v223_v56 = vld [vmem:[%s10463_s23 + $0xfc] sm:$0xf] }
  0x6a   : > { %v819_v18 = vrot.slane %v817_v7, 5  ;;  %v805_v22 = vrot.slane %v804_v9, 4  ;;  %v824_v23 = vrot.slane %v822_v12, 4  ;;  %v835_v25 = vshrl.u32 %v217_v62, 16  ;;  %v224_v6 = vld [vmem:[%s10463_s23 + $0x104] sm:$0xf] }
  0x6b   : > { %9549 = vmatmul.mubr.msk.bf16.gmra.mrb[44].mxu0 %vm1945_vm1, %v10187_v59  ;;  %v827_v24 = vrot.slane %v825_v15, 5  ;;  %v800_v26 = vsel %vm10499_vm4, %v795_v16, %v799_v1  ;;  %v815_v27 = vrot.slane %v814_v17, 4  ;;  %v833_v28 = vrot.slane %v831_v19, 5  ;;  %v314_v1 = vld [vmem:[%s10463_s23 + $0x100] sm:$0x1] }
  0x6c   : > { %9552 = vmatprep.mubr.msk.bf16.mxu0 %vm1945_vm1, %v10188_v3  ;;  %v841_v29 = vshll.u32 %v218_v11, 16  ;;  %v8190_v30 = vcombine.low %v790_v8, %v800_v26  ;;  %v810_v31 = vsel %vm10499_vm4, %v805_v22, %v809_v5  ;;  %v837_v33 = vrot.slane %v835_v25, 4  ;;  %v10191_v16 = vld [vmem:[%s10463_s23 + $0x120] sm:$0xff]   ;;  %v225_v25 = vld [vmem:[%s10463_s23 + $0x108] sm:$0xf] }
  0x6d   : > { %v828_v32 = vor.u32 %v827_v24, %v824_v23  ;;  %v820_v37 = vsel %vm10499_vm4, %v815_v27, %v819_v18  ;;  %v845_v39 = vshrl.u32 %v218_v11, 16  ;;  %v851_v40 = vshll.u32 %v219_v20, 16  ;;  %v10192_v24 = vld [vmem:[%s10463_s23 + $0x12c] sm:$0xff]  }
  0x6e   : > { %v843_v38 = vrot.slane %v841_v29, 5  ;;  %9284 = vmatprep.mubr.msk.bf16.mxu1 %vm1945_vm1, %v8190_v30  ;;  %v8191_v42 = vcombine.low %v810_v31, %v820_v37  ;;  %v838_v44 = vor.u32 %v837_v33, %v833_v28  ;;  %v855_v45 = vshrl.u32 %v219_v20, 16  ;;  %v226_v30 = vld [vmem:[%s10463_s23 + $0x10c] sm:$0xf] }
  0x6f   : > { %v829_v43 = vrot.slane %v828_v32, 4  ;;  %v847_v47 = vrot.slane %v845_v39, 4  ;;  %v853_v48 = vrot.slane %v851_v40, 5  ;;  %v861_v49 = vshll.u32 %v313_v34, 16  ;;  %v227_v39 = vld [vmem:[%s10463_s23 + $0x110] sm:$0xf] }
  0x70   : > { %v866_v51 = vshrl.u32 %v220_v35, 16  ;;  %v839_v53 = vrot.slane %v838_v44, 4  ;;  %v857_v54 = vrot.slane %v855_v45, 4  ;;  %v869_v55 = vshll.u32 %v220_v35, 16  ;;  %v315_v44 = vld [vmem:[%s10463_s23 + $0x114] sm:$0x1] }
  0x71   : > { %v834_v52 = vsel %vm10499_vm4, %v829_v43, %v833_v28  ;;  %9285 = vmatmul.mubr.msk.bf16.gmra.mrb[40].mxu1 %vm1945_vm1, %v8191_v42  ;;  %v848_v57 = vor.u32 %v847_v47, %v843_v38  ;;  %v863_v58 = vrot.slane %v861_v49, 5  ;;  %v875_v60 = vshll.u32 %v221_v46, 16 }
  0x72   : > { %v868_v59 = vrot.slane %v866_v51, 4  ;;  %v844_v61 = vsel %vm10499_vm4, %v839_v53, %v843_v38  ;;  %v858_v62 = vor.u32 %v857_v54, %v853_v48  ;;  %v871_v63 = vrot.slane %v869_v55, 5  ;;  %v10193_v55 = vld [vmem:[%s10463_s23 + $0x134] sm:$0xff]  }
  0x73   : > { %9553 = vmatmul.mubr.msk.bf16.gmra.mrb[48].mxu0 %vm1945_vm1, %v10189_v10  ;;  %v879_v0 = vshrl.u32 %v221_v46, 16  ;;  %v8192_v2 = vcombine.low %v834_v52, %v844_v61  ;;  %v849_v3 = vrot.slane %v848_v57, 4  ;;  %v877_v4 = vrot.slane %v875_v60, 5 }
  0x74   : > { %9556 = vmatprep.mubr.msk.bf16.mxu0 %vm1945_vm1, %v10190_v41  ;;  %v885_v5 = vshll.u32 %v222_v50, 16  ;;  %v859_v7 = vrot.slane %v858_v62, 4  ;;  %v872_v8 = vor.u32 %v871_v63, %v868_v59  ;;  %v889_v11 = vshrl.u32 %v222_v50, 16  ;;  %v228_v59 = vld [vmem:[%s10463_s23 + $0x118] sm:$0xf] }
  0x75   : > { %v881_v9 = vrot.slane %v879_v0, 4  ;;  %9288 = vmatprep.mubr.msk.bf16.mxu1 %vm1945_vm1, %v8192_v2  ;;  %v854_v12 = vsel %vm10499_vm4, %v849_v3, %v853_v48  ;;  %v895_v17 = vshll.u32 %v223_v56, 16  ;;  %v899_v18 = vshrl.u32 %v223_v56, 16  ;;  %v229_v0 = vld [vmem:[%s10463_s23 + $0x11c] sm:$0xf] }
  0x76   : > { %v887_v15 = vrot.slane %v885_v5, 5  ;;  %v864_v19 = vsel %vm10499_vm4, %v859_v7, %v863_v58  ;;  %v873_v20 = vrot.slane %v872_v8, 4  ;;  %v891_v23 = vrot.slane %v889_v11, 4  ;;  %v10194_v58 = vld [vmem:[%s10463_s23 + $0x140] sm:$0xff]  }
  0x77   : > { %v882_v22 = vor.u32 %v881_v9, %v877_v4  ;;  %v8193_v26 = vcombine.low %v854_v12, %v864_v19  ;;  %v897_v27 = vrot.slane %v895_v17, 5  ;;  %v901_v28 = vrot.slane %v899_v18, 4  ;;  %v230_v7 = vld [vmem:[%s10463_s23 + $0x120] sm:$0xf]  ;;  %v231_v17 = vld [vmem:[%s10463_s23 + $0x124] sm:$0xf] }
  0x78   : > { %v905_v29 = vshll.u32 %v314_v1, 16  ;;  %v878_v31 = vsel %vm10499_vm4, %v873_v20, %v877_v4  ;;  %v892_v33 = vor.u32 %v891_v23, %v887_v15  ;;  %v910_v10 = vshrl.u32 %v224_v6, 16 }
  0x79   : > { %v883_v32 = vrot.slane %v882_v22, 4  ;;  %9289 = vmatmul.mubr.msk.bf16.gmra.mrb[44].mxu1 %vm1945_vm1, %v8193_v26  ;;  %v902_v34 = vor.u32 %v901_v28, %v897_v27  ;;  %v913_v37 = vshll.u32 %v224_v6, 16  ;;  %v919_v38 = vshll.u32 %v225_v25, 16 }
  0x7a   : > { %v907_v35 = vrot.slane %v905_v29, 5  ;;  %v893_v41 = vrot.slane %v892_v33, 4  ;;  %v912_v42 = vrot.slane %v910_v10, 4  ;;  %v923_v43 = vshrl.u32 %v225_v25, 16  ;;  %v233_v33 = vld [vmem:[%s10463_s23 + $0x130] sm:$0xf] }
  0x7b   : > { %9557 = vmatmul.mubr.msk.bf16.gmra.mrb[52].mxu0 %vm1945_vm1, %v10191_v16  ;;  %v888_v40 = vsel %vm10499_vm4, %v883_v32, %v887_v15  ;;  %v903_v46 = vrot.slane %v902_v34, 4  ;;  %v915_v47 = vrot.slane %v913_v37, 5  ;;  %v921_v48 = vrot.slane %v919_v38, 5  ;;  %v232_v32 = vld [vmem:[%s10463_s23 + $0x12c] sm:$0xf] }
  0x7c   : > { %9560 = vmatprep.mubr.msk.bf16.mxu0 %vm1945_vm1, %v10192_v24  ;;  %v8194_v45 = vcombine.low %v878_v31, %v888_v40  ;;  %v898_v49 = vsel %vm10499_vm4, %v893_v41, %v897_v27  ;;  %v925_v50 = vrot.slane %v923_v43, 4  ;;  %v929_v51 = vshll.u32 %v226_v30, 16  ;;  %v316_v27 = vld [vmem:[%s10463_s23 + $0x128] sm:$0x1]  ;;  %v10196_v43 = vld [vmem:[%s10463_s23 + $0x154] sm:$0xff]  }
  0x7d   : > { %v933_v52 = vshrl.u32 %v226_v30, 16  ;;  %v908_v53 = vsel %vm10499_vm4, %v903_v46, %v907_v35  ;;  %v916_v54 = vor.u32 %v915_v47, %v912_v42  ;;  %v939_v56 = vshll.u32 %v227_v39, 16  ;;  %v10195_v35 = vld [vmem:[%s10463_s23 + $0x148] sm:$0xff]  }
  0x7e   : > { %9292 = vmatprep.mubr.msk.bf16.mxu1 %vm1945_vm1, %v8194_v45  ;;  %v943_v57 = vshrl.u32 %v227_v39, 16  ;;  %v8195_v60 = vcombine.low %v898_v49, %v908_v53  ;;  %v926_v61 = vor.u32 %v925_v50, %v921_v48  ;;  %v931_v62 = vrot.slane %v929_v51, 5  ;;  %v234_v50 = vld [vmem:[%s10463_s23 + $0x134] sm:$0xf] }
  0x7f   : > { %v935_v63 = vrot.slane %v933_v52, 4  ;;  %v917_v1 = vrot.slane %v916_v54, 4  ;;  %v941_v2 = vrot.slane %v939_v56, 5  ;;  %v949_v4 = vshll.u32 %v315_v44, 16 }
  0x80   : > { %v945_v3 = vrot.slane %v943_v57, 4  ;;  %v927_v5 = vrot.slane %v926_v61, 4  ;;  %v954_v8 = vshrl.u32 %v228_v59, 16  ;;  %v957_v9 = vshll.u32 %v228_v59, 16  ;;  %v235_v61 = vld [vmem:[%s10463_s23 + $0x138] sm:$0xf] }
  0x81   : > { %v936_v6 = vor.u32 %v935_v63, %v931_v62  ;;  %9293 = vmatmul.mubr.msk.bf16.gmra.mrb[48].mxu1 %vm1945_vm1, %v8195_v60  ;;  %v922_v11 = vsel %vm10499_vm4, %v917_v1, %v921_v48  ;;  %v951_v15 = vrot.slane %v949_v4, 5  ;;  %v963_v16 = vshll.u32 %v229_v0, 16 }
  0x82   : > { %v946_v12 = vor.u32 %v945_v3, %v941_v2  ;;  %v932_v18 = vsel %vm10499_vm4, %v927_v5, %v931_v62  ;;  %v956_v20 = vrot.slane %v954_v8, 4  ;;  %v959_v22 = vrot.slane %v957_v9, 5  ;;  %v236_v8 = vld [vmem:[%s10463_s23 + $0x140] sm:$0xf] }
  0x83   : > { %9561 = vmatmul.mubr.msk.bf16.gmra.mrb[56].mxu0 %vm1945_vm1, %v10193_v55  ;;  %v937_v19 = vrot.slane %v936_v6, 4  ;;  %v8196_v23 = vcombine.low %v922_v11, %v932_v18  ;;  %v965_v25 = vrot.slane %v963_v16, 5  ;;  %v967_v26 = vshrl.u32 %v229_v0, 16  ;;  %v10198_v16 = vld [vmem:[%s10463_s23 + $0x168] sm:$0xff]  }
  0x84   : > { %9564 = vmatprep.mubr.msk.bf16.mxu0 %vm1945_vm1, %v10194_v58  ;;  %v947_v24 = vrot.slane %v946_v12, 4  ;;  %v960_v29 = vor.u32 %v959_v22, %v956_v20  ;;  %v973_v30 = vshll.u32 %v230_v7, 16  ;;  %v977_v31 = vshrl.u32 %v230_v7, 16  ;;  %v10197_v7 = vld [vmem:[%s10463_s23 + $0x15c] sm:$0xff]   ;;  %v237_v22 = vld [vmem:[%s10463_s23 + $0x144] sm:$0xf] }
  0x85   : > { %v942_v28 = vsel %vm10499_vm4, %v937_v19, %v941_v2  ;;  %9296 = vmatprep.mubr.msk.bf16.mxu1 %vm1945_vm1, %v8196_v23  ;;  %v969_v34 = vrot.slane %v967_v26, 4  ;;  %v983_v37 = vshll.u32 %v231_v17, 16  ;;  %v987_v38 = vshrl.u32 %v231_v17, 16  ;;  %v317_v2 = vld [vmem:[%s10463_s23 + $0x13c] sm:$0x1] }
  0x86   : > { %v952_v10 = vsel %vm10499_vm4, %v947_v24, %v951_v15  ;;  %v961_v40 = vrot.slane %v960_v29, 4  ;;  %v975_v41 = vrot.slane %v973_v30, 5  ;;  %v979_v42 = vrot.slane %v977_v31, 4  ;;  %v238_v23 = vld [vmem:[%s10463_s23 + $0x148] sm:$0xf] }
  0x87   : > { %v8197_v39 = vcombine.low %v942_v28, %v952_v10  ;;  %v970_v44 = vor.u32 %v969_v34, %v965_v25  ;;  %v985_v45 = vrot.slane %v983_v37, 5  ;;  %v989_v46 = vrot.slane %v987_v38, 4 }
  0x88   : > { %v993_v47 = vshll.u32 %v316_v27, 16  ;;  %v966_v48 = vsel %vm10499_vm4, %v961_v40, %v965_v25  ;;  %v980_v49 = vor.u32 %v979_v42, %v975_v41  ;;  %v998_v51 = vshrl.u32 %v232_v32, 16  ;;  %v239_v40 = vld [vmem:[%s10463_s23 + $0x14c] sm:$0xf] }
  0x89   : > { %v1001_v52 = vshll.u32 %v232_v32, 16  ;;  %9297 = vmatmul.mubr.msk.bf16.gmra.mrb[52].mxu1 %vm1945_vm1, %v8197_v39  ;;  %v971_v53 = vrot.slane %v970_v44, 4  ;;  %v990_v54 = vor.u32 %v989_v46, %v985_v45  ;;  %v1007_v56 = vshll.u32 %v233_v33, 16 }
  0x8a   : > { %v995_v55 = vrot.slane %v993_v47, 5  ;;  %v981_v57 = vrot.slane %v980_v49, 4  ;;  %v1000_v58 = vrot.slane %v998_v51, 4  ;;  %v1011_v60 = vshrl.u32 %v233_v33, 16  ;;  %v10199_v49 = vld [vmem:[%s10463_s23 + $0x170] sm:$0xff]  }
  0x8b   : > { %9565 = vmatmul.mubr.msk.bf16.gmra.mrb[60].mxu0 %vm1945_vm1, %v10195_v35  ;;  %v1003_v59 = vrot.slane %v1001_v52, 5  ;;  %v976_v62 = vsel %vm10499_vm4, %v971_v53, %v975_v41  ;;  %v991_v63 = vrot.slane %v990_v54, 4  ;;  %v1009_v0 = vrot.slane %v1007_v56, 5  ;;  %v318_v41 = vld [vmem:[%s10463_s23 + $0x150] sm:$0x1] }
  0x8c   : > { %9568 = vmatprep.mubr.msk.bf16.mxu0 %vm1945_vm1, %v10196_v43  ;;  %v1017_v1 = vshll.u32 %v234_v50, 16  ;;  %v8198_v3 = vcombine.low %v966_v48, %v976_v62  ;;  %v986_v4 = vsel %vm10499_vm4, %v981_v57, %v985_v45  ;;  %v1013_v6 = vrot.slane %v1011_v60, 4  ;;  %v240_v56 = vld [vmem:[%s10463_s23 + $0x154] sm:$0xf] }
  0x8d   : > { %v1004_v5 = vor.u32 %v1003_v59, %v1000_v58  ;;  %v996_v9 = vsel %vm10499_vm4, %v991_v63, %v995_v55  ;;  %v1021_v12 = vshrl.u32 %v234_v50, 16  ;;  %v1027_v15 = vshll.u32 %v235_v61, 16  ;;  %v10200_v55 = vld [vmem:[%s10463_s23 + $0x17c] sm:$0xff]  }
  0x8e   : > { %v1019_v11 = vrot.slane %v1017_v1, 5  ;;  %9300 = vmatprep.mubr.msk.bf16.mxu1 %vm1945_vm1, %v8198_v3  ;;  %v8199_v17 = vcombine.low %v986_v4, %v996_v9  ;;  %v1014_v19 = vor.u32 %v1013_v6, %v1009_v0  ;;  %v1031_v20 = vshrl.u32 %v235_v61, 16  ;;  %v241_v61 = vld [vmem:[%s10463_s23 + $0x158] sm:$0xf] }
  0x8f   : > { %v1005_v18 = vrot.slane %v1004_v5, 4  ;;  %v1023_v24 = vrot.slane %v1021_v12, 4  ;;  %v1029_v25 = vrot.slane %v1027_v15, 5  ;;  %v1037_v26 = vshll.u32 %v317_v2, 16  ;;  %v242_v5 = vld [vmem:[%s10463_s23 + $0x15c] sm:$0xf] }
  0x90   : > { %v1042_v27 = vshrl.u32 %v236_v8, 16  ;;  %v1015_v29 = vrot.slane %v1014_v19, 4  ;;  %v1033_v30 = vrot.slane %v1031_v20, 4  ;;  %v1045_v31 = vshll.u32 %v236_v8, 16  ;;  %v243_v12 = vld [vmem:[%s10463_s23 + $0x160] sm:$0xf] }
  0x91   : > { %v1010_v28 = vsel %vm10499_vm4, %v1005_v18, %v1009_v0  ;;  %9301 = vmatmul.mubr.msk.bf16.gmra.mrb[56].mxu1 %vm1945_vm1, %v8199_v17  ;;  %v1024_v32 = vor.u32 %v1023_v24, %v1019_v11  ;;  %v1039_v33 = vrot.slane %v1037_v26, 5  ;;  %v1051_v34 = vshll.u32 %v237_v22, 16  ;;  %v10201_v24 = vld [vmem:[%s10463_s23 + $0x184] sm:$0xff]  }
  0x92   : > { %v1044_v10 = vrot.slane %v1042_v27, 4  ;;  %v1020_v35 = vsel %vm10499_vm4, %v1015_v29, %v1019_v11  ;;  %v1034_v37 = vor.u32 %v1033_v30, %v1029_v25  ;;  %v1047_v38 = vrot.slane %v1045_v31, 5  ;;  %v10202_v30 = vld [vmem:[%s10463_s23 + $0x190] sm:$0xff]  }
  0x93   : > { %9569 = vmatmul.mubr.msk.bf16.gmra.mrb[64].mxu0 %vm1945_vm1, %v10197_v7  ;;  %v1055_v39 = vshrl.u32 %v237_v22, 16  ;;  %v8200_v42 = vcombine.low %v1010_v28, %v1020_v35  ;;  %v1025_v43 = vrot.slane %v1024_v32, 4  ;;  %v1053_v44 = vrot.slane %v1051_v34, 5  ;;  %v319_v28 = vld [vmem:[%s10463_s23 + $0x164] sm:$0x1] }
  0x94   : > { %9572 = vmatprep.mubr.msk.bf16.mxu0 %vm1945_vm1, %v10198_v16  ;;  %v1061_v45 = vshll.u32 %v238_v23, 16  ;;  %v1035_v46 = vrot.slane %v1034_v37, 4  ;;  %v1048_v47 = vor.u32 %v1047_v38, %v1044_v10  ;;  %v1065_v50 = vshrl.u32 %v238_v23, 16  ;;  %v244_v34 = vld [vmem:[%s10463_s23 + $0x168] sm:$0xf] }
  0x95   : > { %v1057_v48 = vrot.slane %v1055_v39, 4  ;;  %9304 = vmatprep.mubr.msk.bf16.mxu1 %vm1945_vm1, %v8200_v42  ;;  %v1030_v51 = vsel %vm10499_vm4, %v1025_v43, %v1029_v25  ;;  %v1071_v53 = vshll.u32 %v239_v40, 16  ;;  %v1075_v54 = vshrl.u32 %v239_v40, 16  ;;  %v245_v40 = vld [vmem:[%s10463_s23 + $0x16c] sm:$0xf] }
  0x96   : > { %v1063_v52 = vrot.slane %v1061_v45, 5  ;;  %v1040_v57 = vsel %vm10499_vm4, %v1035_v46, %v1039_v33  ;;  %v1049_v58 = vrot.slane %v1048_v47, 4  ;;  %v1067_v60 = vrot.slane %v1065_v50, 4  ;;  %v246_v47 = vld [vmem:[%s10463_s23 + $0x170] sm:$0xf] }
  0x97   : > { %v1058_v59 = vor.u32 %v1057_v48, %v1053_v44  ;;  %v8201_v62 = vcombine.low %v1030_v51, %v1040_v57  ;;  %v1073_v63 = vrot.slane %v1071_v53, 5  ;;  %v1077_v0 = vrot.slane %v1075_v54, 4 }
  0x98   : > { %v1081_v1 = vshll.u32 %v318_v41, 16  ;;  %v1054_v2 = vsel %vm10499_vm4, %v1049_v58, %v1053_v44  ;;  %v1068_v4 = vor.u32 %v1067_v60, %v1063_v52  ;;  %v1086_v6 = vshrl.u32 %v240_v56, 16  ;;  %v247_v58 = vld [vmem:[%s10463_s23 + $0x174] sm:$0xf] }
  0x99   : > { %v1059_v3 = vrot.slane %v1058_v59, 4  ;;  %9305 = vmatmul.mubr.msk.bf16.gmra.mrb[60].mxu1 %vm1945_vm1, %v8201_v62  ;;  %v1078_v7 = vor.u32 %v1077_v0, %v1073_v63  ;;  %v1089_v9 = vshll.u32 %v240_v56, 16  ;;  %v1095_v11 = vshll.u32 %v241_v61, 16 }
  0x9a   : > { %v1083_v8 = vrot.slane %v1081_v1, 5  ;;  %v1069_v16 = vrot.slane %v1068_v4, 4  ;;  %v1088_v17 = vrot.slane %v1086_v6, 4  ;;  %v1099_v18 = vshrl.u32 %v241_v61, 16  ;;  %v10203_v6 = vld [vmem:[%s10463_s23 + $0x198] sm:$0xff]  }
  0x9b   : > { %9573 = vmatmul.mubr.msk.bf16.gmra.mrb[68].mxu0 %vm1945_vm1, %v10199_v49  ;;  %v1064_v15 = vsel %vm10499_vm4, %v1059_v3, %v1063_v52  ;;  %v1079_v20 = vrot.slane %v1078_v7, 4  ;;  %v1091_v22 = vrot.slane %v1089_v9, 5  ;;  %v1097_v23 = vrot.slane %v1095_v11, 5  ;;  %v248_v9 = vld [vmem:[%s10463_s23 + $0x17c] sm:$0xf] }
  0x9c   : > { %9576 = vmatprep.mubr.msk.bf16.mxu0 %vm1945_vm1, %v10200_v55  ;;  %v8202_v19 = vcombine.low %v1054_v2, %v1064_v15  ;;  %v1074_v25 = vsel %vm10499_vm4, %v1069_v16, %v1073_v63  ;;  %v1101_v26 = vrot.slane %v1099_v18, 4  ;;  %v1105_v27 = vshll.u32 %v242_v5, 16  ;;  %v320_v63 = vld [vmem:[%s10463_s23 + $0x178] sm:$0x1]  ;;  %v249_v18 = vld [vmem:[%s10463_s23 + $0x180] sm:$0xf] }
  0x9d   : > { %v1109_v29 = vshrl.u32 %v242_v5, 16  ;;  %v1084_v31 = vsel %vm10499_vm4, %v1079_v20, %v1083_v8  ;;  %v1092_v32 = vor.u32 %v1091_v22, %v1088_v17  ;;  %v1115_v33 = vshll.u32 %v243_v12, 16  ;;  %v10204_v17 = vld [vmem:[%s10463_s23 + $0x1a4] sm:$0xff]  }
  0x9e   : > { %9308 = vmatprep.mubr.msk.bf16.mxu1 %vm1945_vm1, %v8202_v19  ;;  %v1119_v10 = vshrl.u32 %v243_v12, 16  ;;  %v8203_v35 = vcombine.low %v1074_v25, %v1084_v31  ;;  %v1102_v37 = vor.u32 %v1101_v26, %v1097_v23  ;;  %v1107_v38 = vrot.slane %v1105_v27, 5 }
  0x9f   : > { %v1111_v39 = vrot.slane %v1109_v29, 4  ;;  %v1093_v41 = vrot.slane %v1092_v32, 4  ;;  %v1117_v42 = vrot.slane %v1115_v33, 5  ;;  %v1125_v44 = vshll.u32 %v319_v28, 16  ;;  %v251_v33 = vld [vmem:[%s10463_s23 + $0x188] sm:$0xf] }
  0xa0   : > { %v1121_v43 = vrot.slane %v1119_v10, 4  ;;  %v1103_v45 = vrot.slane %v1102_v37, 4  ;;  %v1130_v48 = vshrl.u32 %v244_v34, 16  ;;  %v1133_v49 = vshll.u32 %v244_v34, 16 }
  0xa1   : > { %v1112_v46 = vor.u32 %v1111_v39, %v1107_v38  ;;  %9309 = vmatmul.mubr.msk.bf16.gmra.mrb[64].mxu1 %vm1945_vm1, %v8203_v35  ;;  %v1098_v50 = vsel %vm10499_vm4, %v1093_v41, %v1097_v23  ;;  %v1127_v52 = vrot.slane %v1125_v44, 5  ;;  %v1139_v53 = vshll.u32 %v245_v40, 16 }
  0xa2   : > { %v1122_v51 = vor.u32 %v1121_v43, %v1117_v42  ;;  %v1108_v54 = vsel %vm10499_vm4, %v1103_v45, %v1107_v38  ;;  %v1132_v56 = vrot.slane %v1130_v48, 4  ;;  %v1135_v57 = vrot.slane %v1133_v49, 5  ;;  %v321_v38 = vld [vmem:[%s10463_s23 + $0x18c] sm:$0x1] }
  0xa3   : > { %9577 = vmatmul.mubr.msk.bf16.gmra.mrb[72].mxu0 %vm1945_vm1, %v10201_v24  ;;  %v1113_v55 = vrot.slane %v1112_v46, 4  ;;  %v8204_v59 = vcombine.low %v1098_v50, %v1108_v54  ;;  %v1141_v61 = vrot.slane %v1139_v53, 5  ;;  %v1143_v62 = vshrl.u32 %v245_v40, 16  ;;  %v250_v24 = vld [vmem:[%s10463_s23 + $0x184] sm:$0xf]  ;;  %v10205_v50 = vld [vmem:[%s10463_s23 + $0x1ac] sm:$0xff]  }
  0xa4   : > { %9580 = vmatprep.mubr.msk.bf16.mxu0 %vm1945_vm1, %v10202_v30  ;;  %v1123_v60 = vrot.slane %v1122_v51, 4  ;;  %v1136_v1 = vor.u32 %v1135_v57, %v1132_v56  ;;  %v1149_v2 = vshll.u32 %v246_v47, 16  ;;  %v1153_v3 = vshrl.u32 %v246_v47, 16  ;;  %v252_v47 = vld [vmem:[%s10463_s23 + $0x190] sm:$0xf]  ;;  %v10206_v53 = vld [vmem:[%s10463_s23 + $0x1b8] sm:$0xff]  }
  0xa5   : > { %v1118_v0 = vsel %vm10499_vm4, %v1113_v55, %v1117_v42  ;;  %9312 = vmatprep.mubr.msk.bf16.mxu1 %vm1945_vm1, %v8204_v59  ;;  %v1145_v5 = vrot.slane %v1143_v62, 4  ;;  %v1159_v7 = vshll.u32 %v247_v58, 16  ;;  %v1163_v8 = vshrl.u32 %v247_v58, 16  ;;  %v253_v58 = vld [vmem:[%s10463_s23 + $0x194] sm:$0xf] }
  0xa6   : > { %v1128_v4 = vsel %vm10499_vm4, %v1123_v60, %v1127_v52  ;;  %v1137_v12 = vrot.slane %v1136_v1, 4  ;;  %v1151_v15 = vrot.slane %v1149_v2, 5  ;;  %v1155_v16 = vrot.slane %v1153_v3, 4  ;;  %v254_v2 = vld [vmem:[%s10463_s23 + $0x198] sm:$0xf] }
  0xa7   : > { %v8205_v11 = vcombine.low %v1118_v0, %v1128_v4  ;;  %v1146_v19 = vor.u32 %v1145_v5, %v1141_v61  ;;  %v1161_v20 = vrot.slane %v1159_v7, 5  ;;  %v1165_v22 = vrot.slane %v1163_v8, 4  ;;  %v255_v8 = vld [vmem:[%s10463_s23 + $0x19c] sm:$0xf] }
  0xa8   : > { %v1169_v23 = vshll.u32 %v320_v63, 16  ;;  %v1142_v25 = vsel %vm10499_vm4, %v1137_v12, %v1141_v61  ;;  %v1156_v26 = vor.u32 %v1155_v16, %v1151_v15  ;;  %v1174_v27 = vshrl.u32 %v248_v9, 16 }
  0xa9   : > { %v1177_v28 = vshll.u32 %v248_v9, 16  ;;  %9313 = vmatmul.mubr.msk.bf16.gmra.mrb[68].mxu1 %vm1945_vm1, %v8205_v11  ;;  %v1147_v29 = vrot.slane %v1146_v19, 4  ;;  %v1166_v30 = vor.u32 %v1165_v22, %v1161_v20  ;;  %v1183_v32 = vshll.u32 %v249_v18, 16 }
  0xaa   : > { %v1171_v31 = vrot.slane %v1169_v23, 5  ;;  %v1157_v10 = vrot.slane %v1156_v26, 4  ;;  %v1176_v34 = vrot.slane %v1174_v27, 4  ;;  %v1187_v37 = vshrl.u32 %v249_v18, 16  ;;  %v256_v27 = vld [vmem:[%s10463_s23 + $0x1a4] sm:$0xf] }
  0xab   : > { %9581 = vmatmul.mubr.msk.bf16.gmra.mrb[76].mxu0 %vm1945_vm1, %v10203_v6  ;;  %v1179_v35 = vrot.slane %v1177_v28, 5  ;;  %v1152_v39 = vsel %vm10499_vm4, %v1147_v29, %v1151_v15  ;;  %v1167_v40 = vrot.slane %v1166_v30, 4  ;;  %v1185_v41 = vrot.slane %v1183_v32, 5  ;;  %v10208_v32 = vld [vmem:[%s10463_s23 + $0x1cc] sm:$0xff]  }
  0xac   : > { %9584 = vmatprep.mubr.msk.bf16.mxu0 %vm1945_vm1, %v10204_v17  ;;  %v1193_v42 = vshll.u32 %v250_v24, 16  ;;  %v8206_v43 = vcombine.low %v1142_v25, %v1152_v39  ;;  %v1162_v44 = vsel %vm10499_vm4, %v1157_v10, %v1161_v20  ;;  %v1189_v46 = vrot.slane %v1187_v37, 4  ;;  %v322_v20 = vld [vmem:[%s10463_s23 + $0x1a0] sm:$0x1] }
  0xad   : > { %v1180_v45 = vor.u32 %v1179_v35, %v1176_v34  ;;  %v1172_v48 = vsel %vm10499_vm4, %v1167_v40, %v1171_v31  ;;  %v1197_v51 = vshrl.u32 %v250_v24, 16  ;;  %v1203_v52 = vshll.u32 %v251_v33, 16  ;;  %v10207_v25 = vld [vmem:[%s10463_s23 + $0x1c0] sm:$0xff]  }
  0xae   : > { %v1195_v49 = vrot.slane %v1193_v42, 5  ;;  %9316 = vmatprep.mubr.msk.bf16.mxu1 %vm1945_vm1, %v8206_v43  ;;  %v8207_v54 = vcombine.low %v1162_v44, %v1172_v48  ;;  %v1190_v56 = vor.u32 %v1189_v46, %v1185_v41  ;;  %v1207_v57 = vshrl.u32 %v251_v33, 16  ;;  %v257_v33 = vld [vmem:[%s10463_s23 + $0x1a8] sm:$0xf] }
  0xaf   : > { %v1181_v55 = vrot.slane %v1180_v45, 4  ;;  %v1199_v59 = vrot.slane %v1197_v51, 4  ;;  %v1205_v60 = vrot.slane %v1203_v52, 5  ;;  %v1213_v61 = vshll.u32 %v321_v38, 16  ;;  %v258_v45 = vld [vmem:[%s10463_s23 + $0x1ac] sm:$0xf] }
  0xb0   : > { %v1218_v62 = vshrl.u32 %v252_v47, 16  ;;  %v1191_v0 = vrot.slane %v1190_v56, 4  ;;  %v1209_v1 = vrot.slane %v1207_v57, 4  ;;  %v1221_v3 = vshll.u32 %v252_v47, 16 }
  0xb1   : > { %v1186_v63 = vsel %vm10499_vm4, %v1181_v55, %v1185_v41  ;;  %9317 = vmatmul.mubr.msk.bf16.gmra.mrb[72].mxu1 %vm1945_vm1, %v8207_v54  ;;  %v1200_v4 = vor.u32 %v1199_v59, %v1195_v49  ;;  %v1215_v5 = vrot.slane %v1213_v61, 5  ;;  %v1227_v7 = vshll.u32 %v253_v58, 16  ;;  %v259_v55 = vld [vmem:[%s10463_s23 + $0x1b0] sm:$0xf] }
  0xb2   : > { %v1220_v6 = vrot.slane %v1218_v62, 4  ;;  %v1196_v9 = vsel %vm10499_vm4, %v1191_v0, %v1195_v49  ;;  %v1210_v11 = vor.u32 %v1209_v1, %v1205_v60  ;;  %v1223_v12 = vrot.slane %v1221_v3, 5  ;;  %v10209_v0 = vld [vmem:[%s10463_s23 + $0x1d4] sm:$0xff]  }
  0xb3   : > { %9585 = vmatmul.mubr.msk.bf16.gmra.mrb[80].mxu0 %vm1945_vm1, %v10205_v50  ;;  %v1231_v15 = vshrl.u32 %v253_v58, 16  ;;  %v8208_v16 = vcombine.low %v1186_v63, %v1196_v9  ;;  %v1201_v17 = vrot.slane %v1200_v4, 4  ;;  %v1229_v18 = vrot.slane %v1227_v7, 5 }
  0xb4   : > { %9588 = vmatprep.mubr.msk.bf16.mxu0 %vm1945_vm1, %v10206_v53  ;;  %v1237_v19 = vshll.u32 %v254_v2, 16  ;;  %v1211_v22 = vrot.slane %v1210_v11, 4  ;;  %v1224_v23 = vor.u32 %v1223_v12, %v1220_v6  ;;  %v1241_v26 = vshrl.u32 %v254_v2, 16  ;;  %v260_v2 = vld [vmem:[%s10463_s23 + $0x1b8] sm:$0xf]  ;;  %v10210_v12 = vld [vmem:[%s10463_s23 + $0x1e0] sm:$0xff]  }
  0xb5   : > { %v1233_v24 = vrot.slane %v1231_v15, 4  ;;  %9320 = vmatprep.mubr.msk.bf16.mxu1 %vm1945_vm1, %v8208_v16  ;;  %v1206_v28 = vsel %vm10499_vm4, %v1201_v17, %v1205_v60  ;;  %v1247_v30 = vshll.u32 %v255_v8, 16  ;;  %v1251_v31 = vshrl.u32 %v255_v8, 16  ;;  %v323_v60 = vld [vmem:[%s10463_s23 + $0x1b4] sm:$0x1] }
  0xb6   : > { %v1239_v29 = vrot.slane %v1237_v19, 5  ;;  %v1216_v10 = vsel %vm10499_vm4, %v1211_v22, %v1215_v5  ;;  %v1225_v34 = vrot.slane %v1224_v23, 4  ;;  %v1243_v37 = vrot.slane %v1241_v26, 4  ;;  %v261_v15 = vld [vmem:[%s10463_s23 + $0x1bc] sm:$0xf] }
  0xb7   : > { %v1234_v35 = vor.u32 %v1233_v24, %v1229_v18  ;;  %v8209_v38 = vcombine.low %v1206_v28, %v1216_v10  ;;  %v1249_v39 = vrot.slane %v1247_v30, 5  ;;  %v1253_v40 = vrot.slane %v1251_v31, 4  ;;  %v262_v28 = vld [vmem:[%s10463_s23 + $0x1c0] sm:$0xf]  ;;  %v263_v30 = vld [vmem:[%s10463_s23 + $0x1c4] sm:$0xf] }
  0xb8   : > { %v1257_v41 = vshll.u32 %v322_v20, 16  ;;  %v1230_v42 = vsel %vm10499_vm4, %v1225_v34, %v1229_v18  ;;  %v1244_v44 = vor.u32 %v1243_v37, %v1239_v29  ;;  %v1262_v46 = vshrl.u32 %v256_v27, 16  ;;  %v324_v34 = vld [vmem:[%s10463_s23 + $0x1c8] sm:$0x1] }
  0xb9   : > { %v1235_v43 = vrot.slane %v1234_v35, 4  ;;  %9321 = vmatmul.mubr.msk.bf16.gmra.mrb[76].mxu1 %vm1945_vm1, %v8209_v38  ;;  %v1254_v47 = vor.u32 %v1253_v40, %v1249_v39  ;;  %v1265_v49 = vshll.u32 %v256_v27, 16  ;;  %v1271_v50 = vshll.u32 %v257_v33, 16 }
  0xba   : > { %v1259_v48 = vrot.slane %v1257_v41, 5  ;;  %v1245_v52 = vrot.slane %v1244_v44, 4  ;;  %v1264_v53 = vrot.slane %v1262_v46, 4  ;;  %v1275_v54 = vshrl.u32 %v257_v33, 16  ;;  %v264_v44 = vld [vmem:[%s10463_s23 + $0x1cc] sm:$0xf] }
  0xbb   : > { %9589 = vmatmul.mubr.msk.bf16.gmra.mrb[84].mxu0 %vm1945_vm1, %v10207_v25  ;;  %v1240_v51 = vsel %vm10499_vm4, %v1235_v43, %v1239_v29  ;;  %v1255_v57 = vrot.slane %v1254_v47, 4  ;;  %v1267_v58 = vrot.slane %v1265_v49, 5  ;;  %v1273_v59 = vrot.slane %v1271_v50, 5  ;;  %v10211_v47 = vld [vmem:[%s10463_s23 + $0x1e8] sm:$0xff]   ;;  %v265_v50 = vld [vmem:[%s10463_s23 + $0x1d0] sm:$0xf] }
  0xbc   : > { %9592 = vmatprep.mubr.msk.bf16.mxu0 %vm1945_vm1, %v10208_v32  ;;  %v8210_v56 = vcombine.low %v1230_v42, %v1240_v51  ;;  %v1250_v61 = vsel %vm10499_vm4, %v1245_v52, %v1249_v39  ;;  %v1277_v62 = vrot.slane %v1275_v54, 4  ;;  %v1281_v63 = vshll.u32 %v258_v45, 16 }
  0xbd   : > { %v1285_v1 = vshrl.u32 %v258_v45, 16  ;;  %v1260_v3 = vsel %vm10499_vm4, %v1255_v57, %v1259_v48  ;;  %v1268_v4 = vor.u32 %v1267_v58, %v1264_v53  ;;  %v1291_v5 = vshll.u32 %v259_v55, 16 }
  0xbe   : > { %9324 = vmatprep.mubr.msk.bf16.mxu1 %vm1945_vm1, %v8210_v56  ;;  %v1295_v6 = vshrl.u32 %v259_v55, 16  ;;  %v8211_v7 = vcombine.low %v1250_v61, %v1260_v3  ;;  %v1278_v8 = vor.u32 %v1277_v62, %v1273_v59  ;;  %v1283_v9 = vrot.slane %v1281_v63, 5  ;;  %v10212_v55 = vld [vmem:[%s10463_s23 + $0x1f4] sm:$0xff]  }
  0xbf   : > { %v1287_v11 = vrot.slane %v1285_v1, 4  ;;  %v1269_v16 = vrot.slane %v1268_v4, 4  ;;  %v1293_v17 = vrot.slane %v1291_v5, 5  ;;  %v1301_v19 = vshll.u32 %v323_v60, 16  ;;  %v266_v62 = vld [vmem:[%s10463_s23 + $0x1d4] sm:$0xf] }
  0xc0   : > { %v1297_v18 = vrot.slane %v1295_v6, 4  ;;  %v1279_v20 = vrot.slane %v1278_v8, 4  ;;  %v1306_v23 = vshrl.u32 %v260_v2, 16  ;;  %v1309_v24 = vshll.u32 %v260_v2, 16  ;;  %v267_v5 = vld [vmem:[%s10463_s23 + $0x1d8] sm:$0xf] }
  0xc1   : > { %v1288_v22 = vor.u32 %v1287_v11, %v1283_v9  ;;  %9325 = vmatmul.mubr.msk.bf16.gmra.mrb[80].mxu1 %vm1945_vm1, %v8211_v7  ;;  %v1274_v25 = vsel %vm10499_vm4, %v1269_v16, %v1273_v59  ;;  %v1303_v27 = vrot.slane %v1301_v19, 5  ;;  %v1315_v29 = vshll.u32 %v261_v15, 16 }
  0xc2   : > { %v1298_v26 = vor.u32 %v1297_v18, %v1293_v17  ;;  %v1284_v31 = vsel %vm10499_vm4, %v1279_v20, %v1283_v9  ;;  %v1308_v33 = vrot.slane %v1306_v23, 4  ;;  %v1311_v10 = vrot.slane %v1309_v24, 5  ;;  %v325_v23 = vld [vmem:[%s10463_s23 + $0x1dc] sm:$0x1]  ;;  %v268_v24 = vld [vmem:[%s10463_s23 + $0x1e0] sm:$0xf] }
  0xc3   : > { %9593 = vmatmul.mubr.msk.bf16.gmra.mrb[88].mxu0 %vm1945_vm1, %v10209_v0  ;;  %v1289_v32 = vrot.slane %v1288_v22, 4  ;;  %v8212_v35 = vcombine.low %v1274_v25, %v1284_v31  ;;  %v1317_v38 = vrot.slane %v1315_v29, 5  ;;  %v1319_v39 = vshrl.u32 %v261_v15, 16  ;;  %v10213_v22 = vld [vmem:[%s10463_s23 + $0x1fc] sm:$0xff]   ;;  %v10214_v29 = vld [vmem:[%s10463_s23 + $0x208] sm:$0xff]  }
  0xc4   : > { %9596 = vmatprep.mubr.msk.bf16.mxu0 %vm1945_vm1, %v10210_v12  ;;  %v1299_v37 = vrot.slane %v1298_v26, 4  ;;  %v1312_v41 = vor.u32 %v1311_v10, %v1308_v33  ;;  %v1325_v42 = vshll.u32 %v262_v28, 16  ;;  %v1329_v43 = vshrl.u32 %v262_v28, 16  ;;  %v269_v10 = vld [vmem:[%s10463_s23 + $0x1e4] sm:$0xf] }
  0xc5   : > { %v1294_v40 = vsel %vm10499_vm4, %v1289_v32, %v1293_v17  ;;  %9328 = vmatprep.mubr.msk.bf16.mxu1 %vm1945_vm1, %v8212_v35  ;;  %v1321_v46 = vrot.slane %v1319_v39, 4  ;;  %v1335_v48 = vshll.u32 %v263_v30, 16  ;;  %v1339_v49 = vshrl.u32 %v263_v30, 16 }
  0xc6   : > { %v1304_v45 = vsel %vm10499_vm4, %v1299_v37, %v1303_v27  ;;  %v1313_v52 = vrot.slane %v1312_v41, 4  ;;  %v1327_v53 = vrot.slane %v1325_v42, 5  ;;  %v1331_v54 = vrot.slane %v1329_v43, 4 }
  0xc7   : > { %v8213_v51 = vcombine.low %v1294_v40, %v1304_v45  ;;  %v1322_v56 = vor.u32 %v1321_v46, %v1317_v38  ;;  %v1337_v57 = vrot.slane %v1335_v48, 5  ;;  %v1341_v58 = vrot.slane %v1339_v49, 4 }
  0xc8   : > { %v1345_v59 = vshll.u32 %v324_v34, 16  ;;  %v1318_v60 = vsel %vm10499_vm4, %v1313_v52, %v1317_v38  ;;  %v1332_v61 = vor.u32 %v1331_v54, %v1327_v53  ;;  %v1350_v63 = vshrl.u32 %v264_v44, 16  ;;  %v270_v38 = vld [vmem:[%s10463_s23 + $0x1e8] sm:$0xf] }
  0xc9   : > { %v1353_v0 = vshll.u32 %v264_v44, 16  ;;  %9329 = vmatmul.mubr.msk.bf16.gmra.mrb[84].mxu1 %vm1945_vm1, %v8213_v51  ;;  %v1323_v1 = vrot.slane %v1322_v56, 4  ;;  %v1342_v2 = vor.u32 %v1341_v58, %v1337_v57  ;;  %v1359_v4 = vshll.u32 %v265_v50, 16  ;;  %v271_v44 = vld [vmem:[%s10463_s23 + $0x1ec] sm:$0xf] }
  0xca   : > { %v1347_v3 = vrot.slane %v1345_v59, 5  ;;  %v1333_v6 = vrot.slane %v1332_v61, 4  ;;  %v1352_v7 = vrot.slane %v1350_v63, 4  ;;  %v1363_v9 = vshrl.u32 %v265_v50, 16  ;;  %v272_v58 = vld [vmem:[%s10463_s23 + $0x1f4] sm:$0xf] }
  0xcb   : > { %9597 = vmatmul.mubr.msk.bf16.gmra.mrb[92].mxu0 %vm1945_vm1, %v10211_v47  ;;  %v1355_v8 = vrot.slane %v1353_v0, 5  ;;  %v1328_v11 = vsel %vm10499_vm4, %v1323_v1, %v1327_v53  ;;  %v1343_v12 = vrot.slane %v1342_v2, 4  ;;  %v1361_v15 = vrot.slane %v1359_v4, 5  ;;  %v326_v53 = vld [vmem:[%s10463_s23 + $0x1f0] sm:$0x1] }
  0xcc   : > { %9600 = vmatprep.mubr.msk.bf16.mxu0 %vm1945_vm1, %v10212_v55  ;;  %v1369_v16 = vshll.u32 %v266_v62, 16  ;;  %v8214_v17 = vcombine.low %v1318_v60, %v1328_v11  ;;  %v1338_v18 = vsel %vm10499_vm4, %v1333_v6, %v1337_v57  ;;  %v1365_v20 = vrot.slane %v1363_v9, 4  ;;  %v10215_v1 = vld [vmem:[%s10463_s23 + $0x210] sm:$0xff]   ;;  %v273_v9 = vld [vmem:[%s10463_s23 + $0x1f8] sm:$0xf] }
  0xcd   : > { %v1356_v19 = vor.u32 %v1355_v8, %v1352_v7  ;;  %v1348_v25 = vsel %vm10499_vm4, %v1343_v12, %v1347_v3  ;;  %v1373_v27 = vshrl.u32 %v266_v62, 16  ;;  %v1379_v28 = vshll.u32 %v267_v5, 16  ;;  %v10216_v8 = vld [vmem:[%s10463_s23 + $0x21c] sm:$0xff]  }
  0xce   : > { %v1371_v26 = vrot.slane %v1369_v16, 5  ;;  %9332 = vmatprep.mubr.msk.bf16.mxu1 %vm1945_vm1, %v8214_v17  ;;  %v8215_v30 = vcombine.low %v1338_v18, %v1348_v25  ;;  %v1366_v32 = vor.u32 %v1365_v20, %v1361_v15  ;;  %v1383_v33 = vshrl.u32 %v267_v5, 16  ;;  %v274_v17 = vld [vmem:[%s10463_s23 + $0x1fc] sm:$0xf] }
  0xcf   : > { %v1357_v31 = vrot.slane %v1356_v19, 4  ;;  %v1375_v34 = vrot.slane %v1373_v27, 4  ;;  %v1381_v35 = vrot.slane %v1379_v28, 5  ;;  %v1389_v37 = vshll.u32 %v325_v23, 16  ;;  %v275_v27 = vld [vmem:[%s10463_s23 + $0x200] sm:$0xf] }
  0xd0   : > { %v1394_v39 = vshrl.u32 %v268_v24, 16  ;;  %v1367_v41 = vrot.slane %v1366_v32, 4  ;;  %v1385_v42 = vrot.slane %v1383_v33, 4  ;;  %v1397_v43 = vshll.u32 %v268_v24, 16  ;;  %v327_v32 = vld [vmem:[%s10463_s23 + $0x204] sm:$0x1] }
  0xd1   : > { %v1362_v40 = vsel %vm10499_vm4, %v1357_v31, %v1361_v15  ;;  %9333 = vmatmul.mubr.msk.bf16.gmra.mrb[88].mxu1 %vm1945_vm1, %v8215_v30  ;;  %v1376_v45 = vor.u32 %v1375_v34, %v1371_v26  ;;  %v1391_v46 = vrot.slane %v1389_v37, 5  ;;  %v1403_v48 = vshll.u32 %v269_v10, 16 }
  0xd2   : > { %v1396_v47 = vrot.slane %v1394_v39, 4  ;;  %v1372_v49 = vsel %vm10499_vm4, %v1367_v41, %v1371_v26  ;;  %v1386_v50 = vor.u32 %v1385_v42, %v1381_v35  ;;  %v1399_v51 = vrot.slane %v1397_v43, 5  ;;  %v10217_v43 = vld [vmem:[%s10463_s23 + $0x224] sm:$0xff]  }
  0xd3   : > { %9601 = vmatmul.mubr.msk.bf16.gmra.mrb[96].mxu0 %vm1945_vm1, %v10213_v22  ;;  %v1407_v52 = vshrl.u32 %v269_v10, 16  ;;  %v8216_v54 = vcombine.low %v1362_v40, %v1372_v49  ;;  %v1377_v55 = vrot.slane %v1376_v45, 4  ;;  %v1405_v56 = vrot.slane %v1403_v48, 5 }
  0xd4   : > { %9604 = vmatprep.mubr.msk.bf16.mxu0 %vm1945_vm1, %v10214_v29  ;;  %v1413_v57 = vshll.u32 %v270_v38, 16  ;;  %v1387_v59 = vrot.slane %v1386_v50, 4  ;;  %v1400_v60 = vor.u32 %v1399_v51, %v1396_v47  ;;  %v1417_v62 = vshrl.u32 %v270_v38, 16  ;;  %v276_v47 = vld [vmem:[%s10463_s23 + $0x208] sm:$0xf] }
  0xd5   : > { %v1409_v61 = vrot.slane %v1407_v52, 4  ;;  %9336 = vmatprep.mubr.msk.bf16.mxu1 %vm1945_vm1, %v8216_v54  ;;  %v1382_v63 = vsel %vm10499_vm4, %v1377_v55, %v1381_v35  ;;  %v1423_v2 = vshll.u32 %v271_v44, 16  ;;  %v1427_v3 = vshrl.u32 %v271_v44, 16  ;;  %v277_v52 = vld [vmem:[%s10463_s23 + $0x20c] sm:$0xf] }
  0xd6   : > { %v1415_v0 = vrot.slane %v1413_v57, 5  ;;  %v1392_v4 = vsel %vm10499_vm4, %v1387_v59, %v1391_v46  ;;  %v1401_v5 = vrot.slane %v1400_v60, 4  ;;  %v1419_v7 = vrot.slane %v1417_v62, 4  ;;  %v10218_v46 = vld [vmem:[%s10463_s23 + $0x230] sm:$0xff]  }
  0xd7   : > { %v1410_v6 = vor.u32 %v1409_v61, %v1405_v56  ;;  %v8217_v11 = vcombine.low %v1382_v63, %v1392_v4  ;;  %v1425_v12 = vrot.slane %v1423_v2, 5  ;;  %v1429_v15 = vrot.slane %v1427_v3, 4 }
  0xd8   : > { %v1433_v16 = vshll.u32 %v326_v53, 16  ;;  %v1406_v18 = vsel %vm10499_vm4, %v1401_v5, %v1405_v56  ;;  %v1420_v20 = vor.u32 %v1419_v7, %v1415_v0  ;;  %v1438_v22 = vshrl.u32 %v272_v58, 16 }
  0xd9   : > { %v1411_v19 = vrot.slane %v1410_v6, 4  ;;  %9337 = vmatmul.mubr.msk.bf16.gmra.mrb[92].mxu1 %vm1945_vm1, %v8217_v11  ;;  %v1430_v23 = vor.u32 %v1429_v15, %v1425_v12  ;;  %v1441_v25 = vshll.u32 %v272_v58, 16  ;;  %v1447_v26 = vshll.u32 %v273_v9, 16  ;;  %v279_v6 = vld [vmem:[%s10463_s23 + $0x214] sm:$0xf] }
  0xda   : > { %v1435_v24 = vrot.slane %v1433_v16, 5  ;;  %v1421_v29 = vrot.slane %v1420_v20, 4  ;;  %v1440_v30 = vrot.slane %v1438_v22, 4  ;;  %v1451_v31 = vshrl.u32 %v273_v9, 16  ;;  %v10219_v22 = vld [vmem:[%s10463_s23 + $0x238] sm:$0xff]  }
  0xdb   : > { %9605 = vmatmul.mubr.msk.bf16.gmra.mrb[100].mxu0 %vm1945_vm1, %v10215_v1  ;;  %v1416_v28 = vsel %vm10499_vm4, %v1411_v19, %v1415_v0  ;;  %v1431_v10 = vrot.slane %v1430_v23, 4  ;;  %v1443_v34 = vrot.slane %v1441_v25, 5  ;;  %v1449_v35 = vrot.slane %v1447_v26, 5  ;;  %v278_v0 = vld [vmem:[%s10463_s23 + $0x210] sm:$0xf] }
  0xdc   : > { %9608 = vmatprep.mubr.msk.bf16.mxu0 %vm1945_vm1, %v10216_v8  ;;  %v8218_v33 = vcombine.low %v1406_v18, %v1416_v28  ;;  %v1426_v37 = vsel %vm10499_vm4, %v1421_v29, %v1425_v12  ;;  %v1453_v38 = vrot.slane %v1451_v31, 4  ;;  %v1457_v39 = vshll.u32 %v274_v17, 16  ;;  %v280_v25 = vld [vmem:[%s10463_s23 + $0x21c] sm:$0xf]  ;;  %v281_v31 = vld [vmem:[%s10463_s23 + $0x220] sm:$0xf] }
  0xdd   : > { %v1461_v40 = vshrl.u32 %v274_v17, 16  ;;  %v1436_v41 = vsel %vm10499_vm4, %v1431_v10, %v1435_v24  ;;  %v1444_v42 = vor.u32 %v1443_v34, %v1440_v30  ;;  %v1467_v44 = vshll.u32 %v275_v27, 16  ;;  %v328_v17 = vld [vmem:[%s10463_s23 + $0x218] sm:$0x1]  ;;  %v10220_v30 = vld [vmem:[%s10463_s23 + $0x244] sm:$0xff]  }
  0xde   : > { %9340 = vmatprep.mubr.msk.bf16.mxu1 %vm1945_vm1, %v8218_v33  ;;  %v1471_v45 = vshrl.u32 %v275_v27, 16  ;;  %v8219_v48 = vcombine.low %v1426_v37, %v1436_v41  ;;  %v1454_v49 = vor.u32 %v1453_v38, %v1449_v35  ;;  %v1459_v50 = vrot.slane %v1457_v39, 5  ;;  %v282_v38 = vld [vmem:[%s10463_s23 + $0x224] sm:$0xf] }
  0xdf   : > { %v1463_v51 = vrot.slane %v1461_v40, 4  ;;  %v1445_v53 = vrot.slane %v1444_v42, 4  ;;  %v1469_v54 = vrot.slane %v1467_v44, 5  ;;  %v1477_v56 = vshll.u32 %v327_v32, 16 }
  0xe0   : > { %v1473_v55 = vrot.slane %v1471_v45, 4  ;;  %v1455_v57 = vrot.slane %v1454_v49, 4  ;;  %v1482_v59 = vshrl.u32 %v276_v47, 16  ;;  %v1485_v60 = vshll.u32 %v276_v47, 16  ;;  %v283_v49 = vld [vmem:[%s10463_s23 + $0x228] sm:$0xf] }
  0xe1   : > { %v1464_v58 = vor.u32 %v1463_v51, %v1459_v50  ;;  %9341 = vmatmul.mubr.msk.bf16.gmra.mrb[96].mxu1 %vm1945_vm1, %v8219_v48  ;;  %v1450_v61 = vsel %vm10499_vm4, %v1445_v53, %v1449_v35  ;;  %v1479_v63 = vrot.slane %v1477_v56, 5  ;;  %v1491_v1 = vshll.u32 %v277_v52, 16 }
  0xe2   : > { %v1474_v62 = vor.u32 %v1473_v55, %v1469_v54  ;;  %v1460_v2 = vsel %vm10499_vm4, %v1455_v57, %v1459_v50  ;;  %v1484_v4 = vrot.slane %v1482_v59, 4  ;;  %v1487_v5 = vrot.slane %v1485_v60, 5  ;;  %v284_v59 = vld [vmem:[%s10463_s23 + $0x230] sm:$0xf] }
  0xe3   : > { %9609 = vmatmul.mubr.msk.bf16.gmra.mrb[104].mxu0 %vm1945_vm1, %v10217_v43  ;;  %v1465_v3 = vrot.slane %v1464_v58, 4  ;;  %v8220_v7 = vcombine.low %v1450_v61, %v1460_v2  ;;  %v1493_v9 = vrot.slane %v1491_v1, 5  ;;  %v1495_v11 = vshrl.u32 %v277_v52, 16  ;;  %v329_v58 = vld [vmem:[%s10463_s23 + $0x22c] sm:$0x1] }
  0xe4   : > { %9612 = vmatprep.mubr.msk.bf16.mxu0 %vm1945_vm1, %v10218_v46  ;;  %v1475_v8 = vrot.slane %v1474_v62, 4  ;;  %v1488_v15 = vor.u32 %v1487_v5, %v1484_v4  ;;  %v1501_v16 = vshll.u32 %v278_v0, 16  ;;  %v1505_v18 = vshrl.u32 %v278_v0, 16  ;;  %v10221_v62 = vld [vmem:[%s10463_s23 + $0x24c] sm:$0xff]   ;;  %v10222_v5 = vld [vmem:[%s10463_s23 + $0x258] sm:$0xff]  }
  0xe5   : > { %v1470_v12 = vsel %vm10499_vm4, %v1465_v3, %v1469_v54  ;;  %9344 = vmatprep.mubr.msk.bf16.mxu1 %vm1945_vm1, %v8220_v7  ;;  %v1497_v20 = vrot.slane %v1495_v11, 4  ;;  %v1511_v23 = vshll.u32 %v279_v6, 16  ;;  %v1515_v24 = vshrl.u32 %v279_v6, 16  ;;  %v285_v6 = vld [vmem:[%s10463_s23 + $0x234] sm:$0xf] }
  0xe6   : > { %v1480_v19 = vsel %vm10499_vm4, %v1475_v8, %v1479_v63  ;;  %v1489_v27 = vrot.slane %v1488_v15, 4  ;;  %v1503_v28 = vrot.slane %v1501_v16, 5  ;;  %v1507_v29 = vrot.slane %v1505_v18, 4 }
  0xe7   : > { %v8221_v26 = vcombine.low %v1470_v12, %v1480_v19  ;;  %v1498_v32 = vor.u32 %v1497_v20, %v1493_v9  ;;  %v1513_v33 = vrot.slane %v1511_v23, 5  ;;  %v1517_v10 = vrot.slane %v1515_v24, 4 }
  0xe8   : > { %v1521_v34 = vshll.u32 %v328_v17, 16  ;;  %v1494_v35 = vsel %vm10499_vm4, %v1489_v27, %v1493_v9  ;;  %v1508_v37 = vor.u32 %v1507_v29, %v1503_v28  ;;  %v1526_v39 = vshrl.u32 %v280_v25, 16  ;;  %v286_v17 = vld [vmem:[%s10463_s23 + $0x238] sm:$0xf] }
  0xe9   : > { %v1529_v40 = vshll.u32 %v280_v25, 16  ;;  %9345 = vmatmul.mubr.msk.bf16.gmra.mrb[100].mxu1 %vm1945_vm1, %v8221_v26  ;;  %v1499_v41 = vrot.slane %v1498_v32, 4  ;;  %v1518_v42 = vor.u32 %v1517_v10, %v1513_v33  ;;  %v1535_v44 = vshll.u32 %v281_v31, 16 }
  0xea   : > { %v1523_v43 = vrot.slane %v1521_v34, 5  ;;  %v1509_v45 = vrot.slane %v1508_v37, 4  ;;  %v1528_v46 = vrot.slane %v1526_v39, 4  ;;  %v1539_v48 = vshrl.u32 %v281_v31, 16 }
  0xeb   : > { %9613 = vmatmul.mubr.msk.bf16.gmra.mrb[108].mxu0 %vm1945_vm1, %v10219_v22  ;;  %v1531_v47 = vrot.slane %v1529_v40, 5  ;;  %v1504_v50 = vsel %vm10499_vm4, %v1499_v41, %v1503_v28  ;;  %v1519_v51 = vrot.slane %v1518_v42, 4  ;;  %v1537_v52 = vrot.slane %v1535_v44, 5  ;;  %v287_v28 = vld [vmem:[%s10463_s23 + $0x23c] sm:$0xf]  ;;  %v10223_v40 = vld [vmem:[%s10463_s23 + $0x260] sm:$0xff]  }
  0xec   : > { %9616 = vmatprep.mubr.msk.bf16.mxu0 %vm1945_vm1, %v10220_v30  ;;  %v1545_v53 = vshll.u32 %v282_v38, 16  ;;  %v8222_v54 = vcombine.low %v1494_v35, %v1504_v50  ;;  %v1514_v55 = vsel %vm10499_vm4, %v1509_v45, %v1513_v33  ;;  %v1541_v57 = vrot.slane %v1539_v48, 4  ;;  %v330_v35 = vld [vmem:[%s10463_s23 + $0x240] sm:$0x1]  ;;  %v10224_v48 = vld [vmem:[%s10463_s23 + $0x26c] sm:$0xff]  }
  0xed   : > { %v1532_v56 = vor.u32 %v1531_v47, %v1528_v46  ;;  %v1524_v60 = vsel %vm10499_vm4, %v1519_v51, %v1523_v43  ;;  %v1549_v63 = vshrl.u32 %v282_v38, 16  ;;  %v1555_v0 = vshll.u32 %v283_v49, 16  ;;  %v288_v43 = vld [vmem:[%s10463_s23 + $0x244] sm:$0xf] }
  0xee   : > { %v1547_v61 = vrot.slane %v1545_v53, 5  ;;  %9348 = vmatprep.mubr.msk.bf16.mxu1 %vm1945_vm1, %v8222_v54  ;;  %v8223_v1 = vcombine.low %v1514_v55, %v1524_v60  ;;  %v1542_v3 = vor.u32 %v1541_v57, %v1537_v52  ;;  %v1559_v4 = vshrl.u32 %v283_v49, 16  ;;  %v289_v49 = vld [vmem:[%s10463_s23 + $0x248] sm:$0xf]  ;;  %v290_v60 = vld [vmem:[%s10463_s23 + $0x24c] sm:$0xf] }
  0xef   : > { %v1533_v2 = vrot.slane %v1532_v56, 4  ;;  %v1551_v7 = vrot.slane %v1549_v63, 4  ;;  %v1557_v8 = vrot.slane %v1555_v0, 5  ;;  %v1565_v9 = vshll.u32 %v329_v58, 16 }
  0xf0   : > { %v1570_v11 = vshrl.u32 %v284_v59, 16  ;;  %v1543_v15 = vrot.slane %v1542_v3, 4  ;;  %v1561_v16 = vrot.slane %v1559_v4, 4  ;;  %v1573_v18 = vshll.u32 %v284_v59, 16  ;;  %v291_v3 = vld [vmem:[%s10463_s23 + $0x250] sm:$0xf] }
  0xf1   : > { %v1538_v12 = vsel %vm10499_vm4, %v1533_v2, %v1537_v52  ;;  %9349 = vmatmul.mubr.msk.bf16.gmra.mrb[104].mxu1 %vm1945_vm1, %v8223_v1  ;;  %v1552_v19 = vor.u32 %v1551_v7, %v1547_v61  ;;  %v1567_v20 = vrot.slane %v1565_v9, 5  ;;  %v1579_v23 = vshll.u32 %v285_v6, 16 }
  0xf2   : > { %v1572_v22 = vrot.slane %v1570_v11, 4  ;;  %v1548_v24 = vsel %vm10499_vm4, %v1543_v15, %v1547_v61  ;;  %v1562_v25 = vor.u32 %v1561_v16, %v1557_v8  ;;  %v1575_v26 = vrot.slane %v1573_v18, 5  ;;  %v10225_v18 = vld [vmem:[%s10463_s23 + $0x274] sm:$0xff]  }
  0xf3   : > { %9617 = vmatmul.mubr.msk.bf16.gmra.mrb[112].mxu0 %vm1945_vm1, %v10221_v62  ;;  %v1583_v27 = vshrl.u32 %v285_v6, 16  ;;  %v8224_v29 = vcombine.low %v1538_v12, %v1548_v24  ;;  %v1553_v30 = vrot.slane %v1552_v19, 4  ;;  %v1581_v31 = vrot.slane %v1579_v23, 5  ;;  %v331_v12 = vld [vmem:[%s10463_s23 + $0x254] sm:$0x1] }
  0xf4   : > { %9620 = vmatprep.mubr.msk.bf16.mxu0 %vm1945_vm1, %v10222_v5  ;;  %v1589_v32 = vshll.u32 %v286_v17, 16  ;;  %v1563_v33 = vrot.slane %v1562_v25, 4  ;;  %v1576_v10 = vor.u32 %v1575_v26, %v1572_v22  ;;  %v1593_v37 = vshrl.u32 %v286_v17, 16  ;;  %v292_v22 = vld [vmem:[%s10463_s23 + $0x258] sm:$0xf] }
  0xf5   : > { %v1585_v34 = vrot.slane %v1583_v27, 4  ;;  %9352 = vmatprep.mubr.msk.bf16.mxu1 %vm1945_vm1, %v8224_v29  ;;  %v1558_v38 = vsel %vm10499_vm4, %v1553_v30, %v1557_v8  ;;  %v1599_v41 = vshll.u32 %v287_v28, 16  ;;  %v1603_v42 = vshrl.u32 %v287_v28, 16  ;;  %v10226_v27 = vld [vmem:[%s10463_s23 + $0x280] sm:$0xff]   ;;  %v293_v28 = vld [vmem:[%s10463_s23 + $0x25c] sm:$0xf] }
  0xf6   : > { %v1591_v39 = vrot.slane %v1589_v32, 5  ;;  %v1568_v44 = vsel %vm10499_vm4, %v1563_v33, %v1567_v20  ;;  %v1577_v45 = vrot.slane %v1576_v10, 4  ;;  %v1595_v47 = vrot.slane %v1593_v37, 4 }
  0xf7   : > { %v1586_v46 = vor.u32 %v1585_v34, %v1581_v31  ;;  %v8225_v50 = vcombine.low %v1558_v38, %v1568_v44  ;;  %v1601_v51 = vrot.slane %v1599_v41, 5  ;;  %v1605_v52 = vrot.slane %v1603_v42, 4 }
  0xf8   : > { %v1609_v53 = vshll.u32 %v330_v35, 16  ;;  %v1582_v54 = vsel %vm10499_vm4, %v1577_v45, %v1581_v31  ;;  %v1596_v56 = vor.u32 %v1595_v47, %v1591_v39  ;;  %v1614_v57 = vshrl.u32 %v288_v43, 16 }
  0xf9   : > { %v1587_v55 = vrot.slane %v1586_v46, 4  ;;  %9353 = vmatmul.mubr.msk.bf16.gmra.mrb[108].mxu1 %vm1945_vm1, %v8225_v50  ;;  %v1606_v58 = vor.u32 %v1605_v52, %v1601_v51  ;;  %v1617_v61 = vshll.u32 %v288_v43, 16  ;;  %v1623_v62 = vshll.u32 %v289_v49, 16  ;;  %v295_v46 = vld [vmem:[%s10463_s23 + $0x264] sm:$0xf] }
  0xfa   : > { %v1611_v59 = vrot.slane %v1609_v53, 5  ;;  %v1597_v0 = vrot.slane %v1596_v56, 4  ;;  %v1616_v1 = vrot.slane %v1614_v57, 4  ;;  %v1627_v2 = vshrl.u32 %v289_v49, 16 }
  0xfb   : > { %9621 = vmatmul.mubr.msk.bf16.gmra.mrb[116].mxu0 %vm1945_vm1, %v10223_v40  ;;  %v1592_v63 = vsel %vm10499_vm4, %v1587_v55, %v1591_v39  ;;  %v1607_v5 = vrot.slane %v1606_v58, 4  ;;  %v1619_v6 = vrot.slane %v1617_v61, 5  ;;  %v1625_v7 = vrot.slane %v1623_v62, 5  ;;  %v294_v40 = vld [vmem:[%s10463_s23 + $0x260] sm:$0xf]  ;;  %v10227_v58 = vld [vmem:[%s10463_s23 + $0x288] sm:$0xff]  }
  0xfc   : > { %9624 = vmatprep.mubr.msk.bf16.mxu0 %vm1945_vm1, %v10224_v48  ;;  %v8226_v4 = vcombine.low %v1582_v54, %v1592_v63  ;;  %v1602_v8 = vsel %vm10499_vm4, %v1597_v0, %v1601_v51  ;;  %v1629_v9 = vrot.slane %v1627_v2, 4  ;;  %v1633_v11 = vshll.u32 %v290_v60, 16  ;;  %v332_v54 = vld [vmem:[%s10463_s23 + $0x268] sm:$0x1]  ;;  %v8687_v61 = vld [vmem:[%s10463_s23 + $0x14] sm:$0xf] }
  0xfd   : > { %v1637_v15 = vshrl.u32 %v290_v60, 16  ;;  %v1612_v16 = vsel %vm10499_vm4, %v1607_v5, %v1611_v59  ;;  %v1620_v17 = vor.u32 %v1619_v6, %v1616_v1  ;;  %v1643_v19 = vshll.u32 %v291_v3, 16  ;;  %v8688_v2 = vld [vmem:[%s10463_s23 + $0x18] sm:$0xf] }
  0xfe   : > { %9356 = vmatprep.mubr.msk.bf16.mxu1 %vm1945_vm1, %v8226_v4  ;;  %v1647_v20 = vshrl.u32 %v291_v3, 16  ;;  %v8227_v23 = vcombine.low %v1602_v8, %v1612_v16  ;;  %v1630_v24 = vor.u32 %v1629_v9, %v1625_v7  ;;  %v1635_v25 = vrot.slane %v1633_v11, 5  ;;  %v8689_v9 = vld [vmem:[%s10463_s23 + $0x1c] sm:$0xf] }
  0xff   : > { %v1639_v26 = vrot.slane %v1637_v15, 4  ;;  %v1621_v29 = vrot.slane %v1620_v17, 4  ;;  %v1645_v30 = vrot.slane %v1643_v19, 5  ;;  %v1653_v32 = vshll.u32 %v331_v12, 16 }
 0x100   : > { %v1649_v31 = vrot.slane %v1647_v20, 4  ;;  %v1631_v33 = vrot.slane %v1630_v24, 4  ;;  %v1658_v34 = vshrl.u32 %v292_v22, 16  ;;  %v1661_v35 = vshll.u32 %v292_v22, 16  ;;  %v296_v24 = vld [vmem:[%s10463_s23 + $0x26c] sm:$0xf] }
 0x101   : > { %v1640_v10 = vor.u32 %v1639_v26, %v1635_v25  ;;  %9357 = vmatmul.mubr.msk.bf16.gmra.mrb[112].mxu1 %vm1945_vm1, %v8227_v23  ;;  %v1626_v37 = vsel %vm10499_vm4, %v1621_v29, %v1625_v7  ;;  %v1655_v39 = vrot.slane %v1653_v32, 5  ;;  %v1667_v41 = vshll.u32 %v293_v28, 16 }
 0x102   : > { %v1650_v38 = vor.u32 %v1649_v31, %v1645_v30  ;;  %v1636_v42 = vsel %vm10499_vm4, %v1631_v33, %v1635_v25  ;;  %v1660_v44 = vrot.slane %v1658_v34, 4  ;;  %v1663_v45 = vrot.slane %v1661_v35, 5  ;;  %v297_v33 = vld [vmem:[%s10463_s23 + $0x270] sm:$0xf] }
 0x103   : > { %9625 = vmatmul.mubr.msk.bf16.gmra.mrb[120].mxu0 %vm1945_vm1, %v10225_v18  ;;  %v1641_v43 = vrot.slane %v1640_v10, 4  ;;  %v8228_v47 = vcombine.low %v1626_v37, %v1636_v42  ;;  %v1669_v49 = vrot.slane %v1667_v41, 5  ;;  %v1671_v50 = vshrl.u32 %v293_v28, 16  ;;  %v298_v37 = vld [vmem:[%s10463_s23 + $0x274] sm:$0xf] }
 0x104   : > { %9628 = vmatprep.mubr.msk.bf16.mxu0 %vm1945_vm1, %v10226_v27  ;;  %v1651_v48 = vrot.slane %v1650_v38, 4  ;;  %v1664_v52 = vor.u32 %v1663_v45, %v1660_v44  ;;  %v1677_v53 = vshll.u32 %v294_v40, 16  ;;  %v1681_v55 = vshrl.u32 %v294_v40, 16 }
 0x105   : > { %v1646_v51 = vsel %vm10499_vm4, %v1641_v43, %v1645_v30  ;;  %9360 = vmatprep.mubr.msk.bf16.mxu1 %vm1945_vm1, %v8228_v47  ;;  %v1673_v57 = vrot.slane %v1671_v50, 4  ;;  %v1687_v59 = vshll.u32 %v295_v46, 16  ;;  %v1691_v60 = vshrl.u32 %v295_v46, 16  ;;  %v8690_v43 = vld [vmem:[%s10463_s23 + $0x20] sm:$0xf] }
 0x106   : > { %v1656_v56 = vsel %vm10499_vm4, %v1651_v48, %v1655_v39  ;;  %v1665_v63 = vrot.slane %v1664_v52, 4  ;;  %v1679_v0 = vrot.slane %v1677_v53, 5  ;;  %v1683_v1 = vrot.slane %v1681_v55, 4  ;;  %v8691_v55 = vld [vmem:[%s10463_s23 + $0x24] sm:$0x1] }
 0x107   : > { %v8229_v62 = vcombine.low %v1646_v51, %v1656_v56  ;;  %v1674_v3 = vor.u32 %v1673_v57, %v1669_v49  ;;  %v1689_v4 = vrot.slane %v1687_v59, 5  ;;  %v1693_v5 = vrot.slane %v1691_v60, 4 }
 0x108   : > { %v1697_v6 = vshll.u32 %v332_v54, 16  ;;  %v1670_v7 = vsel %vm10499_vm4, %v1665_v63, %v1669_v49  ;;  %v1684_v8 = vor.u32 %v1683_v1, %v1679_v0  ;;  %v5238_v11 = vshrl.u32 %v8687_v61, 16 }
 0x109   : > { %v5241_v12 = vshll.u32 %v8687_v61, 16  ;;  %9361 = vmatmul.mubr.msk.bf16.gmra.mrb[116].mxu1 %vm1945_vm1, %v8229_v62  ;;  %v1675_v15 = vrot.slane %v1674_v3, 4  ;;  %v1694_v16 = vor.u32 %v1693_v5, %v1689_v4  ;;  %v5247_v18 = vshll.u32 %v8688_v2, 16  ;;  %v299_v61 = vld [vmem:[%s10463_s23 + $0x278] sm:$0xf] }
 0x10a   : > { %v1699_v17 = vrot.slane %v1697_v6, 5  ;;  %v1685_v19 = vrot.slane %v1684_v8, 4  ;;  %v5240_v20 = vrot.slane %v5238_v11, 4  ;;  %v5251_v23 = vshrl.u32 %v8688_v2, 16  ;;  %v333_v5 = vld [vmem:[%s10463_s23 + $0x27c] sm:$0x1] }
 0x10b   : > { %9629 = vmatmul.mubr.msk.bf16.gmra.mrb[124].mxu0 %vm1945_vm1, %v10227_v58  ;;  %v5243_v22 = vrot.slane %v5241_v12, 5  ;;  %v1680_v25 = vsel %vm10499_vm4, %v1675_v15, %v1679_v0  ;;  %v1695_v26 = vrot.slane %v1694_v16, 4  ;;  %v5249_v27 = vrot.slane %v5247_v18, 5  ;;  %v8692_v12 = vld [vmem:[%s10463_s23 + $0x28] sm:$0xf] }
 0x10c   : > { %v5257_v28 = vshll.u32 %v8689_v9, 16  ;;  %v8230_v29 = vcombine.low %v1670_v7, %v1680_v25  ;;  %v1690_v30 = vsel %vm10499_vm4, %v1685_v19, %v1689_v4  ;;  %v5253_v32 = vrot.slane %v5251_v23, 4  ;;  %v8693_v19 = vld [vmem:[%s10463_s23 + $0x2c] sm:$0xf] }
 0x10d   : > { %v5244_v31 = vor.u32 %v5243_v22, %v5240_v20  ;;  %v1700_v10 = vsel %vm10499_vm4, %v1695_v26, %v1699_v17  ;;  %v5261_v35 = vshrl.u32 %v8689_v9, 16  ;;  %v1702_v38 = vshrl.u32 %v296_v24, 16 }
 0x10e   : > { %v5259_v34 = vrot.slane %v5257_v28, 5  ;;  %9364 = vmatprep.mubr.msk.bf16.mxu1 %vm1945_vm1, %v8230_v29  ;;  %v8231_v39 = vcombine.low %v1690_v30, %v1700_v10  ;;  %v5254_v41 = vor.u32 %v5253_v32, %v5249_v27  ;;  %v1705_v42 = vshll.u32 %v296_v24, 16 }
 0x10f   : > { %v5245_v40 = vrot.slane %v5244_v31, 4  ;;  %v5263_v44 = vrot.slane %v5261_v35, 4  ;;  %v1704_v45 = vrot.slane %v1702_v38, 4  ;;  %v1711_v46 = vshll.u32 %v297_v33, 16  ;;  %v8694_v31 = vld [vmem:[%s10463_s23 + $0x30] sm:$0xf] }
 0x110   : > { %v1715_v47 = vshrl.u32 %v297_v33, 16  ;;  %v5255_v49 = vrot.slane %v5254_v41, 4  ;;  %v1707_v50 = vrot.slane %v1705_v42, 5  ;;  %v1721_v51 = vshll.u32 %v298_v37, 16  ;;  %v8695_v38 = vld [vmem:[%s10463_s23 + $0x34] sm:$0xf] }
 0x111   : > { %v5250_v48 = vsel %vm10499_vm4, %v5245_v40, %v5249_v27  ;;  %9365 = vmatmul.mubr.msk.bf16.gmra.mrb[120].mxu1 %vm1945_vm1, %v8231_v39  ;;  %v5264_v52 = vor.u32 %v5263_v44, %v5259_v34  ;;  %v1713_v53 = vrot.slane %v1711_v46, 5  ;;  %v5267_v56 = vshll.u32 %v8690_v43, 16 }
 0x112   : > { %v1717_v54 = vrot.slane %v1715_v47, 4  ;;  %v5260_v57 = vsel %vm10499_vm4, %v5255_v49, %v5259_v34  ;;  %v1708_v58 = vor.u32 %v1707_v50, %v1704_v45  ;;  %v1723_v59 = vrot.slane %v1721_v51, 5  ;;  %v8696_v47 = vld [vmem:[%s10463_s23 + $0x38] sm:$0x1]  ;;  %v10281_v50 = vld [vmem:[%s10463_s23] sm:$0xf] }
 0x113   : > { %v5271_v60 = vshrl.u32 %v8690_v43, 16  ;;  %v5265_v62 = vrot.slane %v5264_v52, 4  ;;  %v8849_v63 = vcombine.low %v5250_v48, %v5260_v57  ;;  %v5269_v1 = vrot.slane %v5267_v56, 5  ;;  %v10282_v51 = vld [vmem:[%s10463_s23 + $0x4] sm:$0xf] }
 0x114   : > { %v1718_v0 = vor.u32 %v1717_v54, %v1713_v53  ;;  %v1709_v2 = vrot.slane %v1708_v58, 4  ;;  %v5277_v4 = vshll.u32 %v8691_v55, 16  ;;  %v1725_v6 = vshrl.u32 %v298_v37, 16  ;;  %v8697_v54 = vld [vmem:[%s10463_s23 + $0x3c] sm:$0xf] }
 0x115   : > { %v5273_v3 = vrot.slane %v5271_v60, 4  ;;  %9634 = vmatprep.mubr.msk.bf16.mxu0 %vm1945_vm1, %v8849_v63  ;;  %v5270_v8 = vsel %vm10499_vm4, %v5265_v62, %v5269_v1  ;;  %v1731_v9 = vshll.u32 %v299_v61, 16  ;;  %v1735_v11 = vshrl.u32 %v299_v61, 16 }
 0x116   : > { %v1719_v7 = vrot.slane %v1718_v0, 4  ;;  %v1714_v15 = vsel %vm10499_vm4, %v1709_v2, %v1713_v53  ;;  %v5279_v17 = vrot.slane %v5277_v4, 5  ;;  %v1727_v18 = vrot.slane %v1725_v6, 4 }
 0x117   : > { %v5274_v16 = vor.u32 %v5273_v3, %v5269_v1  ;;  %v1733_v22 = vrot.slane %v1731_v9, 5  ;;  %v1737_v23 = vrot.slane %v1735_v11, 4  ;;  %v1741_v24 = vshll.u32 %v333_v5, 16 }
 0x118   : > { %v1724_v20 = vsel %vm10499_vm4, %v1719_v7, %v1723_v59  ;;  %v1728_v27 = vor.u32 %v1727_v18, %v1723_v59  ;;  %v5282_v28 = vshrl.u32 %v8692_v12, 16  ;;  %v5285_v32 = vshll.u32 %v8692_v12, 16  ;;  %v8698_v59 = vld [vmem:[%s10463_s23 + $0x40] sm:$0xf]  ;;  %v8699_v7 = vld [vmem:[%s10463_s23 + $0x44] sm:$0xf] }
 0x119   : > { %v8232_v25 = vcombine.low %v1714_v15, %v1724_v20  ;;  %v5275_v26 = vrot.slane %v5274_v16, 4  ;;  %v1738_v29 = vor.u32 %v1737_v23, %v1733_v22  ;;  %v1743_v30 = vrot.slane %v1741_v24, 5  ;;  %v8700_v16 = vld [vmem:[%s10463_s23 + $0x48] sm:$0xf] }
 0x11a   : > { %v5291_v33 = vshll.u32 %v8693_v19, 16  ;;  %v1729_v34 = vrot.slane %v1728_v27, 4  ;;  %v5284_v35 = vrot.slane %v5282_v28, 4  ;;  %v5295_v37 = vshrl.u32 %v8693_v19, 16 }
 0x11b   : > { %9368 = vmatprep.mubr.msk.bf16.mxu1 %vm1945_vm1, %v8232_v25  ;;  %v5280_v10 = vsel %vm10499_vm4, %v5275_v26, %v5279_v17  ;;  %v1739_v40 = vrot.slane %v1738_v29, 4  ;;  %v5287_v41 = vrot.slane %v5285_v32, 5  ;;  %v5301_v45 = vshll.u32 %v8694_v31, 16  ;;  %v8701_v26 = vld [vmem:[%s10463_s23 + $0x4c] sm:$0x1] }
 0x11c   : > { %v8850_v39 = vcombine.low %v5270_v8, %v5280_v10  ;;  %v5293_v42 = vrot.slane %v5291_v33, 5  ;;  %v1734_v43 = vsel %vm10499_vm4, %v1729_v34, %v1733_v22  ;;  %v5297_v44 = vrot.slane %v5295_v37, 4  ;;  %v10283_v29 = vld [vmem:[%s10463_s23 + $0x14] sm:$0xf]  ;;  %v8702_v37 = vld [vmem:[%s10463_s23 + $0x50] sm:$0xf] }
 0x11d   : > { %v5305_v46 = vshrl.u32 %v8694_v31, 16  ;;  %v1744_v48 = vsel %vm10499_vm4, %v1739_v40, %v1743_v30  ;;  %v5288_v49 = vor.u32 %v5287_v41, %v5284_v35  ;;  %v8299_v52 = vcombine.low %v10281_v50, %v10282_v51  ;;  %v10284_v30 = vld [vmem:[%s10463_s23 + $0x18] sm:$0xf]  ;;  %v10285_v50 = vld [vmem:[%s10463_s23 + $0x1c] sm:$0xf] }
 0x11e   : > { %9635 = vmatmul.mubr.msk.bf16.vlgmr.msra.gmra.mrb[0].mxu0 %vm1945_vm1, %v8850_v39  ;;  %v5311_v53 = vshll.u32 %v8695_v38, 16  ;;  %v8233_v55 = vcombine.low %v1734_v43, %v1744_v48  ;;  %v5298_v56 = vor.u32 %v5297_v44, %v5293_v42  ;;  %v5303_v57 = vrot.slane %v5301_v45, 5  ;;  %v10286_v51 = vld [vmem:[%s10463_s23 + $0x20] sm:$0xf] }
 0x11f   : > { %v5307_v58 = vrot.slane %v5305_v46, 4  ;;  %v5289_v60 = vrot.slane %v5288_v49, 4  ;;  %v5315_v62 = vshrl.u32 %v8695_v38, 16  ;;  %v5321_v63 = vshll.u32 %v8696_v47, 16  ;;  %v8704_v47 = vld [vmem:[%s10463_s23 + $0x58] sm:$0xf] }
 0x120   : > { %v5313_v61 = vrot.slane %v5311_v53, 5  ;;  %9369 = vmatmul.mubr.msk.bf16.gmra.mrb[124].mxu1 %vm1945_vm1, %v8233_v55  ;;  %v5299_v0 = vrot.slane %v5298_v56, 4  ;;  %v5326_v2 = vshrl.u32 %v8697_v54, 16  ;;  %v5329_v3 = vshll.u32 %v8697_v54, 16 }
 0x121   : > { %v5308_v1 = vor.u32 %v5307_v58, %v5303_v57  ;;  %v5294_v4 = vsel %vm10499_vm4, %v5289_v60, %v5293_v42  ;;  %9374 = vmatprep.mubr.msk.bf16.mxu1 %vm1945_vm1, %v8299_v52  ;;  %v5317_v5 = vrot.slane %v5315_v62, 4  ;;  %v5323_v6 = vrot.slane %v5321_v63, 5  ;;  %v8703_v42 = vld [vmem:[%s10463_s23 + $0x54] sm:$0xf] }
 0x122   : > { %v5335_v8 = vshll.u32 %v8698_v59, 16  ;;  %v5304_v9 = vsel %vm10499_vm4, %v5299_v0, %v5303_v57  ;;  %v5328_v12 = vrot.slane %v5326_v2, 4  ;;  %v5331_v15 = vrot.slane %v5329_v3, 5 }
 0x123   : > { %v5309_v11 = vrot.slane %v5308_v1, 4  ;;  %v8851_v17 = vcombine.low %v5294_v4, %v5304_v9  ;;  %v5318_v18 = vor.u32 %v5317_v5, %v5313_v61  ;;  %v5339_v20 = vshrl.u32 %v8698_v59, 16  ;;  %v8705_v59 = vld [vmem:[%s10463_s23 + $0x5c] sm:$0xf]  ;;  %v8706_v4 = vld [vmem:[%s10463_s23 + $0x60] sm:$0x1] }
 0x124   : > { %v5337_v19 = vrot.slane %v5335_v8, 5  ;;  %v5332_v23 = vor.u32 %v5331_v15, %v5328_v12  ;;  %v5345_v24 = vshll.u32 %v8699_v7, 16  ;;  %v5349_v25 = vshrl.u32 %v8699_v7, 16  ;;  %v10287_v7 = vld [vmem:[%s10463_s23 + $0x28] sm:$0xf] }
 0x125   : > { %v5314_v22 = vsel %vm10499_vm4, %v5309_v11, %v5313_v61  ;;  %9638 = vmatprep.mubr.msk.bf16.mxu0 %vm1945_vm1, %v8851_v17  ;;  %v5319_v27 = vrot.slane %v5318_v18, 4  ;;  %v5341_v28 = vrot.slane %v5339_v20, 4  ;;  %v8301_v31 = vcombine.low %v10283_v29, %v10284_v30  ;;  %v10288_v8 = vld [vmem:[%s10463_s23 + $0x2c] sm:$0xf]  ;;  %v8707_v12 = vld [vmem:[%s10463_s23 + $0x64] sm:$0xf] }
 0x126   : > { %v5355_v32 = vshll.u32 %v8700_v16, 16  ;;  %v5333_v33 = vrot.slane %v5332_v23, 4  ;;  %v5347_v10 = vrot.slane %v5345_v24, 5  ;;  %v5351_v34 = vrot.slane %v5349_v25, 4  ;;  %v10289_v24 = vld [vmem:[%s10463_s23 + $0x30] sm:$0xf] }
 0x127   : > { %v5359_v35 = vshrl.u32 %v8700_v16, 16  ;;  %v5324_v38 = vsel %vm10499_vm4, %v5319_v27, %v5323_v6  ;;  %v5342_v39 = vor.u32 %v5341_v28, %v5337_v19  ;;  %v5365_v41 = vshll.u32 %v8701_v26, 16  ;;  %v10290_v25 = vld [vmem:[%s10463_s23 + $0x34] sm:$0xf] }
 0x128   : > { %v5357_v40 = vrot.slane %v5355_v32, 5  ;;  %v8852_v43 = vcombine.low %v5314_v22, %v5324_v38  ;;  %9375 = vmatmul.mubr.msk.bf16.vlgmr.msra.gmra.mrb[0].mxu1 %vm1945_vm1, %v8300_v21  ;;  %v5338_v44 = vsel %vm10499_vm4, %v5333_v33, %v5337_v19  ;;  %v5352_v45 = vor.u32 %v5351_v34, %v5347_v10  ;;  %v8708_v19 = vld [vmem:[%s10463_s23 + $0x68] sm:$0xf]  ;;  %v8709_v33 = vld [vmem:[%s10463_s23 + $0x6c] sm:$0xf] }
 0x129   : > { %v5361_v46 = vrot.slane %v5359_v35, 4  ;;  %v5343_v48 = vrot.slane %v5342_v39, 4  ;;  %9378 = vmatprep.mubr.msk.bf16.mxu1 %vm1945_vm1, %v8301_v31  ;;  %v5367_v49 = vrot.slane %v5365_v41, 5  ;;  %v8302_v52 = vcombine.low %v10285_v50, %v10286_v51  ;;  %v10291_v51 = vld [vmem:[%s10463_s23 + $0x3c] sm:$0xf] }
 0x12a   : > { %v5370_v53 = vshrl.u32 %v8702_v37, 16  ;;  %9639 = vmatmul.mubr.msk.bf16.gmra.mrb[4].mxu0 %vm1945_vm1, %v8852_v43  ;;  %v5353_v13 = vrot.slane %v5352_v45, 4  ;;  %v5373_v21 = vshll.u32 %v8702_v37, 16  ;;  %v5379_v54 = vshll.u32 %v8703_v42, 16 }
 0x12b   : > { %v5362_v14 = vor.u32 %v5361_v46, %v5357_v40  ;;  %v5348_v55 = vsel %vm10499_vm4, %v5343_v48, %v5347_v10  ;;  %v5383_v57 = vshrl.u32 %v8703_v42, 16  ;;  %v5389_v58 = vshll.u32 %v8704_v47, 16 }
 0x12c   : > { %v5372_v56 = vrot.slane %v5370_v53, 4  ;;  %v8853_v60 = vcombine.low %v5338_v44, %v5348_v55  ;;  %v5358_v61 = vsel %vm10499_vm4, %v5353_v13, %v5357_v40  ;;  %v5375_v63 = vrot.slane %v5373_v21, 5  ;;  %v8710_v40 = vld [vmem:[%s10463_s23 + $0x70] sm:$0xf]  ;;  %v8711_v13 = vld [vmem:[%s10463_s23 + $0x74] sm:$0x1] }
 0x12d   : > { %v5363_v62 = vrot.slane %v5362_v14, 4  ;;  %v5381_v0 = vrot.slane %v5379_v54, 5  ;;  %v5385_v1 = vrot.slane %v5383_v57, 4  ;;  %v5391_v2 = vrot.slane %v5389_v58, 5  ;;  %v8712_v57 = vld [vmem:[%s10463_s23 + $0x78] sm:$0xf] }
 0x12e   : > { %v5393_v3 = vshrl.u32 %v8704_v47, 16  ;;  %9642 = vmatprep.mubr.msk.bf16.mxu0 %vm1945_vm1, %v8853_v60  ;;  %v5376_v6 = vor.u32 %v5375_v63, %v5372_v56  ;;  %v8303_v9 = vcombine.low %v10287_v7, %v10288_v8  ;;  %v5399_v11 = vshll.u32 %v8705_v59, 16 }
 0x12f   : > { %v5368_v5 = vsel %vm10499_vm4, %v5363_v62, %v5367_v49  ;;  %v5386_v16 = vor.u32 %v5385_v1, %v5381_v0  ;;  %v5403_v18 = vshrl.u32 %v8705_v59, 16  ;;  %v5409_v23 = vshll.u32 %v8706_v4, 16  ;;  %v8713_v62 = vld [vmem:[%s10463_s23 + $0x7c] sm:$0xf] }
 0x130   : > { %v8854_v15 = vcombine.low %v5358_v61, %v5368_v5  ;;  %v5395_v17 = vrot.slane %v5393_v3, 4  ;;  %9379 = vmatmul.mubr.msk.bf16.gmra.mrb[4].mxu1 %vm1945_vm1, %v8302_v52  ;;  %v5377_v20 = vrot.slane %v5376_v6, 4  ;;  %v5401_v22 = vrot.slane %v5399_v11, 5  ;;  %v10292_v52 = vld [vmem:[%s10463_s23 + $0x40] sm:$0xf] }
 0x131   : > { %v8304_v26 = vcombine.low %v10289_v24, %v10290_v25  ;;  %v5387_v27 = vrot.slane %v5386_v16, 4  ;;  %9382 = vmatprep.mubr.msk.bf16.mxu1 %vm1945_vm1, %v8303_v9  ;;  %v5405_v29 = vrot.slane %v5403_v18, 4  ;;  %v5414_v30 = vshrl.u32 %v8707_v12, 16  ;;  %v10294_v3 = vld [vmem:[%s10463_s23 + $0x48] sm:$0xf] }
 0x132   : > { %v5396_v28 = vor.u32 %v5395_v17, %v5391_v2  ;;  %9643 = vmatmul.mubr.msk.bf16.gmra.mrb[8].mxu0 %vm1945_vm1, %v8854_v15  ;;  %v5382_v31 = vsel %vm10499_vm4, %v5377_v20, %v5381_v0  ;;  %v5411_v32 = vrot.slane %v5409_v23, 5  ;;  %v5417_v10 = vshll.u32 %v8707_v12, 16  ;;  %v8714_v15 = vld [vmem:[%s10463_s23 + $0x80] sm:$0xf] }
 0x133   : > { %v5423_v34 = vshll.u32 %v8708_v19, 16  ;;  %v5392_v35 = vsel %vm10499_vm4, %v5387_v27, %v5391_v2  ;;  %v5406_v38 = vor.u32 %v5405_v29, %v5401_v22  ;;  %v5416_v39 = vrot.slane %v5414_v30, 4  ;;  %v10293_v2 = vld [vmem:[%s10463_s23 + $0x44] sm:$0xf] }
 0x134   : > { %v5397_v37 = vrot.slane %v5396_v28, 4  ;;  %v8855_v41 = vcombine.low %v5382_v31, %v5392_v35  ;;  %v5419_v42 = vrot.slane %v5417_v10, 5  ;;  %v5427_v44 = vshrl.u32 %v8708_v19, 16  ;;  %v8716_v31 = vld [vmem:[%s10463_s23 + $0x88] sm:$0x1] }
 0x135   : > { %v5425_v43 = vrot.slane %v5423_v34, 5  ;;  %v5407_v46 = vrot.slane %v5406_v38, 4  ;;  %v5433_v47 = vshll.u32 %v8709_v33, 16  ;;  %v5437_v48 = vshrl.u32 %v8709_v33, 16  ;;  %v10295_v33 = vld [vmem:[%s10463_s23 + $0x50] sm:$0xf] }
 0x136   : > { %v5402_v45 = vsel %vm10499_vm4, %v5397_v37, %v5401_v22  ;;  %9646 = vmatprep.mubr.msk.bf16.mxu0 %vm1945_vm1, %v8855_v41  ;;  %v5420_v49 = vor.u32 %v5419_v42, %v5416_v39  ;;  %v5429_v50 = vrot.slane %v5427_v44, 4  ;;  %v8305_v53 = vcombine.low %v10291_v51, %v10292_v52  ;;  %v8715_v22 = vld [vmem:[%s10463_s23 + $0x84] sm:$0xf]  ;;  %v10296_v10 = vld [vmem:[%s10463_s23 + $0x54] sm:$0xf] }
 0x137   : > { %v5443_v14 = vshll.u32 %v8710_v40, 16  ;;  %v5412_v21 = vsel %vm10499_vm4, %v5407_v46, %v5411_v32  ;;  %v5435_v54 = vrot.slane %v5433_v47, 5  ;;  %v5439_v55 = vrot.slane %v5437_v48, 4  ;;  %v8717_v38 = vld [vmem:[%s10463_s23 + $0x8c] sm:$0xf] }
 0x138   : > { %v5447_v56 = vshrl.u32 %v8710_v40, 16  ;;  %v8856_v58 = vcombine.low %v5402_v45, %v5412_v21  ;;  %9383 = vmatmul.mubr.msk.bf16.gmra.mrb[8].mxu1 %vm1945_vm1, %v8304_v26  ;;  %v5421_v59 = vrot.slane %v5420_v49, 4  ;;  %v5430_v60 = vor.u32 %v5429_v50, %v5425_v43  ;;  %v8718_v47 = vld [vmem:[%s10463_s23 + $0x90] sm:$0xf]  ;;  %v10297_v50 = vld [vmem:[%s10463_s23 + $0x58] sm:$0xf] }
 0x139   : > { %v5445_v61 = vrot.slane %v5443_v14, 5  ;;  %9386 = vmatprep.mubr.msk.bf16.mxu1 %vm1945_vm1, %v8305_v53  ;;  %v5440_v63 = vor.u32 %v5439_v55, %v5435_v54  ;;  %v5453_v1 = vshll.u32 %v8711_v13, 16  ;;  %v8306_v4 = vcombine.low %v10293_v2, %v10294_v3  ;;  %v10298_v51 = vld [vmem:[%s10463_s23 + $0x5c] sm:$0xf] }
 0x13a   : > { %v5449_v0 = vrot.slane %v5447_v56, 4  ;;  %9647 = vmatmul.mubr.msk.bf16.gmra.mrb[12].mxu0 %vm1945_vm1, %v8856_v58  ;;  %v5426_v5 = vsel %vm10499_vm4, %v5421_v59, %v5425_v43  ;;  %v5431_v6 = vrot.slane %v5430_v60, 4  ;;  %v5458_v7 = vshrl.u32 %v8712_v57, 16 }
 0x13b   : > { %v5461_v8 = vshll.u32 %v8712_v57, 16  ;;  %v5441_v9 = vrot.slane %v5440_v63, 4  ;;  %v5455_v12 = vrot.slane %v5453_v1, 5  ;;  %v5467_v16 = vshll.u32 %v8713_v62, 16 }
 0x13c   : > { %v5450_v11 = vor.u32 %v5449_v0, %v5445_v61  ;;  %v5436_v17 = vsel %vm10499_vm4, %v5431_v6, %v5435_v54  ;;  %v5460_v18 = vrot.slane %v5458_v7, 4  ;;  %v5471_v20 = vshrl.u32 %v8713_v62, 16  ;;  %v8719_v54 = vld [vmem:[%s10463_s23 + $0x94] sm:$0xf]  ;;  %v8720_v0 = vld [vmem:[%s10463_s23 + $0x98] sm:$0xf] }
 0x13d   : > { %v5463_v19 = vrot.slane %v5461_v8, 5  ;;  %v8857_v23 = vcombine.low %v5426_v5, %v5436_v17  ;;  %v5446_v24 = vsel %vm10499_vm4, %v5441_v9, %v5445_v61  ;;  %v5469_v26 = vrot.slane %v5467_v16, 5  ;;  %v8721_v5 = vld [vmem:[%s10463_s23 + $0x9c] sm:$0x1]  ;;  %v10299_v9 = vld [vmem:[%s10463_s23 + $0x64] sm:$0xf] }
 0x13e   : > { %v5451_v25 = vrot.slane %v5450_v11, 4  ;;  %v5473_v28 = vrot.slane %v5471_v20, 4  ;;  %v5477_v29 = vshll.u32 %v8714_v15, 16  ;;  %v5481_v30 = vshrl.u32 %v8714_v15, 16  ;;  %v10300_v11 = vld [vmem:[%s10463_s23 + $0x68] sm:$0xf] }
 0x13f   : > { %v5464_v27 = vor.u32 %v5463_v19, %v5460_v18  ;;  %9650 = vmatprep.mubr.msk.bf16.mxu0 %vm1945_vm1, %v8857_v23  ;;  %v8307_v34 = vcombine.low %v10295_v33, %v10296_v10  ;;  %v5487_v35 = vshll.u32 %v8715_v22, 16  ;;  %v5491_v37 = vshrl.u32 %v8715_v22, 16  ;;  %v8722_v15 = vld [vmem:[%s10463_s23 + $0xa0] sm:$0xf] }
 0x140   : > { %v5456_v32 = vsel %vm10499_vm4, %v5451_v25, %v5455_v12  ;;  %9387 = vmatmul.mubr.msk.bf16.gmra.mrb[12].mxu1 %vm1945_vm1, %v8306_v4  ;;  %v5474_v41 = vor.u32 %v5473_v28, %v5469_v26  ;;  %v5479_v42 = vrot.slane %v5477_v29, 5  ;;  %v5483_v43 = vrot.slane %v5481_v30, 4  ;;  %v10302_v28 = vld [vmem:[%s10463_s23 + $0x70] sm:$0xf]  ;;  %v8723_v30 = vld [vmem:[%s10463_s23 + $0xa4] sm:$0xf] }
 0x141   : > { %v8858_v39 = vcombine.low %v5446_v24, %v5456_v32  ;;  %v5465_v40 = vrot.slane %v5464_v27, 4  ;;  %9390 = vmatprep.mubr.msk.bf16.mxu1 %vm1945_vm1, %v8307_v34  ;;  %v5489_v44 = vrot.slane %v5487_v35, 5  ;;  %v5493_v45 = vrot.slane %v5491_v37, 4  ;;  %v10301_v27 = vld [vmem:[%s10463_s23 + $0x6c] sm:$0xf] }
 0x142   : > { %v5497_v46 = vshll.u32 %v8716_v31, 16  ;;  %v5475_v49 = vrot.slane %v5474_v41, 4  ;;  %v8308_v52 = vcombine.low %v10297_v50, %v10298_v51  ;;  %v5502_v53 = vshrl.u32 %v8717_v38, 16  ;;  %v8724_v35 = vld [vmem:[%s10463_s23 + $0xa8] sm:$0xf] }
 0x143   : > { %9651 = vmatmul.mubr.msk.bf16.gmra.mrb[16].mxu0 %vm1945_vm1, %v8858_v39  ;;  %v5470_v48 = vsel %vm10499_vm4, %v5465_v40, %v5469_v26  ;;  %v5484_v13 = vor.u32 %v5483_v43, %v5479_v42  ;;  %v5494_v14 = vor.u32 %v5493_v45, %v5489_v44  ;;  %v5505_v55 = vshll.u32 %v8717_v38, 16  ;;  %v8725_v45 = vld [vmem:[%s10463_s23 + $0xac] sm:$0xf]  ;;  %v8726_v50 = vld [vmem:[%s10463_s23 + $0xb0] sm:$0x1] }
 0x144   : > { %v5499_v21 = vrot.slane %v5497_v46, 5  ;;  %v5480_v56 = vsel %vm10499_vm4, %v5475_v49, %v5479_v42  ;;  %v5504_v57 = vrot.slane %v5502_v53, 4  ;;  %v5511_v58 = vshll.u32 %v8718_v47, 16 }
 0x145   : > { %v5515_v59 = vshrl.u32 %v8718_v47, 16  ;;  %v8859_v60 = vcombine.low %v5470_v48, %v5480_v56  ;;  %v5485_v61 = vrot.slane %v5484_v13, 4  ;;  %v5495_v62 = vrot.slane %v5494_v14, 4  ;;  %v10303_v13 = vld [vmem:[%s10463_s23 + $0x78] sm:$0xf] }
 0x146   : > { %v5507_v63 = vrot.slane %v5505_v55, 5  ;;  %v5513_v1 = vrot.slane %v5511_v58, 5  ;;  %v5521_v3 = vshll.u32 %v8719_v54, 16  ;;  %v5525_v4 = vshrl.u32 %v8719_v54, 16  ;;  %v10304_v14 = vld [vmem:[%s10463_s23 + $0x7c] sm:$0xf] }
 0x147   : > { %v5517_v2 = vrot.slane %v5515_v59, 4  ;;  %9654 = vmatprep.mubr.msk.bf16.mxu0 %vm1945_vm1, %v8859_v60  ;;  %v5490_v6 = vsel %vm10499_vm4, %v5485_v61, %v5489_v44  ;;  %v5500_v7 = vsel %vm10499_vm4, %v5495_v62, %v5499_v21  ;;  %v8309_v12 = vcombine.low %v10299_v9, %v10300_v11  ;;  %v8727_v62 = vld [vmem:[%s10463_s23 + $0xb4] sm:$0xf] }
 0x148   : > { %v5508_v8 = vor.u32 %v5507_v63, %v5504_v57  ;;  %v8860_v16 = vcombine.low %v5490_v6, %v5500_v7  ;;  %9391 = vmatmul.mubr.msk.bf16.gmra.mrb[16].mxu1 %vm1945_vm1, %v8308_v52  ;;  %v5523_v18 = vrot.slane %v5521_v3, 5  ;;  %v5527_v19 = vrot.slane %v5525_v4, 4  ;;  %v8728_v3 = vld [vmem:[%s10463_s23 + $0xb8] sm:$0xf]  ;;  %v10305_v7 = vld [vmem:[%s10463_s23 + $0x80] sm:$0xf] }
 0x149   : > { %v5518_v17 = vor.u32 %v5517_v2, %v5513_v1  ;;  %9394 = vmatprep.mubr.msk.bf16.mxu1 %vm1945_vm1, %v8309_v12  ;;  %v5531_v22 = vshll.u32 %v8720_v0, 16  ;;  %v5535_v23 = vshrl.u32 %v8720_v0, 16  ;;  %v5541_v24 = vshll.u32 %v8721_v5, 16 }
 0x14a   : > { %v5509_v20 = vrot.slane %v5508_v8, 4  ;;  %v5528_v26 = vor.u32 %v5527_v19, %v5523_v18  ;;  %v8310_v29 = vcombine.low %v10301_v27, %v10302_v28  ;;  %v5546_v31 = vshrl.u32 %v8722_v15, 16  ;;  %v10306_v8 = vld [vmem:[%s10463_s23 + $0x84] sm:$0xf] }
 0x14b   : > { %9655 = vmatmul.mubr.msk.bf16.gmra.mrb[20].mxu0 %vm1945_vm1, %v8860_v16  ;;  %v5519_v25 = vrot.slane %v5518_v17, 4  ;;  %v5533_v33 = vrot.slane %v5531_v22, 5  ;;  %v5537_v10 = vrot.slane %v5535_v23, 4  ;;  %v5543_v34 = vrot.slane %v5541_v24, 5  ;;  %v8730_v23 = vld [vmem:[%s10463_s23 + $0xc0] sm:$0xf] }
 0x14c   : > { %v5514_v32 = vsel %vm10499_vm4, %v5509_v20, %v5513_v1  ;;  %v5529_v38 = vrot.slane %v5528_v26, 4  ;;  %v5548_v39 = vrot.slane %v5546_v31, 4  ;;  %v5549_v40 = vshll.u32 %v8722_v15, 16  ;;  %v8729_v15 = vld [vmem:[%s10463_s23 + $0xbc] sm:$0xf] }
 0x14d   : > { %v5524_v37 = vsel %vm10499_vm4, %v5519_v25, %v5523_v18  ;;  %v5538_v42 = vor.u32 %v5537_v10, %v5533_v33  ;;  %v5555_v43 = vshll.u32 %v8723_v30, 16  ;;  %v5559_v44 = vshrl.u32 %v8723_v30, 16  ;;  %v10307_v10 = vld [vmem:[%s10463_s23 + $0x8c] sm:$0xf] }
 0x14e   : > { %v8861_v41 = vcombine.low %v5514_v32, %v5524_v37  ;;  %v5534_v46 = vsel %vm10499_vm4, %v5529_v38, %v5533_v33  ;;  %v5551_v47 = vrot.slane %v5549_v40, 5  ;;  %v5565_v48 = vshll.u32 %v8724_v35, 16  ;;  %v8731_v37 = vld [vmem:[%s10463_s23 + $0xc4] sm:$0x1] }
 0x14f   : > { %v5569_v49 = vshrl.u32 %v8724_v35, 16  ;;  %v5539_v51 = vrot.slane %v5538_v42, 4  ;;  %v5557_v52 = vrot.slane %v5555_v43, 5  ;;  %v5561_v53 = vrot.slane %v5559_v44, 4  ;;  %v8732_v43 = vld [vmem:[%s10463_s23 + $0xc8] sm:$0xf] }
 0x150   : > { %9658 = vmatprep.mubr.msk.bf16.mxu0 %vm1945_vm1, %v8861_v41  ;;  %v8311_v21 = vcombine.low %v10303_v13, %v10304_v14  ;;  %9395 = vmatmul.mubr.msk.bf16.gmra.mrb[20].mxu1 %vm1945_vm1, %v8310_v29  ;;  %v5552_v54 = vor.u32 %v5551_v47, %v5548_v39  ;;  %v5567_v55 = vrot.slane %v5565_v48, 5  ;;  %v5575_v57 = vshll.u32 %v8725_v45, 16  ;;  %v8733_v48 = vld [vmem:[%s10463_s23 + $0xcc] sm:$0xf] }
 0x151   : > { %v5571_v56 = vrot.slane %v5569_v49, 4  ;;  %v5544_v58 = vsel %vm10499_vm4, %v5539_v51, %v5543_v34  ;;  %v5562_v59 = vor.u32 %v5561_v53, %v5557_v52  ;;  %v5579_v60 = vshrl.u32 %v8725_v45, 16  ;;  %v10308_v34 = vld [vmem:[%s10463_s23 + $0x90] sm:$0xf]  ;;  %v10310_v53 = vld [vmem:[%s10463_s23 + $0x98] sm:$0xf] }
 0x152   : > { %9398 = vmatprep.mubr.msk.bf16.mxu1 %vm1945_vm1, %v8311_v21  ;;  %v5585_v61 = vshll.u32 %v8726_v50, 16  ;;  %v8862_v63 = vcombine.low %v5534_v46, %v5544_v58  ;;  %v5553_v0 = vrot.slane %v5552_v54, 4  ;;  %v5577_v2 = vrot.slane %v5575_v57, 5  ;;  %v8734_v54 = vld [vmem:[%s10463_s23 + $0xd0] sm:$0xf] }
 0x153   : > { %v5572_v1 = vor.u32 %v5571_v56, %v5567_v55  ;;  %v5563_v4 = vrot.slane %v5562_v59, 4  ;;  %v5581_v5 = vrot.slane %v5579_v60, 4  ;;  %v8312_v9 = vcombine.low %v10305_v7, %v10306_v8 }
 0x154   : > { %v5587_v6 = vrot.slane %v5585_v61, 5  ;;  %9659 = vmatmul.mubr.msk.bf16.gmra.mrb[24].mxu0 %vm1945_vm1, %v8862_v63  ;;  %v5558_v11 = vsel %vm10499_vm4, %v5553_v0, %v5557_v52  ;;  %v5590_v16 = vshrl.u32 %v8727_v62, 16  ;;  %v5593_v17 = vshll.u32 %v8727_v62, 16  ;;  %v10309_v52 = vld [vmem:[%s10463_s23 + $0x94] sm:$0xf] }
 0x155   : > { %v5573_v12 = vrot.slane %v5572_v1, 4  ;;  %v5568_v18 = vsel %vm10499_vm4, %v5563_v4, %v5567_v55  ;;  %v5582_v19 = vor.u32 %v5581_v5, %v5577_v2  ;;  %v5599_v20 = vshll.u32 %v8728_v3, 16  ;;  %v8735_v1 = vld [vmem:[%s10463_s23 + $0xd4] sm:$0xf] }
 0x156   : > { %v5603_v22 = vshrl.u32 %v8728_v3, 16  ;;  %v8863_v24 = vcombine.low %v5558_v11, %v5568_v18  ;;  %v5592_v26 = vrot.slane %v5590_v16, 4  ;;  %v5595_v27 = vrot.slane %v5593_v17, 5  ;;  %v10312_v11 = vld [vmem:[%s10463_s23 + $0xa4] sm:$0xf] }
 0x157   : > { %v5578_v25 = vsel %vm10499_vm4, %v5573_v12, %v5577_v2  ;;  %v5583_v28 = vrot.slane %v5582_v19, 4  ;;  %v5601_v29 = vrot.slane %v5599_v20, 5  ;;  %v5609_v31 = vshll.u32 %v8729_v15, 16  ;;  %v8737_v20 = vld [vmem:[%s10463_s23 + $0xdc] sm:$0xf] }
 0x158   : > { %v5605_v30 = vrot.slane %v5603_v22, 4  ;;  %9662 = vmatprep.mubr.msk.bf16.mxu0 %vm1945_vm1, %v8863_v24  ;;  %9399 = vmatmul.mubr.msk.bf16.gmra.mrb[24].mxu1 %vm1945_vm1, %v8312_v9  ;;  %v5596_v32 = vor.u32 %v5595_v27, %v5592_v26  ;;  %v5613_v33 = vshrl.u32 %v8729_v15, 16  ;;  %v8313_v35 = vcombine.low %v10307_v10, %v10308_v34  ;;  %v10311_v9 = vld [vmem:[%s10463_s23 + $0xa0] sm:$0xf]  ;;  %v8736_v15 = vld [vmem:[%s10463_s23 + $0xd8] sm:$0x1] }
 0x159   : > { %v5619_v38 = vshll.u32 %v8730_v23, 16  ;;  %v5588_v39 = vsel %vm10499_vm4, %v5583_v28, %v5587_v6  ;;  %v5611_v41 = vrot.slane %v5609_v31, 5  ;;  %v5623_v42 = vshrl.u32 %v8730_v23, 16  ;;  %v8738_v26 = vld [vmem:[%s10463_s23 + $0xe0] sm:$0xf] }
 0x15a   : > { %v5606_v40 = vor.u32 %v5605_v30, %v5601_v29  ;;  %v8864_v44 = vcombine.low %v5578_v25, %v5588_v39  ;;  %v5597_v45 = vrot.slane %v5596_v32, 4  ;;  %9402 = vmatprep.mubr.msk.bf16.mxu1 %vm1945_vm1, %v8313_v35  ;;  %v5615_v46 = vrot.slane %v5613_v33, 4  ;;  %v10313_v30 = vld [vmem:[%s10463_s23 + $0xa8] sm:$0xf]  ;;  %v10314_v31 = vld [vmem:[%s10463_s23 + $0xac] sm:$0xf] }
 0x15b   : > { %v5621_v47 = vrot.slane %v5619_v38, 5  ;;  %v5625_v50 = vrot.slane %v5623_v42, 4  ;;  %v5629_v51 = vshll.u32 %v8731_v37, 16  ;;  %v8314_v13 = vcombine.low %v10309_v52, %v10310_v53  ;;  %v8739_v35 = vld [vmem:[%s10463_s23 + $0xe4] sm:$0xf] }
 0x15c   : > { %v5607_v49 = vrot.slane %v5606_v40, 4  ;;  %9663 = vmatmul.mubr.msk.bf16.gmra.mrb[28].mxu0 %vm1945_vm1, %v8864_v44  ;;  %v5602_v14 = vsel %vm10499_vm4, %v5597_v45, %v5601_v29  ;;  %v5616_v21 = vor.u32 %v5615_v46, %v5611_v41  ;;  %v5634_v55 = vshrl.u32 %v8732_v43, 16 }
 0x15d   : > { %v5637_v56 = vshll.u32 %v8732_v43, 16  ;;  %v5626_v58 = vor.u32 %v5625_v50, %v5621_v47  ;;  %v5631_v59 = vrot.slane %v5629_v51, 5  ;;  %v5643_v60 = vshll.u32 %v8733_v48, 16  ;;  %v8740_v50 = vld [vmem:[%s10463_s23 + $0xe8] sm:$0xf] }
 0x15e   : > { %v5612_v57 = vsel %vm10499_vm4, %v5607_v49, %v5611_v41  ;;  %v5617_v62 = vrot.slane %v5616_v21, 4  ;;  %v5636_v63 = vrot.slane %v5634_v55, 4  ;;  %v5647_v4 = vshrl.u32 %v8733_v48, 16 }
 0x15f   : > { %v8865_v61 = vcombine.low %v5602_v14, %v5612_v57  ;;  %v5639_v0 = vrot.slane %v5637_v56, 5  ;;  %v5627_v2 = vrot.slane %v5626_v58, 4  ;;  %v5645_v3 = vrot.slane %v5643_v60, 5  ;;  %v8741_v14 = vld [vmem:[%s10463_s23 + $0xec] sm:$0x1] }
 0x160   : > { %v5653_v5 = vshll.u32 %v8734_v54, 16  ;;  %v5622_v6 = vsel %vm10499_vm4, %v5617_v62, %v5621_v47  ;;  %9403 = vmatmul.mubr.msk.bf16.gmra.mrb[28].mxu1 %vm1945_vm1, %v8314_v13  ;;  %v5657_v8 = vshrl.u32 %v8734_v54, 16  ;;  %v8315_v12 = vcombine.low %v10311_v9, %v10312_v11  ;;  %v10315_v56 = vld [vmem:[%s10463_s23 + $0xb4] sm:$0xf]  ;;  %v10316_v57 = vld [vmem:[%s10463_s23 + $0xb8] sm:$0xf] }
 0x161   : > { %9666 = vmatprep.mubr.msk.bf16.mxu0 %vm1945_vm1, %v8865_v61  ;;  %v5640_v7 = vor.u32 %v5639_v0, %v5636_v63  ;;  %v5632_v16 = vsel %vm10499_vm4, %v5627_v2, %v5631_v59  ;;  %v5649_v17 = vrot.slane %v5647_v4, 4  ;;  %v5663_v19 = vshll.u32 %v8735_v1, 16  ;;  %v8742_v63 = vld [vmem:[%s10463_s23 + $0xf0] sm:$0xf]  ;;  %v8743_v4 = vld [vmem:[%s10463_s23 + $0xf4] sm:$0xf] }
 0x162   : > { %v5655_v18 = vrot.slane %v5653_v5, 5  ;;  %v8866_v22 = vcombine.low %v5622_v6, %v5632_v16  ;;  %9406 = vmatprep.mubr.msk.bf16.mxu1 %vm1945_vm1, %v8315_v12  ;;  %v5659_v24 = vrot.slane %v5657_v8, 4  ;;  %v5667_v25 = vshrl.u32 %v8735_v1, 16  ;;  %v10317_v8 = vld [vmem:[%s10463_s23 + $0xbc] sm:$0xf] }
 0x163   : > { %v5641_v23 = vrot.slane %v5640_v7, 4  ;;  %v5650_v27 = vor.u32 %v5649_v17, %v5645_v3  ;;  %v5665_v28 = vrot.slane %v5663_v19, 5  ;;  %v5673_v29 = vshll.u32 %v8736_v15, 16  ;;  %v10318_v9 = vld [vmem:[%s10463_s23 + $0xc0] sm:$0xf] }
 0x164   : > { %v8316_v32 = vcombine.low %v10313_v30, %v10314_v31  ;;  %9667 = vmatmul.mubr.msk.bf16.gmra.mrb[32].mxu0 %vm1945_vm1, %v8866_v22  ;;  %v5660_v10 = vor.u32 %v5659_v24, %v5655_v18  ;;  %v5669_v34 = vrot.slane %v5667_v25, 4  ;;  %v5678_v37 = vshrl.u32 %v8737_v20, 16  ;;  %v8744_v17 = vld [vmem:[%s10463_s23 + $0xf8] sm:$0xf] }
 0x165   : > { %v5646_v33 = vsel %vm10499_vm4, %v5641_v23, %v5645_v3  ;;  %v5651_v38 = vrot.slane %v5650_v27, 4  ;;  %v5675_v39 = vrot.slane %v5673_v29, 5  ;;  %v5681_v40 = vshll.u32 %v8737_v20, 16 }
 0x166   : > { %v5687_v41 = vshll.u32 %v8738_v26, 16  ;;  %v5661_v42 = vrot.slane %v5660_v10, 4  ;;  %v5670_v43 = vor.u32 %v5669_v34, %v5665_v28  ;;  %v5680_v44 = vrot.slane %v5678_v37, 4  ;;  %v10320_v37 = vld [vmem:[%s10463_s23 + $0xcc] sm:$0xf] }
 0x167   : > { %v5691_v45 = vshrl.u32 %v8738_v26, 16  ;;  %v5656_v46 = vsel %vm10499_vm4, %v5651_v38, %v5655_v18  ;;  %v5683_v47 = vrot.slane %v5681_v40, 5  ;;  %v5697_v49 = vshll.u32 %v8739_v35, 16 }
 0x168   : > { %v5689_v48 = vrot.slane %v5687_v41, 5  ;;  %v8867_v51 = vcombine.low %v5646_v33, %v5656_v46  ;;  %v5666_v52 = vsel %vm10499_vm4, %v5661_v42, %v5665_v28  ;;  %v5671_v53 = vrot.slane %v5670_v43, 4  ;;  %9407 = vmatmul.mubr.msk.bf16.gmra.mrb[32].mxu1 %vm1945_vm1, %v8316_v32  ;;  %v8745_v28 = vld [vmem:[%s10463_s23 + $0xfc] sm:$0xf] }
 0x169   : > { %v5693_v13 = vrot.slane %v5691_v45, 4  ;;  %v5684_v21 = vor.u32 %v5683_v47, %v5680_v44  ;;  %v5699_v54 = vrot.slane %v5697_v49, 5  ;;  %v5701_v55 = vshrl.u32 %v8739_v35, 16  ;;  %v10319_v35 = vld [vmem:[%s10463_s23 + $0xc8] sm:$0xf] }
 0x16a   : > { %v8317_v58 = vcombine.low %v10315_v56, %v10316_v57  ;;  %9670 = vmatprep.mubr.msk.bf16.mxu0 %vm1945_vm1, %v8867_v51  ;;  %v5676_v59 = vsel %vm10499_vm4, %v5671_v53, %v5675_v39  ;;  %v5707_v61 = vshll.u32 %v8740_v50, 16  ;;  %v5711_v62 = vshrl.u32 %v8740_v50, 16  ;;  %v8746_v39 = vld [vmem:[%s10463_s23 + $0x100] sm:$0x1]  ;;  %v8747_v44 = vld [vmem:[%s10463_s23 + $0x104] sm:$0xf] }
 0x16b   : > { %v5694_v60 = vor.u32 %v5693_v13, %v5689_v48  ;;  %v8868_v0 = vcombine.low %v5666_v52, %v5676_v59  ;;  %v5685_v1 = vrot.slane %v5684_v21, 4  ;;  %v5703_v2 = vrot.slane %v5701_v55, 4  ;;  %v8748_v49 = vld [vmem:[%s10463_s23 + $0x108] sm:$0xf]  ;;  %v10321_v53 = vld [vmem:[%s10463_s23 + $0xd0] sm:$0xf] }
 0x16c   : > { %9410 = vmatprep.mubr.msk.bf16.mxu1 %vm1945_vm1, %v8317_v58  ;;  %v5717_v3 = vshll.u32 %v8741_v14, 16  ;;  %v5709_v6 = vrot.slane %v5707_v61, 5  ;;  %v5713_v7 = vrot.slane %v5711_v62, 4  ;;  %v8318_v11 = vcombine.low %v10317_v8, %v10318_v9  ;;  %v10322_v13 = vld [vmem:[%s10463_s23 + $0xd4] sm:$0xf] }
 0x16d   : > { %v5695_v5 = vrot.slane %v5694_v60, 4  ;;  %9671 = vmatmul.mubr.msk.bf16.gmra.mrb[36].mxu0 %vm1945_vm1, %v8868_v0  ;;  %v5690_v12 = vsel %vm10499_vm4, %v5685_v1, %v5689_v48  ;;  %v5704_v15 = vor.u32 %v5703_v2, %v5699_v54  ;;  %v5722_v18 = vshrl.u32 %v8742_v63, 16  ;;  %v8749_v59 = vld [vmem:[%s10463_s23 + $0x10c] sm:$0xf]  ;;  %v8750_v2 = vld [vmem:[%s10463_s23 + $0x110] sm:$0xf] }
 0x16e   : > { %v5719_v16 = vrot.slane %v5717_v3, 5  ;;  %v5714_v20 = vor.u32 %v5713_v7, %v5709_v6  ;;  %v5725_v22 = vshll.u32 %v8742_v63, 16  ;;  %v5731_v23 = vshll.u32 %v8743_v4, 16 }
 0x16f   : > { %v5700_v19 = vsel %vm10499_vm4, %v5695_v5, %v5699_v54  ;;  %v5705_v25 = vrot.slane %v5704_v15, 4  ;;  %v5724_v26 = vrot.slane %v5722_v18, 4  ;;  %v5735_v27 = vshrl.u32 %v8743_v4, 16 }
 0x170   : > { %v8869_v24 = vcombine.low %v5690_v12, %v5700_v19  ;;  %v5715_v29 = vrot.slane %v5714_v20, 4  ;;  %9411 = vmatmul.mubr.msk.bf16.gmra.mrb[36].mxu1 %vm1945_vm1, %v8318_v11  ;;  %v5727_v30 = vrot.slane %v5725_v22, 5  ;;  %v5733_v31 = vrot.slane %v5731_v23, 5  ;;  %v8751_v19 = vld [vmem:[%s10463_s23 + $0x114] sm:$0x1] }
 0x171   : > { %v5741_v32 = vshll.u32 %v8744_v17, 16  ;;  %v5710_v33 = vsel %vm10499_vm4, %v5705_v25, %v5709_v6  ;;  %v5737_v10 = vrot.slane %v5735_v27, 4  ;;  %v5745_v34 = vshrl.u32 %v8744_v17, 16  ;;  %v10324_v17 = vld [vmem:[%s10463_s23 + $0xe0] sm:$0xf] }
 0x172   : > { %9674 = vmatprep.mubr.msk.bf16.mxu0 %vm1945_vm1, %v8869_v24  ;;  %v8319_v38 = vcombine.low %v10319_v35, %v10320_v37  ;;  %v5720_v40 = vsel %vm10499_vm4, %v5715_v29, %v5719_v16  ;;  %v5728_v41 = vor.u32 %v5727_v30, %v5724_v26  ;;  %v5751_v43 = vshll.u32 %v8745_v28, 16  ;;  %v10323_v16 = vld [vmem:[%s10463_s23 + $0xdc] sm:$0xf]  ;;  %v8752_v26 = vld [vmem:[%s10463_s23 + $0x118] sm:$0xf] }
 0x173   : > { %v5743_v42 = vrot.slane %v5741_v32, 5  ;;  %v8870_v45 = vcombine.low %v5710_v33, %v5720_v40  ;;  %v5738_v46 = vor.u32 %v5737_v10, %v5733_v31  ;;  %v5747_v47 = vrot.slane %v5745_v34, 4  ;;  %v10325_v34 = vld [vmem:[%s10463_s23 + $0xe4] sm:$0xf]  ;;  %v10326_v35 = vld [vmem:[%s10463_s23 + $0xe8] sm:$0xf] }
 0x174   : > { %9414 = vmatprep.mubr.msk.bf16.mxu1 %vm1945_vm1, %v8319_v38  ;;  %v5755_v48 = vshrl.u32 %v8745_v28, 16  ;;  %v5729_v50 = vrot.slane %v5728_v41, 4  ;;  %v5753_v51 = vrot.slane %v5751_v43, 5  ;;  %v5761_v52 = vshll.u32 %v8746_v39, 16 }
 0x175   : > { %v8320_v14 = vcombine.low %v10321_v53, %v10322_v13  ;;  %9675 = vmatmul.mubr.msk.bf16.gmra.mrb[40].mxu0 %vm1945_vm1, %v8870_v45  ;;  %v5739_v21 = vrot.slane %v5738_v46, 4  ;;  %v5748_v54 = vor.u32 %v5747_v47, %v5743_v42  ;;  %v5766_v56 = vshrl.u32 %v8747_v44, 16  ;;  %v8754_v45 = vld [vmem:[%s10463_s23 + $0x120] sm:$0xf] }
 0x176   : > { %v5757_v55 = vrot.slane %v5755_v48, 4  ;;  %v5734_v57 = vsel %vm10499_vm4, %v5729_v50, %v5733_v31  ;;  %v5763_v58 = vrot.slane %v5761_v52, 5  ;;  %v5769_v60 = vshll.u32 %v8747_v44, 16  ;;  %v8753_v31 = vld [vmem:[%s10463_s23 + $0x11c] sm:$0xf] }
 0x177   : > { %v5775_v61 = vshll.u32 %v8748_v49, 16  ;;  %v5744_v62 = vsel %vm10499_vm4, %v5739_v21, %v5743_v42  ;;  %v5749_v63 = vrot.slane %v5748_v54, 4  ;;  %v5768_v1 = vrot.slane %v5766_v56, 4 }
 0x178   : > { %v5758_v0 = vor.u32 %v5757_v55, %v5753_v51  ;;  %v8871_v3 = vcombine.low %v5734_v57, %v5744_v62  ;;  %9415 = vmatmul.mubr.msk.bf16.gmra.mrb[40].mxu1 %vm1945_vm1, %v8320_v14  ;;  %v5771_v4 = vrot.slane %v5769_v60, 5  ;;  %v5779_v6 = vshrl.u32 %v8748_v49, 16  ;;  %v8756_v57 = vld [vmem:[%s10463_s23 + $0x128] sm:$0x1]  ;;  %v10328_v60 = vld [vmem:[%s10463_s23 + $0xf4] sm:$0xf] }
 0x179   : > { %v5777_v5 = vrot.slane %v5775_v61, 5  ;;  %v5754_v7 = vsel %vm10499_vm4, %v5749_v63, %v5753_v51  ;;  %v5785_v9 = vshll.u32 %v8749_v59, 16  ;;  %v5789_v11 = vshrl.u32 %v8749_v59, 16  ;;  %v8755_v51 = vld [vmem:[%s10463_s23 + $0x124] sm:$0xf] }
 0x17a   : > { %v5759_v8 = vrot.slane %v5758_v0, 4  ;;  %9678 = vmatprep.mubr.msk.bf16.mxu0 %vm1945_vm1, %v8871_v3  ;;  %v5772_v12 = vor.u32 %v5771_v4, %v5768_v1  ;;  %v5781_v15 = vrot.slane %v5779_v6, 4  ;;  %v8321_v18 = vcombine.low %v10323_v16, %v10324_v17  ;;  %v10327_v59 = vld [vmem:[%s10463_s23 + $0xf0] sm:$0xf]  ;;  %v8757_v0 = vld [vmem:[%s10463_s23 + $0x12c] sm:$0xf] }
 0x17b   : > { %v5795_v20 = vshll.u32 %v8750_v2, 16  ;;  %v5787_v23 = vrot.slane %v5785_v9, 5  ;;  %v5791_v24 = vrot.slane %v5789_v11, 4  ;;  %v5799_v25 = vshrl.u32 %v8750_v2, 16  ;;  %v8758_v9 = vld [vmem:[%s10463_s23 + $0x130] sm:$0xf] }
 0x17c   : > { %v5764_v22 = vsel %vm10499_vm4, %v5759_v8, %v5763_v58  ;;  %v5773_v28 = vrot.slane %v5772_v12, 4  ;;  %v5782_v29 = vor.u32 %v5781_v15, %v5777_v5  ;;  %9418 = vmatprep.mubr.msk.bf16.mxu1 %vm1945_vm1, %v8321_v18  ;;  %v5805_v10 = vshll.u32 %v8751_v19, 16  ;;  %v10329_v15 = vld [vmem:[%s10463_s23 + $0xf8] sm:$0xf]  ;;  %v10330_v16 = vld [vmem:[%s10463_s23 + $0xfc] sm:$0xf] }
 0x17d   : > { %v8872_v27 = vcombine.low %v5754_v7, %v5764_v22  ;;  %v5797_v30 = vrot.slane %v5795_v20, 5  ;;  %v5792_v32 = vor.u32 %v5791_v24, %v5787_v23  ;;  %v5801_v33 = vrot.slane %v5799_v25, 4 }
 0x17e   : > { %v8322_v37 = vcombine.low %v10325_v34, %v10326_v35  ;;  %v5778_v38 = vsel %vm10499_vm4, %v5773_v28, %v5777_v5  ;;  %v5783_v39 = vrot.slane %v5782_v29, 4  ;;  %v5810_v40 = vshrl.u32 %v8752_v26, 16 }
 0x17f   : > { %9679 = vmatmul.mubr.msk.bf16.gmra.mrb[44].mxu0 %vm1945_vm1, %v8872_v27  ;;  %v5813_v41 = vshll.u32 %v8752_v26, 16  ;;  %v5793_v42 = vrot.slane %v5792_v32, 4  ;;  %v5802_v43 = vor.u32 %v5801_v33, %v5797_v30  ;;  %v5807_v44 = vrot.slane %v5805_v10, 5  ;;  %v8760_v33 = vld [vmem:[%s10463_s23 + $0x138] sm:$0xf] }
 0x180   : > { %v5819_v46 = vshll.u32 %v8753_v31, 16  ;;  %v5788_v47 = vsel %vm10499_vm4, %v5783_v39, %v5787_v23  ;;  %9419 = vmatmul.mubr.msk.bf16.gmra.mrb[44].mxu1 %vm1945_vm1, %v8322_v37  ;;  %v5812_v48 = vrot.slane %v5810_v40, 4  ;;  %v5823_v50 = vshrl.u32 %v8753_v31, 16  ;;  %v8759_v23 = vld [vmem:[%s10463_s23 + $0x134] sm:$0xf] }
 0x181   : > { %v5815_v49 = vrot.slane %v5813_v41, 5  ;;  %v8873_v52 = vcombine.low %v5778_v38, %v5788_v47  ;;  %v5798_v53 = vsel %vm10499_vm4, %v5793_v42, %v5797_v30  ;;  %v5803_v13 = vrot.slane %v5802_v43, 4  ;;  %v8761_v38 = vld [vmem:[%s10463_s23 + $0x13c] sm:$0x1]  ;;  %v10331_v42 = vld [vmem:[%s10463_s23 + $0x104] sm:$0xf] }
 0x182   : > { %v5821_v14 = vrot.slane %v5819_v46, 5  ;;  %v5825_v54 = vrot.slane %v5823_v50, 4  ;;  %v5829_v55 = vshll.u32 %v8754_v45, 16  ;;  %v5833_v56 = vshrl.u32 %v8754_v45, 16  ;;  %v10332_v43 = vld [vmem:[%s10463_s23 + $0x108] sm:$0xf] }
 0x183   : > { %v5816_v21 = vor.u32 %v5815_v49, %v5812_v48  ;;  %9682 = vmatprep.mubr.msk.bf16.mxu0 %vm1945_vm1, %v8873_v52  ;;  %v5808_v58 = vsel %vm10499_vm4, %v5803_v13, %v5807_v44  ;;  %v8323_v61 = vcombine.low %v10327_v59, %v10328_v60  ;;  %v5839_v62 = vshll.u32 %v8755_v51, 16  ;;  %v8762_v45 = vld [vmem:[%s10463_s23 + $0x140] sm:$0xf] }
 0x184   : > { %v5843_v63 = vshrl.u32 %v8755_v51, 16  ;;  %v8874_v1 = vcombine.low %v5798_v53, %v5808_v58  ;;  %v5826_v3 = vor.u32 %v5825_v54, %v5821_v14  ;;  %v5831_v4 = vrot.slane %v5829_v55, 5  ;;  %v10334_v54 = vld [vmem:[%s10463_s23 + $0x110] sm:$0xf] }
 0x185   : > { %v5817_v2 = vrot.slane %v5816_v21, 4  ;;  %9422 = vmatprep.mubr.msk.bf16.mxu1 %vm1945_vm1, %v8323_v61  ;;  %v5835_v5 = vrot.slane %v5833_v56, 4  ;;  %v5841_v6 = vrot.slane %v5839_v62, 5  ;;  %v5849_v8 = vshll.u32 %v8756_v57, 16  ;;  %v10333_v21 = vld [vmem:[%s10463_s23 + $0x10c] sm:$0xf] }
 0x186   : > { %v5845_v7 = vrot.slane %v5843_v63, 4  ;;  %v5827_v12 = vrot.slane %v5826_v3, 4  ;;  %v8324_v17 = vcombine.low %v10329_v15, %v10330_v16  ;;  %v5854_v18 = vshrl.u32 %v8757_v0, 16  ;;  %v8763_v56 = vld [vmem:[%s10463_s23 + $0x144] sm:$0xf] }
 0x187   : > { %9683 = vmatmul.mubr.msk.bf16.gmra.mrb[48].mxu0 %vm1945_vm1, %v8874_v1  ;;  %v5822_v11 = vsel %vm10499_vm4, %v5817_v2, %v5821_v14  ;;  %v5836_v19 = vor.u32 %v5835_v5, %v5831_v4  ;;  %v5851_v22 = vrot.slane %v5849_v8, 5  ;;  %v5857_v24 = vshll.u32 %v8757_v0, 16  ;;  %v8764_v62 = vld [vmem:[%s10463_s23 + $0x148] sm:$0xf]  ;;  %v8766_v15 = vld [vmem:[%s10463_s23 + $0x150] sm:$0x1] }
 0x188   : > { %v5846_v20 = vor.u32 %v5845_v7, %v5841_v6  ;;  %v5832_v25 = vsel %vm10499_vm4, %v5827_v12, %v5831_v4  ;;  %9423 = vmatmul.mubr.msk.bf16.gmra.mrb[48].mxu1 %vm1945_vm1, %v8324_v17  ;;  %v5856_v26 = vrot.slane %v5854_v18, 4  ;;  %v5863_v27 = vshll.u32 %v8758_v9, 16  ;;  %v8765_v7 = vld [vmem:[%s10463_s23 + $0x14c] sm:$0xf] }
 0x189   : > { %v5867_v28 = vshrl.u32 %v8758_v9, 16  ;;  %v8875_v29 = vcombine.low %v5822_v11, %v5832_v25  ;;  %v5837_v30 = vrot.slane %v5836_v19, 4  ;;  %v5859_v32 = vrot.slane %v5857_v24, 5  ;;  %v10335_v19 = vld [vmem:[%s10463_s23 + $0x118] sm:$0xf] }
 0x18a   : > { %v5847_v31 = vrot.slane %v5846_v20, 4  ;;  %v5865_v10 = vrot.slane %v5863_v27, 5  ;;  %v5873_v35 = vshll.u32 %v8759_v23, 16  ;;  %v5877_v37 = vshrl.u32 %v8759_v23, 16  ;;  %v10336_v20 = vld [vmem:[%s10463_s23 + $0x11c] sm:$0xf] }
 0x18b   : > { %v5869_v34 = vrot.slane %v5867_v28, 4  ;;  %9686 = vmatprep.mubr.msk.bf16.mxu0 %vm1945_vm1, %v8875_v29  ;;  %v5842_v39 = vsel %vm10499_vm4, %v5837_v30, %v5841_v6  ;;  %v5860_v41 = vor.u32 %v5859_v32, %v5856_v26  ;;  %v8325_v44 = vcombine.low %v10331_v42, %v10332_v43 }
 0x18c   : > { %v5852_v40 = vsel %vm10499_vm4, %v5847_v31, %v5851_v22  ;;  %v5875_v48 = vrot.slane %v5873_v35, 5  ;;  %v5879_v49 = vrot.slane %v5877_v37, 4  ;;  %v5883_v51 = vshll.u32 %v8760_v33, 16  ;;  %v8767_v31 = vld [vmem:[%s10463_s23 + $0x154] sm:$0xf] }
 0x18d   : > { %v8876_v46 = vcombine.low %v5842_v39, %v5852_v40  ;;  %v5870_v47 = vor.u32 %v5869_v34, %v5865_v10  ;;  %v5861_v50 = vrot.slane %v5860_v41, 4  ;;  %9426 = vmatprep.mubr.msk.bf16.mxu1 %vm1945_vm1, %v8325_v44  ;;  %v5887_v52 = vshrl.u32 %v8760_v33, 16  ;;  %v8768_v35 = vld [vmem:[%s10463_s23 + $0x158] sm:$0xf]  ;;  %v10337_v40 = vld [vmem:[%s10463_s23 + $0x120] sm:$0xf] }
 0x18e   : > { %v5893_v53 = vshll.u32 %v8761_v38, 16  ;;  %v5880_v14 = vor.u32 %v5879_v49, %v5875_v48  ;;  %v8326_v55 = vcombine.low %v10333_v21, %v10334_v54  ;;  %v5898_v57 = vshrl.u32 %v8762_v45, 16  ;;  %v10338_v41 = vld [vmem:[%s10463_s23 + $0x124] sm:$0xf] }
 0x18f   : > { %9687 = vmatmul.mubr.msk.bf16.gmra.mrb[52].mxu0 %vm1945_vm1, %v8876_v46  ;;  %v5871_v13 = vrot.slane %v5870_v47, 4  ;;  %v5866_v58 = vsel %vm10499_vm4, %v5861_v50, %v5865_v10  ;;  %v5885_v59 = vrot.slane %v5883_v51, 5  ;;  %v5889_v60 = vrot.slane %v5887_v52, 4  ;;  %v8770_v52 = vld [vmem:[%s10463_s23 + $0x160] sm:$0xf] }
 0x190   : > { %v5895_v61 = vrot.slane %v5893_v53, 5  ;;  %v5881_v0 = vrot.slane %v5880_v14, 4  ;;  %9427 = vmatmul.mubr.msk.bf16.gmra.mrb[52].mxu1 %vm1945_vm1, %v8326_v55  ;;  %v5900_v1 = vrot.slane %v5898_v57, 4  ;;  %v5901_v2 = vshll.u32 %v8762_v45, 16  ;;  %v8769_v45 = vld [vmem:[%s10463_s23 + $0x15c] sm:$0xf] }
 0x191   : > { %v5876_v63 = vsel %vm10499_vm4, %v5871_v13, %v5875_v48  ;;  %v5890_v4 = vor.u32 %v5889_v60, %v5885_v59  ;;  %v5907_v5 = vshll.u32 %v8763_v56, 16  ;;  %v5911_v6 = vshrl.u32 %v8763_v56, 16  ;;  %v10339_v60 = vld [vmem:[%s10463_s23 + $0x12c] sm:$0xf] }
 0x192   : > { %v8877_v3 = vcombine.low %v5866_v58, %v5876_v63  ;;  %v5886_v8 = vsel %vm10499_vm4, %v5881_v0, %v5885_v59  ;;  %v5903_v9 = vrot.slane %v5901_v2, 5  ;;  %v5917_v11 = vshll.u32 %v8764_v62, 16  ;;  %v8771_v63 = vld [vmem:[%s10463_s23 + $0x164] sm:$0x1] }
 0x193   : > { %v5921_v12 = vshrl.u32 %v8764_v62, 16  ;;  %v5891_v16 = vrot.slane %v5890_v4, 4  ;;  %v5909_v17 = vrot.slane %v5907_v5, 5  ;;  %v5913_v18 = vrot.slane %v5911_v6, 4  ;;  %v8772_v5 = vld [vmem:[%s10463_s23 + $0x168] sm:$0xf] }
 0x194   : > { %9690 = vmatprep.mubr.msk.bf16.mxu0 %vm1945_vm1, %v8877_v3  ;;  %v8327_v22 = vcombine.low %v10335_v19, %v10336_v20  ;;  %v5904_v23 = vor.u32 %v5903_v9, %v5900_v1  ;;  %v5919_v24 = vrot.slane %v5917_v11, 5  ;;  %v5927_v26 = vshll.u32 %v8765_v7, 16  ;;  %v8773_v11 = vld [vmem:[%s10463_s23 + $0x16c] sm:$0xf] }
 0x195   : > { %v5923_v25 = vrot.slane %v5921_v12, 4  ;;  %v5896_v27 = vsel %vm10499_vm4, %v5891_v16, %v5895_v61  ;;  %v5914_v28 = vor.u32 %v5913_v18, %v5909_v17  ;;  %v5931_v29 = vshrl.u32 %v8765_v7, 16  ;;  %v10340_v61 = vld [vmem:[%s10463_s23 + $0x130] sm:$0xf]  ;;  %v10342_v18 = vld [vmem:[%s10463_s23 + $0x138] sm:$0xf] }
 0x196   : > { %9430 = vmatprep.mubr.msk.bf16.mxu1 %vm1945_vm1, %v8327_v22  ;;  %v5937_v30 = vshll.u32 %v8766_v15, 16  ;;  %v8878_v32 = vcombine.low %v5886_v8, %v5896_v27  ;;  %v5905_v33 = vrot.slane %v5904_v23, 4  ;;  %v5929_v34 = vrot.slane %v5927_v26, 5  ;;  %v8774_v23 = vld [vmem:[%s10463_s23 + $0x170] sm:$0xf] }
 0x197   : > { %v5924_v10 = vor.u32 %v5923_v25, %v5919_v24  ;;  %v5915_v37 = vrot.slane %v5914_v28, 4  ;;  %v5933_v38 = vrot.slane %v5931_v29, 4  ;;  %v8328_v42 = vcombine.low %v10337_v40, %v10338_v41 }
 0x198   : > { %v5939_v39 = vrot.slane %v5937_v30, 5  ;;  %9691 = vmatmul.mubr.msk.bf16.gmra.mrb[56].mxu0 %vm1945_vm1, %v8878_v32  ;;  %v5910_v43 = vsel %vm10499_vm4, %v5905_v33, %v5909_v17  ;;  %v5942_v46 = vshrl.u32 %v8767_v31, 16  ;;  %v5945_v47 = vshll.u32 %v8767_v31, 16  ;;  %v10341_v17 = vld [vmem:[%s10463_s23 + $0x134] sm:$0xf] }
 0x199   : > { %v5925_v44 = vrot.slane %v5924_v10, 4  ;;  %v5920_v48 = vsel %vm10499_vm4, %v5915_v37, %v5919_v24  ;;  %v5934_v49 = vor.u32 %v5933_v38, %v5929_v34  ;;  %9431 = vmatmul.mubr.msk.bf16.gmra.mrb[56].mxu1 %vm1945_vm1, %v8328_v42  ;;  %v5951_v50 = vshll.u32 %v8768_v35, 16  ;;  %v8775_v10 = vld [vmem:[%s10463_s23 + $0x174] sm:$0xf]  ;;  %v10343_v42 = vld [vmem:[%s10463_s23 + $0x140] sm:$0xf] }
 0x19a   : > { %v5955_v51 = vshrl.u32 %v8768_v35, 16  ;;  %v8879_v53 = vcombine.low %v5910_v43, %v5920_v48  ;;  %v5944_v14 = vrot.slane %v5942_v46, 4  ;;  %v5947_v21 = vrot.slane %v5945_v47, 5  ;;  %v10344_v43 = vld [vmem:[%s10463_s23 + $0x144] sm:$0xf] }
 0x19b   : > { %v5930_v13 = vsel %vm10499_vm4, %v5925_v44, %v5929_v34  ;;  %v5935_v54 = vrot.slane %v5934_v49, 4  ;;  %v5953_v55 = vrot.slane %v5951_v50, 5  ;;  %v5961_v57 = vshll.u32 %v8769_v45, 16  ;;  %v8777_v50 = vld [vmem:[%s10463_s23 + $0x17c] sm:$0xf] }
 0x19c   : > { %v5957_v56 = vrot.slane %v5955_v51, 4  ;;  %9694 = vmatprep.mubr.msk.bf16.mxu0 %vm1945_vm1, %v8879_v53  ;;  %v5948_v58 = vor.u32 %v5947_v21, %v5944_v14  ;;  %v5965_v59 = vshrl.u32 %v8769_v45, 16  ;;  %v8329_v62 = vcombine.low %v10339_v60, %v10340_v61  ;;  %v8776_v45 = vld [vmem:[%s10463_s23 + $0x178] sm:$0x1]  ;;  %v8778_v14 = vld [vmem:[%s10463_s23 + $0x180] sm:$0xf] }
 0x19d   : > { %v5971_v0 = vshll.u32 %v8770_v52, 16  ;;  %v5940_v1 = vsel %vm10499_vm4, %v5935_v54, %v5939_v39  ;;  %v5963_v3 = vrot.slane %v5961_v57, 5  ;;  %v5975_v4 = vshrl.u32 %v8770_v52, 16  ;;  %v10346_v57 = vld [vmem:[%s10463_s23 + $0x14c] sm:$0xf] }
 0x19e   : > { %v5958_v2 = vor.u32 %v5957_v56, %v5953_v55  ;;  %v8880_v6 = vcombine.low %v5930_v13, %v5940_v1  ;;  %v5949_v7 = vrot.slane %v5948_v58, 4  ;;  %9434 = vmatprep.mubr.msk.bf16.mxu1 %vm1945_vm1, %v8329_v62  ;;  %v5967_v8 = vrot.slane %v5965_v59, 4  ;;  %v10345_v56 = vld [vmem:[%s10463_s23 + $0x148] sm:$0xf]  ;;  %v8779_v62 = vld [vmem:[%s10463_s23 + $0x184] sm:$0xf] }
 0x19f   : > { %v5973_v9 = vrot.slane %v5971_v0, 5  ;;  %v5977_v15 = vrot.slane %v5975_v4, 4  ;;  %v5981_v16 = vshll.u32 %v8771_v63, 16  ;;  %v8330_v19 = vcombine.low %v10341_v17, %v10342_v18 }
 0x1a0   : > { %v5959_v12 = vrot.slane %v5958_v2, 4  ;;  %9695 = vmatmul.mubr.msk.bf16.gmra.mrb[60].mxu0 %vm1945_vm1, %v8880_v6  ;;  %v5954_v20 = vsel %vm10499_vm4, %v5949_v7, %v5953_v55  ;;  %v5968_v22 = vor.u32 %v5967_v8, %v5963_v3  ;;  %v5986_v24 = vshrl.u32 %v8772_v5, 16 }
 0x1a1   : > { %v5989_v25 = vshll.u32 %v8772_v5, 16  ;;  %v5978_v27 = vor.u32 %v5977_v15, %v5973_v9  ;;  %v5983_v28 = vrot.slane %v5981_v16, 5  ;;  %9435 = vmatmul.mubr.msk.bf16.gmra.mrb[60].mxu1 %vm1945_vm1, %v8330_v19  ;;  %v5995_v29 = vshll.u32 %v8773_v11, 16  ;;  %v8780_v15 = vld [vmem:[%s10463_s23 + $0x188] sm:$0xf] }
 0x1a2   : > { %v5964_v26 = vsel %vm10499_vm4, %v5959_v12, %v5963_v3  ;;  %v5969_v31 = vrot.slane %v5968_v22, 4  ;;  %v5988_v32 = vrot.slane %v5986_v24, 4  ;;  %v5999_v37 = vshrl.u32 %v8773_v11, 16 }
 0x1a3   : > { %v8881_v30 = vcombine.low %v5954_v20, %v5964_v26  ;;  %v5991_v33 = vrot.slane %v5989_v25, 5  ;;  %v5979_v34 = vrot.slane %v5978_v27, 4  ;;  %v5997_v35 = vrot.slane %v5995_v29, 5  ;;  %v8781_v20 = vld [vmem:[%s10463_s23 + $0x18c] sm:$0x1] }
 0x1a4   : > { %v6005_v38 = vshll.u32 %v8774_v23, 16  ;;  %v5974_v39 = vsel %vm10499_vm4, %v5969_v31, %v5973_v9  ;;  %v6009_v41 = vshrl.u32 %v8774_v23, 16  ;;  %v8331_v44 = vcombine.low %v10343_v42, %v10344_v43  ;;  %v10347_v25 = vld [vmem:[%s10463_s23 + $0x154] sm:$0xf]  ;;  %v10348_v26 = vld [vmem:[%s10463_s23 + $0x158] sm:$0xf] }
 0x1a5   : > { %9698 = vmatprep.mubr.msk.bf16.mxu0 %vm1945_vm1, %v8881_v30  ;;  %v5992_v40 = vor.u32 %v5991_v33, %v5988_v32  ;;  %v5984_v46 = vsel %vm10499_vm4, %v5979_v34, %v5983_v28  ;;  %v6001_v47 = vrot.slane %v5999_v37, 4  ;;  %v6015_v49 = vshll.u32 %v8775_v10, 16  ;;  %v8782_v32 = vld [vmem:[%s10463_s23 + $0x190] sm:$0xf]  ;;  %v8783_v37 = vld [vmem:[%s10463_s23 + $0x194] sm:$0xf] }
 0x1a6   : > { %v6007_v48 = vrot.slane %v6005_v38, 5  ;;  %v8882_v51 = vcombine.low %v5974_v39, %v5984_v46  ;;  %9438 = vmatprep.mubr.msk.bf16.mxu1 %vm1945_vm1, %v8331_v44  ;;  %v6011_v53 = vrot.slane %v6009_v41, 4  ;;  %v6019_v13 = vshrl.u32 %v8775_v10, 16  ;;  %v10349_v41 = vld [vmem:[%s10463_s23 + $0x15c] sm:$0xf] }
 0x1a7   : > { %v5993_v52 = vrot.slane %v5992_v40, 4  ;;  %v6002_v21 = vor.u32 %v6001_v47, %v5997_v35  ;;  %v6017_v54 = vrot.slane %v6015_v49, 5  ;;  %v6025_v55 = vshll.u32 %v8776_v45, 16  ;;  %v10350_v42 = vld [vmem:[%s10463_s23 + $0x160] sm:$0xf] }
 0x1a8   : > { %v8332_v58 = vcombine.low %v10345_v56, %v10346_v57  ;;  %9699 = vmatmul.mubr.msk.bf16.gmra.mrb[64].mxu0 %vm1945_vm1, %v8882_v51  ;;  %v6012_v60 = vor.u32 %v6011_v53, %v6007_v48  ;;  %v6021_v61 = vrot.slane %v6019_v13, 4  ;;  %v6030_v63 = vshrl.u32 %v8777_v50, 16  ;;  %v8784_v47 = vld [vmem:[%s10463_s23 + $0x198] sm:$0xf] }
 0x1a9   : > { %v5998_v59 = vsel %vm10499_vm4, %v5993_v52, %v5997_v35  ;;  %v6003_v0 = vrot.slane %v6002_v21, 4  ;;  %v6027_v1 = vrot.slane %v6025_v55, 5  ;;  %v6033_v2 = vshll.u32 %v8777_v50, 16 }
 0x1aa   : > { %9439 = vmatmul.mubr.msk.bf16.gmra.mrb[64].mxu1 %vm1945_vm1, %v8332_v58  ;;  %v6039_v3 = vshll.u32 %v8778_v14, 16  ;;  %v6013_v4 = vrot.slane %v6012_v60, 4  ;;  %v6022_v5 = vor.u32 %v6021_v61, %v6017_v54  ;;  %v6032_v6 = vrot.slane %v6030_v63, 4  ;;  %v10352_v63 = vld [vmem:[%s10463_s23 + $0x16c] sm:$0xf] }
 0x1ab   : > { %v6043_v7 = vshrl.u32 %v8778_v14, 16  ;;  %v6008_v8 = vsel %vm10499_vm4, %v6003_v0, %v6007_v48  ;;  %v6035_v9 = vrot.slane %v6033_v2, 5  ;;  %v6049_v12 = vshll.u32 %v8779_v62, 16 }
 0x1ac   : > { %v6041_v11 = vrot.slane %v6039_v3, 5  ;;  %v8883_v16 = vcombine.low %v5998_v59, %v6008_v8  ;;  %v6018_v17 = vsel %vm10499_vm4, %v6013_v4, %v6017_v54  ;;  %v6023_v18 = vrot.slane %v6022_v5, 4  ;;  %v8785_v54 = vld [vmem:[%s10463_s23 + $0x19c] sm:$0xf] }
 0x1ad   : > { %v6045_v19 = vrot.slane %v6043_v7, 4  ;;  %v6036_v22 = vor.u32 %v6035_v9, %v6032_v6  ;;  %v6051_v23 = vrot.slane %v6049_v12, 5  ;;  %v6053_v24 = vshrl.u32 %v8779_v62, 16  ;;  %v10351_v62 = vld [vmem:[%s10463_s23 + $0x168] sm:$0xf] }
 0x1ae   : > { %v8333_v27 = vcombine.low %v10347_v25, %v10348_v26  ;;  %9702 = vmatprep.mubr.msk.bf16.mxu0 %vm1945_vm1, %v8883_v16  ;;  %v6028_v28 = vsel %vm10499_vm4, %v6023_v18, %v6027_v1  ;;  %v6059_v30 = vshll.u32 %v8780_v15, 16  ;;  %v6063_v31 = vshrl.u32 %v8780_v15, 16  ;;  %v8786_v1 = vld [vmem:[%s10463_s23 + $0x1a0] sm:$0x1]  ;;  %v8787_v6 = vld [vmem:[%s10463_s23 + $0x1a4] sm:$0xf] }
 0x1af   : > { %v6046_v29 = vor.u32 %v6045_v19, %v6041_v11  ;;  %v8884_v33 = vcombine.low %v6018_v17, %v6028_v28  ;;  %v6037_v10 = vrot.slane %v6036_v22, 4  ;;  %v6055_v34 = vrot.slane %v6053_v24, 4  ;;  %v8788_v12 = vld [vmem:[%s10463_s23 + $0x1a8] sm:$0xf]  ;;  %v10353_v18 = vld [vmem:[%s10463_s23 + $0x170] sm:$0xf] }
 0x1b0   : > { %9442 = vmatprep.mubr.msk.bf16.mxu1 %vm1945_vm1, %v8333_v27  ;;  %v6069_v35 = vshll.u32 %v8781_v20, 16  ;;  %v6061_v39 = vrot.slane %v6059_v30, 5  ;;  %v6065_v40 = vrot.slane %v6063_v31, 4  ;;  %v8334_v43 = vcombine.low %v10349_v41, %v10350_v42  ;;  %v10354_v19 = vld [vmem:[%s10463_s23 + $0x174] sm:$0xf] }
 0x1b1   : > { %v6047_v38 = vrot.slane %v6046_v29, 4  ;;  %9703 = vmatmul.mubr.msk.bf16.gmra.mrb[68].mxu0 %vm1945_vm1, %v8884_v33  ;;  %v6042_v44 = vsel %vm10499_vm4, %v6037_v10, %v6041_v11  ;;  %v6056_v45 = vor.u32 %v6055_v34, %v6051_v23  ;;  %v6074_v48 = vshrl.u32 %v8782_v32, 16  ;;  %v8789_v28 = vld [vmem:[%s10463_s23 + $0x1ac] sm:$0xf]  ;;  %v8790_v34 = vld [vmem:[%s10463_s23 + $0x1b0] sm:$0xf] }
 0x1b2   : > { %v6071_v46 = vrot.slane %v6069_v35, 5  ;;  %v6066_v50 = vor.u32 %v6065_v40, %v6061_v39  ;;  %9443 = vmatmul.mubr.msk.bf16.gmra.mrb[68].mxu1 %vm1945_vm1, %v8334_v43  ;;  %v6077_v51 = vshll.u32 %v8782_v32, 16  ;;  %v6083_v52 = vshll.u32 %v8783_v37, 16 }
 0x1b3   : > { %v6052_v49 = vsel %vm10499_vm4, %v6047_v38, %v6051_v23  ;;  %v6057_v13 = vrot.slane %v6056_v45, 4  ;;  %v6076_v14 = vrot.slane %v6074_v48, 4  ;;  %v6087_v21 = vshrl.u32 %v8783_v37, 16 }
 0x1b4   : > { %v8885_v53 = vcombine.low %v6042_v44, %v6052_v49  ;;  %v6067_v55 = vrot.slane %v6066_v50, 4  ;;  %v6079_v56 = vrot.slane %v6077_v51, 5  ;;  %v6085_v57 = vrot.slane %v6083_v52, 5  ;;  %v8791_v49 = vld [vmem:[%s10463_s23 + $0x1b4] sm:$0x1] }
 0x1b5   : > { %v6093_v58 = vshll.u32 %v8784_v47, 16  ;;  %v6062_v59 = vsel %vm10499_vm4, %v6057_v13, %v6061_v39  ;;  %v6089_v60 = vrot.slane %v6087_v21, 4  ;;  %v6097_v61 = vshrl.u32 %v8784_v47, 16  ;;  %v10356_v47 = vld [vmem:[%s10463_s23 + $0x180] sm:$0xf] }
 0x1b6   : > { %9706 = vmatprep.mubr.msk.bf16.mxu0 %vm1945_vm1, %v8885_v53  ;;  %v8335_v0 = vcombine.low %v10351_v62, %v10352_v63  ;;  %v6072_v2 = vsel %vm10499_vm4, %v6067_v55, %v6071_v46  ;;  %v6080_v3 = vor.u32 %v6079_v56, %v6076_v14  ;;  %v6103_v5 = vshll.u32 %v8785_v54, 16  ;;  %v10355_v46 = vld [vmem:[%s10463_s23 + $0x17c] sm:$0xf]  ;;  %v8792_v14 = vld [vmem:[%s10463_s23 + $0x1b8] sm:$0xf] }
 0x1b7   : > { %v6095_v4 = vrot.slane %v6093_v58, 5  ;;  %v8886_v7 = vcombine.low %v6062_v59, %v6072_v2  ;;  %v6090_v8 = vor.u32 %v6089_v60, %v6085_v57  ;;  %v6099_v9 = vrot.slane %v6097_v61, 4  ;;  %v10357_v61 = vld [vmem:[%s10463_s23 + $0x184] sm:$0xf]  ;;  %v10358_v62 = vld [vmem:[%s10463_s23 + $0x188] sm:$0xf] }
 0x1b8   : > { %9446 = vmatprep.mubr.msk.bf16.mxu1 %vm1945_vm1, %v8335_v0  ;;  %v6107_v11 = vshrl.u32 %v8785_v54, 16  ;;  %v6081_v15 = vrot.slane %v6080_v3, 4  ;;  %v6105_v16 = vrot.slane %v6103_v5, 5  ;;  %v6113_v17 = vshll.u32 %v8786_v1, 16 }
 0x1b9   : > { %v8336_v20 = vcombine.low %v10353_v18, %v10354_v19  ;;  %9707 = vmatmul.mubr.msk.bf16.gmra.mrb[72].mxu0 %vm1945_vm1, %v8886_v7  ;;  %v6091_v22 = vrot.slane %v6090_v8, 4  ;;  %v6100_v23 = vor.u32 %v6099_v9, %v6095_v4  ;;  %v6118_v25 = vshrl.u32 %v8787_v6, 16  ;;  %v8794_v7 = vld [vmem:[%s10463_s23 + $0x1c0] sm:$0xf] }
 0x1ba   : > { %v6109_v24 = vrot.slane %v6107_v11, 4  ;;  %v6086_v26 = vsel %vm10499_vm4, %v6081_v15, %v6085_v57  ;;  %v6115_v27 = vrot.slane %v6113_v17, 5  ;;  %v6121_v29 = vshll.u32 %v8787_v6, 16  ;;  %v8793_v57 = vld [vmem:[%s10463_s23 + $0x1bc] sm:$0xf] }
 0x1bb   : > { %9447 = vmatmul.mubr.msk.bf16.gmra.mrb[72].mxu1 %vm1945_vm1, %v8336_v20  ;;  %v6127_v30 = vshll.u32 %v8788_v12, 16  ;;  %v6096_v31 = vsel %vm10499_vm4, %v6091_v22, %v6095_v4  ;;  %v6101_v32 = vrot.slane %v6100_v23, 4  ;;  %v6120_v10 = vrot.slane %v6118_v25, 4 }
 0x1bc   : > { %v6110_v33 = vor.u32 %v6109_v24, %v6105_v16  ;;  %v8887_v35 = vcombine.low %v6086_v26, %v6096_v31  ;;  %v6123_v37 = vrot.slane %v6121_v29, 5  ;;  %v6131_v39 = vshrl.u32 %v8788_v12, 16  ;;  %v8796_v26 = vld [vmem:[%s10463_s23 + $0x1c8] sm:$0x1]  ;;  %v10360_v29 = vld [vmem:[%s10463_s23 + $0x194] sm:$0xf] }
 0x1bd   : > { %v6129_v38 = vrot.slane %v6127_v30, 5  ;;  %v6106_v40 = vsel %vm10499_vm4, %v6101_v32, %v6105_v16  ;;  %v6137_v42 = vshll.u32 %v8789_v28, 16  ;;  %v6141_v43 = vshrl.u32 %v8789_v28, 16  ;;  %v8795_v16 = vld [vmem:[%s10463_s23 + $0x1c4] sm:$0xf] }
 0x1be   : > { %v6111_v41 = vrot.slane %v6110_v33, 4  ;;  %9710 = vmatprep.mubr.msk.bf16.mxu0 %vm1945_vm1, %v8887_v35  ;;  %v6124_v44 = vor.u32 %v6123_v37, %v6120_v10  ;;  %v6133_v45 = vrot.slane %v6131_v39, 4  ;;  %v8337_v48 = vcombine.low %v10355_v46, %v10356_v47  ;;  %v10359_v28 = vld [vmem:[%s10463_s23 + $0x190] sm:$0xf]  ;;  %v8797_v33 = vld [vmem:[%s10463_s23 + $0x1cc] sm:$0xf] }
 0x1bf   : > { %v6147_v50 = vshll.u32 %v8790_v34, 16  ;;  %v6139_v52 = vrot.slane %v6137_v42, 5  ;;  %v6143_v53 = vrot.slane %v6141_v43, 4  ;;  %v6151_v13 = vshrl.u32 %v8790_v34, 16  ;;  %v8798_v42 = vld [vmem:[%s10463_s23 + $0x1d0] sm:$0xf] }
 0x1c0   : > { %v6116_v51 = vsel %vm10499_vm4, %v6111_v41, %v6115_v27  ;;  %v6125_v54 = vrot.slane %v6124_v44, 4  ;;  %v6134_v55 = vor.u32 %v6133_v45, %v6129_v38  ;;  %9450 = vmatprep.mubr.msk.bf16.mxu1 %vm1945_vm1, %v8337_v48  ;;  %v6157_v60 = vshll.u32 %v8791_v49, 16  ;;  %v10361_v45 = vld [vmem:[%s10463_s23 + $0x198] sm:$0xf]  ;;  %v10362_v46 = vld [vmem:[%s10463_s23 + $0x19c] sm:$0xf] }
 0x1c1   : > { %v8888_v21 = vcombine.low %v6106_v40, %v6116_v51  ;;  %v6149_v56 = vrot.slane %v6147_v50, 5  ;;  %v6144_v58 = vor.u32 %v6143_v53, %v6139_v52  ;;  %v6153_v59 = vrot.slane %v6151_v13, 4 }
 0x1c2   : > { %v8338_v63 = vcombine.low %v10357_v61, %v10358_v62  ;;  %v6130_v0 = vsel %vm10499_vm4, %v6125_v54, %v6129_v38  ;;  %v6135_v1 = vrot.slane %v6134_v55, 4  ;;  %v6162_v2 = vshrl.u32 %v8792_v14, 16 }
 0x1c3   : > { %9711 = vmatmul.mubr.msk.bf16.gmra.mrb[76].mxu0 %vm1945_vm1, %v8888_v21  ;;  %v6165_v3 = vshll.u32 %v8792_v14, 16  ;;  %v6145_v4 = vrot.slane %v6144_v58, 4  ;;  %v6154_v5 = vor.u32 %v6153_v59, %v6149_v56  ;;  %v6159_v6 = vrot.slane %v6157_v60, 5  ;;  %v8800_v59 = vld [vmem:[%s10463_s23 + $0x1d8] sm:$0xf] }
 0x1c4   : > { %9451 = vmatmul.mubr.msk.bf16.gmra.mrb[76].mxu1 %vm1945_vm1, %v8338_v63  ;;  %v6171_v8 = vshll.u32 %v8793_v57, 16  ;;  %v6140_v9 = vsel %vm10499_vm4, %v6135_v1, %v6139_v52  ;;  %v6164_v11 = vrot.slane %v6162_v2, 4  ;;  %v6175_v15 = vshrl.u32 %v8793_v57, 16  ;;  %v8799_v52 = vld [vmem:[%s10463_s23 + $0x1d4] sm:$0xf] }
 0x1c5   : > { %v6167_v12 = vrot.slane %v6165_v3, 5  ;;  %v8889_v17 = vcombine.low %v6130_v0, %v6140_v9  ;;  %v6150_v18 = vsel %vm10499_vm4, %v6145_v4, %v6149_v56  ;;  %v6155_v19 = vrot.slane %v6154_v5, 4  ;;  %v8801_v0 = vld [vmem:[%s10463_s23 + $0x1dc] sm:$0x1]  ;;  %v10363_v4 = vld [vmem:[%s10463_s23 + $0x1a4] sm:$0xf] }
 0x1c6   : > { %v6173_v20 = vrot.slane %v6171_v8, 5  ;;  %v6177_v23 = vrot.slane %v6175_v15, 4  ;;  %v6181_v24 = vshll.u32 %v8794_v7, 16  ;;  %v6185_v25 = vshrl.u32 %v8794_v7, 16  ;;  %v10364_v5 = vld [vmem:[%s10463_s23 + $0x1a8] sm:$0xf] }
 0x1c7   : > { %v6168_v22 = vor.u32 %v6167_v12, %v6164_v11  ;;  %9714 = vmatprep.mubr.msk.bf16.mxu0 %vm1945_vm1, %v8889_v17  ;;  %v6160_v27 = vsel %vm10499_vm4, %v6155_v19, %v6159_v6  ;;  %v8339_v30 = vcombine.low %v10359_v28, %v10360_v29  ;;  %v6191_v31 = vshll.u32 %v8795_v16, 16  ;;  %v8802_v7 = vld [vmem:[%s10463_s23 + $0x1e0] sm:$0xf] }
 0x1c8   : > { %v6195_v32 = vshrl.u32 %v8795_v16, 16  ;;  %v8890_v10 = vcombine.low %v6150_v18, %v6160_v27  ;;  %v6178_v35 = vor.u32 %v6177_v23, %v6173_v20  ;;  %v6183_v37 = vrot.slane %v6181_v24, 5  ;;  %v10366_v23 = vld [vmem:[%s10463_s23 + $0x1b0] sm:$0xf] }
 0x1c9   : > { %v6169_v34 = vrot.slane %v6168_v22, 4  ;;  %9454 = vmatprep.mubr.msk.bf16.mxu1 %vm1945_vm1, %v8339_v30  ;;  %v6187_v38 = vrot.slane %v6185_v25, 4  ;;  %v6193_v39 = vrot.slane %v6191_v31, 5  ;;  %v6201_v41 = vshll.u32 %v8796_v26, 16  ;;  %v10365_v22 = vld [vmem:[%s10463_s23 + $0x1ac] sm:$0xf] }
 0x1ca   : > { %v6197_v40 = vrot.slane %v6195_v32, 4  ;;  %v6179_v44 = vrot.slane %v6178_v35, 4  ;;  %v8340_v47 = vcombine.low %v10361_v45, %v10362_v46  ;;  %v6206_v48 = vshrl.u32 %v8797_v33, 16  ;;  %v8803_v25 = vld [vmem:[%s10463_s23 + $0x1e4] sm:$0xf] }
 0x1cb   : > { %9715 = vmatmul.mubr.msk.bf16.gmra.mrb[80].mxu0 %vm1945_vm1, %v8890_v10  ;;  %v6174_v43 = vsel %vm10499_vm4, %v6169_v34, %v6173_v20  ;;  %v6188_v49 = vor.u32 %v6187_v38, %v6183_v37  ;;  %v6203_v51 = vrot.slane %v6201_v41, 5  ;;  %v6209_v53 = vshll.u32 %v8797_v33, 16  ;;  %v8804_v31 = vld [vmem:[%s10463_s23 + $0x1e8] sm:$0xf]  ;;  %v8806_v45 = vld [vmem:[%s10463_s23 + $0x1f0] sm:$0x1] }
 0x1cc   : > { %v6198_v50 = vor.u32 %v6197_v40, %v6193_v39  ;;  %v6184_v13 = vsel %vm10499_vm4, %v6179_v44, %v6183_v37  ;;  %9455 = vmatmul.mubr.msk.bf16.gmra.mrb[80].mxu1 %vm1945_vm1, %v8340_v47  ;;  %v6208_v14 = vrot.slane %v6206_v48, 4  ;;  %v6215_v21 = vshll.u32 %v8798_v42, 16  ;;  %v8805_v40 = vld [vmem:[%s10463_s23 + $0x1ec] sm:$0xf] }
 0x1cd   : > { %v6219_v54 = vshrl.u32 %v8798_v42, 16  ;;  %v8891_v55 = vcombine.low %v6174_v43, %v6184_v13  ;;  %v6189_v56 = vrot.slane %v6188_v49, 4  ;;  %v6211_v58 = vrot.slane %v6209_v53, 5  ;;  %v10367_v49 = vld [vmem:[%s10463_s23 + $0x1b8] sm:$0xf] }
 0x1ce   : > { %v6199_v57 = vrot.slane %v6198_v50, 4  ;;  %v6217_v60 = vrot.slane %v6215_v21, 5  ;;  %v6225_v62 = vshll.u32 %v8799_v52, 16  ;;  %v6229_v63 = vshrl.u32 %v8799_v52, 16  ;;  %v10368_v50 = vld [vmem:[%s10463_s23 + $0x1bc] sm:$0xf] }
 0x1cf   : > { %v6221_v61 = vrot.slane %v6219_v54, 4  ;;  %9718 = vmatprep.mubr.msk.bf16.mxu0 %vm1945_vm1, %v8891_v55  ;;  %v6194_v1 = vsel %vm10499_vm4, %v6189_v56, %v6193_v39  ;;  %v6212_v3 = vor.u32 %v6211_v58, %v6208_v14  ;;  %v8341_v6 = vcombine.low %v10363_v4, %v10364_v5 }
 0x1d0   : > { %v6204_v2 = vsel %vm10499_vm4, %v6199_v57, %v6203_v51  ;;  %v6227_v11 = vrot.slane %v6225_v62, 5  ;;  %v6231_v12 = vrot.slane %v6229_v63, 4  ;;  %v6235_v16 = vshll.u32 %v8800_v59, 16  ;;  %v8807_v57 = vld [vmem:[%s10463_s23 + $0x1f4] sm:$0xf] }
 0x1d1   : > { %v8892_v8 = vcombine.low %v6194_v1, %v6204_v2  ;;  %v6222_v9 = vor.u32 %v6221_v61, %v6217_v60  ;;  %v6213_v15 = vrot.slane %v6212_v3, 4  ;;  %9458 = vmatprep.mubr.msk.bf16.mxu1 %vm1945_vm1, %v8341_v6  ;;  %v6239_v17 = vshrl.u32 %v8800_v59, 16  ;;  %v8808_v62 = vld [vmem:[%s10463_s23 + $0x1f8] sm:$0xf]  ;;  %v10369_v2 = vld [vmem:[%s10463_s23 + $0x1c0] sm:$0xf] }
 0x1d2   : > { %v6245_v18 = vshll.u32 %v8801_v0, 16  ;;  %v6232_v20 = vor.u32 %v6231_v12, %v6227_v11  ;;  %v8342_v24 = vcombine.low %v10365_v22, %v10366_v23  ;;  %v6250_v26 = vshrl.u32 %v8802_v7, 16  ;;  %v10370_v3 = vld [vmem:[%s10463_s23 + $0x1c4] sm:$0xf] }
 0x1d3   : > { %9719 = vmatmul.mubr.msk.bf16.gmra.mrb[84].mxu0 %vm1945_vm1, %v8892_v8  ;;  %v6223_v19 = vrot.slane %v6222_v9, 4  ;;  %v6218_v27 = vsel %vm10499_vm4, %v6213_v15, %v6217_v60  ;;  %v6237_v28 = vrot.slane %v6235_v16, 5  ;;  %v6241_v29 = vrot.slane %v6239_v17, 4  ;;  %v8810_v17 = vld [vmem:[%s10463_s23 + $0x200] sm:$0xf] }
 0x1d4   : > { %v6247_v30 = vrot.slane %v6245_v18, 5  ;;  %v6233_v33 = vrot.slane %v6232_v20, 4  ;;  %9459 = vmatmul.mubr.msk.bf16.gmra.mrb[84].mxu1 %vm1945_vm1, %v8342_v24  ;;  %v6252_v10 = vrot.slane %v6250_v26, 4  ;;  %v6253_v34 = vshll.u32 %v8802_v7, 16  ;;  %v8809_v7 = vld [vmem:[%s10463_s23 + $0x1fc] sm:$0xf] }
 0x1d5   : > { %v6228_v32 = vsel %vm10499_vm4, %v6223_v19, %v6227_v11  ;;  %v6242_v37 = vor.u32 %v6241_v29, %v6237_v28  ;;  %v6259_v38 = vshll.u32 %v8803_v25, 16  ;;  %v6263_v39 = vshrl.u32 %v8803_v25, 16  ;;  %v10371_v29 = vld [vmem:[%s10463_s23 + $0x1cc] sm:$0xf] }
 0x1d6   : > { %v8893_v35 = vcombine.low %v6218_v27, %v6228_v32  ;;  %v6238_v41 = vsel %vm10499_vm4, %v6233_v33, %v6237_v28  ;;  %v6255_v42 = vrot.slane %v6253_v34, 5  ;;  %v6269_v43 = vshll.u32 %v8804_v31, 16  ;;  %v8811_v32 = vld [vmem:[%s10463_s23 + $0x204] sm:$0x1] }
 0x1d7   : > { %v6273_v44 = vshrl.u32 %v8804_v31, 16  ;;  %v6243_v46 = vrot.slane %v6242_v37, 4  ;;  %v6261_v47 = vrot.slane %v6259_v38, 5  ;;  %v6265_v48 = vrot.slane %v6263_v39, 4  ;;  %v8812_v38 = vld [vmem:[%s10463_s23 + $0x208] sm:$0xf] }
 0x1d8   : > { %9722 = vmatprep.mubr.msk.bf16.mxu0 %vm1945_vm1, %v8893_v35  ;;  %v8343_v51 = vcombine.low %v10367_v49, %v10368_v50  ;;  %v6256_v52 = vor.u32 %v6255_v42, %v6252_v10  ;;  %v6271_v53 = vrot.slane %v6269_v43, 5  ;;  %v6279_v14 = vshll.u32 %v8805_v40, 16  ;;  %v8813_v43 = vld [vmem:[%s10463_s23 + $0x20c] sm:$0xf] }
 0x1d9   : > { %v6275_v13 = vrot.slane %v6273_v44, 4  ;;  %v6248_v21 = vsel %vm10499_vm4, %v6243_v46, %v6247_v30  ;;  %v6266_v54 = vor.u32 %v6265_v48, %v6261_v47  ;;  %v6283_v55 = vshrl.u32 %v8805_v40, 16  ;;  %v10372_v30 = vld [vmem:[%s10463_s23 + $0x1d0] sm:$0xf]  ;;  %v10374_v48 = vld [vmem:[%s10463_s23 + $0x1d8] sm:$0xf] }
 0x1da   : > { %9462 = vmatprep.mubr.msk.bf16.mxu1 %vm1945_vm1, %v8343_v51  ;;  %v6289_v56 = vshll.u32 %v8806_v45, 16  ;;  %v8894_v58 = vcombine.low %v6238_v41, %v6248_v21  ;;  %v6257_v59 = vrot.slane %v6256_v52, 4  ;;  %v6281_v61 = vrot.slane %v6279_v14, 5  ;;  %v8814_v52 = vld [vmem:[%s10463_s23 + $0x210] sm:$0xf] }
 0x1db   : > { %v6276_v60 = vor.u32 %v6275_v13, %v6271_v53  ;;  %v6267_v63 = vrot.slane %v6266_v54, 4  ;;  %v6285_v0 = vrot.slane %v6283_v55, 4  ;;  %v8344_v4 = vcombine.low %v10369_v2, %v10370_v3 }
 0x1dc   : > { %v6291_v1 = vrot.slane %v6289_v56, 5  ;;  %9723 = vmatmul.mubr.msk.bf16.gmra.mrb[88].mxu0 %vm1945_vm1, %v8894_v58  ;;  %v6262_v5 = vsel %vm10499_vm4, %v6257_v59, %v6261_v47  ;;  %v6294_v8 = vshrl.u32 %v8807_v57, 16  ;;  %v6297_v9 = vshll.u32 %v8807_v57, 16  ;;  %v10373_v47 = vld [vmem:[%s10463_s23 + $0x1d4] sm:$0xf] }
 0x1dd   : > { %v6277_v6 = vrot.slane %v6276_v60, 4  ;;  %v6272_v11 = vsel %vm10499_vm4, %v6267_v63, %v6271_v53  ;;  %v6286_v12 = vor.u32 %v6285_v0, %v6281_v61  ;;  %9463 = vmatmul.mubr.msk.bf16.gmra.mrb[88].mxu1 %vm1945_vm1, %v8344_v4  ;;  %v6303_v15 = vshll.u32 %v8808_v62, 16  ;;  %v8815_v60 = vld [vmem:[%s10463_s23 + $0x214] sm:$0xf]  ;;  %v10375_v4 = vld [vmem:[%s10463_s23 + $0x1e0] sm:$0xf] }
 0x1de   : > { %v6307_v16 = vshrl.u32 %v8808_v62, 16  ;;  %v8895_v18 = vcombine.low %v6262_v5, %v6272_v11  ;;  %v6296_v20 = vrot.slane %v6294_v8, 4  ;;  %v6299_v22 = vrot.slane %v6297_v9, 5  ;;  %v10376_v5 = vld [vmem:[%s10463_s23 + $0x1e4] sm:$0xf] }
 0x1df   : > { %v6282_v19 = vsel %vm10499_vm4, %v6277_v6, %v6281_v61  ;;  %v6287_v23 = vrot.slane %v6286_v12, 4  ;;  %v6305_v24 = vrot.slane %v6303_v15, 5  ;;  %v6313_v26 = vshll.u32 %v8809_v7, 16  ;;  %v8817_v15 = vld [vmem:[%s10463_s23 + $0x21c] sm:$0xf] }
 0x1e0   : > { %v6309_v25 = vrot.slane %v6307_v16, 4  ;;  %9726 = vmatprep.mubr.msk.bf16.mxu0 %vm1945_vm1, %v8895_v18  ;;  %v6300_v27 = vor.u32 %v6299_v22, %v6296_v20  ;;  %v6317_v28 = vshrl.u32 %v8809_v7, 16  ;;  %v8345_v31 = vcombine.low %v10371_v29, %v10372_v30  ;;  %v8816_v7 = vld [vmem:[%s10463_s23 + $0x218] sm:$0x1]  ;;  %v8818_v20 = vld [vmem:[%s10463_s23 + $0x220] sm:$0xf] }
 0x1e1   : > { %v6323_v33 = vshll.u32 %v8810_v17, 16  ;;  %v6292_v10 = vsel %vm10499_vm4, %v6287_v23, %v6291_v1  ;;  %v6315_v35 = vrot.slane %v6313_v26, 5  ;;  %v6327_v37 = vshrl.u32 %v8810_v17, 16  ;;  %v10378_v26 = vld [vmem:[%s10463_s23 + $0x1ec] sm:$0xf] }
 0x1e2   : > { %v6310_v34 = vor.u32 %v6309_v25, %v6305_v24  ;;  %v8896_v39 = vcombine.low %v6282_v19, %v6292_v10  ;;  %v6301_v40 = vrot.slane %v6300_v27, 4  ;;  %9466 = vmatprep.mubr.msk.bf16.mxu1 %vm1945_vm1, %v8345_v31  ;;  %v6319_v41 = vrot.slane %v6317_v28, 4  ;;  %v10377_v25 = vld [vmem:[%s10463_s23 + $0x1e8] sm:$0xf]  ;;  %v8819_v31 = vld [vmem:[%s10463_s23 + $0x224] sm:$0xf] }
 0x1e3   : > { %v6325_v42 = vrot.slane %v6323_v33, 5  ;;  %v6329_v45 = vrot.slane %v6327_v37, 4  ;;  %v6333_v46 = vshll.u32 %v8811_v32, 16  ;;  %v8346_v49 = vcombine.low %v10373_v47, %v10374_v48 }
 0x1e4   : > { %v6311_v44 = vrot.slane %v6310_v34, 4  ;;  %9727 = vmatmul.mubr.msk.bf16.gmra.mrb[92].mxu0 %vm1945_vm1, %v8896_v39  ;;  %v6306_v50 = vsel %vm10499_vm4, %v6301_v40, %v6305_v24  ;;  %v6320_v51 = vor.u32 %v6319_v41, %v6315_v35  ;;  %v6338_v53 = vshrl.u32 %v8812_v38, 16 }
 0x1e5   : > { %v6341_v13 = vshll.u32 %v8812_v38, 16  ;;  %v6330_v21 = vor.u32 %v6329_v45, %v6325_v42  ;;  %v6335_v54 = vrot.slane %v6333_v46, 5  ;;  %9467 = vmatmul.mubr.msk.bf16.gmra.mrb[92].mxu1 %vm1945_vm1, %v8346_v49  ;;  %v6347_v55 = vshll.u32 %v8813_v43, 16  ;;  %v8820_v45 = vld [vmem:[%s10463_s23 + $0x228] sm:$0xf] }
 0x1e6   : > { %v6316_v14 = vsel %vm10499_vm4, %v6311_v44, %v6315_v35  ;;  %v6321_v57 = vrot.slane %v6320_v51, 4  ;;  %v6340_v58 = vrot.slane %v6338_v53, 4  ;;  %v6351_v63 = vshrl.u32 %v8813_v43, 16 }
 0x1e7   : > { %v8897_v56 = vcombine.low %v6306_v50, %v6316_v14  ;;  %v6343_v59 = vrot.slane %v6341_v13, 5  ;;  %v6331_v61 = vrot.slane %v6330_v21, 4  ;;  %v6349_v62 = vrot.slane %v6347_v55, 5  ;;  %v8821_v50 = vld [vmem:[%s10463_s23 + $0x22c] sm:$0x1] }
 0x1e8   : > { %v6357_v0 = vshll.u32 %v8814_v52, 16  ;;  %v6326_v1 = vsel %vm10499_vm4, %v6321_v57, %v6325_v42  ;;  %v6361_v3 = vshrl.u32 %v8814_v52, 16  ;;  %v8347_v6 = vcombine.low %v10375_v4, %v10376_v5  ;;  %v10379_v14 = vld [vmem:[%s10463_s23 + $0x1f4] sm:$0xf]  ;;  %v10380_v21 = vld [vmem:[%s10463_s23 + $0x1f8] sm:$0xf] }
 0x1e9   : > { %9730 = vmatprep.mubr.msk.bf16.mxu0 %vm1945_vm1, %v8897_v56  ;;  %v6344_v2 = vor.u32 %v6343_v59, %v6340_v58  ;;  %v6336_v8 = vsel %vm10499_vm4, %v6331_v61, %v6335_v54  ;;  %v6353_v9 = vrot.slane %v6351_v63, 4  ;;  %v6367_v12 = vshll.u32 %v8815_v60, 16  ;;  %v8822_v61 = vld [vmem:[%s10463_s23 + $0x230] sm:$0xf] }
 0x1ea   : > { %v6359_v11 = vrot.slane %v6357_v0, 5  ;;  %v8898_v16 = vcombine.low %v6326_v1, %v6336_v8  ;;  %9470 = vmatprep.mubr.msk.bf16.mxu1 %vm1945_vm1, %v8347_v6  ;;  %v6363_v18 = vrot.slane %v6361_v3, 4  ;;  %v6371_v19 = vshrl.u32 %v8815_v60, 16  ;;  %v8823_v3 = vld [vmem:[%s10463_s23 + $0x234] sm:$0xf] }
 0x1eb   : > { %v6345_v17 = vrot.slane %v6344_v2, 4  ;;  %v6354_v22 = vor.u32 %v6353_v9, %v6349_v62  ;;  %v6369_v23 = vrot.slane %v6367_v12, 5  ;;  %v6377_v24 = vshll.u32 %v8816_v7, 16  ;;  %v10381_v7 = vld [vmem:[%s10463_s23 + $0x1fc] sm:$0xf] }
 0x1ec   : > { %v8348_v27 = vcombine.low %v10377_v25, %v10378_v26  ;;  %9731 = vmatmul.mubr.msk.bf16.gmra.mrb[96].mxu0 %vm1945_vm1, %v8898_v16  ;;  %v6364_v29 = vor.u32 %v6363_v18, %v6359_v11  ;;  %v6373_v30 = vrot.slane %v6371_v19, 4  ;;  %v6382_v32 = vshrl.u32 %v8817_v15, 16  ;;  %v10382_v8 = vld [vmem:[%s10463_s23 + $0x200] sm:$0xf]  ;;  %v8824_v16 = vld [vmem:[%s10463_s23 + $0x238] sm:$0xf] }
 0x1ed   : > { %v6350_v28 = vsel %vm10499_vm4, %v6345_v17, %v6349_v62  ;;  %v6355_v33 = vrot.slane %v6354_v22, 4  ;;  %v6379_v10 = vrot.slane %v6377_v24, 5  ;;  %v6385_v34 = vshll.u32 %v8817_v15, 16 }
 0x1ee   : > { %9471 = vmatmul.mubr.msk.bf16.gmra.mrb[96].mxu1 %vm1945_vm1, %v8348_v27  ;;  %v6391_v35 = vshll.u32 %v8818_v20, 16  ;;  %v6365_v37 = vrot.slane %v6364_v29, 4  ;;  %v6374_v38 = vor.u32 %v6373_v30, %v6369_v23  ;;  %v6384_v39 = vrot.slane %v6382_v32, 4  ;;  %v8825_v27 = vld [vmem:[%s10463_s23 + $0x23c] sm:$0xf] }
 0x1ef   : > { %v6395_v40 = vshrl.u32 %v8818_v20, 16  ;;  %v6360_v41 = vsel %vm10499_vm4, %v6355_v33, %v6359_v11  ;;  %v6387_v42 = vrot.slane %v6385_v34, 5  ;;  %v6401_v44 = vshll.u32 %v8819_v31, 16  ;;  %v10383_v34 = vld [vmem:[%s10463_s23 + $0x208] sm:$0xf] }
 0x1f0   : > { %v6393_v43 = vrot.slane %v6391_v35, 5  ;;  %v8899_v46 = vcombine.low %v6350_v28, %v6360_v41  ;;  %v6370_v47 = vsel %vm10499_vm4, %v6365_v37, %v6369_v23  ;;  %v6375_v48 = vrot.slane %v6374_v38, 4  ;;  %v10384_v35 = vld [vmem:[%s10463_s23 + $0x20c] sm:$0xf]  ;;  %v8826_v38 = vld [vmem:[%s10463_s23 + $0x240] sm:$0x1] }
 0x1f1   : > { %v6397_v49 = vrot.slane %v6395_v40, 4  ;;  %v11641_v51 = vpop.f32.mrb[0].mxu0  ;;  %v6388_v52 = vor.u32 %v6387_v42, %v6384_v39  ;;  %v6403_v53 = vrot.slane %v6401_v44, 5  ;;  %v6405_v13 = vshrl.u32 %v8819_v31, 16 }
 0x1f2   : > { %v8349_v54 = vcombine.low %v10379_v14, %v10380_v21  ;;  %v11645_v55 = vpop.f32.mrb[1].mxu0  ;;  %9734 = vmatprep.mubr.msk.bf16.mxu0 %vm1945_vm1, %v8899_v46  ;;  %v6380_v56 = vsel %vm10499_vm4, %v6375_v48, %v6379_v10  ;;  %v6411_v58 = vshll.u32 %v8820_v45, 16  ;;  %v6415_v59 = vshrl.u32 %v8820_v45, 16  ;;  %v11681_v14 = vld [vmem:[%s12297_s2] ss:$0 sm:$0xff] }
 0x1f3   : > { %v6398_v57 = vor.u32 %v6397_v49, %v6393_v43  ;;  %v11650_v60 = vpop.f32.mrb[2].mxu0  ;;  %v8900_v62 = vcombine.low %v6370_v47, %v6380_v56  ;;  %v6389_v63 = vrot.slane %v6388_v52, 4  ;;  %v6407_v0 = vrot.slane %v6405_v13, 4  ;;  %v10385_v52 = vld [vmem:[%s10463_s23 + $0x210] sm:$0xf] }
 0x1f4   : > { %9474 = vmatprep.mubr.msk.bf16.mxu1 %vm1945_vm1, %v8349_v54  ;;  %v6421_v1 = vshll.u32 %v8821_v50, 16  ;;  %v11654_v2 = vpop.f32.mrb[3].mxu0  ;;  %v6413_v5 = vrot.slane %v6411_v58, 5  ;;  %v6417_v6 = vrot.slane %v6415_v59, 4  ;;  %v8350_v9 = vcombine.low %v10381_v7, %v10382_v8 }
 0x1f5   : > { %v6399_v4 = vrot.slane %v6398_v57, 4  ;;  %9735 = vmatmul.mubr.msk.bf16.gmra.mrb[100].mxu0 %vm1945_vm1, %v8900_v62  ;;  %v6394_v11 = vsel %vm10499_vm4, %v6389_v63, %v6393_v43  ;;  %v6408_v12 = vor.u32 %v6407_v0, %v6403_v53  ;;  %v6426_v17 = vshrl.u32 %v8822_v61, 16 }
 0x1f6   : > { %v6423_v15 = vrot.slane %v6421_v1, 5  ;;  %v6418_v19 = vor.u32 %v6417_v6, %v6413_v5  ;;  %9475 = vmatmul.mubr.msk.bf16.gmra.mrb[100].mxu1 %vm1945_vm1, %v8350_v9  ;;  %v6429_v20 = vshll.u32 %v8822_v61, 16  ;;  %v6435_v22 = vshll.u32 %v8823_v3, 16 }
 0x1f7   : > { %v6404_v18 = vsel %vm10499_vm4, %v6399_v4, %v6403_v53  ;;  %v6409_v24 = vrot.slane %v6408_v12, 4  ;;  %v6428_v25 = vrot.slane %v6426_v17, 4  ;;  %v6439_v26 = vshrl.u32 %v8823_v3, 16  ;;  %v10386_v53 = vld [vmem:[%s10463_s23 + $0x214] sm:$0xf] }
 0x1f8   : > { %v8901_v23 = vcombine.low %v6394_v11, %v6404_v18  ;;  %v6419_v28 = vrot.slane %v6418_v19, 4  ;;  %v6431_v29 = vrot.slane %v6429_v20, 5  ;;  %v6437_v30 = vrot.slane %v6435_v22, 5  ;;  %v8827_v4 = vld [vmem:[%s10463_s23 + $0x244] sm:$0xf] }
 0x1f9   : > { %v6445_v31 = vshll.u32 %v8824_v16, 16  ;;  %v6414_v32 = vsel %vm10499_vm4, %v6409_v24, %v6413_v5  ;;  %v6441_v33 = vrot.slane %v6439_v26, 4  ;;  %v6449_v10 = vshrl.u32 %v8824_v16, 16  ;;  %v8828_v16 = vld [vmem:[%s10463_s23 + $0x248] sm:$0xf] }
 0x1fa   : > { %9738 = vmatprep.mubr.msk.bf16.mxu0 %vm1945_vm1, %v8901_v23  ;;  %v8351_v37 = vcombine.low %v10383_v34, %v10384_v35  ;;  %v6424_v39 = vsel %vm10499_vm4, %v6419_v28, %v6423_v15  ;;  %v6432_v40 = vor.u32 %v6431_v29, %v6428_v25  ;;  %v6455_v42 = vshll.u32 %v8825_v27, 16  ;;  %v8829_v24 = vld [vmem:[%s10463_s23 + $0x24c] sm:$0xf]  ;;  %v8830_v29 = vld [vmem:[%s10463_s23 + $0x250] sm:$0xf] }
 0x1fb   : > { %v6447_v41 = vrot.slane %v6445_v31, 5  ;;  %v8902_v43 = vcombine.low %v6414_v32, %v6424_v39  ;;  %v6442_v44 = vor.u32 %v6441_v33, %v6437_v30  ;;  %v6451_v45 = vrot.slane %v6449_v10, 4  ;;  %v9376_v47 = vpop.f32.mrb[0].mxu1  ;;  %v8831_v34 = vld [vmem:[%s10463_s23 + $0x254] sm:$0x1] }
 0x1fc   : > { %9478 = vmatprep.mubr.msk.bf16.mxu1 %vm1945_vm1, %v8351_v37  ;;  %v6459_v46 = vshrl.u32 %v8825_v27, 16  ;;  %v6433_v48 = vrot.slane %v6432_v40, 4  ;;  %v6457_v49 = vrot.slane %v6455_v42, 5  ;;  %v6465_v50 = vshll.u32 %v8826_v38, 16  ;;  %v3241_v21 = vpop.f32.mrb[1].mxu1 }
 0x1fd   : > { %v8352_v13 = vcombine.low %v10385_v52, %v10386_v53  ;;  %9739 = vmatmul.mubr.msk.bf16.gmra.mrb[104].mxu0 %vm1945_vm1, %v8902_v43  ;;  %v6443_v54 = vrot.slane %v6442_v44, 4  ;;  %v6452_v56 = vor.u32 %v6451_v45, %v6447_v41  ;;  %v11684_v58 = vpop.f32.mrb[4].mxu0  ;;  %v9762_v59 = vadd.f32 %v11641_v51, %v9376_v47  ;;  %v9377_v61 = vpop.f32.mrb[2].mxu1  ;;  %v10387_v44 = vld [vmem:[%s10463_s23 + $0x21c] sm:$0xf] }
 0x1fe   : > { %v6461_v57 = vrot.slane %v6459_v46, 4  ;;  %v6438_v62 = vsel %vm10499_vm4, %v6433_v48, %v6437_v30  ;;  %v6467_v63 = vrot.slane %v6465_v50, 5  ;;  %v11691_v0 = vpop.f32.mrb[5].mxu0  ;;  %v9763_v1 = vadd.f32 %v11645_v55, %v3241_v21  ;;  %v3244_v3 = vpop.f32.mrb[3].mxu1  ;;  %v10388_v45 = vld [vmem:[%s10463_s23 + $0x220] sm:$0xf] }
 0x1ff   : > { %9479 = vmatmul.mubr.msk.bf16.gmra.mrb[104].mxu1 %vm1945_vm1, %v8352_v13  ;;  %v6448_v5 = vsel %vm10499_vm4, %v6443_v54, %v6447_v41  ;;  %v6453_v6 = vrot.slane %v6452_v56, 4  ;;  %v7722_v7 = vadd.f32 %v9762_v59, %v11681_v14  ;;  %v11698_v8 = vpop.f32.mrb[6].mxu0  ;;  %v9764_v11 = vadd.f32 %v11650_v60, %v9377_v61  ;;  %v10389_v61 = vld [vmem:[%s10463_s23 + $0x224] sm:$0xf] }
 0x200   : > { %v6462_v51 = vor.u32 %v6461_v57, %v6457_v49  ;;  %v8903_v9 = vcombine.low %v6438_v62, %v6448_v5  ;;  %v7720_v55 = vadd.f32 %v9763_v1, %v11681_v14  ;;  %v11707_v12 = vpop.f32.mrb[7].mxu0  ;;  %v9765_v15 = vadd.f32 %v11654_v2, %v3244_v3  ;;  %v10390_v62 = vld [vmem:[%s10463_s23 + $0x228] sm:$0xf] }
 0x201   : > { %v6458_v17 = vsel %vm10499_vm4, %v6453_v6, %v6457_v49  ;;  %v7850_v19 = vmax.f32 %v7722_v7, 0.0  ;;  %v6470_v20 = vshrl.u32 %v8827_v4, 16  ;;  %v7723_v23 = vadd.f32 %v9764_v11, %v11681_v14  ;;  %v8832_v11 = vld [vmem:[%s10463_s23 + $0x258] sm:$0xf] }
 0x202   : > { %v6463_v18 = vrot.slane %v6462_v51, 4  ;;  %9742 = vmatprep.mubr.msk.bf16.mxu0 %vm1945_vm1, %v8903_v9  ;;  %v7848_v22 = vmax.f32 %v7720_v55, 0.0  ;;  %v7721_v60 = vadd.f32 %v9765_v15, %v11681_v14  ;;  %v6473_v25 = vshll.u32 %v8827_v4, 16 }
 0x203   : > { %7979 = vst.msk [vmem:[%s11703_s4 + $0x10] sm:$0xff] %vm7976_vm5, %v7850_v19  ;;  %v6472_v26 = vrot.slane %v6470_v20, 4  ;;  %v6479_v27 = vshll.u32 %v8828_v16, 16  ;;  %v6483_v28 = vshrl.u32 %v8828_v16, 16  ;;  %v9380_v30 = vpop.f32.mrb[4].mxu1  ;;  %v7851_v32 = vmax.f32 %v7723_v23, 0.0 }
 0x204   : > { %v6468_v2 = vsel %vm10499_vm4, %v6463_v18, %v6467_v63  ;;  %7977 = vst.msk [vmem:[%s11703_s4] sm:$0xff] %vm7976_vm5, %v7848_v22  ;;  %v7849_v33 = vmax.f32 %v7721_v60, 0.0  ;;  %v6475_v10 = vrot.slane %v6473_v25, 5  ;;  %v3257_v35 = vpop.f32.mrb[5].mxu1  ;;  %v6489_v39 = vshll.u32 %v8829_v24, 16 }
 0x205   : > { %v8904_v31 = vcombine.low %v6458_v17, %v6468_v2  ;;  %v6481_v37 = vrot.slane %v6479_v27, 5  ;;  %v6485_v38 = vrot.slane %v6483_v28, 4  ;;  %v6493_v40 = vshrl.u32 %v8829_v24, 16  ;;  %v11725_v41 = vpop.f32.mrb[8].mxu0  ;;  %v9381_v42 = vpop.f32.mrb[6].mxu1  ;;  %7980 = vst.msk [vmem:[%s11703_s4 + $0x18] sm:$0xff] %vm7976_vm5, %v7851_v32 }
 0x206   : > { %7978 = vst.msk [vmem:[%s11703_s4 + $0x8] sm:$0xff] %vm7976_vm5, %v7849_v33  ;;  %v6476_v43 = vor.u32 %v6475_v10, %v6472_v26  ;;  %v8353_v46 = vcombine.low %v10387_v44, %v10388_v45  ;;  %v6499_v47 = vshll.u32 %v8830_v29, 16  ;;  %v6503_v48 = vshrl.u32 %v8830_v29, 16  ;;  %v11734_v49 = vpop.f32.mrb[9].mxu0  ;;  %v3260_v50 = vpop.f32.mrb[7].mxu1 }
 0x207   : > { %9743 = vmatmul.mubr.msk.bf16.gmra.mrb[108].mxu0 %vm1945_vm1, %v8904_v31  ;;  %v6486_v52 = vor.u32 %v6485_v38, %v6481_v37  ;;  %v6491_v53 = vrot.slane %v6489_v39, 5  ;;  %v6495_v13 = vrot.slane %v6493_v40, 4  ;;  %v6509_v21 = vshll.u32 %v8831_v34, 16  ;;  %v11736_v54 = vpop.f32.mrb[10].mxu0  ;;  %v8834_v60 = vld [vmem:[%s10463_s23 + $0x260] sm:$0xf] }
 0x208   : > { %v6477_v56 = vrot.slane %v6476_v43, 4  ;;  %9482 = vmatprep.mubr.msk.bf16.mxu1 %vm1945_vm1, %v8353_v46  ;;  %v6501_v57 = vrot.slane %v6499_v47, 5  ;;  %v6505_v59 = vrot.slane %v6503_v48, 4  ;;  %v8354_v63 = vcombine.low %v10389_v61, %v10390_v62  ;;  %v11741_v1 = vpop.f32.mrb[11].mxu0  ;;  %v8836_v39 = vld [vmem:[%s10463_s23 + $0x268] sm:$0x1] }
 0x209   : > { %v6487_v3 = vrot.slane %v6486_v52, 4  ;;  %v6496_v4 = vor.u32 %v6495_v13, %v6491_v53  ;;  %v6511_v5 = vrot.slane %v6509_v21, 5  ;;  %v9766_v6 = vadd.f32 %v11684_v58, %v9380_v30  ;;  %v10391_v48 = vld [vmem:[%s10463_s23 + $0x230] sm:$0xf] }
 0x20a   : > { %v6482_v51 = vsel %vm10499_vm4, %v6477_v56, %v6481_v37  ;;  %v6506_v7 = vor.u32 %v6505_v59, %v6501_v57  ;;  %9483 = vmatmul.mubr.msk.bf16.gmra.mrb[108].mxu1 %vm1945_vm1, %v8354_v63  ;;  %v9767_v9 = vadd.f32 %v11691_v0, %v3257_v35  ;;  %v9768_v55 = vadd.f32 %v11698_v8, %v9381_v42  ;;  %v8833_v0 = vld [vmem:[%s10463_s23 + $0x25c] sm:$0xf] }
 0x20b   : > { %v6492_v15 = vsel %vm10499_vm4, %v6487_v3, %v6491_v53  ;;  %v6497_v16 = vrot.slane %v6496_v4, 4  ;;  %v7726_v58 = vadd.f32 %v9766_v6, %v11681_v14  ;;  %v9769_v17 = vadd.f32 %v11707_v12, %v3260_v50  ;;  %v9384_v18 = vpop.f32.mrb[8].mxu1  ;;  %v8835_v12 = vld [vmem:[%s10463_s23 + $0x264] sm:$0xf]  ;;  %v10392_v50 = vld [vmem:[%s10463_s23 + $0x234] sm:$0xf] }
 0x20c   : > { %v8905_v19 = vcombine.low %v6482_v51, %v6492_v15  ;;  %v6507_v20 = vrot.slane %v6506_v7, 4  ;;  %v7724_v22 = vadd.f32 %v9767_v9, %v11681_v14  ;;  %v7727_v23 = vadd.f32 %v9768_v55, %v11681_v14  ;;  %v3273_v8 = vpop.f32.mrb[9].mxu1  ;;  %v10393_v3 = vld [vmem:[%s10463_s23 + $0x238] sm:$0xf]  ;;  %v10394_v4 = vld [vmem:[%s10463_s23 + $0x23c] sm:$0xf] }
 0x20d   : > { %v6502_v24 = vsel %vm10499_vm4, %v6497_v16, %v6501_v57  ;;  %v7854_v25 = vmax.f32 %v7726_v58, 0.0  ;;  %v7725_v2 = vadd.f32 %v9769_v17, %v11681_v14  ;;  %v6514_v26 = vshrl.u32 %v8832_v11, 16  ;;  %v11762_v27 = vpop.f32.mrb[12].mxu0  ;;  %v9385_v28 = vpop.f32.mrb[10].mxu1 }
 0x20e   : > { %9746 = vmatprep.mubr.msk.bf16.mxu0 %vm1945_vm1, %v8905_v19  ;;  %v6512_v29 = vsel %vm10499_vm4, %v6507_v20, %v6511_v5  ;;  %v7852_v30 = vmax.f32 %v7724_v22, 0.0  ;;  %v7855_v31 = vmax.f32 %v7727_v23, 0.0  ;;  %v6517_v32 = vshll.u32 %v8832_v11, 16  ;;  %v11767_v33 = vpop.f32.mrb[13].mxu0  ;;  %v3276_v10 = vpop.f32.mrb[11].mxu1 }
 0x20f   : > { %v8906_v34 = vcombine.low %v6502_v24, %v6512_v29  ;;  %7983 = vst.msk [vmem:[%s11703_s4 + $0x30] sm:$0xff] %vm7976_vm5, %v7854_v25  ;;  %v7853_v35 = vmax.f32 %v7725_v2, 0.0  ;;  %v6516_v37 = vrot.slane %v6514_v26, 4  ;;  %v6523_v38 = vshll.u32 %v8833_v0, 16  ;;  %v11772_v40 = vpop.f32.mrb[14].mxu0 }
 0x210   : > { %7981 = vst.msk [vmem:[%s11703_s4 + $0x20] sm:$0xff] %vm7976_vm5, %v7852_v30  ;;  %7984 = vst.msk [vmem:[%s11703_s4 + $0x38] sm:$0xff] %vm7976_vm5, %v7855_v31  ;;  %v6519_v42 = vrot.slane %v6517_v32, 5  ;;  %v6527_v43 = vshrl.u32 %v8833_v0, 16  ;;  %v6533_v44 = vshll.u32 %v8834_v60, 16  ;;  %v6537_v45 = vshrl.u32 %v8834_v60, 16 }
 0x211   : > { %v11778_v46 = vpop.f32.mrb[15].mxu0  ;;  %9747 = vmatmul.mubr.msk.bf16.gmra.mrb[112].mxu0 %vm1945_vm1, %v8906_v34  ;;  %7982 = vst.msk [vmem:[%s11703_s4 + $0x28] sm:$0xff] %vm7976_vm5, %v7853_v35  ;;  %v6525_v47 = vrot.slane %v6523_v38, 5  ;;  %v8355_v52 = vcombine.low %v10391_v48, %v10392_v50  ;;  %v6543_v53 = vshll.u32 %v8835_v12, 16  ;;  %v6547_v13 = vshrl.u32 %v8835_v12, 16 }
 0x212   : > { %v6520_v21 = vor.u32 %v6519_v42, %v6516_v37  ;;  %v6529_v56 = vrot.slane %v6527_v43, 4  ;;  %v6535_v57 = vrot.slane %v6533_v44, 5  ;;  %v6539_v59 = vrot.slane %v6537_v45, 4  ;;  %v8837_v19 = vld [vmem:[%s10463_s23 + $0x26c] sm:$0xf] }
 0x213   : > { %9486 = vmatprep.mubr.msk.bf16.mxu1 %vm1945_vm1, %v8355_v52  ;;  %v6545_v61 = vrot.slane %v6543_v53, 5  ;;  %v6549_v62 = vrot.slane %v6547_v13, 4  ;;  %v6553_v63 = vshll.u32 %v8836_v39, 16  ;;  %v8356_v5 = vcombine.low %v10393_v3, %v10394_v4  ;;  %v11788_v6 = vpop.f32.mrb[12].mxu1  ;;  %v8838_v2 = vld [vmem:[%s10463_s23 + $0x270] sm:$0xf] }
 0x214   : > { %v6521_v51 = vrot.slane %v6520_v21, 4  ;;  %v6530_v7 = vor.u32 %v6529_v56, %v6525_v47  ;;  %v6540_v9 = vor.u32 %v6539_v59, %v6535_v57  ;;  %v9770_v55 = vadd.f32 %v11725_v41, %v9384_v18  ;;  %v11791_v11 = vpop.f32.mrb[13].mxu1  ;;  %v8839_v30 = vld [vmem:[%s10463_s23 + $0x274] sm:$0xf]  ;;  %v8840_v37 = vld [vmem:[%s10463_s23 + $0x278] sm:$0xf] }
 0x215   : > { %v6550_v15 = vor.u32 %v6549_v62, %v6545_v61  ;;  %v6555_v16 = vrot.slane %v6553_v63, 5  ;;  %9487 = vmatmul.mubr.msk.bf16.gmra.mrb[112].mxu1 %vm1945_vm1, %v8356_v5  ;;  %v9771_v58 = vadd.f32 %v11734_v49, %v3273_v8  ;;  %v9772_v17 = vadd.f32 %v11736_v54, %v9385_v28  ;;  %v11799_v22 = vpop.f32.mrb[14].mxu1  ;;  %v8841_v44 = vld [vmem:[%s10463_s23 + $0x27c] sm:$0x1]  ;;  %v10395_v21 = vld [vmem:[%s10463_s23 + $0x244] sm:$0xf] }
 0x216   : > { %v11797_v20 = vpop.f32.mrb[16].mxu0  ;;  %v6526_v41 = vsel %vm10499_vm4, %v6521_v51, %v6525_v47  ;;  %v6531_v18 = vrot.slane %v6530_v7, 4  ;;  %v6541_v23 = vrot.slane %v6540_v9, 4  ;;  %v7730_v0 = vadd.f32 %v9770_v55, %v11681_v14  ;;  %v11806_v24 = vpop.f32.mrb[15].mxu1  ;;  %v10396_v56 = vld [vmem:[%s10463_s23 + $0x248] sm:$0xf] }
 0x217   : > { %v11804_v60 = vpop.f32.mrb[17].mxu0  ;;  %v6551_v49 = vrot.slane %v6550_v15, 4  ;;  %v7728_v54 = vadd.f32 %v9771_v58, %v11681_v14  ;;  %v7731_v8 = vadd.f32 %v9772_v17, %v11681_v14  ;;  %v9773_v25 = vadd.f32 %v11741_v1, %v3276_v10 }
 0x218   : > { %v11812_v26 = vpop.f32.mrb[18].mxu0  ;;  %v6536_v12 = vsel %vm10499_vm4, %v6531_v18, %v6535_v57  ;;  %v6546_v28 = vsel %vm10499_vm4, %v6541_v23, %v6545_v61  ;;  %v7858_v29 = vmax.f32 %v7730_v0, 0.0  ;;  %v6558_v31 = vshrl.u32 %v8837_v19, 16  ;;  %v10398_v18 = vld [vmem:[%s10463_s23 + $0x250] sm:$0xf] }
 0x219   : > { %v11819_v32 = vpop.f32.mrb[19].mxu0  ;;  %v8907_v34 = vcombine.low %v6526_v41, %v6536_v12  ;;  %v6556_v1 = vsel %vm10499_vm4, %v6551_v49, %v6555_v16  ;;  %v7856_v10 = vmax.f32 %v7728_v54, 0.0  ;;  %v7859_v35 = vmax.f32 %v7731_v8, 0.0  ;;  %v10397_v41 = vld [vmem:[%s10463_s23 + $0x24c] sm:$0xf] }
 0x21a   : > { %v8908_v38 = vcombine.low %v6546_v28, %v6556_v1  ;;  %7987 = vst.msk [vmem:[%s11703_s4 + $0x50] sm:$0xff] %vm7976_vm5, %v7858_v29  ;;  %v7729_v39 = vadd.f32 %v9773_v25, %v11681_v14  ;;  %v6560_v42 = vrot.slane %v6558_v31, 4  ;;  %v6561_v43 = vshll.u32 %v8837_v19, 16  ;;  %v8843_v1 = vld [vmem:[%s10463_s23 + $0x284] sm:$0xf] }
 0x21b   : > { %9750 = vmatprep.mubr.msk.bf16.mxu0 %vm1945_vm1, %v8907_v34  ;;  %7985 = vst.msk [vmem:[%s11703_s4 + $0x40] sm:$0xff] %vm7976_vm5, %v7856_v10  ;;  %7988 = vst.msk [vmem:[%s11703_s4 + $0x58] sm:$0xff] %vm7976_vm5, %v7859_v35  ;;  %v6567_v45 = vshll.u32 %v8838_v2, 16  ;;  %v6571_v47 = vshrl.u32 %v8838_v2, 16  ;;  %v6577_v48 = vshll.u32 %v8839_v30, 16  ;;  %v6581_v50 = vshrl.u32 %v8839_v30, 16 }
 0x21c   : > { %v11833_v52 = vpop.f32.mrb[16].mxu1  ;;  %9751 = vmatmul.mubr.msk.bf16.gmra.mrb[116].mxu0 %vm1945_vm1, %v8908_v38  ;;  %v7857_v53 = vmax.f32 %v7729_v39, 0.0  ;;  %v6563_v13 = vrot.slane %v6561_v43, 5  ;;  %v8357_v57 = vcombine.low %v10395_v21, %v10396_v56  ;;  %v6587_v59 = vshll.u32 %v8840_v37, 16 }
 0x21d   : > { %v11838_v61 = vpop.f32.mrb[17].mxu1  ;;  %v6569_v62 = vrot.slane %v6567_v45, 5  ;;  %v6573_v63 = vrot.slane %v6571_v47, 4  ;;  %v6579_v3 = vrot.slane %v6577_v48, 5  ;;  %v6583_v4 = vrot.slane %v6581_v50, 4 }
 0x21e   : > { %v11840_v5 = vpop.f32.mrb[20].mxu0  ;;  %v11842_v51 = vpop.f32.mrb[18].mxu1  ;;  %7986 = vst.msk [vmem:[%s11703_s4 + $0x48] sm:$0xff] %vm7976_vm5, %v7857_v53  ;;  %v6564_v7 = vor.u32 %v6563_v13, %v6560_v42  ;;  %9490 = vmatprep.mubr.msk.bf16.mxu1 %vm1945_vm1, %v8357_v57  ;;  %v6589_v9 = vrot.slane %v6587_v59, 5  ;;  %v6591_v55 = vshrl.u32 %v8840_v37, 16  ;;  %v6597_v15 = vshll.u32 %v8841_v44, 16 }
 0x21f   : > { %v11847_v16 = vpop.f32.mrb[21].mxu0  ;;  %v11849_v58 = vpop.f32.mrb[19].mxu1  ;;  %v6574_v17 = vor.u32 %v6573_v63, %v6569_v62  ;;  %v6584_v19 = vor.u32 %v6583_v4, %v6579_v3  ;;  %v8358_v23 = vcombine.low %v10397_v41, %v10398_v18  ;;  %v9774_v0 = vadd.f32 %v11762_v27, %v11788_v6  ;;  %v8844_v37 = vld [vmem:[%s10463_s23 + $0x288] sm:$0xf]  ;;  %v8846_v59 = vld [vmem:[%s10463_s23 + $0x290] sm:$0x1] }
 0x220   : > { %v11855_v49 = vpop.f32.mrb[22].mxu0  ;;  %v6565_v54 = vrot.slane %v6564_v7, 4  ;;  %v6593_v8 = vrot.slane %v6591_v55, 4  ;;  %v6599_v25 = vrot.slane %v6597_v15, 5  ;;  %v9775_v2 = vadd.f32 %v11767_v33, %v11791_v11  ;;  %v8842_v11 = vld [vmem:[%s10463_s23 + $0x280] sm:$0xf] }
 0x221   : > { %v11859_v12 = vpop.f32.mrb[23].mxu0  ;;  %v6575_v28 = vrot.slane %v6574_v17, 4  ;;  %v6585_v29 = vrot.slane %v6584_v19, 4  ;;  %9491 = vmatmul.mubr.msk.bf16.gmra.mrb[116].mxu1 %vm1945_vm1, %v8358_v23  ;;  %v7734_v30 = vadd.f32 %v9774_v0, %v11681_v14  ;;  %v9776_v27 = vadd.f32 %v11772_v40, %v11799_v22  ;;  %v10399_v19 = vld [vmem:[%s10463_s23 + $0x258] sm:$0xf] }
 0x222   : > { %v6570_v6 = vsel %vm10499_vm4, %v6565_v54, %v6569_v62  ;;  %v6594_v31 = vor.u32 %v6593_v8, %v6589_v9  ;;  %v7732_v34 = vadd.f32 %v9775_v2, %v11681_v14  ;;  %v9777_v33 = vadd.f32 %v11778_v46, %v11806_v24  ;;  %v8845_v24 = vld [vmem:[%s10463_s23 + $0x28c] sm:$0xf]  ;;  %v10400_v41 = vld [vmem:[%s10463_s23 + $0x25c] sm:$0xf] }
 0x223   : > { %v6580_v10 = vsel %vm10499_vm4, %v6575_v28, %v6579_v3  ;;  %v6590_v35 = vsel %vm10499_vm4, %v6585_v29, %v6589_v9  ;;  %v7862_v40 = vmax.f32 %v7734_v30, 0.0  ;;  %v7735_v22 = vadd.f32 %v9776_v27, %v11681_v14  ;;  %v11878_v38 = vpop.f32.mrb[20].mxu1  ;;  %v10401_v30 = vld [vmem:[%s10463_s23 + $0x260] sm:$0xf]  ;;  %v10402_v27 = vld [vmem:[%s10463_s23 + $0x264] sm:$0xf] }
 0x224   : > { %v8909_v39 = vcombine.low %v6570_v6, %v6580_v10  ;;  %v6595_v42 = vrot.slane %v6594_v31, 4  ;;  %v7860_v43 = vmax.f32 %v7732_v34, 0.0  ;;  %v7733_v46 = vadd.f32 %v9777_v33, %v11681_v14  ;;  %v11882_v44 = vpop.f32.mrb[21].mxu1 }
 0x225   : > { %7991 = vst.msk [vmem:[%s11703_s4 + $0x70] sm:$0xff] %vm7976_vm5, %v7862_v40  ;;  %v7863_v45 = vmax.f32 %v7735_v22, 0.0  ;;  %v6602_v47 = vshrl.u32 %v8842_v11, 16  ;;  %v6605_v48 = vshll.u32 %v8842_v11, 16  ;;  %v6611_v50 = vshll.u32 %v8843_v1, 16  ;;  %v11886_v53 = vpop.f32.mrb[22].mxu1 }
 0x226   : > { %9754 = vmatprep.mubr.msk.bf16.mxu0 %vm1945_vm1, %v8909_v39  ;;  %v6600_v13 = vsel %vm10499_vm4, %v6595_v42, %v6599_v25  ;;  %7989 = vst.msk [vmem:[%s11703_s4 + $0x60] sm:$0xff] %vm7976_vm5, %v7860_v43  ;;  %v7861_v21 = vmax.f32 %v7733_v46, 0.0  ;;  %v6615_v56 = vshrl.u32 %v8843_v1, 16  ;;  %v6621_v57 = vshll.u32 %v8844_v37, 16  ;;  %v11894_v62 = vpop.f32.mrb[23].mxu1 }
 0x227   : > { %v8910_v63 = vcombine.low %v6590_v35, %v6600_v13  ;;  %7992 = vst.msk [vmem:[%s11703_s4 + $0x78] sm:$0xff] %vm7976_vm5, %v7863_v45  ;;  %v6604_v3 = vrot.slane %v6602_v47, 4  ;;  %v6607_v4 = vrot.slane %v6605_v48, 5  ;;  %v6613_v7 = vrot.slane %v6611_v50, 5  ;;  %v11898_v9 = vpop.f32.mrb[24].mxu0 }
 0x228   : > { %7990 = vst.msk [vmem:[%s11703_s4 + $0x68] sm:$0xff] %vm7976_vm5, %v7861_v21  ;;  %v6617_v55 = vrot.slane %v6615_v56, 4  ;;  %v6623_v15 = vrot.slane %v6621_v57, 5  ;;  %v6625_v17 = vshrl.u32 %v8844_v37, 16  ;;  %v8359_v18 = vcombine.low %v10399_v19, %v10400_v41  ;;  %v11904_v23 = vpop.f32.mrb[25].mxu0 }
 0x229   : > { %9755 = vmatmul.mubr.msk.bf16.gmra.mrb[120].mxu0 %vm1945_vm1, %v8910_v63  ;;  %v6608_v0 = vor.u32 %v6607_v4, %v6604_v3  ;;  %v6631_v54 = vshll.u32 %v8845_v24, 16  ;;  %v6635_v8 = vshrl.u32 %v8845_v24, 16  ;;  %v6641_v25 = vshll.u32 %v8846_v59, 16  ;;  %v11907_v2 = vpop.f32.mrb[26].mxu0  ;;  %v10403_v56 = vld [vmem:[%s10463_s23 + $0x26c] sm:$0xf] }
 0x22a   : > { %v6618_v28 = vor.u32 %v6617_v55, %v6613_v7  ;;  %9494 = vmatprep.mubr.msk.bf16.mxu1 %vm1945_vm1, %v8359_v18  ;;  %v6627_v29 = vrot.slane %v6625_v17, 4  ;;  %v8360_v6 = vcombine.low %v10401_v30, %v10402_v27  ;;  %v9778_v31 = vadd.f32 %v11797_v20, %v11833_v52  ;;  %v11914_v34 = vpop.f32.mrb[27].mxu0  ;;  %v10404_v57 = vld [vmem:[%s10463_s23 + $0x270] sm:$0xf]  ;;  %v10405_v63 = vld [vmem:[%s10463_s23 + $0x274] sm:$0xf] }
 0x22b   : > { %v6609_v33 = vrot.slane %v6608_v0, 4  ;;  %v6633_v11 = vrot.slane %v6631_v54, 5  ;;  %v6637_v1 = vrot.slane %v6635_v8, 4  ;;  %v6643_v10 = vrot.slane %v6641_v25, 5  ;;  %v9400_v35 = vpop.f32.mrb[24].mxu1 }
 0x22c   : > { %v6619_v40 = vrot.slane %v6618_v28, 4  ;;  %v6628_v22 = vor.u32 %v6627_v29, %v6623_v15  ;;  %9495 = vmatmul.mubr.msk.bf16.gmra.mrb[120].mxu1 %vm1945_vm1, %v8360_v6  ;;  %v7738_v37 = vadd.f32 %v9778_v31, %v11681_v14  ;;  %v9779_v39 = vadd.f32 %v11804_v60, %v11838_v61  ;;  %v3337_v42 = vpop.f32.mrb[25].mxu1  ;;  %v10406_v3 = vld [vmem:[%s10463_s23 + $0x278] sm:$0xf] }
 0x22d   : > { %v6614_v20 = vsel %vm10499_vm4, %v6609_v33, %v6613_v7  ;;  %v6638_v52 = vor.u32 %v6637_v1, %v6633_v11  ;;  %v9780_v43 = vadd.f32 %v11812_v26, %v11842_v51  ;;  %v9781_v46 = vadd.f32 %v11819_v32, %v11849_v58  ;;  %v9401_v24 = vpop.f32.mrb[26].mxu1 }
 0x22e   : > { %v6624_v45 = vsel %vm10499_vm4, %v6619_v40, %v6623_v15  ;;  %v6629_v60 = vrot.slane %v6628_v22, 4  ;;  %v7866_v61 = vmax.f32 %v7738_v37, 0.0  ;;  %v7736_v47 = vadd.f32 %v9779_v39, %v11681_v14  ;;  %v3340_v48 = vpop.f32.mrb[27].mxu1 }
 0x22f   : > { %v8911_v50 = vcombine.low %v6614_v20, %v6624_v45  ;;  %v6639_v13 = vrot.slane %v6638_v52, 4  ;;  %v7739_v26 = vadd.f32 %v9780_v43, %v11681_v14  ;;  %v7737_v51 = vadd.f32 %v9781_v46, %v11681_v14  ;;  %v9664_v21 = vpop.f32.mrb[28].mxu0 }
 0x230   : > { %v6634_v32 = vsel %vm10499_vm4, %v6629_v60, %v6633_v11  ;;  %7995 = vst.msk [vmem:[%s11703_s4 + $0x90] sm:$0xff] %vm7976_vm5, %v7866_v61  ;;  %v7864_v58 = vmax.f32 %v7736_v47, 0.0  ;;  %v8361_v59 = vcombine.low %v10403_v56, %v10404_v57  ;;  %v8362_v4 = vcombine.low %v10405_v63, %v10406_v3  ;;  %v7186_v7 = vpop.f32.mrb[29].mxu0 }
 0x231   : > { %9758 = vmatprep.mubr.msk.bf16.mxu0 %vm1945_vm1, %v8911_v50  ;;  %v6644_v55 = vsel %vm10499_vm4, %v6639_v13, %v6643_v10  ;;  %v7867_v15 = vmax.f32 %v7739_v26, 0.0  ;;  %v7865_v17 = vmax.f32 %v7737_v51, 0.0  ;;  %v9782_v19 = vadd.f32 %v11840_v5, %v11878_v38  ;;  %v9665_v41 = vpop.f32.mrb[30].mxu0 }
 0x232   : > { %v8912_v18 = vcombine.low %v6634_v32, %v6644_v55  ;;  %7993 = vst.msk [vmem:[%s11703_s4 + $0x80] sm:$0xff] %vm7976_vm5, %v7864_v58  ;;  %9498 = vmatprep.mubr.msk.bf16.mxu1 %vm1945_vm1, %v8361_v59  ;;  %v9783_v0 = vadd.f32 %v11847_v16, %v11882_v44  ;;  %v9784_v54 = vadd.f32 %v11855_v49, %v11886_v53  ;;  %v7189_v8 = vpop.f32.mrb[31].mxu0 }
 0x233   : > { %v9785_v36 = vadd.f32 %v11859_v12, %v11894_v62  ;;  %7996 = vst.msk [vmem:[%s11703_s4 + $0x98] sm:$0xff] %vm7976_vm5, %v7867_v15  ;;  %7994 = vst.msk [vmem:[%s11703_s4 + $0x88] sm:$0xff] %vm7976_vm5, %v7865_v17  ;;  %v7742_v5 = vadd.f32 %v9782_v19, %v11681_v14  ;;  %v9786_v38 = vadd.f32 %v11898_v9, %v9400_v35  ;;  %v9404_v16 = vpop.f32.mrb[28].mxu1 }
 0x234   : > { %v9787_v25 = vadd.f32 %v11904_v23, %v3337_v42  ;;  %v9788_v28 = vadd.f32 %v11907_v2, %v9401_v24  ;;  %9759 = vmatmul.mubr.msk.bf16.gmra.mrb[124].mxu0 %vm1945_vm1, %v8912_v18  ;;  %9499 = vmatmul.mubr.msk.bf16.gmra.mrb[124].mxu1 %vm1945_vm1, %v8362_v4  ;;  %v7740_v49 = vadd.f32 %v9783_v0, %v11681_v14  ;;  %v3353_v53 = vpop.f32.mrb[29].mxu1 }
 0x235   : > { %v7743_v12 = vadd.f32 %v9784_v54, %v11681_v14  ;;  %v7741_v44 = vadd.f32 %v9785_v36, %v11681_v14  ;;  %v7870_v62 = vmax.f32 %v7742_v5, 0.0  ;;  %v7746_v9 = vadd.f32 %v9786_v38, %v11681_v14  ;;  %v9405_v29 = vpop.f32.mrb[30].mxu1 }
 0x236   : > { %v7744_v23 = vadd.f32 %v9787_v25, %v11681_v14  ;;  %v7747_v2 = vadd.f32 %v9788_v28, %v11681_v14  ;;  %v7868_v30 = vmax.f32 %v7740_v49, 0.0  ;;  %v9789_v31 = vadd.f32 %v11914_v34, %v3340_v48  ;;  %v3356_v33 = vpop.f32.mrb[31].mxu1 }
 0x237   : > { %v7871_v27 = vmax.f32 %v7743_v12, 0.0  ;;  %v7869_v6 = vmax.f32 %v7741_v44, 0.0  ;;  %7999 = vst.msk [vmem:[%s11703_s4 + $0xb0] sm:$0xff] %vm7976_vm5, %v7870_v62  ;;  %v7874_v11 = vmax.f32 %v7746_v9, 0.0  ;;  %v9668_v35 = vpop.f32.mrb[32].mxu0  ;;  %v9790_v40 = vadd.f32 %v9664_v21, %v9404_v16 }
 0x238   : > { %v7872_v1 = vmax.f32 %v7744_v23, 0.0  ;;  %v7875_v10 = vmax.f32 %v7747_v2, 0.0  ;;  %7997 = vst.msk [vmem:[%s11703_s4 + $0xa0] sm:$0xff] %vm7976_vm5, %v7868_v30  ;;  %v7745_v22 = vadd.f32 %v9789_v31, %v11681_v14  ;;  %v7202_v34 = vpop.f32.mrb[33].mxu0  ;;  %v9791_v37 = vadd.f32 %v7186_v7, %v3353_v53 }
 0x239   : > { %8000 = vst.msk [vmem:[%s11703_s4 + $0xb8] sm:$0xff] %vm7976_vm5, %v7871_v27  ;;  %7998 = vst.msk [vmem:[%s11703_s4 + $0xa8] sm:$0xff] %vm7976_vm5, %v7869_v6  ;;  %v9792_v39 = vadd.f32 %v9665_v41, %v9405_v29  ;;  %v9793_v42 = vadd.f32 %v7189_v8, %v3356_v33  ;;  %v7750_v20 = vadd.f32 %v9790_v40, %v11681_v14  ;;  %v9669_v52 = vpop.f32.mrb[34].mxu0 }
 0x23a   : > { %8003 = vst.msk [vmem:[%s11703_s4 + $0xd0] sm:$0xff] %vm7976_vm5, %v7874_v11  ;;  %8001 = vst.msk [vmem:[%s11703_s4 + $0xc0] sm:$0xff] %vm7976_vm5, %v7872_v1  ;;  %v7873_v43 = vmax.f32 %v7745_v22, 0.0  ;;  %v7748_v46 = vadd.f32 %v9791_v37, %v11681_v14  ;;  %v7205_v45 = vpop.f32.mrb[35].mxu0 }
 0x23b   : > { %8004 = vst.msk [vmem:[%s11703_s4 + $0xd8] sm:$0xff] %vm7976_vm5, %v7875_v10  ;;  %v7751_v24 = vadd.f32 %v9792_v39, %v11681_v14  ;;  %v7749_v60 = vadd.f32 %v9793_v42, %v11681_v14  ;;  %v7878_v61 = vmax.f32 %v7750_v20, 0.0  ;;  %v9408_v47 = vpop.f32.mrb[32].mxu1 }
 0x23c   : > { %8002 = vst.msk [vmem:[%s11703_s4 + $0xc8] sm:$0xff] %vm7976_vm5, %v7873_v43  ;;  %v7876_v48 = vmax.f32 %v7748_v46, 0.0  ;;  %v9794_v26 = vadd.f32 %v9668_v35, %v9408_v47  ;;  %v3369_v51 = vpop.f32.mrb[33].mxu1 }
 0x23d   : > { %v7879_v50 = vmax.f32 %v7751_v24, 0.0  ;;  %v7877_v13 = vmax.f32 %v7749_v60, 0.0  ;;  %8007 = vst.msk [vmem:[%s11703_s4 + $0xf0] sm:$0xff] %vm7976_vm5, %v7878_v61  ;;  %v9795_v21 = vadd.f32 %v7202_v34, %v3369_v51  ;;  %v9409_v32 = vpop.f32.mrb[34].mxu1 }
 0x23e   : > { %8005 = vst.msk [vmem:[%s11703_s4 + $0xe0] sm:$0xff] %vm7976_vm5, %v7876_v48  ;;  %v7754_v58 = vadd.f32 %v9794_v26, %v11681_v14  ;;  %v9796_v56 = vadd.f32 %v9669_v52, %v9409_v32  ;;  %v3372_v57 = vpop.f32.mrb[35].mxu1 }
 0x23f   : > { %8008 = vst.msk [vmem:[%s11703_s4 + $0xf8] sm:$0xff] %vm7976_vm5, %v7879_v50  ;;  %8006 = vst.msk [vmem:[%s11703_s4 + $0xe8] sm:$0xff] %vm7976_vm5, %v7877_v13  ;;  %v7752_v59 = vadd.f32 %v9795_v21, %v11681_v14  ;;  %v9797_v63 = vadd.f32 %v7205_v45, %v3372_v57 }
 0x240   : > { %v9672_v3 = vpop.f32.mrb[36].mxu0  ;;  %v7882_v4 = vmax.f32 %v7754_v58, 0.0  ;;  %v7755_v7 = vadd.f32 %v9796_v56, %v11681_v14 }
 0x241   : > { %v7218_v55 = vpop.f32.mrb[37].mxu0  ;;  %v7880_v15 = vmax.f32 %v7752_v59, 0.0  ;;  %v7753_v17 = vadd.f32 %v9797_v63, %v11681_v14 }
 0x242   : > { %8011 = vst.msk [vmem:[%s11703_s4 + $0x110] sm:$0xff] %vm7976_vm5, %v7882_v4  ;;  %v9673_v19 = vpop.f32.mrb[38].mxu0  ;;  %v7883_v41 = vmax.f32 %v7755_v7, 0.0 }
 0x243   : > { %8009 = vst.msk [vmem:[%s11703_s4 + $0x100] sm:$0xff] %vm7976_vm5, %v7880_v15  ;;  %v7221_v18 = vpop.f32.mrb[39].mxu0  ;;  %v7881_v0 = vmax.f32 %v7753_v17, 0.0  ;;  %v9412_v54 = vpop.f32.mrb[36].mxu1 }
 0x244   : > { %8012 = vst.msk [vmem:[%s11703_s4 + $0x118] sm:$0xff] %vm7976_vm5, %v7883_v41  ;;  %v9798_v36 = vadd.f32 %v9672_v3, %v9412_v54  ;;  %v3385_v8 = vpop.f32.mrb[37].mxu1 }
 0x245   : > { %8010 = vst.msk [vmem:[%s11703_s4 + $0x108] sm:$0xff] %vm7976_vm5, %v7881_v0  ;;  %v9799_v5 = vadd.f32 %v7218_v55, %v3385_v8  ;;  %v9413_v38 = vpop.f32.mrb[38].mxu1 }
 0x246   : > { %v7758_v25 = vadd.f32 %v9798_v36, %v11681_v14  ;;  %v9800_v28 = vadd.f32 %v9673_v19, %v9413_v38  ;;  %v3388_v16 = vpop.f32.mrb[39].mxu1 }
 0x247   : > { %v7756_v49 = vadd.f32 %v9799_v5, %v11681_v14  ;;  %v9801_v12 = vadd.f32 %v7221_v18, %v3388_v16 }
 0x248   : > { %v9676_v44 = vpop.f32.mrb[40].mxu0  ;;  %v7886_v53 = vmax.f32 %v7758_v25, 0.0  ;;  %v7759_v62 = vadd.f32 %v9800_v28, %v11681_v14 }
 0x249   : > { %v7234_v9 = vpop.f32.mrb[41].mxu0  ;;  %v7884_v23 = vmax.f32 %v7756_v49, 0.0  ;;  %v7757_v2 = vadd.f32 %v9801_v12, %v11681_v14 }
 0x24a   : > { %8015 = vst.msk [vmem:[%s11703_s4 + $0x130] sm:$0xff] %vm7976_vm5, %v7886_v53  ;;  %v9677_v29 = vpop.f32.mrb[42].mxu0  ;;  %v7887_v30 = vmax.f32 %v7759_v62, 0.0 }
 0x24b   : > { %8013 = vst.msk [vmem:[%s11703_s4 + $0x120] sm:$0xff] %vm7976_vm5, %v7884_v23  ;;  %v7237_v27 = vpop.f32.mrb[43].mxu0  ;;  %v7885_v6 = vmax.f32 %v7757_v2, 0.0  ;;  %v9416_v31 = vpop.f32.mrb[40].mxu1 }
 0x24c   : > { %8016 = vst.msk [vmem:[%s11703_s4 + $0x138] sm:$0xff] %vm7976_vm5, %v7887_v30  ;;  %v9802_v33 = vadd.f32 %v9676_v44, %v9416_v31  ;;  %v3401_v11 = vpop.f32.mrb[41].mxu1 }
 0x24d   : > { %8014 = vst.msk [vmem:[%s11703_s4 + $0x128] sm:$0xff] %vm7976_vm5, %v7885_v6  ;;  %v9803_v1 = vadd.f32 %v7234_v9, %v3401_v11  ;;  %v9417_v10 = vpop.f32.mrb[42].mxu1 }
 0x24e   : > { %v7762_v35 = vadd.f32 %v9802_v33, %v11681_v14  ;;  %v9804_v40 = vadd.f32 %v9677_v29, %v9417_v10  ;;  %v3404_v22 = vpop.f32.mrb[43].mxu1  ;;  %v12062_v33 = vld [vmem:[%s12297_s2] ss:$0 sm:$0xff] }
 0x24f   : > { %v7760_v34 = vadd.f32 %v9803_v1, %v11681_v14  ;;  %v9805_v37 = vadd.f32 %v7237_v27, %v3404_v22 }
 0x250   : > { %v7890_v39 = vmax.f32 %v7762_v35, 0.0  ;;  %v7763_v42 = vadd.f32 %v9804_v40, %v11681_v14 }
 0x251   : > { %v7888_v52 = vmax.f32 %v7760_v34, 0.0  ;;  %v7761_v43 = vadd.f32 %v9805_v37, %v11681_v14 }
 0x252   : > { %v9680_v20 = vpop.f32.mrb[44].mxu0  ;;  %8019 = vst.msk [vmem:[%s11703_s4 + $0x150] sm:$0xff] %vm7976_vm5, %v7890_v39  ;;  %v7891_v24 = vmax.f32 %v7763_v42, 0.0 }
 0x253   : > { %v7250_v46 = vpop.f32.mrb[45].mxu0  ;;  %8017 = vst.msk [vmem:[%s11703_s4 + $0x140] sm:$0xff] %vm7976_vm5, %v7888_v52  ;;  %v7889_v60 = vmax.f32 %v7761_v43, 0.0  ;;  %v9420_v61 = vpop.f32.mrb[44].mxu1 }
 0x254   : > { %v9681_v45 = vpop.f32.mrb[46].mxu0  ;;  %8020 = vst.msk [vmem:[%s11703_s4 + $0x158] sm:$0xff] %vm7976_vm5, %v7891_v24  ;;  %v9806_v48 = vadd.f32 %v9680_v20, %v9420_v61  ;;  %v3417_v50 = vpop.f32.mrb[45].mxu1 }
 0x255   : > { %v7253_v47 = vpop.f32.mrb[47].mxu0  ;;  %8018 = vst.msk [vmem:[%s11703_s4 + $0x148] sm:$0xff] %vm7976_vm5, %v7889_v60  ;;  %v9807_v13 = vadd.f32 %v7250_v46, %v3417_v50  ;;  %v9421_v26 = vpop.f32.mrb[46].mxu1 }
 0x256   : > { %v7766_v51 = vadd.f32 %v9806_v48, %v11681_v14  ;;  %v9808_v21 = vadd.f32 %v9681_v45, %v9421_v26  ;;  %v3420_v32 = vpop.f32.mrb[47].mxu1 }
 0x257   : > { %v7764_v58 = vadd.f32 %v9807_v13, %v11681_v14  ;;  %v9809_v56 = vadd.f32 %v7253_v47, %v3420_v32 }
 0x258   : > { %v7894_v57 = vmax.f32 %v7766_v51, 0.0  ;;  %v7767_v59 = vadd.f32 %v9808_v21, %v11681_v14 }
 0x259   : > { %v7892_v3 = vmax.f32 %v7764_v58, 0.0  ;;  %v7765_v4 = vadd.f32 %v9809_v56, %v11681_v14 }
 0x25a   : > { %v9684_v63 = vpop.f32.mrb[48].mxu0  ;;  %8023 = vst.msk [vmem:[%s11703_s4 + $0x170] sm:$0xff] %vm7976_vm5, %v7894_v57  ;;  %v7895_v55 = vmax.f32 %v7767_v59, 0.0 }
 0x25b   : > { %v7266_v7 = vpop.f32.mrb[49].mxu0  ;;  %8021 = vst.msk [vmem:[%s11703_s4 + $0x160] sm:$0xff] %vm7976_vm5, %v7892_v3  ;;  %v7893_v17 = vmax.f32 %v7765_v4, 0.0  ;;  %v9424_v19 = vpop.f32.mrb[48].mxu1 }
 0x25c   : > { %v9685_v15 = vpop.f32.mrb[50].mxu0  ;;  %8024 = vst.msk [vmem:[%s11703_s4 + $0x178] sm:$0xff] %vm7976_vm5, %v7895_v55  ;;  %v9810_v18 = vadd.f32 %v9684_v63, %v9424_v19  ;;  %v3433_v0 = vpop.f32.mrb[49].mxu1 }
 0x25d   : > { %v7269_v41 = vpop.f32.mrb[51].mxu0  ;;  %8022 = vst.msk [vmem:[%s11703_s4 + $0x168] sm:$0xff] %vm7976_vm5, %v7893_v17  ;;  %v9811_v54 = vadd.f32 %v7266_v7, %v3433_v0  ;;  %v9425_v36 = vpop.f32.mrb[50].mxu1 }
 0x25e   : > { %v7770_v8 = vadd.f32 %v9810_v18, %v11681_v14  ;;  %v9812_v5 = vadd.f32 %v9685_v15, %v9425_v36  ;;  %v3436_v38 = vpop.f32.mrb[51].mxu1 }
 0x25f   : > { %v7768_v25 = vadd.f32 %v9811_v54, %v11681_v14  ;;  %v9813_v28 = vadd.f32 %v7269_v41, %v3436_v38 }
 0x260   : > { %v7898_v16 = vmax.f32 %v7770_v8, 0.0  ;;  %v7771_v49 = vadd.f32 %v9812_v5, %v11681_v14 }
 0x261   : > { %v7896_v44 = vmax.f32 %v7768_v25, 0.0  ;;  %v7769_v53 = vadd.f32 %v9813_v28, %v11681_v14 }
 0x262   : > { %v9688_v12 = vpop.f32.mrb[52].mxu0  ;;  %8027 = vst.msk [vmem:[%s11703_s4 + $0x190] sm:$0xff] %vm7976_vm5, %v7898_v16  ;;  %v7899_v9 = vmax.f32 %v7771_v49, 0.0 }
 0x263   : > { %v7282_v62 = vpop.f32.mrb[53].mxu0  ;;  %8025 = vst.msk [vmem:[%s11703_s4 + $0x180] sm:$0xff] %vm7976_vm5, %v7896_v44  ;;  %v7897_v2 = vmax.f32 %v7769_v53, 0.0  ;;  %v9428_v29 = vpop.f32.mrb[52].mxu1 }
 0x264   : > { %v9689_v23 = vpop.f32.mrb[54].mxu0  ;;  %8028 = vst.msk [vmem:[%s11703_s4 + $0x198] sm:$0xff] %vm7976_vm5, %v7899_v9  ;;  %v9814_v27 = vadd.f32 %v9688_v12, %v9428_v29  ;;  %v3449_v6 = vpop.f32.mrb[53].mxu1 }
 0x265   : > { %v7285_v30 = vpop.f32.mrb[55].mxu0  ;;  %8026 = vst.msk [vmem:[%s11703_s4 + $0x188] sm:$0xff] %vm7976_vm5, %v7897_v2  ;;  %v9815_v31 = vadd.f32 %v7282_v62, %v3449_v6  ;;  %v9429_v14 = vpop.f32.mrb[54].mxu1 }
 0x266   : > { %v7774_v11 = vadd.f32 %v12062_v33, %v9814_v27  ;;  %v9816_v1 = vadd.f32 %v9689_v23, %v9429_v14  ;;  %v3452_v10 = vpop.f32.mrb[55].mxu1 }
 0x267   : > { %v7772_v35 = vadd.f32 %v12062_v33, %v9815_v31  ;;  %v9817_v40 = vadd.f32 %v7285_v30, %v3452_v10 }
 0x268   : > { %v7902_v22 = vmax.f32 %v7774_v11, 0.0  ;;  %v7775_v34 = vadd.f32 %v12062_v33, %v9816_v1 }
 0x269   : > { %v7900_v37 = vmax.f32 %v7772_v35, 0.0  ;;  %v7773_v39 = vadd.f32 %v12062_v33, %v9817_v40 }
 0x26a   : > { %8031 = vst.msk [vmem:[%s11703_s4 + $0x1b0] sm:$0xff] %vm7976_vm5, %v7902_v22  ;;  %v7903_v42 = vmax.f32 %v7775_v34, 0.0 }
 0x26b   : > { %v9692_v20 = vpop.f32.mrb[56].mxu0  ;;  %8029 = vst.msk [vmem:[%s11703_s4 + $0x1a0] sm:$0xff] %vm7976_vm5, %v7900_v37  ;;  %v7901_v52 = vmax.f32 %v7773_v39, 0.0 }
 0x26c   : > { %v7298_v43 = vpop.f32.mrb[57].mxu0  ;;  %8032 = vst.msk [vmem:[%s11703_s4 + $0x1b8] sm:$0xff] %vm7976_vm5, %v7903_v42  ;;  %v9432_v46 = vpop.f32.mrb[56].mxu1 }
 0x26d   : > { %v9693_v24 = vpop.f32.mrb[58].mxu0  ;;  %8030 = vst.msk [vmem:[%s11703_s4 + $0x1a8] sm:$0xff] %vm7976_vm5, %v7901_v52  ;;  %v9818_v45 = vadd.f32 %v9692_v20, %v9432_v46  ;;  %v3465_v60 = vpop.f32.mrb[57].mxu1 }
 0x26e   : > { %v7301_v61 = vpop.f32.mrb[59].mxu0  ;;  %v9819_v47 = vadd.f32 %v7298_v43, %v3465_v60  ;;  %v9433_v48 = vpop.f32.mrb[58].mxu1 }
 0x26f   : > { %v7778_v50 = vadd.f32 %v12062_v33, %v9818_v45  ;;  %v9820_v13 = vadd.f32 %v9693_v24, %v9433_v48  ;;  %v3468_v26 = vpop.f32.mrb[59].mxu1 }
 0x270   : > { %v7776_v51 = vadd.f32 %v12062_v33, %v9819_v47  ;;  %v9821_v21 = vadd.f32 %v7301_v61, %v3468_v26 }
 0x271   : > { %v7906_v32 = vmax.f32 %v7778_v50, 0.0  ;;  %v7779_v58 = vadd.f32 %v12062_v33, %v9820_v13 }
 0x272   : > { %v7904_v56 = vmax.f32 %v7776_v51, 0.0  ;;  %v7777_v57 = vadd.f32 %v12062_v33, %v9821_v21 }
 0x273   : > { %v9696_v59 = vpop.f32.mrb[60].mxu0  ;;  %8035 = vst.msk [vmem:[%s11703_s4 + $0x1d0] sm:$0xff] %vm7976_vm5, %v7906_v32  ;;  %v7907_v63 = vmax.f32 %v7779_v58, 0.0 }
 0x274   : > { %v7314_v3 = vpop.f32.mrb[61].mxu0  ;;  %8033 = vst.msk [vmem:[%s11703_s4 + $0x1c0] sm:$0xff] %vm7976_vm5, %v7904_v56  ;;  %v7905_v4 = vmax.f32 %v7777_v57, 0.0  ;;  %v9436_v7 = vpop.f32.mrb[60].mxu1 }
 0x275   : > { %v9697_v55 = vpop.f32.mrb[62].mxu0  ;;  %8036 = vst.msk [vmem:[%s11703_s4 + $0x1d8] sm:$0xff] %vm7976_vm5, %v7907_v63  ;;  %v9822_v15 = vadd.f32 %v9696_v59, %v9436_v7  ;;  %v3481_v17 = vpop.f32.mrb[61].mxu1 }
 0x276   : > { %v7317_v19 = vpop.f32.mrb[63].mxu0  ;;  %8034 = vst.msk [vmem:[%s11703_s4 + $0x1c8] sm:$0xff] %vm7976_vm5, %v7905_v4  ;;  %v9823_v41 = vadd.f32 %v7314_v3, %v3481_v17  ;;  %v9437_v18 = vpop.f32.mrb[62].mxu1 }
 0x277   : > { %v7782_v0 = vadd.f32 %v12062_v33, %v9822_v15  ;;  %v9824_v54 = vadd.f32 %v9697_v55, %v9437_v18  ;;  %v3484_v36 = vpop.f32.mrb[63].mxu1 }
 0x278   : > { %v7780_v8 = vadd.f32 %v12062_v33, %v9823_v41  ;;  %v9825_v5 = vadd.f32 %v7317_v19, %v3484_v36 }
 0x279   : > { %v7910_v38 = vmax.f32 %v7782_v0, 0.0  ;;  %v7783_v25 = vadd.f32 %v12062_v33, %v9824_v54 }
 0x27a   : > { %v7908_v28 = vmax.f32 %v7780_v8, 0.0  ;;  %v7781_v16 = vadd.f32 %v12062_v33, %v9825_v5 }
 0x27b   : > { %v9700_v49 = vpop.f32.mrb[64].mxu0  ;;  %8039 = vst.msk [vmem:[%s11703_s4 + $0x1f0] sm:$0xff] %vm7976_vm5, %v7910_v38  ;;  %v7911_v12 = vmax.f32 %v7783_v25, 0.0 }
 0x27c   : > { %v7330_v44 = vpop.f32.mrb[65].mxu0  ;;  %8037 = vst.msk [vmem:[%s11703_s4 + $0x1e0] sm:$0xff] %vm7976_vm5, %v7908_v28  ;;  %v7909_v53 = vmax.f32 %v7781_v16, 0.0 }
 0x27d   : > { %v9440_v62 = vpop.f32.mrb[64].mxu1  ;;  %v9701_v9 = vpop.f32.mrb[66].mxu0  ;;  %8040 = vst.msk [vmem:[%s11703_s4 + $0x1f8] sm:$0xff] %vm7976_vm5, %v7911_v12 }
 0x27e   : > { %v9826_v23 = vadd.f32 %v9700_v49, %v9440_v62  ;;  %v3497_v2 = vpop.f32.mrb[65].mxu1  ;;  %v7333_v29 = vpop.f32.mrb[67].mxu0  ;;  %8038 = vst.msk [vmem:[%s11703_s4 + $0x1e8] sm:$0xff] %vm7976_vm5, %v7909_v53 }
 0x27f   : > { %v9827_v30 = vadd.f32 %v7330_v44, %v3497_v2  ;;  %v9441_v27 = vpop.f32.mrb[66].mxu1 }
 0x280   : > { %v7786_v6 = vadd.f32 %v12062_v33, %v9826_v23  ;;  %v9828_v31 = vadd.f32 %v9701_v9, %v9441_v27  ;;  %v3500_v14 = vpop.f32.mrb[67].mxu1 }
 0x281   : > { %v7784_v11 = vadd.f32 %v12062_v33, %v9827_v30  ;;  %v9829_v1 = vadd.f32 %v7333_v29, %v3500_v14 }
 0x282   : > { %v7914_v10 = vmax.f32 %v7786_v6, 0.0  ;;  %v7787_v35 = vadd.f32 %v12062_v33, %v9828_v31 }
 0x283   : > { %v7912_v40 = vmax.f32 %v7784_v11, 0.0  ;;  %v7785_v22 = vadd.f32 %v12062_v33, %v9829_v1 }
 0x284   : > { %8043 = vst.msk [vmem:[%s11703_s4 + $0x210] sm:$0xff] %vm7976_vm5, %v7914_v10  ;;  %v7915_v34 = vmax.f32 %v7787_v35, 0.0  ;;  %v9704_v37 = vpop.f32.mrb[68].mxu0 }
 0x285   : > { %8041 = vst.msk [vmem:[%s11703_s4 + $0x200] sm:$0xff] %vm7976_vm5, %v7912_v40  ;;  %v7913_v39 = vmax.f32 %v7785_v22, 0.0  ;;  %v7346_v42 = vpop.f32.mrb[69].mxu0  ;;  %v9444_v20 = vpop.f32.mrb[68].mxu1 }
 0x286   : > { %8044 = vst.msk [vmem:[%s11703_s4 + $0x218] sm:$0xff] %vm7976_vm5, %v7915_v34  ;;  %v9705_v52 = vpop.f32.mrb[70].mxu0  ;;  %v9830_v43 = vadd.f32 %v9704_v37, %v9444_v20  ;;  %v3513_v46 = vpop.f32.mrb[69].mxu1 }
 0x287   : > { %8042 = vst.msk [vmem:[%s11703_s4 + $0x208] sm:$0xff] %vm7976_vm5, %v7913_v39  ;;  %v7349_v24 = vpop.f32.mrb[71].mxu0  ;;  %v9831_v45 = vadd.f32 %v7346_v42, %v3513_v46  ;;  %v9445_v60 = vpop.f32.mrb[70].mxu1 }
 0x288   : > { %v7790_v61 = vadd.f32 %v12062_v33, %v9830_v43  ;;  %v9832_v47 = vadd.f32 %v9705_v52, %v9445_v60  ;;  %v3516_v48 = vpop.f32.mrb[71].mxu1 }
 0x289   : > { %v7788_v50 = vadd.f32 %v12062_v33, %v9831_v45  ;;  %v9833_v13 = vadd.f32 %v7349_v24, %v3516_v48 }
 0x28a   : > { %v7918_v26 = vmax.f32 %v7790_v61, 0.0  ;;  %v7791_v51 = vadd.f32 %v12062_v33, %v9832_v47 }
 0x28b   : > { %v7916_v21 = vmax.f32 %v7788_v50, 0.0  ;;  %v7789_v32 = vadd.f32 %v12062_v33, %v9833_v13 }
 0x28c   : > { %v9708_v58 = vpop.f32.mrb[72].mxu0  ;;  %8047 = vst.msk [vmem:[%s11703_s4 + $0x230] sm:$0xff] %vm7976_vm5, %v7918_v26  ;;  %v7919_v56 = vmax.f32 %v7791_v51, 0.0 }
 0x28d   : > { %v7362_v57 = vpop.f32.mrb[73].mxu0  ;;  %8045 = vst.msk [vmem:[%s11703_s4 + $0x220] sm:$0xff] %vm7976_vm5, %v7916_v21  ;;  %v7917_v59 = vmax.f32 %v7789_v32, 0.0 }
 0x28e   : > { %v9448_v63 = vpop.f32.mrb[72].mxu1  ;;  %v9709_v3 = vpop.f32.mrb[74].mxu0  ;;  %8048 = vst.msk [vmem:[%s11703_s4 + $0x238] sm:$0xff] %vm7976_vm5, %v7919_v56 }
 0x28f   : > { %v9834_v4 = vadd.f32 %v9708_v58, %v9448_v63  ;;  %v3529_v7 = vpop.f32.mrb[73].mxu1  ;;  %v7365_v55 = vpop.f32.mrb[75].mxu0  ;;  %8046 = vst.msk [vmem:[%s11703_s4 + $0x228] sm:$0xff] %vm7976_vm5, %v7917_v59 }
 0x290   : > { %v9835_v15 = vadd.f32 %v7362_v57, %v3529_v7  ;;  %v9449_v17 = vpop.f32.mrb[74].mxu1 }
 0x291   : > { %v7794_v19 = vadd.f32 %v12062_v33, %v9834_v4  ;;  %v9836_v41 = vadd.f32 %v9709_v3, %v9449_v17  ;;  %v3532_v18 = vpop.f32.mrb[75].mxu1 }
 0x292   : > { %v7792_v0 = vadd.f32 %v12062_v33, %v9835_v15  ;;  %v9837_v54 = vadd.f32 %v7365_v55, %v3532_v18 }
 0x293   : > { %v7922_v36 = vmax.f32 %v7794_v19, 0.0  ;;  %v7795_v8 = vadd.f32 %v12062_v33, %v9836_v41 }
 0x294   : > { %v7920_v5 = vmax.f32 %v7792_v0, 0.0  ;;  %v7793_v38 = vadd.f32 %v12062_v33, %v9837_v54 }
 0x295   : > { %8051 = vst.msk [vmem:[%s11703_s4 + $0x250] sm:$0xff] %vm7976_vm5, %v7922_v36  ;;  %v7923_v25 = vmax.f32 %v7795_v8, 0.0 }
 0x296   : > { %v9712_v28 = vpop.f32.mrb[76].mxu0  ;;  %8049 = vst.msk [vmem:[%s11703_s4 + $0x240] sm:$0xff] %vm7976_vm5, %v7920_v5  ;;  %v7921_v16 = vmax.f32 %v7793_v38, 0.0 }
 0x297   : > { %v7378_v49 = vpop.f32.mrb[77].mxu0  ;;  %8052 = vst.msk [vmem:[%s11703_s4 + $0x258] sm:$0xff] %vm7976_vm5, %v7923_v25  ;;  %v9452_v12 = vpop.f32.mrb[76].mxu1 }
 0x298   : > { %v9713_v44 = vpop.f32.mrb[78].mxu0  ;;  %8050 = vst.msk [vmem:[%s11703_s4 + $0x248] sm:$0xff] %vm7976_vm5, %v7921_v16  ;;  %v9838_v53 = vadd.f32 %v9712_v28, %v9452_v12  ;;  %v3545_v62 = vpop.f32.mrb[77].mxu1 }
 0x299   : > { %v7381_v9 = vpop.f32.mrb[79].mxu0  ;;  %v9839_v23 = vadd.f32 %v7378_v49, %v3545_v62  ;;  %v9453_v2 = vpop.f32.mrb[78].mxu1 }
 0x29a   : > { %v7798_v29 = vadd.f32 %v12062_v33, %v9838_v53  ;;  %v9840_v30 = vadd.f32 %v9713_v44, %v9453_v2  ;;  %v3548_v27 = vpop.f32.mrb[79].mxu1 }
 0x29b   : > { %v7796_v6 = vadd.f32 %v12062_v33, %v9839_v23  ;;  %v9841_v31 = vadd.f32 %v7381_v9, %v3548_v27 }
 0x29c   : > { %v7926_v14 = vmax.f32 %v7798_v29, 0.0  ;;  %v7799_v11 = vadd.f32 %v12062_v33, %v9840_v30 }
 0x29d   : > { %v7924_v1 = vmax.f32 %v7796_v6, 0.0  ;;  %v7797_v10 = vadd.f32 %v12062_v33, %v9841_v31 }
 0x29e   : > { %v9716_v35 = vpop.f32.mrb[80].mxu0  ;;  %8055 = vst.msk [vmem:[%s11703_s4 + $0x270] sm:$0xff] %vm7976_vm5, %v7926_v14  ;;  %v7927_v40 = vmax.f32 %v7799_v11, 0.0 }
 0x29f   : > { %v7394_v22 = vpop.f32.mrb[81].mxu0  ;;  %8053 = vst.msk [vmem:[%s11703_s4 + $0x260] sm:$0xff] %vm7976_vm5, %v7924_v1  ;;  %v7925_v34 = vmax.f32 %v7797_v10, 0.0  ;;  %v9456_v39 = vpop.f32.mrb[80].mxu1 }
 0x2a0   : > { %v9717_v37 = vpop.f32.mrb[82].mxu0  ;;  %8056 = vst.msk [vmem:[%s11703_s4 + $0x278] sm:$0xff] %vm7976_vm5, %v7927_v40  ;;  %v9842_v20 = vadd.f32 %v9716_v35, %v9456_v39  ;;  %v3561_v52 = vpop.f32.mrb[81].mxu1 }
 0x2a1   : > { %v7397_v42 = vpop.f32.mrb[83].mxu0  ;;  %8054 = vst.msk [vmem:[%s11703_s4 + $0x268] sm:$0xff] %vm7976_vm5, %v7925_v34  ;;  %v9843_v43 = vadd.f32 %v7394_v22, %v3561_v52  ;;  %v9457_v46 = vpop.f32.mrb[82].mxu1 }
 0x2a2   : > { %v7802_v24 = vadd.f32 %v12062_v33, %v9842_v20  ;;  %v9844_v45 = vadd.f32 %v9717_v37, %v9457_v46  ;;  %v3564_v60 = vpop.f32.mrb[83].mxu1 }
 0x2a3   : > { %v7800_v61 = vadd.f32 %v12062_v33, %v9843_v43  ;;  %v9845_v47 = vadd.f32 %v7397_v42, %v3564_v60 }
 0x2a4   : > { %v7930_v48 = vmax.f32 %v7802_v24, 0.0  ;;  %v7803_v50 = vadd.f32 %v12062_v33, %v9844_v45 }
 0x2a5   : > { %v7928_v26 = vmax.f32 %v7800_v61, 0.0  ;;  %v7801_v51 = vadd.f32 %v12062_v33, %v9845_v47 }
 0x2a6   : > { %v9720_v13 = vpop.f32.mrb[84].mxu0  ;;  %8059 = vst.msk [vmem:[%s11703_s4 + $0x290] sm:$0xff] %vm7976_vm5, %v7930_v48  ;;  %v7931_v32 = vmax.f32 %v7803_v50, 0.0 }
 0x2a7   : > { %v7410_v21 = vpop.f32.mrb[85].mxu0  ;;  %8057 = vst.msk [vmem:[%s11703_s4 + $0x280] sm:$0xff] %vm7976_vm5, %v7928_v26  ;;  %v7929_v56 = vmax.f32 %v7801_v51, 0.0  ;;  %v9460_v57 = vpop.f32.mrb[84].mxu1 }
 0x2a8   : > { %v9721_v58 = vpop.f32.mrb[86].mxu0  ;;  %8060 = vst.msk [vmem:[%s11703_s4 + $0x298] sm:$0xff] %vm7976_vm5, %v7931_v32  ;;  %v9846_v63 = vadd.f32 %v9720_v13, %v9460_v57  ;;  %v3577_v3 = vpop.f32.mrb[85].mxu1 }
 0x2a9   : > { %v7413_v59 = vpop.f32.mrb[87].mxu0  ;;  %8058 = vst.msk [vmem:[%s11703_s4 + $0x288] sm:$0xff] %vm7976_vm5, %v7929_v56  ;;  %v9847_v4 = vadd.f32 %v7410_v21, %v3577_v3  ;;  %v9461_v7 = vpop.f32.mrb[86].mxu1 }
 0x2aa   : > { %v7806_v55 = vadd.f32 %v12062_v33, %v9846_v63  ;;  %v9848_v15 = vadd.f32 %v9721_v58, %v9461_v7  ;;  %v3580_v17 = vpop.f32.mrb[87].mxu1 }
 0x2ab   : > { %v7804_v19 = vadd.f32 %v12062_v33, %v9847_v4  ;;  %v9849_v41 = vadd.f32 %v7413_v59, %v3580_v17 }
 0x2ac   : > { %v7934_v18 = vmax.f32 %v7806_v55, 0.0  ;;  %v7807_v0 = vadd.f32 %v12062_v33, %v9848_v15 }
 0x2ad   : > { %v7932_v54 = vmax.f32 %v7804_v19, 0.0  ;;  %v7805_v36 = vadd.f32 %v12062_v33, %v9849_v41 }
 0x2ae   : > { %8063 = vst.msk [vmem:[%s11703_s4 + $0x2b0] sm:$0xff] %vm7976_vm5, %v7934_v18  ;;  %v7935_v8 = vmax.f32 %v7807_v0, 0.0 }
 0x2af   : > { %v9724_v5 = vpop.f32.mrb[88].mxu0  ;;  %8061 = vst.msk [vmem:[%s11703_s4 + $0x2a0] sm:$0xff] %vm7976_vm5, %v7932_v54  ;;  %v7933_v38 = vmax.f32 %v7805_v36, 0.0 }
 0x2b0   : > { %v7426_v25 = vpop.f32.mrb[89].mxu0  ;;  %8064 = vst.msk [vmem:[%s11703_s4 + $0x2b8] sm:$0xff] %vm7976_vm5, %v7935_v8  ;;  %v9464_v28 = vpop.f32.mrb[88].mxu1 }
 0x2b1   : > { %v9725_v16 = vpop.f32.mrb[90].mxu0  ;;  %8062 = vst.msk [vmem:[%s11703_s4 + $0x2a8] sm:$0xff] %vm7976_vm5, %v7933_v38  ;;  %v9850_v49 = vadd.f32 %v9724_v5, %v9464_v28  ;;  %v3593_v12 = vpop.f32.mrb[89].mxu1 }
 0x2b2   : > { %v7429_v44 = vpop.f32.mrb[91].mxu0  ;;  %v9851_v53 = vadd.f32 %v7426_v25, %v3593_v12  ;;  %v9465_v62 = vpop.f32.mrb[90].mxu1 }
 0x2b3   : > { %v7810_v9 = vadd.f32 %v12062_v33, %v9850_v49  ;;  %v9852_v23 = vadd.f32 %v9725_v16, %v9465_v62  ;;  %v3596_v2 = vpop.f32.mrb[91].mxu1 }
 0x2b4   : > { %v7808_v29 = vadd.f32 %v12062_v33, %v9851_v53  ;;  %v9853_v30 = vadd.f32 %v7429_v44, %v3596_v2 }
 0x2b5   : > { %v7938_v27 = vmax.f32 %v7810_v9, 0.0  ;;  %v7811_v6 = vadd.f32 %v12062_v33, %v9852_v23 }
 0x2b6   : > { %v7936_v31 = vmax.f32 %v7808_v29, 0.0  ;;  %v7809_v14 = vadd.f32 %v12062_v33, %v9853_v30 }
 0x2b7   : > { %v9728_v11 = vpop.f32.mrb[92].mxu0  ;;  %8067 = vst.msk [vmem:[%s11703_s4 + $0x2d0] sm:$0xff] %vm7976_vm5, %v7938_v27  ;;  %v7939_v1 = vmax.f32 %v7811_v6, 0.0 }
 0x2b8   : > { %v7442_v10 = vpop.f32.mrb[93].mxu0  ;;  %8065 = vst.msk [vmem:[%s11703_s4 + $0x2c0] sm:$0xff] %vm7976_vm5, %v7936_v31  ;;  %v7937_v35 = vmax.f32 %v7809_v14, 0.0  ;;  %v9468_v40 = vpop.f32.mrb[92].mxu1 }
 0x2b9   : > { %v9729_v22 = vpop.f32.mrb[94].mxu0  ;;  %8068 = vst.msk [vmem:[%s11703_s4 + $0x2d8] sm:$0xff] %vm7976_vm5, %v7939_v1  ;;  %v9854_v34 = vadd.f32 %v9728_v11, %v9468_v40  ;;  %v3609_v37 = vpop.f32.mrb[93].mxu1 }
 0x2ba   : > { %v7445_v39 = vpop.f32.mrb[95].mxu0  ;;  %8066 = vst.msk [vmem:[%s11703_s4 + $0x2c8] sm:$0xff] %vm7976_vm5, %v7937_v35  ;;  %v9855_v42 = vadd.f32 %v7442_v10, %v3609_v37  ;;  %v9469_v20 = vpop.f32.mrb[94].mxu1 }
 0x2bb   : > { %v7814_v52 = vadd.f32 %v12062_v33, %v9854_v34  ;;  %v9856_v43 = vadd.f32 %v9729_v22, %v9469_v20  ;;  %v3612_v46 = vpop.f32.mrb[95].mxu1 }
 0x2bc   : > { %v7812_v24 = vadd.f32 %v12062_v33, %v9855_v42  ;;  %v9857_v45 = vadd.f32 %v7445_v39, %v3612_v46 }
 0x2bd   : > { %v7942_v60 = vmax.f32 %v7814_v52, 0.0  ;;  %v7815_v61 = vadd.f32 %v12062_v33, %v9856_v43 }
 0x2be   : > { %v7940_v47 = vmax.f32 %v7812_v24, 0.0  ;;  %v7813_v48 = vadd.f32 %v12062_v33, %v9857_v45 }
 0x2bf   : > { %v9732_v50 = vpop.f32.mrb[96].mxu0  ;;  %8071 = vst.msk [vmem:[%s11703_s4 + $0x2f0] sm:$0xff] %vm7976_vm5, %v7942_v60  ;;  %v7943_v13 = vmax.f32 %v7815_v61, 0.0 }
 0x2c0   : > { %v7458_v26 = vpop.f32.mrb[97].mxu0  ;;  %8069 = vst.msk [vmem:[%s11703_s4 + $0x2e0] sm:$0xff] %vm7976_vm5, %v7940_v47  ;;  %v7941_v51 = vmax.f32 %v7813_v48, 0.0 }
 0x2c1   : > { %v9472_v21 = vpop.f32.mrb[96].mxu1  ;;  %v9733_v32 = vpop.f32.mrb[98].mxu0  ;;  %8072 = vst.msk [vmem:[%s11703_s4 + $0x2f8] sm:$0xff] %vm7976_vm5, %v7943_v13 }
 0x2c2   : > { %v9858_v58 = vadd.f32 %v9732_v50, %v9472_v21  ;;  %v3625_v56 = vpop.f32.mrb[97].mxu1  ;;  %v7461_v57 = vpop.f32.mrb[99].mxu0  ;;  %8070 = vst.msk [vmem:[%s11703_s4 + $0x2e8] sm:$0xff] %vm7976_vm5, %v7941_v51 }
 0x2c3   : > { %v9859_v59 = vadd.f32 %v7458_v26, %v3625_v56  ;;  %v9473_v63 = vpop.f32.mrb[98].mxu1 }
 0x2c4   : > { %v7818_v3 = vadd.f32 %v12062_v33, %v9858_v58  ;;  %v9860_v4 = vadd.f32 %v9733_v32, %v9473_v63  ;;  %v3628_v7 = vpop.f32.mrb[99].mxu1 }
 0x2c5   : > { %v7816_v55 = vadd.f32 %v12062_v33, %v9859_v59  ;;  %v9861_v15 = vadd.f32 %v7461_v57, %v3628_v7 }
 0x2c6   : > { %v7946_v17 = vmax.f32 %v7818_v3, 0.0  ;;  %v7819_v19 = vadd.f32 %v12062_v33, %v9860_v4 }
 0x2c7   : > { %v7944_v41 = vmax.f32 %v7816_v55, 0.0  ;;  %v7817_v18 = vadd.f32 %v12062_v33, %v9861_v15 }
 0x2c8   : > { %8075 = vst.msk [vmem:[%s11703_s4 + $0x310] sm:$0xff] %vm7976_vm5, %v7946_v17  ;;  %v7947_v0 = vmax.f32 %v7819_v19, 0.0  ;;  %v9736_v54 = vpop.f32.mrb[100].mxu0 }
 0x2c9   : > { %8073 = vst.msk [vmem:[%s11703_s4 + $0x300] sm:$0xff] %vm7976_vm5, %v7944_v41  ;;  %v7945_v36 = vmax.f32 %v7817_v18, 0.0  ;;  %v7474_v8 = vpop.f32.mrb[101].mxu0  ;;  %v9476_v5 = vpop.f32.mrb[100].mxu1 }
 0x2ca   : > { %8076 = vst.msk [vmem:[%s11703_s4 + $0x318] sm:$0xff] %vm7976_vm5, %v7947_v0  ;;  %v9737_v38 = vpop.f32.mrb[102].mxu0  ;;  %v9862_v25 = vadd.f32 %v9736_v54, %v9476_v5  ;;  %v3641_v28 = vpop.f32.mrb[101].mxu1 }
 0x2cb   : > { %8074 = vst.msk [vmem:[%s11703_s4 + $0x308] sm:$0xff] %vm7976_vm5, %v7945_v36  ;;  %v7477_v16 = vpop.f32.mrb[103].mxu0  ;;  %v9863_v49 = vadd.f32 %v7474_v8, %v3641_v28  ;;  %v9477_v12 = vpop.f32.mrb[102].mxu1 }
 0x2cc   : > { %v7822_v44 = vadd.f32 %v12062_v33, %v9862_v25  ;;  %v9864_v53 = vadd.f32 %v9737_v38, %v9477_v12  ;;  %v3644_v62 = vpop.f32.mrb[103].mxu1 }
 0x2cd   : > { %v7820_v9 = vadd.f32 %v12062_v33, %v9863_v49  ;;  %v9865_v23 = vadd.f32 %v7477_v16, %v3644_v62 }
 0x2ce   : > { %v7950_v2 = vmax.f32 %v7822_v44, 0.0  ;;  %v7823_v29 = vadd.f32 %v12062_v33, %v9864_v53 }
 0x2cf   : > { %v7948_v30 = vmax.f32 %v7820_v9, 0.0  ;;  %v7821_v27 = vadd.f32 %v12062_v33, %v9865_v23 }
 0x2d0   : > { %v9740_v6 = vpop.f32.mrb[104].mxu0  ;;  %8079 = vst.msk [vmem:[%s11703_s4 + $0x330] sm:$0xff] %vm7976_vm5, %v7950_v2  ;;  %v7951_v31 = vmax.f32 %v7823_v29, 0.0 }
 0x2d1   : > { %v7490_v14 = vpop.f32.mrb[105].mxu0  ;;  %8077 = vst.msk [vmem:[%s11703_s4 + $0x320] sm:$0xff] %vm7976_vm5, %v7948_v30  ;;  %v7949_v11 = vmax.f32 %v7821_v27, 0.0 }
 0x2d2   : > { %v9480_v1 = vpop.f32.mrb[104].mxu1  ;;  %v9741_v10 = vpop.f32.mrb[106].mxu0  ;;  %8080 = vst.msk [vmem:[%s11703_s4 + $0x338] sm:$0xff] %vm7976_vm5, %v7951_v31 }
 0x2d3   : > { %v9866_v35 = vadd.f32 %v9740_v6, %v9480_v1  ;;  %v3657_v40 = vpop.f32.mrb[105].mxu1  ;;  %v7493_v22 = vpop.f32.mrb[107].mxu0  ;;  %8078 = vst.msk [vmem:[%s11703_s4 + $0x328] sm:$0xff] %vm7976_vm5, %v7949_v11 }
 0x2d4   : > { %v9867_v34 = vadd.f32 %v7490_v14, %v3657_v40  ;;  %v9481_v37 = vpop.f32.mrb[106].mxu1 }
 0x2d5   : > { %v7826_v39 = vadd.f32 %v12062_v33, %v9866_v35  ;;  %v9868_v42 = vadd.f32 %v9741_v10, %v9481_v37  ;;  %v3660_v20 = vpop.f32.mrb[107].mxu1 }
 0x2d6   : > { %v7824_v52 = vadd.f32 %v12062_v33, %v9867_v34  ;;  %v9869_v43 = vadd.f32 %v7493_v22, %v3660_v20 }
 0x2d7   : > { %v7954_v46 = vmax.f32 %v7826_v39, 0.0  ;;  %v7827_v24 = vadd.f32 %v12062_v33, %v9868_v42 }
 0x2d8   : > { %v7952_v45 = vmax.f32 %v7824_v52, 0.0  ;;  %v7825_v60 = vadd.f32 %v12062_v33, %v9869_v43 }
 0x2d9   : > { %8083 = vst.msk [vmem:[%s11703_s4 + $0x350] sm:$0xff] %vm7976_vm5, %v7954_v46  ;;  %v7955_v61 = vmax.f32 %v7827_v24, 0.0 }
 0x2da   : > { %v9744_v47 = vpop.f32.mrb[108].mxu0  ;;  %8081 = vst.msk [vmem:[%s11703_s4 + $0x340] sm:$0xff] %vm7976_vm5, %v7952_v45  ;;  %v7953_v48 = vmax.f32 %v7825_v60, 0.0 }
 0x2db   : > { %v7506_v50 = vpop.f32.mrb[109].mxu0  ;;  %8084 = vst.msk [vmem:[%s11703_s4 + $0x358] sm:$0xff] %vm7976_vm5, %v7955_v61 }
 0x2dc   : > { %v9745_v13 = vpop.f32.mrb[110].mxu0  ;;  %8082 = vst.msk [vmem:[%s11703_s4 + $0x348] sm:$0xff] %vm7976_vm5, %v7953_v48 }
 0x2dd   : > { %v7509_v26 = vpop.f32.mrb[111].mxu0  ;;  %v9484_v51 = vpop.f32.mrb[108].mxu1 }
 0x2de   : > { %v9870_v21 = vadd.f32 %v9744_v47, %v9484_v51  ;;  %v3673_v32 = vpop.f32.mrb[109].mxu1 }
 0x2df   : > { %v9871_v58 = vadd.f32 %v7506_v50, %v3673_v32  ;;  %v9485_v56 = vpop.f32.mrb[110].mxu1 }
 0x2e0   : > { %v7830_v57 = vadd.f32 %v12062_v33, %v9870_v21  ;;  %v9872_v59 = vadd.f32 %v9745_v13, %v9485_v56  ;;  %v3676_v63 = vpop.f32.mrb[111].mxu1 }
 0x2e1   : > { %v7828_v3 = vadd.f32 %v12062_v33, %v9871_v58  ;;  %v9873_v4 = vadd.f32 %v7509_v26, %v3676_v63 }
 0x2e2   : > { %v7958_v7 = vmax.f32 %v7830_v57, 0.0  ;;  %v7831_v55 = vadd.f32 %v12062_v33, %v9872_v59 }
 0x2e3   : > { %v7956_v15 = vmax.f32 %v7828_v3, 0.0  ;;  %v7829_v17 = vadd.f32 %v12062_v33, %v9873_v4 }
 0x2e4   : > { %v9748_v19 = vpop.f32.mrb[112].mxu0  ;;  %8087 = vst.msk [vmem:[%s11703_s4 + $0x370] sm:$0xff] %vm7976_vm5, %v7958_v7  ;;  %v7959_v41 = vmax.f32 %v7831_v55, 0.0 }
 0x2e5   : > { %v7522_v18 = vpop.f32.mrb[113].mxu0  ;;  %8085 = vst.msk [vmem:[%s11703_s4 + $0x360] sm:$0xff] %vm7976_vm5, %v7956_v15  ;;  %v7957_v0 = vmax.f32 %v7829_v17, 0.0 }
 0x2e6   : > { %v9749_v54 = vpop.f32.mrb[114].mxu0  ;;  %8088 = vst.msk [vmem:[%s11703_s4 + $0x378] sm:$0xff] %vm7976_vm5, %v7959_v41 }
 0x2e7   : > { %v7525_v36 = vpop.f32.mrb[115].mxu0  ;;  %8086 = vst.msk [vmem:[%s11703_s4 + $0x368] sm:$0xff] %vm7976_vm5, %v7957_v0 }
 0x2e8   : > { %v9488_v8 = vpop.f32.mrb[112].mxu1 }
 0x2e9   : > { %v9874_v5 = vadd.f32 %v9748_v19, %v9488_v8  ;;  %v3689_v38 = vpop.f32.mrb[113].mxu1 }
 0x2ea   : > { %v9875_v25 = vadd.f32 %v7522_v18, %v3689_v38  ;;  %v9489_v28 = vpop.f32.mrb[114].mxu1 }
 0x2eb   : > { %v7834_v16 = vadd.f32 %v12062_v33, %v9874_v5  ;;  %v9876_v49 = vadd.f32 %v9749_v54, %v9489_v28  ;;  %v3692_v12 = vpop.f32.mrb[115].mxu1 }
 0x2ec   : > { %v7832_v44 = vadd.f32 %v12062_v33, %v9875_v25  ;;  %v9877_v53 = vadd.f32 %v7525_v36, %v3692_v12 }
 0x2ed   : > { %v7962_v62 = vmax.f32 %v7834_v16, 0.0  ;;  %v7835_v9 = vadd.f32 %v12062_v33, %v9876_v49 }
 0x2ee   : > { %v7960_v23 = vmax.f32 %v7832_v44, 0.0  ;;  %v7833_v2 = vadd.f32 %v12062_v33, %v9877_v53 }
 0x2ef   : > { %v9752_v29 = vpop.f32.mrb[116].mxu0  ;;  %8091 = vst.msk [vmem:[%s11703_s4 + $0x390] sm:$0xff] %vm7976_vm5, %v7962_v62  ;;  %v7963_v30 = vmax.f32 %v7835_v9, 0.0 }
 0x2f0   : > { %v7538_v27 = vpop.f32.mrb[117].mxu0  ;;  %8089 = vst.msk [vmem:[%s11703_s4 + $0x380] sm:$0xff] %vm7976_vm5, %v7960_v23  ;;  %v7961_v6 = vmax.f32 %v7833_v2, 0.0 }
 0x2f1   : > { %v9753_v31 = vpop.f32.mrb[118].mxu0  ;;  %8092 = vst.msk [vmem:[%s11703_s4 + $0x398] sm:$0xff] %vm7976_vm5, %v7963_v30 }
 0x2f2   : > { %v7541_v14 = vpop.f32.mrb[119].mxu0  ;;  %8090 = vst.msk [vmem:[%s11703_s4 + $0x388] sm:$0xff] %vm7976_vm5, %v7961_v6 }
 0x2f4   : > { %v9492_v11 = vpop.f32.mrb[116].mxu1 }
 0x2f5   : > { %v9878_v1 = vadd.f32 %v9752_v29, %v9492_v11  ;;  %v3705_v10 = vpop.f32.mrb[117].mxu1 }
 0x2f6   : > { %v9879_v35 = vadd.f32 %v7538_v27, %v3705_v10  ;;  %v9493_v40 = vpop.f32.mrb[118].mxu1 }
 0x2f7   : > { %v7838_v22 = vadd.f32 %v12062_v33, %v9878_v1  ;;  %v9880_v34 = vadd.f32 %v9753_v31, %v9493_v40  ;;  %v3708_v37 = vpop.f32.mrb[119].mxu1 }
 0x2f8   : > { %v7836_v39 = vadd.f32 %v12062_v33, %v9879_v35  ;;  %v9881_v42 = vadd.f32 %v7541_v14, %v3708_v37 }
 0x2f9   : > { %v7966_v20 = vmax.f32 %v7838_v22, 0.0  ;;  %v7839_v52 = vadd.f32 %v12062_v33, %v9880_v34 }
 0x2fa   : > { %v7964_v43 = vmax.f32 %v7836_v39, 0.0  ;;  %v7837_v46 = vadd.f32 %v12062_v33, %v9881_v42 }
 0x2fb   : > { %8095 = vst.msk [vmem:[%s11703_s4 + $0x3b0] sm:$0xff] %vm7976_vm5, %v7966_v20  ;;  %v7967_v24 = vmax.f32 %v7839_v52, 0.0 }
 0x2fc   : > { %v9756_v45 = vpop.f32.mrb[120].mxu0  ;;  %8093 = vst.msk [vmem:[%s11703_s4 + $0x3a0] sm:$0xff] %vm7976_vm5, %v7964_v43  ;;  %v7965_v60 = vmax.f32 %v7837_v46, 0.0 }
 0x2fd   : > { %v7554_v61 = vpop.f32.mrb[121].mxu0  ;;  %8096 = vst.msk [vmem:[%s11703_s4 + $0x3b8] sm:$0xff] %vm7976_vm5, %v7967_v24 }
 0x2fe   : > { %v9757_v47 = vpop.f32.mrb[122].mxu0  ;;  %8094 = vst.msk [vmem:[%s11703_s4 + $0x3a8] sm:$0xff] %vm7976_vm5, %v7965_v60 }
 0x2ff   : > { %v7557_v48 = vpop.f32.mrb[123].mxu0  ;;  %v9496_v50 = vpop.f32.mrb[120].mxu1 }
 0x300   : > { %v9882_v13 = vadd.f32 %v9756_v45, %v9496_v50  ;;  %v3721_v26 = vpop.f32.mrb[121].mxu1 }
 0x301   : > { %v9883_v51 = vadd.f32 %v7554_v61, %v3721_v26  ;;  %v9497_v21 = vpop.f32.mrb[122].mxu1 }
 0x302   : > { %v7842_v32 = vadd.f32 %v12062_v33, %v9882_v13  ;;  %v9884_v58 = vadd.f32 %v9757_v47, %v9497_v21  ;;  %v3724_v56 = vpop.f32.mrb[123].mxu1 }
 0x303   : > { %v7840_v57 = vadd.f32 %v12062_v33, %v9883_v51  ;;  %v9885_v59 = vadd.f32 %v7557_v48, %v3724_v56 }
 0x304   : > { %v7970_v63 = vmax.f32 %v7842_v32, 0.0  ;;  %v7843_v3 = vadd.f32 %v12062_v33, %v9884_v58 }
 0x305   : > { %v7968_v4 = vmax.f32 %v7840_v57, 0.0  ;;  %v7841_v7 = vadd.f32 %v12062_v33, %v9885_v59 }
 0x306   : > { %8099 = vst.msk [vmem:[%s11703_s4 + $0x3d0] sm:$0xff] %vm7976_vm5, %v7970_v63  ;;  %v7971_v55 = vmax.f32 %v7843_v3, 0.0 }
 0x307   : > { %v9760_v15 = vpop.f32.mrb[124].mxu0  ;;  %8097 = vst.msk [vmem:[%s11703_s4 + $0x3c0] sm:$0xff] %vm7976_vm5, %v7968_v4  ;;  %v7969_v17 = vmax.f32 %v7841_v7, 0.0  ;;  %v9500_v19 = vpop.f32.mrb[124].mxu1 }
 0x308   : > { %v7570_v41 = vpop.f32.mrb[125].mxu0  ;;  %8100 = vst.msk [vmem:[%s11703_s4 + $0x3d8] sm:$0xff] %vm7976_vm5, %v7971_v55  ;;  %v9886_v18 = vadd.f32 %v9760_v15, %v9500_v19  ;;  %v3737_v0 = vpop.f32.mrb[125].mxu1 }
 0x309   : > { %v9761_v54 = vpop.f32.mrb[126].mxu0  ;;  %8098 = vst.msk [vmem:[%s11703_s4 + $0x3c8] sm:$0xff] %vm7976_vm5, %v7969_v17  ;;  %v9887_v36 = vadd.f32 %v7570_v41, %v3737_v0  ;;  %v9501_v8 = vpop.f32.mrb[126].mxu1 }
 0x30a   : > { %v7573_v5 = vpop.f32.mrb[127].mxu0  ;;  %v7846_v38 = vadd.f32 %v12062_v33, %v9886_v18  ;;  %v9888_v25 = vadd.f32 %v9761_v54, %v9501_v8  ;;  %v3740_v28 = vpop.f32.mrb[127].mxu1 }
 0x30b   : > { %v7844_v16 = vadd.f32 %v12062_v33, %v9887_v36  ;;  %v9889_v49 = vadd.f32 %v7573_v5, %v3740_v28 }
 0x30c   : > { %v7974_v12 = vmax.f32 %v7846_v38, 0.0  ;;  %v7847_v44 = vadd.f32 %v12062_v33, %v9888_v25 }
 0x30d   : > { %v7972_v53 = vmax.f32 %v7844_v16, 0.0  ;;  %v7845_v62 = vadd.f32 %v12062_v33, %v9889_v49 }
 0x30e   : > { %8103 = vst.msk [vmem:[%s11703_s4 + $0x3f0] sm:$0xff] %vm7976_vm5, %v7974_v12  ;;  %v7975_v9 = vmax.f32 %v7847_v44, 0.0 }
 0x30f   : > { %8101 = vst.msk [vmem:[%s11703_s4 + $0x3e0] sm:$0xff] %vm7976_vm5, %v7972_v53  ;;  %v7973_v23 = vmax.f32 %v7845_v62, 0.0 }
 0x310   : > { %8104 = vst.msk [vmem:[%s11703_s4 + $0x3f8] sm:$0xff] %vm7976_vm5, %v7975_v9 }
 0x311   : > { %8102 = vst.msk [vmem:[%s11703_s4 + $0x3e8] sm:$0xff] %vm7976_vm5, %v7973_v23 }
 0x312 PF: > { %s13_s12 = sadd.s32 1, %s10414_s12  }
 0x313   : > { %p10_p4 = scmp.ge.s32.totalorder %s13_s12, 4  }
 0x315   :  { %12 = sbr.rel (!%p10_p4) target bundleno = 1 (0x1), region = 66 }

// kernel: basenet_forward.6
= control target key start
LH: loop header
LB: loop body
LE: loop exit
PB: predicated region body
PF: predicated region fallthrough
CT: control target
= control target key end

     0   :  { %s3200_s12 = smov 0   ;;  %s3871_s0 = inlined_call_operand.vmem [shape: bf16[2,17,17,64], index: 0, kind: input, shape index: {}]   ;;  %s3872_s1 = inlined_call_operand.vmem [shape: bf16[4,64,16], index: 1, kind: input, shape index: {}]   ;;  %s3873_s2 = inlined_call_operand.vmem [shape: f32[1,16], index: 2, kind: input, shape index: {}]   ;;  %s3874_s3 = inlined_call_operand.vmem [shape: f32[2,16,16,16], index: 3, kind: output, shape index: {}]  }
   0x1 LB: > { %s2519_s13 = sadd.s32 4294967295, %s3178_s12   ;;  %p2523_p0 = scmp.ge.s32.totalorder %s3178_s12, 1  ;;  %s3178_s12 = sphi %s3200_s12, %s13_s12  }
   0x2   : > { %p137_p1 = scmp.lt.s32.totalorder %s3178_s12, 3 }
   0x4   : > { %p138_p2 = pnand %p2523_p0, %p137_p1 }
   0x5   : > { %v3124_v0 = vld [vmem:[%s3872_s1 + $0x20] sm:$0xff] (!%p138_p2)   ;;  %p161_p3 = scmp.lt.s32.totalorder (!%p138_p2), %s2519_s13, 1  ;;  %v3126_v2 = vld [vmem:[%s3872_s1 + $0x28] sm:$0xff] (!%p138_p2)   ;;  %v3128_v4 = vld [vmem:[%s3872_s1 + $0x30] sm:$0xff] (!%p138_p2)   ;;  %vm696_vm0 = vcmask (!%p138_p2), 523264   ;;  %vm2431_vm4 = vcmask (!%p138_p2), 130048  }
   0x6   : > { %141 = sbr.rel (%p138_p2) target bundleno = 386 (0x182), region = 32  ;;  %v3125_v1 = vld [vmem:[%s3872_s1 + $0x40] sm:$0xff] (!%p138_p2)   ;;  %2859 = vmatprep.subr.bf16.mxu1 (!%p138_p2), %v3124_v0  ;;  %v3127_v3 = vld [vmem:[%s3872_s1 + $0x48] sm:$0xff] (!%p138_p2)   ;;  %v3129_v5 = vld [vmem:[%s3872_s1 + $0x50] sm:$0xff] (!%p138_p2)   ;;  %vm228_vm1 = vsmask.f32 (!%p138_p2), 3328 }
   0x7   : > { %2939 = vmatprep.subr.bf16.mxu0 (!%p138_p2), %v3125_v1  ;;  %2860 = vmatpush3.bf16.msra.mxu1 (!%p138_p2), %v3124_v0  ;;  %v3130_v6 = vld [vmem:[%s3872_s1 + $0x38] sm:$0xff] (!%p138_p2)   ;;  %vm229_vm2 = vsmask.f32 (!%p138_p2), 7440  ;;  %v3256_v17 = vld [vmem:[%s3872_s1] sm:$0xff] (!%p138_p2)  }
   0x8   : > { %2940 = vmatpush3.bf16.msra.mxu0 (!%p138_p2), %v3125_v1  ;;  %2861 = vmatprep.subr.bf16.mxu1 (!%p138_p2), %v3126_v2  ;;  %v3131_v7 = vld [vmem:[%s3872_s1 + $0x58] sm:$0xff] (!%p138_p2)   ;;  %vm3261_vm3 = vmor (!%p138_p2), %vm228_vm1, %vm229_vm2  ;;  %v3135_v27 = vld [vmem:[%s3872_s1 + $0x60] sm:$0xff] (!%p138_p2)  }
   0x9   : > { %2941 = vmatprep.subr.bf16.mxu0 (!%p138_p2), %v3127_v3 }
   0xb   : > { %2862 = vmatpush3.bf16.msra.mxu1 (!%p138_p2), %v3126_v2 }
   0xc   : > { %2942 = vmatpush3.bf16.msra.mxu0 (!%p138_p2), %v3127_v3  ;;  %2863 = vmatprep.subr.bf16.mxu1 (!%p138_p2), %v3128_v4 }
   0xd   : > { %s3884_s13 = smov (!%p161_p3, %s2519_s13), 1  ;;  %2943 = vmatprep.subr.bf16.mxu0 %v3129_v5 }
   0xe   : > { %s3115_s24 = smul.u32 204, %s3884_s13  ;;  %s2778_s27 = sshll.u32 %s3884_s13, 8 }
   0xf   : > { %2864 = vmatpush3.bf16.msra.mxu1 %v3128_v4  ;;  %s3771_s30 = scalar_lea.vmem %s3874_s3, %s2778_s27 }
  0x10   : > { %s3235_s4 = scalar_lea.vmem %s3871_s0, %s3115_s24  ;;  %2944 = vmatpush3.bf16.msra.mxu0 %v3129_v5  ;;  %2865 = vmatprep.subr.bf16.mxu1 %v3130_v6 }
  0x11   : > { %v3132_v8 = vld [vmem:[%s3235_s4 + $0xc] sm:$0xff]   ;;  %v3242_v9 = vld [vmem:[%s3235_s4] sm:$0xf]  ;;  %v3245_v10 = vld [vmem:[%s3235_s4 + $0x4] sm:$0xf]  ;;  %2945 = vmatprep.subr.bf16.mxu0 %v3131_v7 }
  0x12   : > { %v212_v11 = vld [vmem:[%s3235_s4 + $0x8] sm:$0x1]  ;;  %2947 = vmatprep.mubr.msk.bf16.mxu0 %vm696_vm0, %v3132_v8  ;;  %v232_v12 = vshrl.u32 %v3242_v9, 16  ;;  %v235_v13 = vshll.u32 %v3242_v9, 16  ;;  %v241_v14 = vshll.u32 %v3245_v10, 16  ;;  %v245_v15 = vshrl.u32 %v3245_v10, 16 }
  0x13   : > { %v251_v16 = vshll.u32 %v212_v11, 16  ;;  %v2571_v18 = vcombine.low %v3242_v9, %v3245_v10  ;;  %v3134_v24 = vld [vmem:[%s3235_s4 + $0x18] sm:$0xff]   ;;  %2866 = vmatpush3.bf16.msra.mxu1 %v3130_v6  ;;  %v3270_v29 = vld [vmem:[%s3235_s4 + $0xc] sm:$0xf]  ;;  %v3273_v30 = vld [vmem:[%s3235_s4 + $0x10] sm:$0xf] }
  0x14   : > { %v234_v19 = vrot.slane %v232_v12, 4  ;;  %v237_v20 = vrot.slane %v235_v13, 5  ;;  %v243_v22 = vrot.slane %v241_v14, 5  ;;  %v247_v23 = vrot.slane %v245_v15, 4  ;;  %v213_v31 = vld [vmem:[%s3235_s4 + $0x14] sm:$0x1]  ;;  %2946 = vmatpush3.bf16.msra.mxu0 %v3131_v7  ;;  %2899 = vmatprep.subr.bf16.mxu1 %v3256_v17 }
  0x15   : > { %v253_v26 = vrot.slane %v251_v16, 5  ;;  %v256_v33 = vshrl.u32 %v3270_v29, 16  ;;  %v259_v34 = vshll.u32 %v3270_v29, 16  ;;  %v265_v35 = vshll.u32 %v3273_v30, 16  ;;  %2979 = vmatprep.subr.bf16.mxu0 %v3135_v27  ;;  %v3136_v39 = vld [vmem:[%s3235_s4 + $0x24] sm:$0xff]   ;;  %v3137_v59 = vld [vmem:[%s3235_s4 + $0x30] sm:$0xff]  }
  0x16   : > { %v238_v25 = vor.u32 %v237_v20, %v234_v19  ;;  %v248_v28 = vor.u32 %v247_v23, %v243_v22  ;;  %v269_v37 = vshrl.u32 %v3273_v30, 16  ;;  %v275_v38 = vshll.u32 %v213_v31, 16  ;;  %v3287_v45 = vld [vmem:[%s3235_s4 + $0x18] sm:$0xf]  ;;  %v3293_v49 = vld [vmem:[%s3235_s4 + $0x1c] sm:$0xf] }
  0x17   : > { %v2572_v40 = vcombine.low %v3270_v29, %v3273_v30  ;;  %v258_v42 = vrot.slane %v256_v33, 4  ;;  %v261_v43 = vrot.slane %v259_v34, 5  ;;  %v267_v44 = vrot.slane %v265_v35, 5  ;;  %2948 = vmatmul.mubr.msk.bf16.vlgmr.msra.gmra.mrb[0].mxu0 %vm696_vm0, %v3134_v24  ;;  %v214_v50 = vld [vmem:[%s3235_s4 + $0x20] sm:$0x1] }
  0x18   : > { %v239_v32 = vrot.slane %v238_v25, 4  ;;  %v249_v36 = vrot.slane %v248_v28, 4  ;;  %v271_v47 = vrot.slane %v269_v37, 4  ;;  %v277_v48 = vrot.slane %v275_v38, 5  ;;  %2980 = vmatpush3.bf16.msra.mxu0 %v3135_v27  ;;  %2951 = vmatprep.mubr.msk.bf16.mxu0 %vm696_vm0, %v3136_v39  ;;  %v3303_v60 = vld [vmem:[%s3235_s4 + $0x24] sm:$0xf] }
  0x19   : > { %v262_v52 = vor.u32 %v261_v43, %v258_v42  ;;  %v280_v53 = vshrl.u32 %v3287_v45, 16  ;;  %v283_v54 = vshll.u32 %v3287_v45, 16  ;;  %v289_v56 = vshll.u32 %v3293_v49, 16  ;;  %v3307_v0 = vld [vmem:[%s3235_s4 + $0x28] sm:$0xf]  ;;  %v3138_v2 = vld [vmem:[%s3235_s4 + $0x3c] sm:$0xff]  }
  0x1a   : > { %v244_v41 = vsel %vm3261_vm3, %v239_v32, %v243_v22  ;;  %v254_v46 = vsel %vm3261_vm3, %v249_v36, %v253_v26  ;;  %v272_v55 = vor.u32 %v271_v47, %v267_v44  ;;  %v293_v57 = vshrl.u32 %v3293_v49, 16  ;;  %v215_v7 = vld [vmem:[%s3235_s4 + $0x2c] sm:$0x1]  ;;  %v3320_v20 = vld [vmem:[%s3235_s4 + $0x30] sm:$0xf] }
  0x1b   : > { %v2535_v51 = vcombine.low %v244_v41, %v254_v46  ;;  %v299_v58 = vshll.u32 %v214_v50, 16  ;;  %v263_v61 = vrot.slane %v262_v52, 4  ;;  %v282_v62 = vrot.slane %v280_v53, 4  ;;  %v3323_v22 = vld [vmem:[%s3235_s4 + $0x34] sm:$0xf]  ;;  %v3139_v28 = vld [vmem:[%s3872_s1 + $0x8] sm:$0xff]  }
  0x1c   : > { %v285_v63 = vrot.slane %v283_v54, 5  ;;  %v304_v1 = vshrl.u32 %v3303_v60, 16  ;;  %v273_v3 = vrot.slane %v272_v55, 4  ;;  %v291_v4 = vrot.slane %v289_v56, 5  ;;  %v216_v27 = vld [vmem:[%s3235_s4 + $0x38] sm:$0x1] }
  0x1d   : > { %2867 = vmatprep.mubr.msk.bf16.mxu1 %vm696_vm0, %v2535_v51  ;;  %v295_v5 = vrot.slane %v293_v57, 4  ;;  %v301_v6 = vrot.slane %v299_v58, 5  ;;  %v268_v8 = vsel %vm3261_vm3, %v263_v61, %v267_v44  ;;  %v307_v13 = vshll.u32 %v3303_v60, 16  ;;  %v3141_v44 = vld [vmem:[%s3872_s1 + $0x68] sm:$0xff]   ;;  %v3351_v58 = vld [vmem:[%s3235_s4 + $0x3c] sm:$0xf] }
  0x1e   : > { %v286_v11 = vor.u32 %v285_v63, %v282_v62  ;;  %v306_v12 = vrot.slane %v304_v1, 4  ;;  %v278_v14 = vsel %vm3261_vm3, %v273_v3, %v277_v48  ;;  %v313_v16 = vshll.u32 %v3307_v0, 16  ;;  %v3140_v53 = vld [vmem:[%s3235_s4 + $0x48] sm:$0xff]   ;;  %2981 = vmatprep.subr.bf16.mxu0 %v3141_v44  ;;  %v3142_v61 = vld [vmem:[%s3235_s4 + $0x54] sm:$0xff]  }
  0x1f   : > { %v296_v15 = vor.u32 %v295_v5, %v291_v4  ;;  %v317_v19 = vshrl.u32 %v3307_v0, 16  ;;  %v2536_v23 = vcombine.low %v268_v8, %v278_v14  ;;  %v309_v25 = vrot.slane %v307_v13, 5  ;;  %2952 = vmatmul.mubr.msk.bf16.gmra.mrb[4].mxu0 %vm696_vm0, %v3137_v59  ;;  %v3354_v59 = vld [vmem:[%s3235_s4 + $0x40] sm:$0xf]  ;;  %v3145_v5 = vld [vmem:[%s3872_s1 + $0x10] sm:$0xff]  }
  0x20   : > { %v287_v24 = vrot.slane %v286_v11, 4  ;;  %v323_v26 = vshll.u32 %v215_v7, 16  ;;  %v315_v32 = vrot.slane %v313_v16, 5  ;;  %v328_v34 = vshrl.u32 %v3320_v20, 16  ;;  %2955 = vmatprep.mubr.msk.bf16.mxu0 %vm696_vm0, %v3138_v2  ;;  %2982 = vmatpush3.bf16.msra.mxu0 %v3141_v44  ;;  %v217_v2 = vld [vmem:[%s3235_s4 + $0x44] sm:$0x1] }
  0x21   : > { %v297_v31 = vrot.slane %v296_v15, 4  ;;  %v319_v33 = vrot.slane %v317_v19, 4  ;;  %2868 = vmatmul.mubr.msk.bf16.vlgmr.msra.gmra.mrb[0].mxu1 %vm696_vm0, %v2536_v23  ;;  %v310_v36 = vor.u32 %v309_v25, %v306_v12  ;;  %v331_v38 = vshll.u32 %v3320_v20, 16  ;;  %v3371_v16 = vld [vmem:[%s3235_s4 + $0x48] sm:$0xf] }
  0x22   : > { %v292_v35 = vsel %vm3261_vm3, %v287_v24, %v291_v4  ;;  %v325_v37 = vrot.slane %v323_v26, 5  ;;  %2900 = vmatpush3.bf16.msra.mxu1 %v3256_v17  ;;  %v330_v42 = vrot.slane %v328_v34, 4  ;;  %v337_v43 = vshll.u32 %v3323_v22, 16  ;;  %v3378_v25 = vld [vmem:[%s3235_s4 + $0x4c] sm:$0xf]  ;;  %v3143_v34 = vld [vmem:[%s3235_s4 + $0x60] sm:$0xff]  }
  0x23   : > { %v302_v39 = vsel %vm3261_vm3, %v297_v31, %v301_v6  ;;  %v320_v41 = vor.u32 %v319_v33, %v315_v32  ;;  %v311_v47 = vrot.slane %v310_v36, 4  ;;  %v333_v48 = vrot.slane %v331_v38, 5  ;;  %2901 = vmatprep.subr.bf16.mxu1 %v3139_v28  ;;  %v218_v26 = vld [vmem:[%s3235_s4 + $0x50] sm:$0x1]  ;;  %v2699_v29 = vld [vmem:[%s3235_s4 + $0x4c] sm:$0xf] }
  0x24   : > { %v2537_v46 = vcombine.low %v292_v35, %v302_v39  ;;  %v341_v50 = vshrl.u32 %v3323_v22, 16  ;;  %v339_v51 = vrot.slane %v337_v43, 5  ;;  %v347_v52 = vshll.u32 %v216_v27, 16  ;;  %v3144_v39 = vld [vmem:[%s3235_s4 + $0x6c] sm:$0xff]  }
  0x25   : > { %v321_v17 = vrot.slane %v320_v41, 4  ;;  %v316_v55 = vsel %vm3261_vm3, %v311_v47, %v315_v32  ;;  %v334_v56 = vor.u32 %v333_v48, %v330_v42  ;;  %v352_v3 = vshrl.u32 %v3351_v58, 16  ;;  %v3147_v41 = vld [vmem:[%s3872_s1 + $0x70] sm:$0xff]   ;;  %v3398_v48 = vld [vmem:[%s3235_s4 + $0x58] sm:$0xf] }
  0x26   : > { %2871 = vmatprep.mubr.msk.bf16.mxu1 %vm696_vm0, %v2537_v46  ;;  %v343_v57 = vrot.slane %v341_v50, 4  ;;  %v349_v1 = vrot.slane %v347_v52, 5  ;;  %v355_v4 = vshll.u32 %v3351_v58, 16  ;;  %2902 = vmatpush3.bf16.msra.mxu1 %v3139_v28  ;;  %v361_v11 = vshll.u32 %v3354_v59, 16  ;;  %v3395_v47 = vld [vmem:[%s3235_s4 + $0x54] sm:$0xf] }
  0x27   : > { %v326_v63 = vsel %vm3261_vm3, %v321_v17, %v325_v37  ;;  %v335_v7 = vrot.slane %v334_v56, 4  ;;  %2956 = vmatmul.mubr.msk.bf16.gmra.mrb[8].mxu0 %vm696_vm0, %v3140_v53  ;;  %v354_v12 = vrot.slane %v352_v3, 4  ;;  %v365_v14 = vshrl.u32 %v3354_v59, 16  ;;  %2903 = vmatprep.subr.bf16.mxu1 %v3145_v5  ;;  %v219_v53 = vld [vmem:[%s3235_s4 + $0x5c] sm:$0x1] }
  0x28   : > { %v2538_v6 = vcombine.low %v316_v55, %v326_v63  ;;  %v344_v8 = vor.u32 %v343_v57, %v339_v51  ;;  %v357_v13 = vrot.slane %v355_v4, 5  ;;  %v371_v15 = vshll.u32 %v217_v2, 16  ;;  %2959 = vmatprep.mubr.msk.bf16.mxu0 %vm696_vm0, %v3142_v61  ;;  %2983 = vmatprep.subr.bf16.mxu0 %v3147_v41  ;;  %v3408_v4 = vld [vmem:[%s3235_s4 + $0x60] sm:$0xf] }
  0x29   : > { %v340_v19 = vsel %vm3261_vm3, %v335_v7, %v339_v51  ;;  %v363_v24 = vrot.slane %v361_v11, 5  ;;  %v367_v31 = vrot.slane %v365_v14, 4  ;;  %v376_v33 = vshrl.u32 %v3371_v16, 16  ;;  %2984 = vmatpush3.bf16.msra.mxu0 %v3147_v41  ;;  %v3415_v11 = vld [vmem:[%s3235_s4 + $0x64] sm:$0xf] }
  0x2a   : > { %2872 = vmatmul.mubr.msk.bf16.gmra.mrb[4].mxu1 %vm696_vm0, %v2538_v6  ;;  %v345_v23 = vrot.slane %v344_v8, 4  ;;  %v358_v28 = vor.u32 %v357_v13, %v354_v12  ;;  %v373_v32 = vrot.slane %v371_v15, 5  ;;  %v379_v36 = vshll.u32 %v3371_v16, 16 }
  0x2b   : > { %2904 = vmatpush3.bf16.msra.mxu1 %v3145_v5  ;;  %v385_v37 = vshll.u32 %v3378_v25, 16  ;;  %v389_v38 = vshrl.u32 %v3378_v25, 16  ;;  %v368_v44 = vor.u32 %v367_v31, %v363_v24  ;;  %v378_v46 = vrot.slane %v376_v33, 4  ;;  %v3146_v31 = vld [vmem:[%s3235_s4 + $0x78] sm:$0xff]  }
  0x2c   : > { %v350_v35 = vsel %vm3261_vm3, %v345_v23, %v349_v1  ;;  %v359_v43 = vrot.slane %v358_v28, 4  ;;  %v381_v50 = vrot.slane %v379_v36, 5  ;;  %v395_v52 = vshll.u32 %v218_v26, 16 }
  0x2d   : > { %v2539_v42 = vcombine.low %v340_v19, %v350_v35  ;;  %v387_v17 = vrot.slane %v385_v37, 5  ;;  %v391_v51 = vrot.slane %v389_v38, 4  ;;  %v369_v56 = vrot.slane %v368_v44, 4  ;;  %v220_v19 = vld [vmem:[%s3235_s4 + $0x68] sm:$0x1] }
  0x2e   : > { %v364_v55 = vsel %vm3261_vm3, %v359_v43, %v363_v24  ;;  %v400_v57 = vshrl.u32 %v3395_v47, 16  ;;  %v403_v61 = vshll.u32 %v3395_v47, 16  ;;  %v382_v63 = vor.u32 %v381_v50, %v378_v46  ;;  %v3148_v37 = vld [vmem:[%s3235_s4 + $0x84] sm:$0xff]  }
  0x2f   : > { %2875 = vmatprep.mubr.msk.bf16.mxu1 %vm696_vm0, %v2539_v42  ;;  %v392_v1 = vor.u32 %v391_v51, %v387_v17  ;;  %v397_v2 = vrot.slane %v395_v52, 5  ;;  %v409_v3 = vshll.u32 %v3398_v48, 16  ;;  %v374_v5 = vsel %vm3261_vm3, %v369_v56, %v373_v32  ;;  %2960 = vmatmul.mubr.msk.bf16.gmra.mrb[12].mxu0 %vm696_vm0, %v3143_v34  ;;  %v3151_v32 = vld [vmem:[%s3872_s1 + $0x18] sm:$0xff]  }
  0x30   : > { %v402_v6 = vrot.slane %v400_v57, 4  ;;  %v405_v7 = vrot.slane %v403_v61, 5  ;;  %v413_v8 = vshrl.u32 %v3398_v48, 16  ;;  %v2540_v12 = vcombine.low %v364_v55, %v374_v5  ;;  %2963 = vmatprep.mubr.msk.bf16.mxu0 %vm696_vm0, %v3144_v39  ;;  %2905 = vmatprep.subr.bf16.mxu1 %v3151_v32  ;;  %v3440_v55 = vld [vmem:[%s3235_s4 + $0x70] sm:$0xf] }
  0x31   : > { %v383_v13 = vrot.slane %v382_v63, 4  ;;  %v393_v14 = vrot.slane %v392_v1, 4  ;;  %v411_v15 = vrot.slane %v409_v3, 5  ;;  %v419_v26 = vshll.u32 %v219_v53, 16  ;;  %2906 = vmatpush3.bf16.msra.mxu1 %v3151_v32  ;;  %v3437_v53 = vld [vmem:[%s3235_s4 + $0x6c] sm:$0xf] }
  0x32   : > { %v406_v23 = vor.u32 %v405_v7, %v402_v6  ;;  %v415_v24 = vrot.slane %v413_v8, 4  ;;  %v424_v28 = vshrl.u32 %v3408_v4, 16  ;;  %2876 = vmatmul.mubr.msk.bf16.gmra.mrb[8].mxu1 %vm696_vm0, %v2540_v12  ;;  %v427_v35 = vshll.u32 %v3408_v4, 16  ;;  %v221_v63 = vld [vmem:[%s3235_s4 + $0x74] sm:$0x1]  ;;  %v3153_v8 = vld [vmem:[%s3872_s1 + $0x78] sm:$0xff]  }
  0x33   : > { %v388_v33 = vsel %vm3261_vm3, %v383_v13, %v387_v17  ;;  %v398_v34 = vsel %vm3261_vm3, %v393_v14, %v397_v2  ;;  %v433_v36 = vshll.u32 %v3415_v11, 16  ;;  %v421_v42 = vrot.slane %v419_v26, 5  ;;  %2985 = vmatprep.subr.bf16.mxu0 %v3153_v8 }
  0x34   : > { %v2541_v38 = vcombine.low %v388_v33, %v398_v34  ;;  %v407_v39 = vrot.slane %v406_v23, 4  ;;  %v416_v41 = vor.u32 %v415_v24, %v411_v15  ;;  %v426_v43 = vrot.slane %v424_v28, 4  ;;  %v222_v34 = vld [vmem:[%s3235_s4 + $0x80] sm:$0x1]  ;;  %2986 = vmatpush3.bf16.msra.mxu0 %v3153_v8 }
  0x35   : > { %v429_v44 = vrot.slane %v427_v35, 5  ;;  %v435_v46 = vrot.slane %v433_v36, 5  ;;  %v437_v50 = vshrl.u32 %v3415_v11, 16  ;;  %v443_v52 = vshll.u32 %v220_v19, 16  ;;  %v3457_v19 = vld [vmem:[%s3235_s4 + $0x78] sm:$0xf] }
  0x36   : > { %2879 = vmatprep.mubr.msk.bf16.mxu1 %vm696_vm0, %v2541_v38  ;;  %v412_v17 = vsel %vm3261_vm3, %v407_v39, %v411_v15  ;;  %v417_v51 = vrot.slane %v416_v41, 4  ;;  %v448_v1 = vshrl.u32 %v3437_v53, 16  ;;  %v451_v2 = vshll.u32 %v3437_v53, 16 }
  0x37   : > { %v430_v57 = vor.u32 %v429_v44, %v426_v43  ;;  %v439_v61 = vrot.slane %v437_v50, 4  ;;  %v445_v5 = vrot.slane %v443_v52, 5  ;;  %2964 = vmatmul.mubr.msk.bf16.gmra.mrb[16].mxu0 %vm696_vm0, %v3146_v31  ;;  %v457_v6 = vshll.u32 %v3440_v55, 16  ;;  %v3460_v31 = vld [vmem:[%s3235_s4 + $0x7c] sm:$0xf] }
  0x38   : > { %v422_v3 = vsel %vm3261_vm3, %v417_v51, %v421_v42  ;;  %v461_v7 = vshrl.u32 %v3440_v55, 16  ;;  %v450_v15 = vrot.slane %v448_v1, 4  ;;  %2967 = vmatprep.mubr.msk.bf16.mxu0 %vm696_vm0, %v3148_v37  ;;  %v453_v23 = vrot.slane %v451_v2, 5  ;;  %v3149_v37 = vld [vmem:[%s3235_s4 + $0x90] sm:$0xff]   ;;  %v3150_v51 = vld [vmem:[%s3235_s4 + $0x9c] sm:$0xff]  }
  0x39   : > { %v2542_v12 = vcombine.low %v412_v17, %v422_v3  ;;  %v431_v13 = vrot.slane %v430_v57, 4  ;;  %v440_v14 = vor.u32 %v439_v61, %v435_v46  ;;  %v459_v24 = vrot.slane %v457_v6, 5  ;;  %v3474_v17 = vld [vmem:[%s3235_s4 + $0x84] sm:$0xf]  ;;  %v3478_v1 = vld [vmem:[%s3235_s4 + $0x88] sm:$0xf] }
  0x3a   : > { %v463_v26 = vrot.slane %v461_v7, 4  ;;  %v467_v28 = vshll.u32 %v221_v63, 16  ;;  %v472_v35 = vshrl.u32 %v3457_v19, 16  ;;  %v475_v36 = vshll.u32 %v3457_v19, 16  ;;  %v223_v7 = vld [vmem:[%s3235_s4 + $0x8c] sm:$0x1] }
  0x3b   : > { %2880 = vmatmul.mubr.msk.bf16.gmra.mrb[12].mxu1 %vm696_vm0, %v2542_v12  ;;  %v436_v32 = vsel %vm3261_vm3, %v431_v13, %v435_v46  ;;  %v441_v33 = vrot.slane %v440_v14, 4  ;;  %v454_v38 = vor.u32 %v453_v23, %v450_v15  ;;  %v481_v42 = vshll.u32 %v3460_v31, 16 }
  0x3c   : > { %v464_v39 = vor.u32 %v463_v26, %v459_v24  ;;  %v469_v41 = vrot.slane %v467_v28, 5  ;;  %v474_v44 = vrot.slane %v472_v35, 4  ;;  %v477_v46 = vrot.slane %v475_v36, 5 }
  0x3d   : > { %v446_v43 = vsel %vm3261_vm3, %v441_v33, %v445_v5  ;;  %v485_v50 = vshrl.u32 %v3460_v31, 16  ;;  %v455_v57 = vrot.slane %v454_v38, 4  ;;  %v483_v63 = vrot.slane %v481_v42, 5 }
  0x3e   : > { %v2543_v52 = vcombine.low %v436_v32, %v446_v43  ;;  %v465_v61 = vrot.slane %v464_v39, 4  ;;  %v478_v2 = vor.u32 %v477_v46, %v474_v44  ;;  %v491_v6 = vshll.u32 %v222_v34, 16  ;;  %v3492_v32 = vld [vmem:[%s3235_s4 + $0x90] sm:$0xf] }
  0x3f   : > { %v487_v3 = vrot.slane %v485_v50, 4  ;;  %v496_v5 = vshrl.u32 %v3474_v17, 16  ;;  %v460_v8 = vsel %vm3261_vm3, %v455_v57, %v459_v24  ;;  %2968 = vmatmul.mubr.msk.bf16.gmra.mrb[20].mxu0 %vm696_vm0, %v3149_v37  ;;  %v499_v13 = vshll.u32 %v3474_v17, 16  ;;  %v3495_v24 = vld [vmem:[%s3235_s4 + $0x94] sm:$0xf] }
  0x40   : > { %2883 = vmatprep.mubr.msk.bf16.mxu1 %vm696_vm0, %v2543_v52  ;;  %v470_v12 = vsel %vm3261_vm3, %v465_v61, %v469_v41  ;;  %v505_v14 = vshll.u32 %v3478_v1, 16  ;;  %v479_v23 = vrot.slane %v478_v2, 4  ;;  %v493_v28 = vrot.slane %v491_v6, 5  ;;  %2971 = vmatprep.mubr.msk.bf16.mxu0 %vm696_vm0, %v3150_v51  ;;  %v224_v37 = vld [vmem:[%s3235_s4 + $0x98] sm:$0x1]  ;;  %v3152_v51 = vld [vmem:[%s3235_s4 + $0xa8] sm:$0xff]  }
  0x41   : > { %v2544_v15 = vcombine.low %v460_v8, %v470_v12  ;;  %v488_v26 = vor.u32 %v487_v3, %v483_v63  ;;  %v498_v33 = vrot.slane %v496_v5, 4  ;;  %v501_v34 = vrot.slane %v499_v13, 5 }
  0x42   : > { %v507_v35 = vrot.slane %v505_v14, 5  ;;  %v509_v36 = vshrl.u32 %v3478_v1, 16  ;;  %v484_v38 = vsel %vm3261_vm3, %v479_v23, %v483_v63  ;;  %v515_v41 = vshll.u32 %v223_v7, 16  ;;  %v3154_v63 = vld [vmem:[%s3235_s4 + $0xb4] sm:$0xff]  }
  0x43   : > { %2884 = vmatmul.mubr.msk.bf16.gmra.mrb[16].mxu1 %vm696_vm0, %v2544_v15  ;;  %v489_v39 = vrot.slane %v488_v26, 4  ;;  %v520_v42 = vshrl.u32 %v3492_v32, 16  ;;  %v502_v43 = vor.u32 %v501_v34, %v498_v33  ;;  %v523_v46 = vshll.u32 %v3492_v32, 16  ;;  %v3520_v33 = vld [vmem:[%s3235_s4 + $0xa0] sm:$0xf] }
  0x44   : > { %v511_v44 = vrot.slane %v509_v36, 4  ;;  %v529_v50 = vshll.u32 %v3495_v24, 16  ;;  %v517_v57 = vrot.slane %v515_v41, 5  ;;  %v533_v2 = vshrl.u32 %v3495_v24, 16 }
  0x45   : > { %v494_v52 = vsel %vm3261_vm3, %v489_v39, %v493_v28  ;;  %v522_v61 = vrot.slane %v520_v42, 4  ;;  %v503_v6 = vrot.slane %v502_v43, 4  ;;  %v525_v5 = vrot.slane %v523_v46, 5  ;;  %v3517_v28 = vld [vmem:[%s3235_s4 + $0x9c] sm:$0xf] }
  0x46   : > { %v2545_v3 = vcombine.low %v484_v38, %v494_v52  ;;  %v512_v7 = vor.u32 %v511_v44, %v507_v35  ;;  %v531_v8 = vrot.slane %v529_v50, 5  ;;  %v535_v12 = vrot.slane %v533_v2, 4  ;;  %v225_v38 = vld [vmem:[%s3235_s4 + $0xa4] sm:$0x1] }
  0x47   : > { %v539_v13 = vshll.u32 %v224_v37, 16  ;;  %v508_v15 = vsel %vm3261_vm3, %v503_v6, %v507_v35  ;;  %v526_v26 = vor.u32 %v525_v5, %v522_v61  ;;  %2972 = vmatmul.mubr.msk.bf16.gmra.mrb[24].mxu0 %vm696_vm0, %v3152_v51  ;;  %v544_v39 = vshrl.u32 %v3517_v28, 16  ;;  %v3535_v6 = vld [vmem:[%s3235_s4 + $0xa8] sm:$0xf] }
  0x48   : > { %2887 = vmatprep.mubr.msk.bf16.mxu1 %vm696_vm0, %v2545_v3  ;;  %v513_v23 = vrot.slane %v512_v7, 4  ;;  %v536_v36 = vor.u32 %v535_v12, %v531_v8  ;;  %v547_v35 = vshll.u32 %v3517_v28, 16  ;;  %2975 = vmatprep.mubr.msk.bf16.mxu0 %vm696_vm0, %v3154_v63  ;;  %v553_v43 = vshll.u32 %v3520_v33, 16  ;;  %v3542_v12 = vld [vmem:[%s3235_s4 + $0xac] sm:$0xf] }
  0x49   : > { %v541_v37 = vrot.slane %v539_v13, 5  ;;  %v527_v42 = vrot.slane %v526_v26, 4  ;;  %v557_v44 = vshrl.u32 %v3520_v33, 16  ;;  %v546_v51 = vrot.slane %v544_v39, 4  ;;  %v226_v13 = vld [vmem:[%s3235_s4 + $0xb0] sm:$0x1] }
  0x4a   : > { %v518_v41 = vsel %vm3261_vm3, %v513_v23, %v517_v57  ;;  %v537_v50 = vrot.slane %v536_v36, 4  ;;  %v549_v52 = vrot.slane %v547_v35, 5  ;;  %v555_v2 = vrot.slane %v553_v43, 5  ;;  %v3155_v57 = vld [vmem:[%s3235_s4 + $0xc0] sm:$0xff]  }
  0x4b   : > { %v2546_v46 = vcombine.low %v508_v15, %v518_v41  ;;  %v532_v61 = vsel %vm3261_vm3, %v527_v42, %v531_v8  ;;  %v559_v3 = vrot.slane %v557_v44, 4  ;;  %v563_v63 = vshll.u32 %v225_v38, 16  ;;  %v3550_v42 = vld [vmem:[%s3235_s4 + $0xb4] sm:$0xf] }
  0x4c   : > { %v542_v7 = vsel %vm3261_vm3, %v537_v50, %v541_v37  ;;  %v550_v5 = vor.u32 %v549_v52, %v546_v51  ;;  %v568_v15 = vshrl.u32 %v3535_v6, 16  ;;  %v571_v8 = vshll.u32 %v3535_v6, 16  ;;  %v3555_v50 = vld [vmem:[%s3235_s4 + $0xb8] sm:$0xf] }
  0x4d   : > { %2888 = vmatmul.mubr.msk.bf16.gmra.mrb[20].mxu1 %vm696_vm0, %v2546_v46  ;;  %v2547_v23 = vcombine.low %v532_v61, %v542_v7  ;;  %v560_v26 = vor.u32 %v559_v3, %v555_v2  ;;  %v565_v36 = vrot.slane %v563_v63, 5  ;;  %v577_v38 = vshll.u32 %v3542_v12, 16  ;;  %v227_v63 = vld [vmem:[%s3235_s4 + $0xbc] sm:$0x1] }
  0x4e   : > { %v551_v39 = vrot.slane %v550_v5, 4  ;;  %v570_v35 = vrot.slane %v568_v15, 4  ;;  %v573_v41 = vrot.slane %v571_v8, 5  ;;  %v581_v37 = vshrl.u32 %v3542_v12, 16  ;;  %v2683_v5 = vld [vmem:[%s3235_s4 + $0xc] sm:$0xf] }
  0x4f   : > { %2891 = vmatprep.mubr.msk.bf16.mxu1 %vm696_vm0, %v2547_v23  ;;  %v561_v43 = vrot.slane %v560_v26, 4  ;;  %v579_v44 = vrot.slane %v577_v38, 5  ;;  %v587_v46 = vshll.u32 %v226_v13, 16  ;;  %2976 = vmatmul.mubr.msk.bf16.gmra.mrb[28].mxu0 %vm696_vm0, %v3155_v57  ;;  %v592_v51 = vshrl.u32 %v3550_v42, 16 }
  0x50   : > { %v556_v52 = vsel %vm3261_vm3, %v551_v39, %v555_v2  ;;  %v574_v61 = vor.u32 %v573_v41, %v570_v35  ;;  %v583_v3 = vrot.slane %v581_v37, 4  ;;  %v595_v7 = vshll.u32 %v3550_v42, 16  ;;  %v2684_v2 = vld [vmem:[%s3235_s4 + $0x10] sm:$0xf] }
  0x51   : > { %v566_v15 = vsel %vm3261_vm3, %v561_v43, %v565_v36  ;;  %v589_v13 = vrot.slane %v587_v46, 5  ;;  %v594_v57 = vrot.slane %v592_v51, 4  ;;  %v601_v8 = vshll.u32 %v3555_v50, 16  ;;  %v2685_v51 = vld [vmem:[%s3235_s4 + $0x14] sm:$0x1] }
  0x52   : > { %v2548_v23 = vcombine.low %v556_v52, %v566_v15  ;;  %v575_v26 = vrot.slane %v574_v61, 4  ;;  %v584_v38 = vor.u32 %v583_v3, %v579_v44  ;;  %v597_v34 = vrot.slane %v595_v7, 5 }
  0x53   : > { %v603_v39 = vrot.slane %v601_v8, 5  ;;  %v605_v35 = vshrl.u32 %v3555_v50, 16  ;;  %v611_v41 = vshll.u32 %v227_v63, 16  ;;  %v1655_v37 = vshrl.u32 %v2683_v5, 16  ;;  %v2686_v8 = vld [vmem:[%s3235_s4 + $0x18] sm:$0xf] }
  0x54   : > { %v580_v36 = vsel %vm3261_vm3, %v575_v26, %v579_v44  ;;  %v585_v43 = vrot.slane %v584_v38, 4  ;;  %v598_v46 = vor.u32 %v597_v34, %v594_v57  ;;  %v1658_v52 = vshll.u32 %v2683_v5, 16  ;;  %v2688_v38 = vld [vmem:[%s3235_s4 + $0x20] sm:$0x1] }
  0x55   : > { %2892 = vmatmul.mubr.msk.bf16.gmra.mrb[24].mxu1 %vm696_vm0, %v2548_v23  ;;  %v607_v61 = vrot.slane %v605_v35, 4  ;;  %v613_v3 = vrot.slane %v611_v41, 5  ;;  %v1657_v7 = vrot.slane %v1655_v37, 4  ;;  %v1664_v15 = vshll.u32 %v2684_v2, 16  ;;  %v2687_v23 = vld [vmem:[%s3235_s4 + $0x1c] sm:$0xf] }
  0x56   : > { %v590_v63 = vsel %vm3261_vm3, %v585_v43, %v589_v13  ;;  %v599_v14 = vrot.slane %v598_v46, 4  ;;  %v1660_v56 = vrot.slane %v1658_v52, 5  ;;  %v1668_v27 = vshrl.u32 %v2684_v2, 16 }
  0x57   : > { %v2549_v62 = vcombine.low %v580_v36, %v590_v63  ;;  %v608_v54 = vor.u32 %v607_v61, %v603_v39  ;;  %v1666_v44 = vrot.slane %v1664_v15, 5  ;;  %v1674_v34 = vshll.u32 %v2685_v51, 16  ;;  %v2689_v51 = vld [vmem:[%s3235_s4 + $0x24] sm:$0xf]  ;;  %v2690_v61 = vld [vmem:[%s3235_s4 + $0x28] sm:$0xf] }
  0x58   : > { %v604_v5 = vsel %vm3261_vm3, %v599_v14, %v603_v39  ;;  %v1661_v57 = vor.u32 %v1660_v56, %v1657_v7  ;;  %v1670_v26 = vrot.slane %v1668_v27, 4  ;;  %v1679_v35 = vshrl.u32 %v2686_v8, 16 }
  0x59   : > { %2895 = vmatprep.mubr.msk.bf16.mxu1 %vm696_vm0, %v2549_v62  ;;  %v609_v13 = vrot.slane %v608_v54, 4  ;;  %v1676_v41 = vrot.slane %v1674_v34, 5  ;;  %v1682_v37 = vshll.u32 %v2686_v8, 16  ;;  %v1688_v2 = vshll.u32 %v2687_v23, 16  ;;  %v2691_v34 = vld [vmem:[%s3235_s4 + $0x2c] sm:$0x1] }
  0x5a   : > { %v1662_v43 = vrot.slane %v1661_v57, 4  ;;  %v1671_v36 = vor.u32 %v1670_v26, %v1666_v44  ;;  %v1681_v46 = vrot.slane %v1679_v35, 4  ;;  %v1692_v52 = vshrl.u32 %v2687_v23, 16  ;;  %v2692_v35 = vld [vmem:[%s3235_s4 + $0x30] sm:$0xf] }
  0x5b   : > { %v614_v14 = vsel %vm3261_vm3, %v609_v13, %v613_v3  ;;  %v1684_v56 = vrot.slane %v1682_v37, 5  ;;  %v1690_v27 = vrot.slane %v1688_v2, 5  ;;  %v1698_v39 = vshll.u32 %v2688_v38, 16 }
  0x5c   : > { %v2550_v7 = vcombine.low %v604_v5, %v614_v14  ;;  %v1667_v54 = vsel %vm3261_vm3, %v1662_v43, %v1666_v44  ;;  %v1672_v62 = vrot.slane %v1671_v36, 4  ;;  %v1694_v15 = vrot.slane %v1692_v52, 4  ;;  %v2693_v43 = vld [vmem:[%s3235_s4 + $0x34] sm:$0xf] }
  0x5d   : > { %v1685_v8 = vor.u32 %v1684_v56, %v1681_v46  ;;  %v1700_v63 = vrot.slane %v1698_v39, 5  ;;  %v1703_v23 = vshrl.u32 %v2689_v51, 16  ;;  %v1706_v57 = vshll.u32 %v2689_v51, 16  ;;  %v2694_v56 = vld [vmem:[%s3235_s4 + $0x38] sm:$0x1] }
  0x5e   : > { %2896 = vmatmul.mubr.msk.bf16.gmra.mrb[28].mxu1 %vm696_vm0, %v2550_v7  ;;  %v1677_v3 = vsel %vm3261_vm3, %v1672_v62, %v1676_v41  ;;  %v1695_v26 = vor.u32 %v1694_v15, %v1690_v27  ;;  %v1712_v38 = vshll.u32 %v2690_v61, 16  ;;  %v1716_v5 = vshrl.u32 %v2690_v61, 16 }
  0x5f   : > { %v2739_v13 = vcombine.low %v1667_v54, %v1677_v3  ;;  %2907 = vmatprep.mubr.msk.bf16.mxu1 %vm696_vm0, %v2571_v18  ;;  %v1686_v44 = vrot.slane %v1685_v8, 4  ;;  %v1705_v37 = vrot.slane %v1703_v23, 4  ;;  %v1708_v2 = vrot.slane %v1706_v57, 5  ;;  %v2695_v54 = vld [vmem:[%s3235_s4 + $0x3c] sm:$0xf] }
  0x60   : > { %v1696_v36 = vrot.slane %v1695_v26, 4  ;;  %v1714_v46 = vrot.slane %v1712_v38, 5  ;;  %v1718_v52 = vrot.slane %v1716_v5, 4  ;;  %v1722_v41 = vshll.u32 %v2691_v34, 16  ;;  %v2696_v23 = vld [vmem:[%s3235_s4 + $0x40] sm:$0xf] }
  0x61   : > { %2987 = vmatprep.mubr.msk.bf16.mxu0 %vm696_vm0, %v2739_v13  ;;  %v1691_v51 = vsel %vm3261_vm3, %v1686_v44, %v1690_v27  ;;  %v1709_v14 = vor.u32 %v1708_v2, %v1705_v37  ;;  %v1727_v9 = vshrl.u32 %v2692_v35, 16  ;;  %v1730_v10 = vshll.u32 %v2692_v35, 16  ;;  %v2697_v5 = vld [vmem:[%s3235_s4 + $0x44] sm:$0x1] }
  0x62   : > { %v1701_v18 = vsel %vm3261_vm3, %v1696_v36, %v1700_v63  ;;  %v1719_v39 = vor.u32 %v1718_v52, %v1714_v46  ;;  %v1724_v61 = vrot.slane %v1722_v41, 5  ;;  %v1736_v7 = vshll.u32 %v2693_v43, 16  ;;  %v2698_v36 = vld [vmem:[%s3235_s4 + $0x48] sm:$0xf] }
  0x63   : > { %v2740_v62 = vcombine.low %v1691_v51, %v1701_v18  ;;  %v1710_v15 = vrot.slane %v1709_v14, 4  ;;  %v1729_v8 = vrot.slane %v1727_v9, 4  ;;  %v1732_v34 = vrot.slane %v1730_v10, 5 }
  0x64   : > { %v1720_v57 = vrot.slane %v1719_v39, 4  ;;  %v1738_v27 = vrot.slane %v1736_v7, 5  ;;  %v1740_v3 = vshrl.u32 %v2693_v43, 16  ;;  %v1746_v26 = vshll.u32 %v2694_v56, 16  ;;  %v2700_v39 = vld [vmem:[%s3235_s4 + $0x50] sm:$0x1] }
  0x65   : > { %2988 = vmatmul.mubr.msk.bf16.vlgmr.msra.gmra.mrb[0].mxu0 %vm696_vm0, %v2740_v62  ;;  %v1715_v63 = vsel %vm3261_vm3, %v1710_v15, %v1714_v46  ;;  %v1733_v38 = vor.u32 %v1732_v34, %v1729_v8  ;;  %v1751_v35 = vshrl.u32 %v2695_v54, 16  ;;  %v1754_v13 = vshll.u32 %v2695_v54, 16 }
  0x66   : > { %2908 = vmatmul.mubr.msk.bf16.vlgmr.msra.gmra.mrb[0].mxu1 %vm696_vm0, %v2572_v40  ;;  %v1725_v44 = vsel %vm3261_vm3, %v1720_v57, %v1724_v61  ;;  %v1742_v37 = vrot.slane %v1740_v3, 4  ;;  %v1748_v2 = vrot.slane %v1746_v26, 5  ;;  %v1760_v43 = vshll.u32 %v2696_v23, 16  ;;  %v2701_v57 = vld [vmem:[%s3235_s4 + $0x54] sm:$0xf] }
  0x67   : > { %v2741_v52 = vcombine.low %v1715_v63, %v1725_v44  ;;  %v3877_v46 = vcombine.low %v3287_v45, %v3293_v49  ;;  %v1734_v41 = vrot.slane %v1733_v38, 4  ;;  %v1753_v51 = vrot.slane %v1751_v35, 4  ;;  %v2702_v38 = vld [vmem:[%s3235_s4 + $0x58] sm:$0xf] }
  0x68   : > { %v1756_v14 = vrot.slane %v1754_v13, 5  ;;  %v1743_v30 = vor.u32 %v1742_v37, %v1738_v27  ;;  %v1762_v40 = vrot.slane %v1760_v43, 5  ;;  %v1764_v56 = vshrl.u32 %v2696_v23, 16  ;;  %v2703_v37 = vld [vmem:[%s3235_s4 + $0x5c] sm:$0x1] }
  0x69   : > { %2911 = vmatprep.mubr.msk.bf16.mxu1 %vm696_vm0, %v3877_v46  ;;  %v1770_v9 = vshll.u32 %v2697_v5, 16  ;;  %2991 = vmatprep.mubr.msk.bf16.mxu0 %vm696_vm0, %v2741_v52  ;;  %v1739_v10 = vsel %vm3261_vm3, %v1734_v41, %v1738_v27  ;;  %v1775_v45 = vshrl.u32 %v2698_v36, 16  ;;  %v1778_v49 = vshll.u32 %v2698_v36, 16 }
  0x6a   : > { %v1757_v18 = vor.u32 %v1756_v14, %v1753_v51  ;;  %v1744_v61 = vrot.slane %v1743_v30, 4  ;;  %v1766_v7 = vrot.slane %v1764_v56, 4  ;;  %v1784_v62 = vshll.u32 %v2699_v29, 16 }
  0x6b   : > { %v1772_v54 = vrot.slane %v1770_v9, 5  ;;  %v1777_v8 = vrot.slane %v1775_v45, 4  ;;  %v1780_v34 = vrot.slane %v1778_v49, 5  ;;  %v1788_v23 = vshrl.u32 %v2699_v29, 16 }
  0x6c   : > { %v1758_v15 = vrot.slane %v1757_v18, 4  ;;  %v1749_v3 = vsel %vm3261_vm3, %v1744_v61, %v1748_v2  ;;  %v1767_v26 = vor.u32 %v1766_v7, %v1762_v40  ;;  %v1786_v27 = vrot.slane %v1784_v62, 5  ;;  %v2706_v7 = vld [vmem:[%s3235_s4 + $0x68] sm:$0x1] }
  0x6d   : > { %v1794_v63 = vshll.u32 %v2700_v39, 16  ;;  %v2742_v5 = vcombine.low %v1739_v10, %v1749_v3  ;;  %v1781_v13 = vor.u32 %v1780_v34, %v1777_v8  ;;  %v1790_v44 = vrot.slane %v1788_v23, 4  ;;  %v2705_v10 = vld [vmem:[%s3235_s4 + $0x64] sm:$0xf]  ;;  %v2707_v23 = vld [vmem:[%s3235_s4 + $0x6c] sm:$0xf] }
  0x6e   : > { %v1763_v35 = vsel %vm3261_vm3, %v1758_v15, %v1762_v40  ;;  %v3878_v43 = vcombine.low %v3303_v60, %v3307_v0  ;;  %v1768_v36 = vrot.slane %v1767_v26, 4  ;;  %v1799_v52 = vshrl.u32 %v2701_v57, 16  ;;  %v2704_v60 = vld [vmem:[%s3235_s4 + $0x60] sm:$0xf] }
  0x6f   : > { %v1796_v2 = vrot.slane %v1794_v63, 5  ;;  %v1802_v46 = vshll.u32 %v2701_v57, 16  ;;  %2992 = vmatmul.mubr.msk.bf16.gmra.mrb[4].mxu0 %vm696_vm0, %v2742_v5  ;;  %v3879_v41 = vcombine.low %v3320_v20, %v3323_v22  ;;  %v1782_v51 = vrot.slane %v1781_v13, 4  ;;  %v2708_v63 = vld [vmem:[%s3235_s4 + $0x70] sm:$0xf] }
  0x70   : > { %2912 = vmatmul.mubr.msk.bf16.gmra.mrb[4].mxu1 %vm696_vm0, %v3878_v43  ;;  %v1791_v14 = vor.u32 %v1790_v44, %v1786_v27  ;;  %v1808_v29 = vshll.u32 %v2702_v38, 16  ;;  %v1812_v30 = vshrl.u32 %v2702_v38, 16  ;;  %v1773_v0 = vsel %vm3261_vm3, %v1768_v36, %v1772_v54 }
  0x71   : > { %2915 = vmatprep.mubr.msk.bf16.mxu1 %vm696_vm0, %v3879_v41  ;;  %v1801_v40 = vrot.slane %v1799_v52, 4  ;;  %v1804_v56 = vrot.slane %v1802_v46, 5  ;;  %v1818_v9 = vshll.u32 %v2703_v37, 16  ;;  %v2743_v18 = vcombine.low %v1763_v35, %v1773_v0  ;;  %v2710_v0 = vld [vmem:[%s3235_s4 + $0x78] sm:$0xf] }
  0x72   : > { %v1787_v20 = vsel %vm3261_vm3, %v1782_v51, %v1786_v27  ;;  %v1792_v22 = vrot.slane %v1791_v14, 4  ;;  %v1810_v39 = vrot.slane %v1808_v29, 5  ;;  %v1814_v49 = vrot.slane %v1812_v30, 4 }
  0x73   : > { %v1805_v45 = vor.u32 %v1804_v56, %v1801_v40  ;;  %v1820_v61 = vrot.slane %v1818_v9, 5  ;;  %v1823_v62 = vshrl.u32 %v2704_v60, 16  ;;  %2995 = vmatprep.mubr.msk.bf16.mxu0 %vm696_vm0, %v2743_v18  ;;  %v1826_v15 = vshll.u32 %v2704_v60, 16 }
  0x74   : > { %v1797_v54 = vsel %vm3261_vm3, %v1792_v22, %v1796_v2  ;;  %v1832_v8 = vshll.u32 %v2705_v10, 16  ;;  %v1836_v34 = vshrl.u32 %v2705_v10, 16  ;;  %v1815_v26 = vor.u32 %v1814_v49, %v1810_v39  ;;  %v2711_v22 = vld [vmem:[%s3235_s4 + $0x7c] sm:$0xf]  ;;  %v2712_v49 = vld [vmem:[%s3235_s4 + $0x80] sm:$0x1] }
  0x75   : > { %v2744_v57 = vcombine.low %v1787_v20, %v1797_v54  ;;  %v1806_v3 = vrot.slane %v1805_v45, 4  ;;  %v1825_v27 = vrot.slane %v1823_v62, 4  ;;  %v1828_v38 = vrot.slane %v1826_v15, 5 }
  0x76   : > { %v1834_v5 = vrot.slane %v1832_v8, 5  ;;  %v1838_v35 = vrot.slane %v1836_v34, 4  ;;  %v1842_v13 = vshll.u32 %v2706_v7, 16  ;;  %v3880_v44 = vcombine.low %v3351_v58, %v3354_v59  ;;  %v2709_v58 = vld [vmem:[%s3235_s4 + $0x74] sm:$0x1] }
  0x77   : > { %v1811_v37 = vsel %vm3261_vm3, %v1806_v3, %v1810_v39  ;;  %v1816_v43 = vrot.slane %v1815_v26, 4  ;;  %v1847_v36 = vshrl.u32 %v2707_v23, 16  ;;  %v1850_v2 = vshll.u32 %v2707_v23, 16  ;;  %2996 = vmatmul.mubr.msk.bf16.gmra.mrb[8].mxu0 %vm696_vm0, %v2744_v57  ;;  %v2713_v34 = vld [vmem:[%s3235_s4 + $0x84] sm:$0xf] }
  0x78   : > { %2916 = vmatmul.mubr.msk.bf16.gmra.mrb[8].mxu1 %vm696_vm0, %v3880_v44  ;;  %v3881_v52 = vcombine.low %v3371_v16, %v3378_v25  ;;  %v1829_v46 = vor.u32 %v1828_v38, %v1825_v27  ;;  %v1839_v41 = vor.u32 %v1838_v35, %v1834_v5  ;;  %v1844_v51 = vrot.slane %v1842_v13, 5  ;;  %v2714_v3 = vld [vmem:[%s3235_s4 + $0x88] sm:$0xf] }
  0x79   : > { %v1856_v59 = vshll.u32 %v2708_v63, 16  ;;  %v1821_v14 = vsel %vm3261_vm3, %v1816_v43, %v1820_v61  ;;  %v1849_v29 = vrot.slane %v1847_v36, 4  ;;  %v1852_v30 = vrot.slane %v1850_v2, 5 }
  0x7a   : > { %2919 = vmatprep.mubr.msk.bf16.mxu1 %vm696_vm0, %v3881_v52  ;;  %v1860_v60 = vshrl.u32 %v2708_v63, 16  ;;  %v2745_v40 = vcombine.low %v1811_v37, %v1821_v14  ;;  %v1830_v56 = vrot.slane %v1829_v46, 4  ;;  %v1840_v9 = vrot.slane %v1839_v41, 4  ;;  %v2716_v52 = vld [vmem:[%s3235_s4 + $0x90] sm:$0xf] }
  0x7b   : > { %v1858_v16 = vrot.slane %v1856_v59, 5  ;;  %v1853_v25 = vor.u32 %v1852_v30, %v1849_v29  ;;  %v1866_v18 = vshll.u32 %v2709_v58, 16  ;;  %v2579_v20 = vcombine.low %v3408_v4, %v3415_v11  ;;  %v2717_v29 = vld [vmem:[%s3235_s4 + $0x94] sm:$0xf] }
  0x7c   : > { %v1862_v10 = vrot.slane %v1860_v60, 4  ;;  %2999 = vmatprep.mubr.msk.bf16.mxu0 %vm696_vm0, %v2745_v40  ;;  %v1835_v39 = vsel %vm3261_vm3, %v1830_v56, %v1834_v5  ;;  %v1845_v45 = vsel %vm3261_vm3, %v1840_v9, %v1844_v51  ;;  %v1871_v61 = vshrl.u32 %v2710_v0, 16 }
  0x7d   : > { %v1874_v7 = vshll.u32 %v2710_v0, 16  ;;  %v2746_v62 = vcombine.low %v1835_v39, %v1845_v45  ;;  %v1854_v54 = vrot.slane %v1853_v25, 4  ;;  %v1868_v8 = vrot.slane %v1866_v18, 5  ;;  %v2718_v25 = vld [vmem:[%s3235_s4 + $0x98] sm:$0x1] }
  0x7e   : > { %v1863_v15 = vor.u32 %v1862_v10, %v1858_v16  ;;  %v1873_v4 = vrot.slane %v1871_v61, 4  ;;  %v1880_v23 = vshll.u32 %v2711_v22, 16  ;;  %v1884_v57 = vshrl.u32 %v2711_v22, 16  ;;  %v2719_v45 = vld [vmem:[%s3235_s4 + $0x9c] sm:$0xf] }
  0x7f   : > { %v1876_v11 = vrot.slane %v1874_v7, 5  ;;  %v3882_v26 = vcombine.low %v3395_v47, %v3398_v48  ;;  %v1859_v27 = vsel %vm3261_vm3, %v1854_v54, %v1858_v16  ;;  %v1890_v38 = vshll.u32 %v2712_v49, 16  ;;  %3000 = vmatmul.mubr.msk.bf16.gmra.mrb[12].mxu0 %vm696_vm0, %v2746_v62  ;;  %v2715_v47 = vld [vmem:[%s3235_s4 + $0x8c] sm:$0x1]  ;;  %v2720_v7 = vld [vmem:[%s3235_s4 + $0xa0] sm:$0xf] }
  0x80   : > { %v1864_v63 = vrot.slane %v1863_v15, 4  ;;  %v2580_v5 = vcombine.low %v3437_v53, %v3440_v55  ;;  %v1882_v13 = vrot.slane %v1880_v23, 5  ;;  %v1886_v44 = vrot.slane %v1884_v57, 4 }
  0x81   : > { %2920 = vmatmul.mubr.msk.bf16.gmra.mrb[12].mxu1 %vm696_vm0, %v3882_v26  ;;  %v1877_v35 = vor.u32 %v1876_v11, %v1873_v4  ;;  %v1895_v48 = vshrl.u32 %v2713_v34, 16  ;;  %v1892_v43 = vrot.slane %v1890_v38, 5  ;;  %v1898_v36 = vshll.u32 %v2713_v34, 16  ;;  %v2721_v26 = vld [vmem:[%s3235_s4 + $0xa4] sm:$0x1] }
  0x82   : > { %2923 = vmatprep.mubr.msk.bf16.mxu1 %vm696_vm0, %v2579_v20  ;;  %v1869_v37 = vsel %vm3261_vm3, %v1864_v63, %v1868_v8  ;;  %v1904_v2 = vshll.u32 %v2714_v3, 16  ;;  %v1887_v53 = vor.u32 %v1886_v44, %v1882_v13  ;;  %v1908_v59 = vshrl.u32 %v2714_v3, 16 }
  0x83   : > { %v2747_v46 = vcombine.low %v1859_v27, %v1869_v37  ;;  %v1878_v41 = vrot.slane %v1877_v35, 4  ;;  %v1897_v55 = vrot.slane %v1895_v48, 4  ;;  %v1900_v51 = vrot.slane %v1898_v36, 5  ;;  %v2722_v35 = vld [vmem:[%s3235_s4 + $0xa8] sm:$0xf] }
  0x84   : > { %v1906_v58 = vrot.slane %v1904_v2, 5  ;;  %v1914_v14 = vshll.u32 %v2715_v47, 16  ;;  %v1888_v60 = vrot.slane %v1887_v53, 4  ;;  %v2581_v0 = vcombine.low %v3457_v19, %v3460_v31  ;;  %v2723_v37 = vld [vmem:[%s3235_s4 + $0xac] sm:$0xf] }
  0x85   : > { %3003 = vmatprep.mubr.msk.bf16.mxu0 %vm696_vm0, %v2747_v46  ;;  %v1883_v30 = vsel %vm3261_vm3, %v1878_v41, %v1882_v13  ;;  %v1919_v40 = vshrl.u32 %v2716_v52, 16  ;;  %v1901_v56 = vor.u32 %v1900_v51, %v1897_v55  ;;  %v1910_v9 = vrot.slane %v1908_v59, 4  ;;  %v2724_v53 = vld [vmem:[%s3235_s4 + $0xb0] sm:$0x1] }
  0x86   : > { %v1916_v16 = vrot.slane %v1914_v14, 5  ;;  %v1922_v10 = vshll.u32 %v2716_v52, 16  ;;  %v1893_v18 = vsel %vm3261_vm3, %v1888_v60, %v1892_v43  ;;  %v1928_v22 = vshll.u32 %v2717_v29, 16 }
  0x87   : > { %v1921_v20 = vrot.slane %v1919_v40, 4  ;;  %v1932_v39 = vshrl.u32 %v2717_v29, 16  ;;  %v2748_v49 = vcombine.low %v1883_v30, %v1893_v18  ;;  %v1902_v61 = vrot.slane %v1901_v56, 4  ;;  %v2725_v30 = vld [vmem:[%s3235_s4 + $0xb4] sm:$0xf] }
  0x88   : > { %v1911_v19 = vor.u32 %v1910_v9, %v1906_v58  ;;  %v1924_v31 = vrot.slane %v1922_v10, 5  ;;  %v1930_v62 = vrot.slane %v1928_v22, 5  ;;  %v1938_v15 = vshll.u32 %v2718_v25, 16  ;;  %v2726_v40 = vld [vmem:[%s3235_s4 + $0xb8] sm:$0xf] }
  0x89   : > { %2924 = vmatmul.mubr.msk.bf16.gmra.mrb[16].mxu1 %vm696_vm0, %v2580_v5  ;;  %v1934_v54 = vrot.slane %v1932_v39, 4  ;;  %v2582_v8 = vcombine.low %v3474_v17, %v3478_v1  ;;  %3004 = vmatmul.mubr.msk.bf16.gmra.mrb[16].mxu0 %vm696_vm0, %v2748_v49  ;;  %v1907_v34 = vsel %vm3261_vm3, %v1902_v61, %v1906_v58  ;;  %v1943_v23 = vshrl.u32 %v2719_v45, 16  ;;  %v2727_v22 = vld [vmem:[%s3235_s4 + $0xbc] sm:$0x1] }
  0x8a   : > { %2927 = vmatprep.mubr.msk.bf16.mxu1 %vm696_vm0, %v2581_v0  ;;  %v1912_v4 = vrot.slane %v1911_v19, 4  ;;  %v1925_v11 = vor.u32 %v1924_v31, %v1921_v20  ;;  %v1940_v3 = vrot.slane %v1938_v15, 5  ;;  %v1946_v27 = vshll.u32 %v2719_v45, 16  ;;  %v2728_v31 = vld [vmem:[%s3235_s4 + $0xc0] sm:$0xf] }
  0x8b   : > { %v1935_v57 = vor.u32 %v1934_v54, %v1930_v62  ;;  %v1952_v63 = vshll.u32 %v2720_v7, 16  ;;  %v1945_v17 = vrot.slane %v1943_v23, 4  ;;  %v1956_v1 = vshrl.u32 %v2720_v7, 16 }
  0x8c   : > { %v1917_v38 = vsel %vm3261_vm3, %v1912_v4, %v1916_v16  ;;  %v1926_v5 = vrot.slane %v1925_v11, 4  ;;  %v1948_v47 = vrot.slane %v1946_v27, 5  ;;  %v1962_v2 = vshll.u32 %v2721_v26, 16  ;;  %v2729_v4 = vld [vmem:[%s3235_s4 + $0xc4] sm:$0xf] }
  0x8d   : > { %v2749_v13 = vcombine.low %v1907_v34, %v1917_v38  ;;  %v1936_v44 = vrot.slane %v1935_v57, 4  ;;  %v1954_v48 = vrot.slane %v1952_v63, 5  ;;  %v1958_v36 = vrot.slane %v1956_v1, 4  ;;  %v2730_v38 = vld [vmem:[%s3235_s4 + $0xc8] sm:$0x1] }
  0x8e   : > { %v1931_v43 = vsel %vm3261_vm3, %v1926_v5, %v1930_v62  ;;  %v2583_v52 = vcombine.low %v3492_v32, %v3495_v24  ;;  %v1949_v41 = vor.u32 %v1948_v47, %v1945_v17  ;;  %v1967_v55 = vshrl.u32 %v2722_v35, 16 }
  0x8f   : > { %3007 = vmatprep.mubr.msk.bf16.mxu0 %vm696_vm0, %v2749_v13  ;;  %v1941_v46 = vsel %vm3261_vm3, %v1936_v44, %v1940_v3  ;;  %v1970_v51 = vshll.u32 %v2722_v35, 16  ;;  %v1959_v59 = vor.u32 %v1958_v36, %v1954_v48  ;;  %v1964_v14 = vrot.slane %v1962_v2, 5 }
  0x90   : > { %v2750_v58 = vcombine.low %v1931_v43, %v1941_v46  ;;  %v1976_v29 = vshll.u32 %v2723_v37, 16  ;;  %v1950_v60 = vrot.slane %v1949_v41, 4  ;;  %v1969_v32 = vrot.slane %v1967_v55, 4 }
  0x91   : > { %2928 = vmatmul.mubr.msk.bf16.gmra.mrb[20].mxu1 %vm696_vm0, %v2582_v8  ;;  %v1972_v24 = vrot.slane %v1970_v51, 5  ;;  %v1980_v0 = vshrl.u32 %v2723_v37, 16  ;;  %v1960_v56 = vrot.slane %v1959_v59, 4  ;;  %v1986_v16 = vshll.u32 %v2724_v53, 16 }
  0x92   : > { %2931 = vmatprep.mubr.msk.bf16.mxu1 %vm696_vm0, %v2583_v52  ;;  %3008 = vmatmul.mubr.msk.bf16.gmra.mrb[20].mxu0 %vm696_vm0, %v2750_v58  ;;  %v1978_v9 = vrot.slane %v1976_v29, 5  ;;  %v2584_v25 = vcombine.low %v3517_v28, %v3520_v33  ;;  %v1955_v10 = vsel %vm3261_vm3, %v1950_v60, %v1954_v48  ;;  %v1991_v39 = vshrl.u32 %v2725_v30, 16  ;;  %v3764_v60 = vld [vmem:[%s3873_s2] ss:$0 sm:$0xff] }
  0x93   : > { %v1973_v18 = vor.u32 %v1972_v24, %v1969_v32  ;;  %v1982_v20 = vrot.slane %v1980_v0, 4  ;;  %v1965_v45 = vsel %vm3261_vm3, %v1960_v56, %v1964_v14  ;;  %v1988_v49 = vrot.slane %v1986_v16, 5 }
  0x94   : > { %v1994_v61 = vshll.u32 %v2725_v30, 16  ;;  %v2000_v19 = vshll.u32 %v2726_v40, 16  ;;  %v2751_v7 = vcombine.low %v1955_v10, %v1965_v45  ;;  %v1993_v28 = vrot.slane %v1991_v39, 4 }
  0x95   : > { %v1974_v62 = vrot.slane %v1973_v18, 4  ;;  %v1983_v54 = vor.u32 %v1982_v20, %v1978_v9  ;;  %v2004_v8 = vshrl.u32 %v2726_v40, 16  ;;  %v2010_v34 = vshll.u32 %v2727_v22, 16 }
  0x96   : > { %v1996_v33 = vrot.slane %v1994_v61, 5  ;;  %v2002_v15 = vrot.slane %v2000_v19, 5  ;;  %3011 = vmatprep.mubr.msk.bf16.mxu0 %vm696_vm0, %v2751_v7  ;;  %v2585_v57 = vcombine.low %v3535_v6, %v3542_v12  ;;  %v2015_v3 = vshrl.u32 %v2728_v31, 16 }
  0x97   : > { %v1979_v11 = vsel %vm3261_vm3, %v1974_v62, %v1978_v9  ;;  %v1984_v23 = vrot.slane %v1983_v54, 4  ;;  %v2006_v27 = vrot.slane %v2004_v8, 4  ;;  %v2012_v63 = vrot.slane %v2010_v34, 5 }
  0x98   : > { %v1997_v26 = vor.u32 %v1996_v33, %v1993_v28  ;;  %v2018_v5 = vshll.u32 %v2728_v31, 16  ;;  %v2017_v1 = vrot.slane %v2015_v3, 4  ;;  %v2024_v35 = vshll.u32 %v2729_v4, 16 }
  0x99   : > { %2932 = vmatmul.mubr.msk.bf16.gmra.mrb[24].mxu1 %vm696_vm0, %v2584_v25  ;;  %v1989_v17 = vsel %vm3261_vm3, %v1984_v23, %v1988_v49  ;;  %v2028_v13 = vshrl.u32 %v2729_v4, 16  ;;  %v2007_v48 = vor.u32 %v2006_v27, %v2002_v15  ;;  %v2034_v43 = vshll.u32 %v2730_v38, 16 }
  0x9a   : > { %2935 = vmatprep.mubr.msk.bf16.mxu1 %vm696_vm0, %v2585_v57  ;;  %v2752_v44 = vcombine.low %v1979_v11, %v1989_v17  ;;  %v1998_v47 = vrot.slane %v1997_v26, 4  ;;  %v2020_v6 = vrot.slane %v2018_v5, 5  ;;  %v2026_v12 = vrot.slane %v2024_v35, 5 }
  0x9b   : > { %v2030_v37 = vrot.slane %v2028_v13, 4  ;;  %v2008_v2 = vrot.slane %v2007_v48, 4  ;;  %v2586_v46 = vcombine.low %v3550_v42, %v3555_v50  ;;  %v2036_v53 = vrot.slane %v2034_v43, 5 }
  0x9c   : > { %3012 = vmatmul.mubr.msk.bf16.gmra.mrb[24].mxu0 %vm696_vm0, %v2752_v44  ;;  %v2003_v36 = vsel %vm3261_vm3, %v1998_v47, %v2002_v15  ;;  %v2021_v52 = vor.u32 %v2020_v6, %v2017_v1 }
  0x9d   : > { %v2031_v41 = vor.u32 %v2030_v37, %v2026_v12  ;;  %v2013_v55 = vsel %vm3261_vm3, %v2008_v2, %v2012_v63 }
  0x9e   : > { %v2022_v51 = vrot.slane %v2021_v52, 4  ;;  %v2753_v58 = vcombine.low %v2003_v36, %v2013_v55 }
  0x9f   : > { %v2032_v59 = vrot.slane %v2031_v41, 4 }
  0xa0   : > { %v2027_v14 = vsel %vm3261_vm3, %v2022_v51, %v2026_v12  ;;  %3015 = vmatprep.mubr.msk.bf16.mxu0 %vm696_vm0, %v2753_v58 }
  0xa1   : > { %2936 = vmatmul.mubr.msk.bf16.gmra.mrb[28].mxu1 %vm696_vm0, %v2586_v46  ;;  %v2037_v29 = vsel %vm3261_vm3, %v2032_v59, %v2036_v53 }
  0xa2   : > { %v2754_v42 = vcombine.low %v2027_v14, %v2037_v29 }
  0xa4   : > { %3016 = vmatmul.mubr.msk.bf16.gmra.mrb[28].mxu0 %vm696_vm0, %v2754_v42 }
 0x138   : > { %v2989_v50 = vpop.f32.mrb[0].mxu0 }
 0x139   : > { %v2909_v30 = vpop.f32.mrb[0].mxu1  ;;  %v2201_v32 = vpop.f32.mrb[1].mxu0 }
 0x13a   : > { %v3019_v24 = vadd.f32 %v2989_v50, %v2909_v30  ;;  %v1092_v0 = vpop.f32.mrb[1].mxu1  ;;  %v2990_v40 = vpop.f32.mrb[2].mxu0 }
 0x13b   : > { %v3020_v56 = vadd.f32 %v2201_v32, %v1092_v0  ;;  %v2910_v9 = vpop.f32.mrb[2].mxu1  ;;  %v2204_v16 = vpop.f32.mrb[3].mxu0 }
 0x13c   : > { %v2369_v21 = vadd.f32 %v3019_v24, %v3764_v60  ;;  %v3021_v25 = vadd.f32 %v2990_v40, %v2910_v9  ;;  %v1095_v10 = vpop.f32.mrb[3].mxu1 }
 0x13d   : > { %v2367_v18 = vadd.f32 %v3020_v56, %v3764_v60  ;;  %v3022_v20 = vadd.f32 %v2204_v16, %v1095_v10 }
 0x13e   : > { %v2401_v22 = vmax.f32 %v2369_v21, 0.0  ;;  %v2370_v39 = vadd.f32 %v3021_v25, %v3764_v60 }
 0x13f   : > { %v2399_v45 = vmax.f32 %v2367_v18, 0.0  ;;  %v2368_v49 = vadd.f32 %v3022_v20, %v3764_v60 }
 0x140   : > { %2434 = vst.msk [vmem:[%s3771_s30 + $0x10] sm:$0xff] %vm2431_vm4, %v2401_v22  ;;  %v2402_v61 = vmax.f32 %v2370_v39, 0.0 }
 0x141   : > { %2432 = vst.msk [vmem:[%s3771_s30] sm:$0xff] %vm2431_vm4, %v2399_v45  ;;  %v2400_v19 = vmax.f32 %v2368_v49, 0.0 }
 0x142   : > { %2435 = vst.msk [vmem:[%s3771_s30 + $0x18] sm:$0xff] %vm2431_vm4, %v2402_v61  ;;  %v2993_v7 = vpop.f32.mrb[4].mxu0 }
 0x143   : > { %v2913_v31 = vpop.f32.mrb[4].mxu1  ;;  %2433 = vst.msk [vmem:[%s3771_s30 + $0x8] sm:$0xff] %vm2431_vm4, %v2400_v19  ;;  %v2217_v28 = vpop.f32.mrb[5].mxu0 }
 0x144   : > { %v1108_v62 = vpop.f32.mrb[5].mxu1  ;;  %v3023_v54 = vadd.f32 %v2993_v7, %v2913_v31  ;;  %v2994_v8 = vpop.f32.mrb[6].mxu0 }
 0x145   : > { %v2914_v33 = vpop.f32.mrb[6].mxu1  ;;  %v3024_v15 = vadd.f32 %v2217_v28, %v1108_v62  ;;  %v2220_v23 = vpop.f32.mrb[7].mxu0 }
 0x146   : > { %v1111_v34 = vpop.f32.mrb[7].mxu1  ;;  %v2373_v4 = vadd.f32 %v3023_v54, %v3764_v60  ;;  %v3025_v11 = vadd.f32 %v2994_v8, %v2914_v33 }
 0x147   : > { %v2371_v57 = vadd.f32 %v3024_v15, %v3764_v60  ;;  %v3026_v3 = vadd.f32 %v2220_v23, %v1111_v34 }
 0x148   : > { %v2405_v26 = vmax.f32 %v2373_v4, 0.0  ;;  %v2374_v27 = vadd.f32 %v3025_v11, %v3764_v60 }
 0x149   : > { %v2403_v63 = vmax.f32 %v2371_v57, 0.0  ;;  %v2372_v38 = vadd.f32 %v3026_v3, %v3764_v60 }
 0x14a   : > { %2438 = vst.msk [vmem:[%s3771_s30 + $0x30] sm:$0xff] %vm2431_vm4, %v2405_v26  ;;  %v2406_v5 = vmax.f32 %v2374_v27, 0.0  ;;  %v2997_v35 = vpop.f32.mrb[8].mxu0 }
 0x14b   : > { %v2917_v17 = vpop.f32.mrb[8].mxu1  ;;  %2436 = vst.msk [vmem:[%s3771_s30 + $0x20] sm:$0xff] %vm2431_vm4, %v2403_v63  ;;  %v2404_v1 = vmax.f32 %v2372_v38, 0.0  ;;  %v2233_v47 = vpop.f32.mrb[9].mxu0 }
 0x14c   : > { %v1124_v13 = vpop.f32.mrb[9].mxu1  ;;  %2439 = vst.msk [vmem:[%s3771_s30 + $0x38] sm:$0xff] %vm2431_vm4, %v2406_v5  ;;  %v3027_v44 = vadd.f32 %v2997_v35, %v2917_v17  ;;  %v2998_v12 = vpop.f32.mrb[10].mxu0 }
 0x14d   : > { %v2918_v48 = vpop.f32.mrb[10].mxu1  ;;  %2437 = vst.msk [vmem:[%s3771_s30 + $0x28] sm:$0xff] %vm2431_vm4, %v2404_v1  ;;  %v3028_v6 = vadd.f32 %v2233_v47, %v1124_v13  ;;  %v2236_v2 = vpop.f32.mrb[11].mxu0 }
 0x14e   : > { %v1127_v37 = vpop.f32.mrb[11].mxu1  ;;  %v2377_v43 = vadd.f32 %v3027_v44, %v3764_v60  ;;  %v3029_v36 = vadd.f32 %v2998_v12, %v2918_v48 }
 0x14f   : > { %v2375_v52 = vadd.f32 %v3028_v6, %v3764_v60  ;;  %v3030_v46 = vadd.f32 %v2236_v2, %v1127_v37 }
 0x150   : > { %v2409_v41 = vmax.f32 %v2377_v43, 0.0  ;;  %v2378_v53 = vadd.f32 %v3029_v36, %v3764_v60 }
 0x151   : > { %v2407_v55 = vmax.f32 %v2375_v52, 0.0  ;;  %v2376_v51 = vadd.f32 %v3030_v46, %v3764_v60 }
 0x152   : > { %2442 = vst.msk [vmem:[%s3771_s30 + $0x50] sm:$0xff] %vm2431_vm4, %v2409_v41  ;;  %v2410_v58 = vmax.f32 %v2378_v53, 0.0  ;;  %v3001_v29 = vpop.f32.mrb[12].mxu0 }
 0x153   : > { %2440 = vst.msk [vmem:[%s3771_s30 + $0x40] sm:$0xff] %vm2431_vm4, %v2407_v55  ;;  %v2408_v14 = vmax.f32 %v2376_v51, 0.0  ;;  %v2249_v30 = vpop.f32.mrb[13].mxu0 }
 0x154   : > { %v2921_v59 = vpop.f32.mrb[12].mxu1  ;;  %2443 = vst.msk [vmem:[%s3771_s30 + $0x58] sm:$0xff] %vm2431_vm4, %v2410_v58  ;;  %v3002_v0 = vpop.f32.mrb[14].mxu0 }
 0x155   : > { %v1140_v42 = vpop.f32.mrb[13].mxu1  ;;  %v3031_v50 = vadd.f32 %v3001_v29, %v2921_v59  ;;  %2441 = vst.msk [vmem:[%s3771_s30 + $0x48] sm:$0xff] %vm2431_vm4, %v2408_v14  ;;  %v2252_v16 = vpop.f32.mrb[15].mxu0 }
 0x156   : > { %v2922_v32 = vpop.f32.mrb[14].mxu1  ;;  %v3032_v24 = vadd.f32 %v2249_v30, %v1140_v42 }
 0x157   : > { %v1143_v40 = vpop.f32.mrb[15].mxu1  ;;  %v2381_v56 = vadd.f32 %v3031_v50, %v3764_v60  ;;  %v3033_v9 = vadd.f32 %v3002_v0, %v2922_v32 }
 0x158   : > { %v2379_v21 = vadd.f32 %v3032_v24, %v3764_v60  ;;  %v3034_v25 = vadd.f32 %v2252_v16, %v1143_v40 }
 0x159   : > { %v2413_v10 = vmax.f32 %v2381_v56, 0.0  ;;  %v2382_v18 = vadd.f32 %v3033_v9, %v3764_v60 }
 0x15a   : > { %v2411_v20 = vmax.f32 %v2379_v21, 0.0  ;;  %v2380_v22 = vadd.f32 %v3034_v25, %v3764_v60 }
 0x15b   : > { %2446 = vst.msk [vmem:[%s3771_s30 + $0x70] sm:$0xff] %vm2431_vm4, %v2413_v10  ;;  %v2414_v39 = vmax.f32 %v2382_v18, 0.0 }
 0x15c   : > { %v2925_v45 = vpop.f32.mrb[16].mxu1  ;;  %2444 = vst.msk [vmem:[%s3771_s30 + $0x60] sm:$0xff] %vm2431_vm4, %v2411_v20  ;;  %v2412_v49 = vmax.f32 %v2380_v22, 0.0  ;;  %v3005_v19 = vpop.f32.mrb[16].mxu0 }
 0x15d   : > { %v1156_v61 = vpop.f32.mrb[17].mxu1  ;;  %2447 = vst.msk [vmem:[%s3771_s30 + $0x78] sm:$0xff] %vm2431_vm4, %v2414_v39  ;;  %v3035_v7 = vadd.f32 %v3005_v19, %v2925_v45  ;;  %v2265_v62 = vpop.f32.mrb[17].mxu0 }
 0x15e   : > { %v2926_v31 = vpop.f32.mrb[18].mxu1  ;;  %2445 = vst.msk [vmem:[%s3771_s30 + $0x68] sm:$0xff] %vm2431_vm4, %v2412_v49  ;;  %v3036_v28 = vadd.f32 %v2265_v62, %v1156_v61  ;;  %v3006_v33 = vpop.f32.mrb[18].mxu0 }
 0x15f   : > { %v1159_v54 = vpop.f32.mrb[19].mxu1  ;;  %v2385_v15 = vadd.f32 %v3035_v7, %v3764_v60  ;;  %v3037_v8 = vadd.f32 %v3006_v33, %v2926_v31  ;;  %v2268_v34 = vpop.f32.mrb[19].mxu0 }
 0x160   : > { %v2383_v4 = vadd.f32 %v3036_v28, %v3764_v60  ;;  %v3038_v11 = vadd.f32 %v2268_v34, %v1159_v54 }
 0x161   : > { %v2417_v23 = vmax.f32 %v2385_v15, 0.0  ;;  %v2386_v57 = vadd.f32 %v3037_v8, %v3764_v60 }
 0x162   : > { %v2415_v3 = vmax.f32 %v2383_v4, 0.0  ;;  %v2384_v26 = vadd.f32 %v3038_v11, %v3764_v60 }
 0x163   : > { %2450 = vst.msk [vmem:[%s3771_s30 + $0x90] sm:$0xff] %vm2431_vm4, %v2417_v23  ;;  %v2418_v63 = vmax.f32 %v2386_v57, 0.0 }
 0x164   : > { %v2929_v27 = vpop.f32.mrb[20].mxu1  ;;  %2448 = vst.msk [vmem:[%s3771_s30 + $0x80] sm:$0xff] %vm2431_vm4, %v2415_v3  ;;  %v2416_v5 = vmax.f32 %v2384_v26, 0.0 }
 0x165   : > { %v1172_v38 = vpop.f32.mrb[21].mxu1  ;;  %v3009_v17 = vpop.f32.mrb[20].mxu0  ;;  %2451 = vst.msk [vmem:[%s3771_s30 + $0x98] sm:$0xff] %vm2431_vm4, %v2418_v63 }
 0x166   : > { %v2930_v1 = vpop.f32.mrb[22].mxu1  ;;  %v3039_v35 = vadd.f32 %v3009_v17, %v2929_v27  ;;  %v2281_v13 = vpop.f32.mrb[21].mxu0  ;;  %2449 = vst.msk [vmem:[%s3771_s30 + $0x88] sm:$0xff] %vm2431_vm4, %v2416_v5 }
 0x167   : > { %v1175_v44 = vpop.f32.mrb[23].mxu1  ;;  %v3040_v47 = vadd.f32 %v2281_v13, %v1172_v38  ;;  %v3010_v48 = vpop.f32.mrb[22].mxu0 }
 0x168   : > { %v2389_v6 = vadd.f32 %v3039_v35, %v3764_v60  ;;  %v3041_v12 = vadd.f32 %v3010_v48, %v2930_v1  ;;  %v2284_v37 = vpop.f32.mrb[23].mxu0 }
 0x169   : > { %v2387_v43 = vadd.f32 %v3040_v47, %v3764_v60  ;;  %v3042_v36 = vadd.f32 %v2284_v37, %v1175_v44 }
 0x16a   : > { %v2421_v2 = vmax.f32 %v2389_v6, 0.0  ;;  %v2390_v52 = vadd.f32 %v3041_v12, %v3764_v60 }
 0x16b   : > { %v2419_v46 = vmax.f32 %v2387_v43, 0.0  ;;  %v2388_v41 = vadd.f32 %v3042_v36, %v3764_v60 }
 0x16c   : > { %v2933_v53 = vpop.f32.mrb[24].mxu1  ;;  %2454 = vst.msk [vmem:[%s3771_s30 + $0xb0] sm:$0xff] %vm2431_vm4, %v2421_v2  ;;  %v2422_v55 = vmax.f32 %v2390_v52, 0.0 }
 0x16d   : > { %v1188_v51 = vpop.f32.mrb[25].mxu1  ;;  %2452 = vst.msk [vmem:[%s3771_s30 + $0xa0] sm:$0xff] %vm2431_vm4, %v2419_v46  ;;  %v2420_v58 = vmax.f32 %v2388_v41, 0.0 }
 0x16e   : > { %v2934_v59 = vpop.f32.mrb[26].mxu1  ;;  %2455 = vst.msk [vmem:[%s3771_s30 + $0xb8] sm:$0xff] %vm2431_vm4, %v2422_v55 }
 0x16f   : > { %v1191_v14 = vpop.f32.mrb[27].mxu1  ;;  %2453 = vst.msk [vmem:[%s3771_s30 + $0xa8] sm:$0xff] %vm2431_vm4, %v2420_v58  ;;  %v3013_v29 = vpop.f32.mrb[24].mxu0 }
 0x170   : > { %v3043_v42 = vadd.f32 %v3013_v29, %v2933_v53  ;;  %v2297_v50 = vpop.f32.mrb[25].mxu0 }
 0x171   : > { %v3044_v30 = vadd.f32 %v2297_v50, %v1188_v51  ;;  %v3014_v32 = vpop.f32.mrb[26].mxu0 }
 0x172   : > { %v2393_v24 = vadd.f32 %v3043_v42, %v3764_v60  ;;  %v3045_v0 = vadd.f32 %v3014_v32, %v2934_v59  ;;  %v2300_v40 = vpop.f32.mrb[27].mxu0 }
 0x173   : > { %v2391_v56 = vadd.f32 %v3044_v30, %v3764_v60  ;;  %v3046_v9 = vadd.f32 %v2300_v40, %v1191_v14 }
 0x174   : > { %v2937_v16 = vpop.f32.mrb[28].mxu1  ;;  %v2425_v21 = vmax.f32 %v2393_v24, 0.0  ;;  %v2394_v25 = vadd.f32 %v3045_v0, %v3764_v60 }
 0x175   : > { %v1204_v10 = vpop.f32.mrb[29].mxu1  ;;  %v2423_v18 = vmax.f32 %v2391_v56, 0.0  ;;  %v2392_v20 = vadd.f32 %v3046_v9, %v3764_v60 }
 0x176   : > { %v2938_v22 = vpop.f32.mrb[30].mxu1  ;;  %2458 = vst.msk [vmem:[%s3771_s30 + $0xd0] sm:$0xff] %vm2431_vm4, %v2425_v21  ;;  %v2426_v39 = vmax.f32 %v2394_v25, 0.0 }
 0x177   : > { %v1207_v45 = vpop.f32.mrb[31].mxu1  ;;  %2456 = vst.msk [vmem:[%s3771_s30 + $0xc0] sm:$0xff] %vm2431_vm4, %v2423_v18  ;;  %v2424_v49 = vmax.f32 %v2392_v20, 0.0  ;;  %v3017_v61 = vpop.f32.mrb[28].mxu0 }
 0x178   : > { %2459 = vst.msk [vmem:[%s3771_s30 + $0xd8] sm:$0xff] %vm2431_vm4, %v2426_v39  ;;  %v3047_v19 = vadd.f32 %v3017_v61, %v2937_v16  ;;  %v2313_v31 = vpop.f32.mrb[29].mxu0 }
 0x179   : > { %2457 = vst.msk [vmem:[%s3771_s30 + $0xc8] sm:$0xff] %vm2431_vm4, %v2424_v49  ;;  %v3048_v7 = vadd.f32 %v2313_v31, %v1204_v10  ;;  %v3018_v62 = vpop.f32.mrb[30].mxu0 }
 0x17a   : > { %v2397_v54 = vadd.f32 %v3047_v19, %v3764_v60  ;;  %v3049_v28 = vadd.f32 %v3018_v62, %v2938_v22  ;;  %v2316_v33 = vpop.f32.mrb[31].mxu0 }
 0x17b   : > { %v2395_v15 = vadd.f32 %v3048_v7, %v3764_v60  ;;  %v3050_v8 = vadd.f32 %v2316_v33, %v1207_v45 }
 0x17c   : > { %v2429_v34 = vmax.f32 %v2397_v54, 0.0  ;;  %v2398_v4 = vadd.f32 %v3049_v28, %v3764_v60 }
 0x17d   : > { %v2427_v11 = vmax.f32 %v2395_v15, 0.0  ;;  %v2396_v23 = vadd.f32 %v3050_v8, %v3764_v60 }
 0x17e   : > { %2462 = vst.msk [vmem:[%s3771_s30 + $0xf0] sm:$0xff] %vm2431_vm4, %v2429_v34  ;;  %v2430_v57 = vmax.f32 %v2398_v4, 0.0 }
 0x17f   : > { %2460 = vst.msk [vmem:[%s3771_s30 + $0xe0] sm:$0xff] %vm2431_vm4, %v2427_v11  ;;  %v2428_v3 = vmax.f32 %v2396_v23, 0.0 }
 0x180   : > { %2463 = vst.msk [vmem:[%s3771_s30 + $0xf8] sm:$0xff] %vm2431_vm4, %v2430_v57 }
 0x181   : > { %2461 = vst.msk [vmem:[%s3771_s30 + $0xe8] sm:$0xff] %vm2431_vm4, %v2428_v3 }
 0x182 PF: > { %s13_s12 = sadd.s32 1, %s3178_s12  }
 0x183   : > { %p10_p4 = scmp.ge.s32.totalorder %s13_s12, 4  }
 0x185   :  { %12 = sbr.rel (!%p10_p4) target bundleno = 1 (0x1), region = 66 }

// kernel: basenet_forward.7
= control target key start
LH: loop header
LB: loop body
LE: loop exit
PB: predicated region body
PF: predicated region fallthrough
CT: control target
= control target key end

     0   :  { %s1336_s12 = smov 0   ;;  %s1568_s0 = inlined_call_operand.vmem [shape: bf16[2,9,9,64], index: 0, kind: input, shape index: {}]   ;;  %s1569_s1 = inlined_call_operand.vmem [shape: bf16[4,64,32], index: 1, kind: input, shape index: {}]   ;;  %s1570_s2 = inlined_call_operand.vmem [shape: f32[1,32], index: 2, kind: input, shape index: {}]   ;;  %s1571_s3 = inlined_call_operand.vmem [shape: f32[2,8,8,32], index: 3, kind: output, shape index: {}]  }
   0x1 LB: > { %s1047_s13 = sadd.s32 4294967295, %s1314_s12   ;;  %p1051_p0 = scmp.ge.s32.totalorder %s1314_s12, 1  ;;  %s1314_s12 = sphi %s1336_s12, %s13_s12  }
   0x2   : > { %p137_p1 = scmp.lt.s32.totalorder %s1314_s12, 3 }
   0x4   : > { %p138_p2 = pnand %p1051_p0, %p137_p1 }
   0x5   : > { %v1284_v0 = vld [vmem:[%s1569_s1 + $0x20] sm:$0xff] (!%p138_p2)   ;;  %p161_p3 = scmp.lt.s32.totalorder (!%p138_p2), %s1047_s13, 1  ;;  %v1286_v2 = vld [vmem:[%s1569_s1 + $0x28] sm:$0xff] (!%p138_p2)   ;;  %v1288_v4 = vld [vmem:[%s1569_s1 + $0x30] sm:$0xff] (!%p138_p2)   ;;  %vm356_vm0 = vcmask (!%p138_p2), 523264   ;;  %vm983_vm4 = vcmask (!%p138_p2), 261120  }
   0x6   : > { %141 = sbr.rel (%p138_p2) target bundleno = 286 (0x11e), region = 32  ;;  %v1285_v1 = vld [vmem:[%s1569_s1 + $0x40] sm:$0xff] (!%p138_p2)   ;;  %1187 = vmatprep.subr.bf16.mxu1 (!%p138_p2), %v1284_v0  ;;  %v1287_v3 = vld [vmem:[%s1569_s1 + $0x48] sm:$0xff] (!%p138_p2)   ;;  %v1289_v5 = vld [vmem:[%s1569_s1 + $0x50] sm:$0xff] (!%p138_p2)   ;;  %vm196_vm1 = vsmask.f32 (!%p138_p2), 3328 }
   0x7   : > { %1219 = vmatprep.subr.bf16.mxu0 (!%p138_p2), %v1285_v1  ;;  %1188 = vmatpush3.bf16.msra.mxu1 (!%p138_p2), %v1284_v0  ;;  %v1290_v6 = vld [vmem:[%s1569_s1 + $0x38] sm:$0xff] (!%p138_p2)   ;;  %vm197_vm2 = vsmask.f32 (!%p138_p2), 7440  ;;  %v1393_v19 = vld [vmem:[%s1569_s1] sm:$0xff] (!%p138_p2)   ;;  %v1297_v51 = vld [vmem:[%s1569_s1 + $0x68] sm:$0xff] (!%p138_p2)  }
   0x8   : > { %1220 = vmatpush3.bf16.msra.mxu0 (!%p138_p2), %v1285_v1  ;;  %1189 = vmatprep.subr.bf16.mxu1 (!%p138_p2), %v1286_v2  ;;  %v1291_v7 = vld [vmem:[%s1569_s1 + $0x58] sm:$0xff] (!%p138_p2)   ;;  %v1295_v20 = vld [vmem:[%s1569_s1 + $0x60] sm:$0xff] (!%p138_p2)   ;;  %vm1400_vm3 = vmor (!%p138_p2), %vm196_vm1, %vm197_vm2 }
   0x9   : > { %1221 = vmatprep.subr.bf16.mxu0 (!%p138_p2), %v1287_v3 }
   0xb   : > { %1190 = vmatpush3.bf16.msra.mxu1 (!%p138_p2), %v1286_v2 }
   0xc   : > { %1222 = vmatpush3.bf16.msra.mxu0 (!%p138_p2), %v1287_v3  ;;  %1191 = vmatprep.subr.bf16.mxu1 (!%p138_p2), %v1288_v4 }
   0xd   : > { %s1575_s13 = smov (!%p161_p3, %s1047_s13), 1  ;;  %1223 = vmatprep.subr.bf16.mxu0 %v1289_v5 }
   0xe   : > { %s1275_s24 = smul.u32 72, %s1575_s13  ;;  %s1154_s27 = sshll.u32 %s1575_s13, 6 }
   0xf   : > { %1192 = vmatpush3.bf16.msra.mxu1 %v1288_v4  ;;  %s1547_s30 = scalar_lea.vmem %s1571_s3, %s1154_s27 }
  0x10   : > { %s1371_s4 = scalar_lea.vmem %s1568_s0, %s1275_s24  ;;  %1224 = vmatpush3.bf16.msra.mxu0 %v1289_v5  ;;  %1193 = vmatprep.subr.bf16.mxu1 %v1290_v6  ;;  %v1296_v5 = vld [vmem:[%s1569_s1 + $0x8] sm:$0xff]  }
  0x11   : > { %v1292_v8 = vld [vmem:[%s1371_s4 + $0x8] ss:$8 sps:$4 sm:$0xff]   ;;  %v1378_v9 = vld [vmem:[%s1371_s4] sm:$0xf]  ;;  %v188_v11 = vld [vmem:[%s1371_s4 + $0x4] sm:$0x1]  ;;  %1225 = vmatprep.subr.bf16.mxu0 %v1291_v7 }
  0x12   : > { %v1381_v10 = vld [vmem:[%s1371_s4 + $0x8] sm:$0xf]  ;;  %1227 = vmatprep.mubr.msk.bf16.mxu0 %vm356_vm0, %v1292_v8  ;;  %v189_v12 = vld [vmem:[%s1371_s4 + $0xc] sm:$0x1]  ;;  %v200_v13 = vshrl.u32 %v1378_v9, 16  ;;  %v203_v14 = vshll.u32 %v1378_v9, 16 }
  0x13   : > { %v209_v15 = vshll.u32 %v188_v11, 16  ;;  %v214_v16 = vshrl.u32 %v1381_v10, 16  ;;  %v217_v17 = vshll.u32 %v1381_v10, 16  ;;  %v223_v18 = vshll.u32 %v189_v12, 16  ;;  %v1294_v28 = vld [vmem:[%s1371_s4 + $0x18] ss:$8 sps:$4 sm:$0xff]   ;;  %1194 = vmatpush3.bf16.msra.mxu1 %v1290_v6 }
  0x14   : > { %v202_v21 = vrot.slane %v200_v13, 4  ;;  %v205_v22 = vrot.slane %v203_v14, 5  ;;  %v1406_v30 = vld [vmem:[%s1371_s4 + $0x10] sm:$0xf]  ;;  %1226 = vmatpush3.bf16.msra.mxu0 %v1291_v7  ;;  %1203 = vmatprep.subr.bf16.mxu1 %v1393_v19  ;;  %v1410_v32 = vld [vmem:[%s1371_s4 + $0x18] sm:$0xf] }
  0x15   : > { %v211_v23 = vrot.slane %v209_v15, 5  ;;  %v216_v24 = vrot.slane %v214_v16, 4  ;;  %v219_v26 = vrot.slane %v217_v17, 5  ;;  %v225_v27 = vrot.slane %v223_v18, 5  ;;  %v190_v33 = vld [vmem:[%s1371_s4 + $0x14] sm:$0x1]  ;;  %1235 = vmatprep.subr.bf16.mxu0 %v1295_v20 }
  0x16   : > { %v206_v29 = vor.u32 %v205_v22, %v202_v21  ;;  %v191_v34 = vld [vmem:[%s1371_s4 + $0x1c] sm:$0x1]  ;;  %v228_v36 = vshrl.u32 %v1406_v30, 16  ;;  %v231_v37 = vshll.u32 %v1406_v30, 16  ;;  %v237_v38 = vshll.u32 %v190_v33, 16  ;;  %v1301_v15 = vld [vmem:[%s1569_s1 + $0x70] sm:$0xff]  }
  0x17   : > { %v220_v31 = vor.u32 %v219_v26, %v216_v24  ;;  %v242_v40 = vshrl.u32 %v1410_v32, 16  ;;  %v245_v41 = vshll.u32 %v1410_v32, 16  ;;  %v251_v42 = vshll.u32 %v191_v34, 16  ;;  %1228 = vmatmul.mubr.msk.bf16.vlgmr.msra.gmra.mrb[0].mxu0 %vm356_vm0, %v1294_v28  ;;  %v1298_v54 = vld [vmem:[%s1371_s4 + $0x28] ss:$8 sps:$4 sm:$0xff]  }
  0x18   : > { %v207_v35 = vrot.slane %v206_v29, 4  ;;  %v230_v44 = vrot.slane %v228_v36, 4  ;;  %v233_v45 = vrot.slane %v231_v37, 5  ;;  %v239_v46 = vrot.slane %v237_v38, 5  ;;  %1236 = vmatpush3.bf16.msra.mxu0 %v1295_v20  ;;  %v1428_v56 = vld [vmem:[%s1371_s4 + $0x20] sm:$0xf]  ;;  %1231 = vmatprep.mubr.msk.bf16.mxu0 %vm356_vm0, %v1298_v54 }
  0x19   : > { %v221_v39 = vrot.slane %v220_v31, 4  ;;  %v244_v48 = vrot.slane %v242_v40, 4  ;;  %v247_v49 = vrot.slane %v245_v41, 5  ;;  %v253_v50 = vrot.slane %v251_v42, 5  ;;  %1237 = vmatprep.subr.bf16.mxu0 %v1297_v51  ;;  %v1431_v57 = vld [vmem:[%s1371_s4 + $0x28] sm:$0xf] }
  0x1a   : > { %v212_v43 = vsel %vm1400_vm3, %v207_v35, %v211_v23  ;;  %v234_v53 = vor.u32 %v233_v45, %v230_v44  ;;  %v192_v58 = vld [vmem:[%s1371_s4 + $0x24] sm:$0x1]  ;;  %v193_v60 = vld [vmem:[%s1371_s4 + $0x2c] sm:$0x1]  ;;  %v256_v61 = vshrl.u32 %v1428_v56, 16  ;;  %v259_v62 = vshll.u32 %v1428_v56, 16 }
  0x1b   : > { %v226_v47 = vsel %vm1400_vm3, %v221_v39, %v225_v27  ;;  %v248_v55 = vor.u32 %v247_v49, %v244_v48  ;;  %v265_v63 = vshll.u32 %v192_v58, 16  ;;  %v270_v1 = vshrl.u32 %v1431_v57, 16  ;;  %v1300_v18 = vld [vmem:[%s1371_s4 + $0x38] ss:$8 sps:$4 sm:$0xff]   ;;  %v1453_v21 = vld [vmem:[%s1371_s4 + $0x30] sm:$0xf] }
  0x1c   : > { %v1063_v52 = vcombine.low %v212_v43, %v226_v47  ;;  %v235_v59 = vrot.slane %v234_v53, 4  ;;  %1238 = vmatpush3.bf16.msra.mxu0 %v1297_v51  ;;  %v273_v2 = vshll.u32 %v1431_v57, 16  ;;  %v279_v3 = vshll.u32 %v193_v60, 16  ;;  %v1456_v22 = vld [vmem:[%s1371_s4 + $0x38] sm:$0xf]  ;;  %v1299_v35 = vld [vmem:[%s1569_s1 + $0x10] sm:$0xff]  }
  0x1d   : > { %v249_v0 = vrot.slane %v248_v55, 4  ;;  %v258_v6 = vrot.slane %v256_v61, 4  ;;  %v261_v7 = vrot.slane %v259_v62, 5  ;;  %v267_v8 = vrot.slane %v265_v63, 5  ;;  %1239 = vmatprep.subr.bf16.mxu0 %v1301_v15  ;;  %v194_v24 = vld [vmem:[%s1371_s4 + $0x34] sm:$0x1] }
  0x1e   : > { %1195 = vmatprep.mubr.msk.bf16.mxu1 %vm356_vm0, %v1063_v52  ;;  %v240_v4 = vsel %vm1400_vm3, %v235_v59, %v239_v46  ;;  %v272_v12 = vrot.slane %v270_v1, 4  ;;  %v275_v13 = vrot.slane %v273_v2, 5  ;;  %v281_v14 = vrot.slane %v279_v3, 5  ;;  %v195_v26 = vld [vmem:[%s1371_s4 + $0x3c] sm:$0x1] }
  0x1f   : > { %v254_v11 = vsel %vm1400_vm3, %v249_v0, %v253_v50  ;;  %v262_v17 = vor.u32 %v261_v7, %v258_v6  ;;  %1232 = vmatmul.mubr.msk.bf16.gmra.mrb[4].mxu0 %vm356_vm0, %v1300_v18  ;;  %v284_v27 = vshrl.u32 %v1453_v21, 16  ;;  %v287_v29 = vshll.u32 %v1453_v21, 16  ;;  %v1303_v42 = vld [vmem:[%s1569_s1 + $0x78] sm:$0xff]   ;;  %v1115_v46 = vld [vmem:[%s1371_s4 + $0x8] sm:$0xf] }
  0x20   : > { %v1064_v16 = vcombine.low %v240_v4, %v254_v11  ;;  %v276_v20 = vor.u32 %v275_v13, %v272_v12  ;;  %v293_v31 = vshll.u32 %v194_v24, 16  ;;  %v298_v33 = vshrl.u32 %v1456_v22, 16  ;;  %1240 = vmatpush3.bf16.msra.mxu0 %v1301_v15  ;;  %v1116_v49 = vld [vmem:[%s1371_s4 + $0xc] sm:$0x1]  ;;  %v1117_v50 = vld [vmem:[%s1371_s4 + $0x10] sm:$0xf] }
  0x21   : > { %v263_v23 = vrot.slane %v262_v17, 4  ;;  %v286_v36 = vrot.slane %v284_v27, 4  ;;  %v307_v37 = vshll.u32 %v195_v26, 16  ;;  %v289_v39 = vrot.slane %v287_v29, 5  ;;  %1241 = vmatprep.subr.bf16.mxu0 %v1303_v42  ;;  %v1118_v51 = vld [vmem:[%s1371_s4 + $0x14] sm:$0x1] }
  0x22   : > { %1196 = vmatmul.mubr.msk.bf16.vlgmr.msra.gmra.mrb[0].mxu1 %vm356_vm0, %v1064_v16  ;;  %v277_v28 = vrot.slane %v276_v20, 4  ;;  %v295_v40 = vrot.slane %v293_v31, 5  ;;  %v300_v41 = vrot.slane %v298_v33, 4  ;;  %v1075_v47 = vcombine.low %v1378_v9, %v1381_v10  ;;  %v1302_v9 = vld [vmem:[%s1569_s1 + $0x18] sm:$0xff]   ;;  %v1123_v24 = vld [vmem:[%s1371_s4 + $0x28] sm:$0xf] }
  0x23   : > { %1204 = vmatpush3.bf16.msra.mxu1 %v1393_v19  ;;  %v268_v34 = vsel %vm1400_vm3, %v263_v23, %v267_v8  ;;  %v301_v19 = vshll.u32 %v1456_v22, 16  ;;  %v309_v45 = vrot.slane %v307_v37, 5  ;;  %v290_v48 = vor.u32 %v289_v39, %v286_v36  ;;  %v1119_v59 = vld [vmem:[%s1371_s4 + $0x18] sm:$0xf]  ;;  %v1120_v0 = vld [vmem:[%s1371_s4 + $0x1c] sm:$0x1] }
  0x24   : > { %1205 = vmatprep.subr.bf16.mxu1 %v1296_v5  ;;  %v282_v38 = vsel %vm1400_vm3, %v277_v28, %v281_v14  ;;  %v1076_v52 = vcombine.low %v1406_v30, %v1410_v32  ;;  %v1077_v53 = vcombine.low %v1428_v56, %v1431_v57  ;;  %v719_v10 = vshrl.u32 %v1115_v46, 16  ;;  %1242 = vmatpush3.bf16.msra.mxu0 %v1303_v42  ;;  %v1122_v14 = vld [vmem:[%s1371_s4 + $0x24] sm:$0x1]  ;;  %v1124_v31 = vld [vmem:[%s1371_s4 + $0x2c] sm:$0x1] }
  0x25   : > { %v1065_v43 = vcombine.low %v268_v34, %v282_v38  ;;  %v303_v44 = vrot.slane %v301_v19, 5  ;;  %v722_v55 = vshll.u32 %v1115_v46, 16  ;;  %v728_v58 = vshll.u32 %v1116_v49, 16  ;;  %v1125_v39 = vld [vmem:[%s1371_s4 + $0x30] sm:$0xf] }
  0x26   : > { %v291_v60 = vrot.slane %v290_v48, 4  ;;  %v733_v61 = vshrl.u32 %v1117_v50, 16  ;;  %v736_v62 = vshll.u32 %v1117_v50, 16  ;;  %v742_v63 = vshll.u32 %v1118_v51, 16  ;;  %v1127_v46 = vld [vmem:[%s1371_s4 + $0x38] sm:$0xf] }
  0x27   : > { %1206 = vmatpush3.bf16.msra.mxu1 %v1296_v5  ;;  %1199 = vmatprep.mubr.msk.bf16.mxu1 %vm356_vm0, %v1065_v43  ;;  %v304_v54 = vor.u32 %v303_v44, %v300_v41  ;;  %v721_v2 = vrot.slane %v719_v10, 4  ;;  %v724_v3 = vrot.slane %v722_v55, 5  ;;  %v730_v4 = vrot.slane %v728_v58, 5  ;;  %v1121_v5 = vld [vmem:[%s1371_s4 + $0x20] sm:$0xf] }
  0x28   : > { %1207 = vmatprep.subr.bf16.mxu1 %v1299_v35  ;;  %v296_v6 = vsel %vm1400_vm3, %v291_v60, %v295_v40  ;;  %v735_v7 = vrot.slane %v733_v61, 4  ;;  %v738_v8 = vrot.slane %v736_v62, 5  ;;  %v744_v11 = vrot.slane %v742_v63, 5  ;;  %v1126_v40 = vld [vmem:[%s1371_s4 + $0x34] sm:$0x1] }
  0x29   : > { %v305_v1 = vrot.slane %v304_v54, 4  ;;  %v725_v13 = vor.u32 %v724_v3, %v721_v2  ;;  %v747_v15 = vshrl.u32 %v1119_v59, 16  ;;  %v750_v16 = vshll.u32 %v1119_v59, 16  ;;  %v1128_v55 = vld [vmem:[%s1371_s4 + $0x3c] sm:$0x1] }
  0x2a   : > { %v739_v18 = vor.u32 %v738_v8, %v735_v7  ;;  %v756_v20 = vshll.u32 %v1120_v0, 16  ;;  %v761_v23 = vshrl.u32 %v1121_v5, 16  ;;  %v764_v29 = vshll.u32 %v1121_v5, 16  ;;  %v1129_v61 = vld [vmem:[%s1371_s4 + $0x40] sm:$0xf] }
  0x2b   : > { %1208 = vmatpush3.bf16.msra.mxu1 %v1299_v35  ;;  %v310_v12 = vsel %vm1400_vm3, %v305_v1, %v309_v45  ;;  %v726_v26 = vrot.slane %v725_v13, 4  ;;  %v749_v27 = vrot.slane %v747_v15, 4  ;;  %v752_v28 = vrot.slane %v750_v16, 5  ;;  %v1130_v2 = vld [vmem:[%s1371_s4 + $0x44] sm:$0x1] }
  0x2c   : > { %1209 = vmatprep.subr.bf16.mxu1 %v1302_v9  ;;  %v1066_v17 = vcombine.low %v296_v6, %v310_v12  ;;  %v740_v33 = vrot.slane %v739_v18, 4  ;;  %v758_v34 = vrot.slane %v756_v20, 5  ;;  %v763_v35 = vrot.slane %v761_v23, 4 }
  0x2d   : > { %v770_v36 = vshll.u32 %v1122_v14, 16  ;;  %v731_v19 = vsel %vm1400_vm3, %v726_v26, %v730_v4  ;;  %v753_v37 = vor.u32 %v752_v28, %v749_v27  ;;  %v766_v38 = vrot.slane %v764_v29, 5 }
  0x2e   : > { %1200 = vmatmul.mubr.msk.bf16.gmra.mrb[4].mxu1 %vm356_vm0, %v1066_v17  ;;  %v775_v41 = vshrl.u32 %v1123_v24, 16  ;;  %v745_v42 = vsel %vm1400_vm3, %v740_v33, %v744_v11  ;;  %v778_v44 = vshll.u32 %v1123_v24, 16  ;;  %v784_v45 = vshll.u32 %v1124_v31, 16 }
  0x2f   : > { %1210 = vmatpush3.bf16.msra.mxu1 %v1302_v9  ;;  %1211 = vmatprep.mubr.msk.bf16.mxu1 %vm356_vm0, %v1075_v47  ;;  %v772_v43 = vrot.slane %v770_v36, 5  ;;  %v1139_v48 = vcombine.low %v731_v19, %v745_v42  ;;  %v754_v49 = vrot.slane %v753_v37, 4  ;;  %v767_v50 = vor.u32 %v766_v38, %v763_v35 }
  0x30   : > { %v777_v51 = vrot.slane %v775_v41, 4  ;;  %v780_v47 = vrot.slane %v778_v44, 5  ;;  %v786_v54 = vrot.slane %v784_v45, 5  ;;  %v789_v9 = vshrl.u32 %v1125_v39, 16 }
  0x31   : > { %v792_v10 = vshll.u32 %v1125_v39, 16  ;;  %1243 = vmatprep.mubr.msk.bf16.mxu0 %vm356_vm0, %v1139_v48  ;;  %v759_v58 = vsel %vm1400_vm3, %v754_v49, %v758_v34  ;;  %v768_v59 = vrot.slane %v767_v50, 4  ;;  %v798_v60 = vshll.u32 %v1126_v40, 16  ;;  %v1151_v34 = vld [vmem:[%s1570_s2] ss:$0 sm:$0xff] }
  0x32   : > { %v803_v62 = vshrl.u32 %v1127_v46, 16  ;;  %v781_v63 = vor.u32 %v780_v47, %v777_v51  ;;  %v791_v0 = vrot.slane %v789_v9, 4  ;;  %v806_v3 = vshll.u32 %v1127_v46, 16 }
  0x33   : > { %v794_v1 = vrot.slane %v792_v10, 5  ;;  %v773_v4 = vsel %vm1400_vm3, %v768_v59, %v772_v43  ;;  %v800_v5 = vrot.slane %v798_v60, 5  ;;  %v812_v7 = vshll.u32 %v1128_v55, 16 }
  0x34   : > { %v805_v6 = vrot.slane %v803_v62, 4  ;;  %v1140_v8 = vcombine.low %v759_v58, %v773_v4  ;;  %v782_v11 = vrot.slane %v781_v63, 4  ;;  %v808_v13 = vrot.slane %v806_v3, 5 }
  0x35   : > { %v795_v12 = vor.u32 %v794_v1, %v791_v0  ;;  %v817_v14 = vshrl.u32 %v1129_v61, 16  ;;  %v820_v15 = vshll.u32 %v1129_v61, 16  ;;  %v826_v16 = vshll.u32 %v1130_v2, 16 }
  0x36   : > { %1212 = vmatmul.mubr.msk.bf16.vlgmr.msra.gmra.mrb[0].mxu1 %vm356_vm0, %v1076_v52  ;;  %1244 = vmatmul.mubr.msk.bf16.vlgmr.msra.gmra.mrb[0].mxu0 %vm356_vm0, %v1140_v8  ;;  %v787_v17 = vsel %vm1400_vm3, %v782_v11, %v786_v54  ;;  %v809_v30 = vor.u32 %v808_v13, %v805_v6  ;;  %v814_v32 = vrot.slane %v812_v7, 5  ;;  %v1078_v56 = vcombine.low %v1453_v21, %v1456_v22 }
  0x37   : > { %1215 = vmatprep.mubr.msk.bf16.mxu1 %vm356_vm0, %v1077_v53  ;;  %v796_v18 = vrot.slane %v795_v12, 4  ;;  %v819_v52 = vrot.slane %v817_v14, 4  ;;  %v822_v20 = vrot.slane %v820_v15, 5  ;;  %v828_v26 = vrot.slane %v826_v16, 5 }
  0x38   : > { %v810_v24 = vrot.slane %v809_v30, 4 }
  0x39   : > { %v801_v23 = vsel %vm1400_vm3, %v796_v18, %v800_v5  ;;  %v823_v53 = vor.u32 %v822_v20, %v819_v52 }
  0x3a   : > { %v1141_v57 = vcombine.low %v787_v17, %v801_v23  ;;  %v815_v27 = vsel %vm1400_vm3, %v810_v24, %v814_v32 }
  0x3b   : > { %v824_v28 = vrot.slane %v823_v53, 4 }
  0x3c   : > { %1247 = vmatprep.mubr.msk.bf16.mxu0 %vm356_vm0, %v1141_v57 }
  0x3d   : > { %v829_v29 = vsel %vm1400_vm3, %v824_v28, %v828_v26 }
  0x3e   : > { %1216 = vmatmul.mubr.msk.bf16.gmra.mrb[4].mxu1 %vm356_vm0, %v1078_v56  ;;  %v1142_v31 = vcombine.low %v815_v27, %v829_v29 }
  0x40   : > { %1248 = vmatmul.mubr.msk.bf16.gmra.mrb[4].mxu0 %vm356_vm0, %v1142_v31 }
 0x109   : > { %v1213_v33 = vpop.f32.mrb[0].mxu1  ;;  %v1245_v22 = vpop.f32.mrb[0].mxu0 }
 0x10a   : > { %v524_v21 = vpop.f32.mrb[1].mxu1  ;;  %v1251_v36 = vadd.f32 %v1245_v22, %v1213_v33  ;;  %v921_v19 = vpop.f32.mrb[1].mxu0 }
 0x10b   : > { %v1214_v35 = vpop.f32.mrb[2].mxu1  ;;  %v1252_v38 = vadd.f32 %v921_v19, %v524_v21  ;;  %v1246_v39 = vpop.f32.mrb[2].mxu0 }
 0x10c   : > { %v527_v37 = vpop.f32.mrb[3].mxu1  ;;  %v969_v40 = vadd.f32 %v1251_v36, %v1151_v34  ;;  %v1253_v25 = vadd.f32 %v1246_v39, %v1214_v35  ;;  %v924_v41 = vpop.f32.mrb[3].mxu0 }
 0x10d   : > { %v967_v42 = vadd.f32 %v1252_v38, %v1151_v34  ;;  %v1254_v43 = vadd.f32 %v924_v41, %v527_v37 }
 0x10e   : > { %v977_v44 = vmax.f32 %v969_v40, 0.0  ;;  %v970_v45 = vadd.f32 %v1253_v25, %v1151_v34 }
 0x10f   : > { %v975_v46 = vmax.f32 %v967_v42, 0.0  ;;  %v968_v48 = vadd.f32 %v1254_v43, %v1151_v34 }
 0x110   : > { %986 = vst.msk [vmem:[%s1547_s30 + $0x10] sm:$0xff] %vm983_vm4, %v977_v44  ;;  %v978_v50 = vmax.f32 %v970_v45, 0.0 }
 0x111   : > { %v1217_v49 = vpop.f32.mrb[4].mxu1  ;;  %984 = vst.msk [vmem:[%s1547_s30] sm:$0xff] %vm983_vm4, %v975_v46  ;;  %v976_v47 = vmax.f32 %v968_v48, 0.0 }
 0x112   : > { %v540_v51 = vpop.f32.mrb[5].mxu1  ;;  %987 = vst.msk [vmem:[%s1547_s30 + $0x18] sm:$0xff] %vm983_vm4, %v978_v50 }
 0x113   : > { %v1218_v54 = vpop.f32.mrb[6].mxu1  ;;  %985 = vst.msk [vmem:[%s1547_s30 + $0x8] sm:$0xff] %vm983_vm4, %v976_v47  ;;  %v1249_v10 = vpop.f32.mrb[4].mxu0 }
 0x114   : > { %v543_v9 = vpop.f32.mrb[7].mxu1  ;;  %v1255_v55 = vadd.f32 %v1249_v10, %v1217_v49  ;;  %v937_v58 = vpop.f32.mrb[5].mxu0 }
 0x115   : > { %v1256_v59 = vadd.f32 %v937_v58, %v540_v51  ;;  %v1250_v60 = vpop.f32.mrb[6].mxu0 }
 0x116   : > { %v973_v61 = vadd.f32 %v1255_v55, %v1151_v34  ;;  %v1257_v62 = vadd.f32 %v1250_v60, %v1218_v54  ;;  %v940_v63 = vpop.f32.mrb[7].mxu0 }
 0x117   : > { %v971_v0 = vadd.f32 %v1256_v59, %v1151_v34  ;;  %v1258_v1 = vadd.f32 %v940_v63, %v543_v9 }
 0x118   : > { %v981_v2 = vmax.f32 %v973_v61, 0.0  ;;  %v974_v3 = vadd.f32 %v1257_v62, %v1151_v34 }
 0x119   : > { %v979_v4 = vmax.f32 %v971_v0, 0.0  ;;  %v972_v5 = vadd.f32 %v1258_v1, %v1151_v34 }
 0x11a   : > { %990 = vst.msk [vmem:[%s1547_s30 + $0x30] sm:$0xff] %vm983_vm4, %v981_v2  ;;  %v982_v6 = vmax.f32 %v974_v3, 0.0 }
 0x11b   : > { %988 = vst.msk [vmem:[%s1547_s30 + $0x20] sm:$0xff] %vm983_vm4, %v979_v4  ;;  %v980_v7 = vmax.f32 %v972_v5, 0.0 }
 0x11c   : > { %991 = vst.msk [vmem:[%s1547_s30 + $0x38] sm:$0xff] %vm983_vm4, %v982_v6 }
 0x11d   : > { %989 = vst.msk [vmem:[%s1547_s30 + $0x28] sm:$0xff] %vm983_vm4, %v980_v7 }
 0x11e PF: > { %s13_s12 = sadd.s32 1, %s1314_s12  }
 0x11f   : > { %p10_p4 = scmp.ge.s32.totalorder %s13_s12, 4  }
 0x121   :  { %12 = sbr.rel (!%p10_p4) target bundleno = 1 (0x1), region = 66 }

// kernel: basenet_forward.8
= control target key start
LH: loop header
LB: loop body
LE: loop exit
PB: predicated region body
PF: predicated region fallthrough
CT: control target
= control target key end

     0   :  { %s1271_s12 = smov 0   ;;  %s1488_s0 = inlined_call_operand.vmem [shape: bf16[2,5,5,128], index: 0, kind: input, shape index: {}]   ;;  %s1489_s1 = inlined_call_operand.vmem [shape: bf16[4,128,64], index: 1, kind: input, shape index: {}]   ;;  %s1490_s2 = inlined_call_operand.vmem [shape: f32[1,64], index: 2, kind: input, shape index: {}]   ;;  %s1491_s3 = inlined_call_operand.vmem [shape: f32[2,4,4,64], index: 3, kind: output, shape index: {}]  }
   0x1 LB: > { %s964_s13 = sadd.s32 4294967295, %s1246_s12   ;;  %p968_p0 = scmp.ge.s32.totalorder %s1246_s12, 1  ;;  %s1246_s12 = sphi %s1271_s12, %s13_s12  }
   0x2   : > { %p137_p1 = scmp.lt.s32.totalorder %s1246_s12, 3 }
   0x4   : > { %p138_p2 = pnand %p968_p0, %p137_p1 }
   0x5   : > { %v1200_v0 = vld [vmem:[%s1489_s1 + $0x40] sm:$0xff] (!%p138_p2)   ;;  %v1248_v1 = vmov (!%p138_p2), 0.0   ;;  %v1202_v3 = vld [vmem:[%s1489_s1 + $0x48] sm:$0xff] (!%p138_p2)   ;;  %vm1249_vm0 = vmmov (!%p138_p2), 0   ;;  %p161_p3 = scmp.lt.s32.totalorder (!%p138_p2), %s964_s13, 1  ;;  %v1204_v5 = vld [vmem:[%s1489_s1 + $0x50] sm:$0xff] (!%p138_p2)   ;;  %v317_v21 = vlaneseq (!%p138_p2) }
   0x6   : > { %141 = sbr.rel (%p138_p2) target bundleno = 297 (0x129), region = 32  ;;  %1108 = vmatprep.subr.bf16.mxu0 (!%p138_p2), %v1248_v1  ;;  %1128 = vmatprep.subr.bf16.mxu1 (!%p138_p2), %v1248_v1  ;;  %v1201_v2 = vld [vmem:[%s1489_s1] sm:$0xff] (!%p138_p2)   ;;  %v1203_v4 = vld [vmem:[%s1489_s1 + $0x8] sm:$0xff] (!%p138_p2)   ;;  %v1205_v6 = vld [vmem:[%s1489_s1 + $0x10] sm:$0xff] (!%p138_p2)   ;;  %vm232_vm1 = vsmask.f32 (!%p138_p2), 1280 }
   0x7   : > { %1109 = vmatpush3.bf16.msra.mxu0 (!%p138_p2), %v1200_v0  ;;  %1124 = vmatprep.mubr.msk.bf16.mxu0 (!%p138_p2), %vm1249_vm0, %v1248_v1  ;;  %v1206_v7 = vld [vmem:[%s1489_s1 + $0x58] sm:$0xff] (!%p138_p2)   ;;  %v1208_v9 = vld [vmem:[%s1489_s1 + $0x60] sm:$0xff] (!%p138_p2)   ;;  %v1210_v11 = vld [vmem:[%s1489_s1 + $0x68] sm:$0xff] (!%p138_p2)   ;;  %vm233_vm2 = vsmask.f32 (!%p138_p2), 3336  ;;  %v318_v53 = vshrl.u32 (!%p138_p2), %v317_v21, 7 }
   0x8   : > { %1129 = vmatpush3.bf16.msra.mxu1 (!%p138_p2), %v1201_v2  ;;  %1110 = vmatprep.subr.bf16.mxu0 (!%p138_p2), %v1248_v1  ;;  %v1207_v8 = vld [vmem:[%s1489_s1 + $0x18] sm:$0xff] (!%p138_p2)   ;;  %v1209_v10 = vld [vmem:[%s1489_s1 + $0x20] sm:$0xff] (!%p138_p2)   ;;  %v1211_v13 = vld [vmem:[%s1489_s1 + $0x28] sm:$0xff] (!%p138_p2)   ;;  %vm235_vm3 = vsmask.f32 (!%p138_p2), 5392  ;;  %vm904_vm8 = vcmask (!%p138_p2), 519168  }
   0x9   : > { %1130 = vmatprep.subr.bf16.mxu1 (!%p138_p2), %v1248_v1  ;;  %1144 = vmatprep.mubr.msk.bf16.mxu1 (!%p138_p2), %vm1249_vm0, %v1248_v1  ;;  %vm1342_vm4 = vmor (!%p138_p2), %vm232_vm1, %vm233_vm2  ;;  %vm237_vm5 = vsmask.f32 (!%p138_p2), 7448  ;;  %v1212_v22 = vld [vmem:[%s1489_s1 + $0x70] sm:$0xff] (!%p138_p2)   ;;  %v1214_v49 = vld [vmem:[%s1489_s1 + $0x78] sm:$0xff] (!%p138_p2)   ;;  %v1250_v58 = vmov (!%p138_p2), 1983009808  }
   0xa   : > { %v1213_v27 = vld [vmem:[%s1489_s1 + $0x30] sm:$0xff] (!%p138_p2)   ;;  %vm1356_vm6 = vmor (!%p138_p2), %vm1342_vm4, %vm235_vm3  ;;  %v1215_v54 = vld [vmem:[%s1489_s1 + $0x38] sm:$0xff] (!%p138_p2)   ;;  %v315_v59 = vunpack.c.l.s4 (!%p138_p2), %v1250_v58 }
   0xb   : > { %1111 = vmatpush3.bf16.msra.mxu0 (!%p138_p2), %v1202_v3  ;;  %vm1365_vm7 = vmor (!%p138_p2), %vm1356_vm6, %vm237_vm5  ;;  %v1222_v21 = vld [vmem:[%s1489_s1 + $0x90] sm:$0xff] (!%p138_p2)  }
   0xc   : > { %1131 = vmatpush3.bf16.msra.mxu1 (!%p138_p2), %v1203_v4  ;;  %1112 = vmatprep.subr.bf16.mxu0 (!%p138_p2), %v1248_v1  ;;  %v316_v4 = vunpack.c.0.s8 (!%p138_p2), %v315_v59 }
   0xd   : > { %s1499_s13 = smov (!%p161_p3, %s964_s13), 1  ;;  %1132 = vmatprep.subr.bf16.mxu1 %v1248_v1 }
   0xe   : > { %s1188_s26 = smul.u32 20, %s1499_s13  ;;  %s1071_s8 = sshll.u32 %s1499_s13, 4 }
   0xf   : > { %1113 = vmatpush3.bf16.msra.mxu0 %v1204_v5  ;;  %s170_s11 = scalar_lea.vmem %s1491_s3, %s1071_s8 }
  0x10   : > { %1133 = vmatpush3.bf16.msra.mxu1 %v1205_v6  ;;  %1114 = vmatprep.subr.bf16.mxu0 %v1248_v1  ;;  %s1321_s6 = scalar_lea.vmem %s1488_s0, %s1188_s26 }
  0x11   : > { %1134 = vmatprep.subr.bf16.mxu1 %v1248_v1  ;;  %v972_v12 = vld.sshfl [vmem:[%s1321_s6] sm:$0x13 pattern:$0x76325410] }
  0x12   : > { %v973_v14 = vld.sshfl [vmem:[%s1321_s6 + $0x4] sm:$0x13 pattern:$0x76325410]  ;;  %v207_v15 = vcombine.high %v972_v12, %v972_v12  ;;  %v240_v24 = vshrl.u32 %v972_v12, 16  ;;  %v243_v25 = vshll.u32 %v972_v12, 16 }
  0x13   : > { %1115 = vmatpush3.bf16.msra.mxu0 %v1206_v7  ;;  %v974_v16 = vld.sshfl [vmem:[%s1321_s6 + $0x8] sm:$0x13 pattern:$0x76325410]  ;;  %v215_v17 = vcombine.high %v973_v14, %v973_v14  ;;  %v254_v28 = vshrl.u32 %v973_v14, 16  ;;  %v257_v29 = vshll.u32 %v973_v14, 16 }
  0x14   : > { %1135 = vmatpush3.bf16.msra.mxu1 %v1207_v8  ;;  %1116 = vmatprep.subr.bf16.mxu0 %v1248_v1  ;;  %v975_v18 = vld.sshfl [vmem:[%s1321_s6 + $0xc] sm:$0x13 pattern:$0x76325410]  ;;  %v223_v19 = vcombine.high %v974_v16, %v974_v16  ;;  %v249_v26 = vshll.u32 %v207_v15, 16  ;;  %v268_v31 = vshrl.u32 %v974_v16, 16  ;;  %v1390_v8 = vsub.s32 %v316_v4, %v318_v53 }
  0x15   : > { %1136 = vmatprep.subr.bf16.mxu1 %v1248_v1  ;;  %v231_v23 = vcombine.high %v975_v18, %v975_v18  ;;  %v263_v30 = vshll.u32 %v215_v17, 16  ;;  %v242_v33 = vrot.slane %v240_v24, 6  ;;  %v245_v34 = vrot.slane %v243_v25, 7  ;;  %v1219_v12 = vld [vmem:[%s1489_s1 + $0xc0] sm:$0xff]   ;;  %v1221_v17 = vld [vmem:[%s1489_s1 + $0xc8] sm:$0xff]   ;;  %v1225_v24 = vld [vmem:[%s1489_s1 + $0xd8] sm:$0xff]  }
  0x16   : > { %v251_v35 = vrot.slane %v249_v26, 7  ;;  %v271_v36 = vshll.u32 %v974_v16, 16  ;;  %v256_v37 = vrot.slane %v254_v28, 6  ;;  %v259_v38 = vrot.slane %v257_v29, 7  ;;  %v1218_v15 = vld [vmem:[%s1489_s1 + $0x80] sm:$0xff]   ;;  %v1224_v29 = vld [vmem:[%s1489_s1 + $0x98] sm:$0xff]  }
  0x17   : > { %1117 = vmatpush3.bf16.msra.mxu0 %v1208_v9  ;;  %v265_v39 = vrot.slane %v263_v30, 7  ;;  %v270_v40 = vrot.slane %v268_v31, 6  ;;  %v246_v41 = vor.u32 %v245_v34, %v242_v33  ;;  %v277_v43 = vshll.u32 %v223_v19, 16  ;;  %v1223_v19 = vld [vmem:[%s1489_s1 + $0xd0] sm:$0xff]   ;;  %v1227_v30 = vld [vmem:[%s1489_s1 + $0xe0] sm:$0xff]  }
  0x18   : > { %1137 = vmatpush3.bf16.msra.mxu1 %v1209_v10  ;;  %1118 = vmatprep.subr.bf16.mxu0 %v1248_v1  ;;  %v273_v42 = vrot.slane %v271_v36, 7  ;;  %v282_v44 = vshrl.u32 %v975_v18, 16  ;;  %v260_v46 = vor.u32 %v259_v38, %v256_v37  ;;  %v285_v47 = vshll.u32 %v975_v18, 16  ;;  %v1220_v18 = vld [vmem:[%s1489_s1 + $0x88] sm:$0xff]   ;;  %v1226_v34 = vld [vmem:[%s1489_s1 + $0xa0] sm:$0xff]  }
  0x19   : > { %1138 = vmatprep.subr.bf16.mxu1 %v1248_v1  ;;  %v291_v48 = vshll.u32 %v231_v23, 16  ;;  %v247_v50 = vrot.slane %v246_v41, 2  ;;  %v279_v56 = vrot.slane %v277_v43, 7  ;;  %v1228_v37 = vld [vmem:[%s1489_s1 + $0xa8] sm:$0xff]   ;;  %v1230_v43 = vld [vmem:[%s1489_s1 + $0xb0] sm:$0xff]  }
  0x1a   : > { %v274_v51 = vor.u32 %v273_v42, %v270_v40  ;;  %v284_v52 = vrot.slane %v282_v44, 6  ;;  %v261_v55 = vrot.slane %v260_v46, 2  ;;  %v287_v57 = vrot.slane %v285_v47, 7  ;;  %v1231_v40 = vld [vmem:[%s1489_s1 + $0xf0] sm:$0xff]   ;;  %v1233_v46 = vld [vmem:[%s1489_s1 + $0xf8] sm:$0xff]  }
  0x1b   : > { %1119 = vmatpush3.bf16.msra.mxu0 %v1210_v11  ;;  %v1236_v60 = vld.sshfl [vmem:[%s1321_s6] sm:$0xf pattern:$0x76325410]  ;;  %v252_v62 = vsel %vm1365_vm7, %v247_v50, %v251_v35  ;;  %v293_v0 = vrot.slane %v291_v48, 7  ;;  %v1229_v35 = vld [vmem:[%s1489_s1 + $0xe8] sm:$0xff]  }
  0x1c   : > { %1139 = vmatpush3.bf16.msra.mxu1 %v1211_v13  ;;  %1120 = vmatprep.subr.bf16.mxu0 %v1248_v1  ;;  %v1237_v61 = vld.sshfl [vmem:[%s1321_s6 + $0x8] sm:$0xf pattern:$0x76325410]  ;;  %v275_v63 = vrot.slane %v274_v51, 2  ;;  %v1383_v2 = vsel %vm1365_vm7, %v261_v55, %v265_v39  ;;  %v288_v3 = vor.u32 %v287_v57, %v284_v52  ;;  %v1232_v47 = vld [vmem:[%s1489_s1 + $0xb8] sm:$0xff]  }
  0x1d   : > { %1140 = vmatprep.subr.bf16.mxu1 %v1248_v1  ;;  %v312_v5 = vcombine.low %v252_v62, %v1383_v2  ;;  %v439_v13 = vcombine.low %v1236_v60, %v1237_v61  ;;  %v1043_v20 = vld.sshfl [vmem:[%s1321_s6 + $0x10] sm:$0x13 pattern:$0x76325410] }
  0x1e   : > { %v1388_v6 = vsel %vm1365_vm7, %v275_v63, %v279_v56  ;;  %v289_v7 = vrot.slane %v288_v3, 2  ;;  %v748_v23 = vshrl.u32 %v1043_v20, 16  ;;  %v751_v25 = vshll.u32 %v1043_v20, 16  ;;  %v1068_v3 = vld [vmem:[%s1490_s2] ss:$0 sm:$0xff] }
  0x1f   : > { %1121 = vmatpush3.bf16.msra.mxu0 %v1212_v22  ;;  %v320_v11 = vrot.slane %v312_v5, %v1390_v8  ;;  %v704_v22 = vcombine.high %v1043_v20, %v1043_v20  ;;  %v778_v38 = vcombine.low %v1383_v2, %v1388_v6  ;;  %v1238_v41 = vld.sshfl [vmem:[%s1321_s6 + $0x4] sm:$0xf pattern:$0x76325410] }
  0x20   : > { %1141 = vmatpush3.bf16.msra.mxu1 %v1213_v27  ;;  %1122 = vmatprep.subr.bf16.mxu0 %v1248_v1  ;;  %v1396_v9 = vsel %vm1365_vm7, %v289_v7, %v293_v0  ;;  %v750_v26 = vrot.slane %v748_v23, 6  ;;  %v753_v28 = vrot.slane %v751_v25, 7  ;;  %v1239_v42 = vld.sshfl [vmem:[%s1321_s6 + $0xc] sm:$0xf pattern:$0x76325410] }
  0x21   : > { %1142 = vmatprep.subr.bf16.mxu1 %v1248_v1  ;;  %v313_v10 = vcombine.low %v1388_v6, %v1396_v9  ;;  %v757_v27 = vshll.u32 %v704_v22, 16  ;;  %v786_v44 = vrot.slane %v778_v38, %v1390_v8 }
  0x22   : > { %v754_v31 = vor.u32 %v753_v28, %v750_v26 }
  0x23   : > { %1123 = vmatpush3.bf16.msra.mxu0 %v1214_v49  ;;  %v327_v14 = vrot.slane %v313_v10, %v1390_v8  ;;  %v759_v32 = vrot.slane %v757_v27, 7  ;;  %v572_v49 = vcombine.low %v1238_v41, %v1239_v42 }
  0x24   : > { %1143 = vmatpush3.bf16.msra.mxu1 %v1215_v54  ;;  %1148 = vmatprep.subr.bf16.mxu0 %v1248_v1  ;;  %v755_v33 = vrot.slane %v754_v31, 2 }
  0x25   : > { %1168 = vmatprep.subr.bf16.mxu1 %v1248_v1  ;;  %v328_v16 = vcombine.low %v320_v11, %v327_v14 }
  0x26   : > { %v760_v36 = vsel %vm1365_vm7, %v755_v33, %v759_v32 }
  0x27   : > { %1145 = vmatmul.mubr.bf16.vlgmr.msra.gmra.mrb[0].mxu1 %v439_v13  ;;  %1125 = vmatmul.mubr.bf16.vlgmr.msra.gmra.mrb[0].mxu0 %v328_v16  ;;  %v779_v39 = vcombine.low %v1396_v9, %v760_v36 }
  0x28   : > { %1169 = vmatpush3.bf16.msra.mxu1 %v1219_v12  ;;  %1184 = vmatprep.mubr.msk.bf16.mxu1 %vm1249_vm0, %v1248_v1 }
  0x29   : > { %1170 = vmatprep.subr.bf16.mxu1 %v1248_v1  ;;  %1149 = vmatpush3.bf16.msra.mxu0 %v1218_v15  ;;  %v793_v45 = vrot.slane %v779_v39, %v1390_v8 }
  0x2a   : > { %1164 = vmatprep.mubr.msk.bf16.mxu0 %vm1249_vm0, %v1248_v1  ;;  %1150 = vmatprep.subr.bf16.mxu0 %v1248_v1 }
  0x2b   : > { %v794_v48 = vcombine.low %v786_v44, %v793_v45 }
  0x2c   : > { %1171 = vmatpush3.bf16.msra.mxu1 %v1221_v17 }
  0x2d   : > { %1172 = vmatprep.subr.bf16.mxu1 %v1248_v1  ;;  %1151 = vmatpush3.bf16.msra.mxu0 %v1220_v18 }
  0x2e   : > { %1152 = vmatprep.subr.bf16.mxu0 %v1248_v1 }
  0x30   : > { %1173 = vmatpush3.bf16.msra.mxu1 %v1223_v19 }
  0x31   : > { %1174 = vmatprep.subr.bf16.mxu1 %v1248_v1  ;;  %1153 = vmatpush3.bf16.msra.mxu0 %v1222_v21 }
  0x32   : > { %1154 = vmatprep.subr.bf16.mxu0 %v1248_v1 }
  0x34   : > { %1175 = vmatpush3.bf16.msra.mxu1 %v1225_v24 }
  0x35   : > { %1176 = vmatprep.subr.bf16.mxu1 %v1248_v1  ;;  %1155 = vmatpush3.bf16.msra.mxu0 %v1224_v29 }
  0x36   : > { %1156 = vmatprep.subr.bf16.mxu0 %v1248_v1 }
  0x38   : > { %1177 = vmatpush3.bf16.msra.mxu1 %v1227_v30 }
  0x39   : > { %1178 = vmatprep.subr.bf16.mxu1 %v1248_v1  ;;  %1157 = vmatpush3.bf16.msra.mxu0 %v1226_v34 }
  0x3a   : > { %1158 = vmatprep.subr.bf16.mxu0 %v1248_v1 }
  0x3c   : > { %1179 = vmatpush3.bf16.msra.mxu1 %v1229_v35 }
  0x3d   : > { %1180 = vmatprep.subr.bf16.mxu1 %v1248_v1  ;;  %1159 = vmatpush3.bf16.msra.mxu0 %v1228_v37 }
  0x3e   : > { %1160 = vmatprep.subr.bf16.mxu0 %v1248_v1 }
  0x40   : > { %1181 = vmatpush3.bf16.msra.mxu1 %v1231_v40 }
  0x41   : > { %1182 = vmatprep.subr.bf16.mxu1 %v1248_v1  ;;  %1161 = vmatpush3.bf16.msra.mxu0 %v1230_v43 }
  0x42   : > { %1162 = vmatprep.subr.bf16.mxu0 %v1248_v1 }
  0x44   : > { %1183 = vmatpush3.bf16.msra.mxu1 %v1233_v46 }
  0x45   : > { %1163 = vmatpush3.bf16.msra.mxu0 %v1232_v47 }
  0x47   : > { %1185 = vmatmul.mubr.bf16.vlgmr.msra.gmra.mrb[4].mxu1 %v794_v48 }
  0x48   : > { %1165 = vmatmul.mubr.bf16.vlgmr.msra.gmra.mrb[4].mxu0 %v572_v49 }
  0xfa   : > { %v523_v50 = vpop.f32.mrb[0].mxu1  ;;  %v412_v53 = vpop.f32.mrb[0].mxu0 }
  0xfb   : > { %v1146_v51 = vpop.f32.mrb[1].mxu1  ;;  %v524_v55 = vadd.f32 %v523_v50, %v412_v53  ;;  %v1126_v56 = vpop.f32.mrb[1].mxu0 }
  0xfc   : > { %v526_v52 = vpop.f32.mrb[2].mxu1  ;;  %v415_v57 = vpop.f32.mrb[2].mxu0 }
  0xfd   : > { %v1147_v54 = vpop.f32.mrb[3].mxu1  ;;  %v527_v58 = vadd.f32 %v526_v52, %v415_v57  ;;  %v1127_v59 = vpop.f32.mrb[3].mxu0 }
 0x11a   : > { %v878_v60 = vpop.f32.mrb[4].mxu1 }
 0x11b   : > { %v1186_v61 = vpop.f32.mrb[5].mxu1  ;;  %v656_v1 = vpop.f32.mrb[4].mxu0 }
 0x11c   : > { %v881_v62 = vpop.f32.mrb[6].mxu1  ;;  %v663_v0 = vadd.f32 %v656_v1, %v524_v55  ;;  %v1166_v2 = vpop.f32.mrb[5].mxu0 }
 0x11d   : > { %v1187_v63 = vpop.f32.mrb[7].mxu1  ;;  %v659_v4 = vpop.f32.mrb[6].mxu0 }
 0x11e   : > { %v885_v5 = vadd.f32 %v878_v60, %v663_v0  ;;  %v664_v6 = vadd.f32 %v659_v4, %v527_v58  ;;  %v1167_v7 = vpop.f32.mrb[7].mxu0 }
 0x120   : > { %v894_v8 = vadd.f32 %v1068_v3, %v885_v5  ;;  %v886_v9 = vadd.f32 %v881_v62, %v664_v6 }
 0x122   : > { %v896_v10 = vmax.f32 %v894_v8, 0.0  ;;  %v895_v11 = vadd.f32 %v1068_v3, %v886_v9 }
 0x124   : > { %v900_v12 = vcombine.high %v896_v10, %v896_v10  ;;  %905 = vst.msk [vmem:[%s170_s11] sm:$0xf] %vm904_vm8, %v896_v10  ;;  %v897_v13 = vmax.f32 %v895_v11, 0.0 }
 0x126   : > { %906 = vst.msk [vmem:[%s170_s11 + $0x4] sm:$0xf] %vm904_vm8, %v900_v12  ;;  %v901_v14 = vcombine.high %v897_v13, %v897_v13  ;;  %907 = vst.msk [vmem:[%s170_s11 + $0x8] sm:$0xf] %vm904_vm8, %v897_v13 }
 0x128   : > { %908 = vst.msk [vmem:[%s170_s11 + $0xc] sm:$0xf] %vm904_vm8, %v901_v14 }
 0x129 PF: > { %s13_s12 = sadd.s32 1, %s1246_s12  }
 0x12a   : > { %p10_p4 = scmp.ge.s32.totalorder %s13_s12, 4  }
 0x12c   :  { %12 = sbr.rel (!%p10_p4) target bundleno = 1 (0x1), region = 66 }

// kernel: basenet_forward.9
= control target key start
LH: loop header
LB: loop body
LE: loop exit
PB: predicated region body
PF: predicated region fallthrough
CT: control target
= control target key end

     0   :  { %16 = vsyncpa [#allocation4], 0  ;;  %s5650_s0 = inlined_call_operand.vmem [shape: bf16[2,4,4,64], index: 0, kind: input, shape index: {}]   ;;  %s5651_s1 = inlined_call_operand.vmem [shape: bf16[64,64], index: 1, kind: input, shape index: {}]   ;;  %s5652_s2 = inlined_call_operand.vmem [shape: f32[1,64], index: 2, kind: input, shape index: {}]   ;;  %s5653_s3 = inlined_call_operand.vmem [shape: bf16[9,64,64], index: 3, kind: input, shape index: {}]   ;;  %s5654_s4 = inlined_call_operand.vmem [shape: f32[1,64], index: 4, kind: input, shape index: {}]   ;;  %s5655_s5 = inlined_call_operand.vmem [shape: bf16[64,64], index: 5, kind: input, shape index: {}]   ;;  %s5656_s6 = inlined_call_operand.vmem [shape: f32[1,64], index: 6, kind: input, shape index: {}]   ;;  %s5657_s7 = inlined_call_operand.vmem [shape: bf16[64,64], index: 7, kind: input, shape index: {}]   ;;  %s5658_s8 = inlined_call_operand.vmem [shape: f32[1,64], index: 8, kind: input, shape index: {}]   ;;  %s5659_s9 = inlined_call_operand.vmem [shape: bf16[9,64,150], index: 9, kind: input, shape index: {}]   ;;  %s5660_s10 = inlined_call_operand.vmem [shape: f32[1,150], index: 10, kind: input, shape index: {}]   ;;  %s5661_s11 = inlined_call_operand.hbm [shape: f32[2,4,4,150], index: 11, kind: output, shape index: {}]  }
   0x1   :  { %18 = vsyncpa [#allocation4 + $0x1], 0  ;;  %s4821_s17 = smov 0   ;;  %s4823_s18 = smov 0  }
   0x2   :  { %s4825_s19 = smov 0   ;;  %s4827_s20 = smov 0  }
   0x3 LB: > { %s4842_s21 = sadd.s32 4294967295, %s4752_s20   ;;  %s3828_s22 = sadd.s32 4294967294, %s4752_s20   ;;  %s4752_s20 = sphi %s4827_s20, %s5679_s20   ;;  %s4748_s19 = sphi %s4825_s19, %s5678_s19   ;;  %s4744_s18 = sphi %s4823_s18, %s5677_s18   ;;  %s4740_s17 = sphi %s4821_s17, %s5676_s17  }
   0x4   : > { %s4846_s23 = sadd.s32 1, %s4752_s20   ;;  %s267_s24 = sadd.s32 1, %s4748_s19 }
   0x5   : > { %s264_s25 = ssub.s32 %s4752_s20, %s4846_s23  ;;  %p277_p0 = scmp.ne.s32.totalorder %s4748_s19, %s4744_s18 }
   0x6   : > { %p265_p1 = scmp.eq.s32.totalorder %s264_s25, 0  ;;  %p278_p2 = scmp.eq.s32.totalorder %s4842_s21, 1 }
   0x7   : > { %p283_p3 = scmp.ne.s32.totalorder %s4744_s18, %s4740_s17  ;;  %p284_p4 = scmp.eq.s32.totalorder %s3828_s22, 1 }
   0x8   : > { %s4857_s26 = scalar_select %p265_p1, %s4748_s19, %s267_s24  }
   0x9   : > { %p4859_p5 = por %p278_p2, %p277_p0  ;;  %p4863_p6 = por %p284_p4, %p283_p3 }
   0xa   : > { %p3831_p7 = scmp.ge.s32.totalorder %s4752_s20, 1  ;;  %p340_p8 = scmp.lt.s32.totalorder %s4752_s20, 3 }
   0xc   : > { %p341_p9 = pnand %p3831_p7, %p340_p8 }
   0xd   : > { %v4522_v0 = vld [vmem:[%s5651_s1] sm:$0xff] (!%p341_p9)   ;;  %v414_v1 = vlaneseq (!%p341_p9)  ;;  %v4754_v2 = vmov (!%p341_p9), 0.0   ;;  %v4523_v3 = vld [vmem:[%s5651_s1 + $0x8] sm:$0xff] (!%p341_p9)   ;;  %vm4755_vm0 = vmmov (!%p341_p9), 0   ;;  %p380_p10 = scmp.lt.s32.totalorder (!%p341_p9), %s4842_s21, 1  ;;  %v4524_v4 = vld [vmem:[%s5651_s1 + $0x10] sm:$0xff] (!%p341_p9)  }
   0xe   : > { %344 = sbr.rel (%p341_p9) target bundleno = 1214 (0x4be), region = 64  ;;  %4293 = vmatprep.subr.bf16.mxu0 (!%p341_p9), %v4754_v2  ;;  %4377 = vmatprep.subr.bf16.mxu1 (!%p341_p9), %v4754_v2  ;;  %v4756_v6 = vmov (!%p341_p9), 1983009808   ;;  %vm450_vm1 = vcmask (!%p341_p9), 523264   ;;  %v4525_v9 = vld [vmem:[%s5651_s1 + $0x18] sm:$0xff] (!%p341_p9)   ;;  %vm497_vm2 = vcmask (!%p341_p9), 519168  }
   0xf   : > { %4294 = vmatpush3.bf16.msra.mxu0 (!%p341_p9), %v4522_v0  ;;  %4301 = vmatprep.mubr.msk.bf16.mxu0 (!%p341_p9), %vm4755_vm0, %v4754_v2  ;;  %v4887_v5 = vshrl.u32 (!%p341_p9), %v414_v1, 7  ;;  %v412_v7 = vunpack.c.l.s4 (!%p341_p9), %v4756_v6  ;;  %v4757_v20 = vmov (!%p341_p9), 0   ;;  %v4526_v21 = vld [vmem:[%s5653_s3 + $0xc0] sm:$0xff] (!%p341_p9)   ;;  %v4528_v23 = vld [vmem:[%s5653_s3 + $0xc8] sm:$0xff] (!%p341_p9)   ;;  %v4530_v25 = vld [vmem:[%s5653_s3 + $0xd0] sm:$0xff] (!%p341_p9)   ;;  %vm537_vm3 = vcmask (!%p341_p9), 518145  }
  0x10   : > { %4295 = vmatprep.subr.bf16.mxu0 (!%p341_p9), %v4754_v2  ;;  %4385 = vmatprep.mubr.msk.bf16.mxu1 (!%p341_p9), %vm4755_vm0, %v4754_v2  ;;  %500 = vst.msk [vmem:[#allocation2 + $0x8] sm:$0xf] (!%p341_p9), %vm497_vm2, %v4757_v20  ;;  %501 = vst.msk [vmem:[#allocation2 + $0xc] sm:$0xf] (!%p341_p9), %vm497_vm2, %v4757_v20  ;;  %v4527_v22 = vld [vmem:[%s5653_s3 + $0x20] sm:$0xff] (!%p341_p9)   ;;  %v4529_v24 = vld [vmem:[%s5653_s3 + $0x28] sm:$0xff] (!%p341_p9)  }
  0x11   : > { %v413_v8 = vunpack.c.0.s8 (!%p341_p9), %v412_v7  ;;  %498 = vst.msk [vmem:[#allocation2] sm:$0xf] (!%p341_p9), %vm497_vm2, %v4757_v20  ;;  %499 = vst.msk [vmem:[#allocation2 + $0x4] sm:$0xf] (!%p341_p9), %vm497_vm2, %v4757_v20  ;;  %4378 = vmatpush3.bf16.msra.mxu1 (!%p341_p9), %v4526_v21  ;;  %v4531_v26 = vld [vmem:[%s5653_s3 + $0x30] sm:$0xff] (!%p341_p9)   ;;  %v4532_v27 = vld [vmem:[%s5653_s3 + $0xd8] sm:$0xff] (!%p341_p9)  }
  0x12   : > { %502 = vst.msk [vmem:[#allocation2 + $0x10] sm:$0xf] (!%p341_p9), %vm497_vm2, %v4757_v20  ;;  %503 = vst.msk [vmem:[#allocation2 + $0x14] sm:$0xf] (!%p341_p9), %vm497_vm2, %v4757_v20  ;;  %4379 = vmatprep.subr.bf16.mxu1 (!%p341_p9), %v4754_v2  ;;  %v4533_v28 = vld [vmem:[%s5653_s3 + $0x38] sm:$0xff] (!%p341_p9)   ;;  %vm594_vm4 = vcmask (!%p341_p9), 1040384  }
  0x13   : > { %4296 = vmatpush3.bf16.msra.mxu0 (!%p341_p9), %v4523_v3  ;;  %v4897_v15 = vsub.s32 (!%p341_p9), %v413_v8, %v4887_v5  ;;  %504 = vst.msk [vmem:[#allocation2 + $0x18] sm:$0xf] (!%p341_p9), %vm497_vm2, %v4757_v20  ;;  %505 = vst.msk [vmem:[#allocation2 + $0x1c] sm:$0xf] (!%p341_p9), %vm497_vm2, %v4757_v20  ;;  %v3835_v29 = vld [vmem:[%s5652_s2] ss:$0 sm:$0xff] (!%p341_p9) }
  0x14   : > { %4297 = vmatprep.subr.bf16.mxu0 (!%p341_p9), %v4754_v2  ;;  %vm595_vm5 = vcmask (!%p341_p9), 1042434   ;;  %vm597_vm7 = vcmask (!%p341_p9), 1044484   ;;  %vm599_vm8 = vcmask (!%p341_p9), 1046534   ;;  %v4536_v8 = vld [vmem:[%s5653_s3 + $0x100] sm:$0xff] (!%p341_p9)   ;;  %vm1975_vm11 = vsmask.f32 (!%p341_p9), 1280 }
  0x15   : > { %s381_s16 = scalar_select %p380_p10, %s4842_s21, 1  ;;  %4380 = vmatpush3.bf16.msra.mxu1 %v4528_v23  ;;  %vm596_vm6 = vmor %vm594_vm4, %vm595_vm5  ;;  %vm1976_vm12 = vsmask.f32 3336  ;;  %vm1978_vm13 = vsmask.f32 5392 }
  0x16   : > { %4381 = vmatprep.subr.bf16.mxu1 %v4754_v2  ;;  %vm598_vm9 = vmor %vm596_vm6, %vm597_vm7  ;;  %vm1980_vm15 = vsmask.f32 7448  ;;  %vm2358_vm4 = vsmask.f32 2312  ;;  %vm2360_vm5 = vsmask.f32 4368 }
  0x17   : > { %s4223_s22 = sshll.u32 %s381_s16, 3  ;;  %4298 = vmatpush3.bf16.msra.mxu0 %v4524_v4  ;;  %vm4956_vm10 = vmor %vm598_vm9, %vm599_vm8  ;;  %vm2362_vm7 = vsmask.f32 6424  ;;  %v4669_v58 = vld [vmem:[%s5659_s9 + $0x1f0] ss:$8 sps:$4 sm:$0xff]   ;;  %s377_s13 = sand.u32 1, %s4744_s18  }
  0x18   : > { %s384_s29 = scalar_lea.vmem %s5650_s0, %s4223_s22  ;;  %4299 = vmatprep.subr.bf16.mxu0 %v4754_v2  ;;  %v3845_v40 = vld.sshfl [vmem:[#allocation2] sm:$0x12 pattern:$0x76325410]  ;;  %vm1977_vm14 = vmor %vm1975_vm11, %vm1976_vm12  ;;  %s3832_s16 = sshll.u32 %s377_s13, 5  ;;  %vm3746_vm11 = vcmask 179204  }
  0x19   : > { %v386_v10 = vld [vmem:[%s384_s29] sm:$0x3]  ;;  %v387_v11 = vld [vmem:[%s384_s29 + $0x2] sm:$0x3]  ;;  %v388_v12 = vld [vmem:[%s384_s29 + $0x4] sm:$0x3]  ;;  %4382 = vmatpush3.bf16.msra.mxu1 %v4530_v25  ;;  %v569_v46 = vcombine.high %v3845_v40, %v3845_v40 }
  0x1a   : > { %v389_v13 = vld [vmem:[%s384_s29 + $0x6] sm:$0x3]  ;;  %v409_v14 = vcombine.low %v386_v10, %v387_v11  ;;  %4383 = vmatprep.subr.bf16.mxu1 %v4754_v2  ;;  %v3849_v52 = vrot.slane %v3845_v40, 9  ;;  %v4540_v25 = vld [vmem:[%s5653_s3 + $0x110] sm:$0xff]   ;;  %s379_s22 = scalar_lea.vmem [#allocation3], %s3832_s16  ;;  %s4232_s25 = sshll.u32 %s4842_s21, 9 }
  0x1b   : > { %v410_v16 = vcombine.low %v388_v12, %v389_v13  ;;  %4300 = vmatpush3.bf16.msra.mxu0 %v4525_v9  ;;  %v3846_v41 = vld.sshfl [vmem:[#allocation2 + $0x4] sm:$0x12 pattern:$0x76325410]  ;;  %v603_v53 = vrot.slane %v569_v46, 7  ;;  %s3766_s24 = sshll.u32 %s379_s22, 4  ;;  %s5603_s12 = scalar_lea.hbm %s5661_s11, %s4232_s25  ;;  %s5605_s24 = int_to_ptr.vmem [resolvable:$true] %s3766_s24 }
  0x1c   : > { %v417_v17 = vrot.slane %v409_v14, %v4897_v15  ;;  %4305 = vmatprep.subr.bf16.mxu0 %v4754_v2  ;;  %v577_v50 = vcombine.high %v3846_v41, %v3846_v41  ;;  %v3850_v54 = vrot.slane %v3846_v41, 9  ;;  %v4684_v56 = vld.sshfl [vmem:[#allocation2 + $0x18] sm:$0xf pattern:$0x76325410]  ;;  %s5609_s21 = scalar_lea.sflag [#allocation4], %s377_s13 }
  0x1d   : > { %v424_v18 = vrot.slane %v410_v16, %v4897_v15  ;;  %4384 = vmatpush3.bf16.msra.mxu1 %v4532_v27  ;;  %v604_v60 = vsel %vm4956_vm10, %v3849_v52, %v603_v53  ;;  %v4537_v16 = vld [vmem:[%s5653_s3] sm:$0xff]   ;;  %v4551_v52 = vld [vmem:[%s5653_s3 + $0x68] sm:$0xff]   ;;  %v4552_v53 = vld [vmem:[%s5653_s3 + $0x70] sm:$0xff]   ;;  %s4690_s14 = scalar_lea.vmem %s5605_s24, 512  ;;  %s4758_s15 = smov [#allocation3]  }
  0x1e   : > { %4401 = vmatprep.subr.bf16.mxu1 %v4754_v2  ;;  %v607_v55 = vrot.slane %v577_v50, 7  ;;  %v3871_v40 = vld.sshfl [vmem:[#allocation2] sm:$0x30 pattern:$0x76325410]  ;;  %p4691_p11 = scmp.ne.s32.totalorder %s5605_s24, %s4690_s14  ;;  %s4694_s16 = sshll.u32 %s4758_s15, 4  ;;  %s4695_s16 = int_to_ptr.vmem [resolvable:$false] %s4694_s16 }
  0x1f   : > { %v4902_v19 = vcombine.low %v417_v17, %v424_v18  ;;  %v4538_v17 = vld [vmem:[%s5653_s3 + $0x108] sm:$0xff]   ;;  %v3979_v18 = vld.sshfl [vmem:[#allocation2 + $0x18] sm:$0x30 pattern:$0x76325410]  ;;  %v4550_v50 = vld [vmem:[%s5653_s3 + $0x60] sm:$0xff]   ;;  %p4697_p0 = scmp.lt.s32.totalorder %s5605_s24, %s4695_s16 }
  0x20   : > { %v4964_v61 = vsel %vm4956_vm10, %v3850_v54, %v607_v55  ;;  %v3872_v41 = vld.sshfl [vmem:[#allocation2 + $0x4] sm:$0x30 pattern:$0x76325410]  ;;  %p4692_p12 = pnand %p4691_p11, %p4859_p5  ;;  %s4696_s25 = scalar_lea.vmem %s4695_s16, 1024 }
  0x21   : > { %4302 = vmatmul.mubr.msk.bf16.vlgmr.msra.gmra.mrb[0].mxu0 %vm450_vm1, %v4902_v19  ;;  %v626_v3 = vcombine.low %v604_v60, %v4964_v61  ;;  %p4698_p1 = scmp.lt.s32.totalorder %s4696_s25, %s4690_s14 }
  0x22   : > { %4313 = vmatprep.mubr.msk.bf16.mxu0 %vm4755_vm0, %v4754_v2  ;;  %4306 = vmatpush3.bf16.msra.mxu0 %v4527_v22  ;;  %v3980_v22 = vld.sshfl [vmem:[#allocation2 + $0x1c] sm:$0x30 pattern:$0x76325410]  ;;  %p4693_p13 = pneg %p4692_p12 }
  0x23   : > { %4307 = vmatprep.subr.bf16.mxu0 %v4754_v2  ;;  %v634_v13 = vrot.slane %v626_v3, %v4897_v15  ;;  %v4557_v3 = vld [vmem:[%s5653_s3 + $0x88] sm:$0xff]   ;;  %p4699_p2 = por %p4698_p1, %p4697_p0 }
  0x25   : > { %p4700_p3 = pnand %p4699_p2, %p4693_p13 }
  0x26   : > { %4308 = vmatpush3.bf16.msra.mxu0 %v4529_v24  ;;  %v4539_v24 = vld [vmem:[%s5653_s3 + $0x8] sm:$0xff]  }
  0x27   : > { %4309 = vmatprep.subr.bf16.mxu0 %v4754_v2 }
  0x2a   : > { %4310 = vmatpush3.bf16.msra.mxu0 %v4531_v26 }
  0x2b   : > { %4311 = vmatprep.subr.bf16.mxu0 %v4754_v2 }
  0x2e   : > { %4312 = vmatpush3.bf16.msra.mxu0 %v4533_v28  ;;  %v3990_v28 = vcombine.high %v3979_v18, %v3980_v22  ;;  %v4561_v18 = vld [vmem:[%s5653_s3 + $0xa8] sm:$0xff]   ;;  %v3959_v22 = vld.sshfl [vmem:[#allocation2 + $0x1c] sm:$0x12 pattern:$0x76325410] }
  0x2f   : > { %4317 = vmatprep.subr.bf16.mxu0 %v4754_v2 }
  0xf4   : > { %v488_v30 = vpop.f32.mrb[0].mxu0 }
  0xf5   : > { %v489_v31 = vadd.f32 %v3835_v29, %v488_v30  ;;  %v4303_v32 = vpop.f32.mrb[1].mxu0  ;;  %v4542_v30 = vld [vmem:[%s5653_s3 + $0x118] sm:$0xff]  }
  0xf6   : > { %v491_v33 = vpop.f32.mrb[2].mxu0  ;;  %v1649_v32 = vrot.slane %v3990_v28, %v4897_v15 }
  0xf7   : > { %v495_v34 = vmax.f32 %v489_v31, 0.0  ;;  %v492_v35 = vadd.f32 %v3835_v29, %v491_v33  ;;  %v4304_v36 = vpop.f32.mrb[3].mxu0  ;;  %v4541_v29 = vld [vmem:[%s5653_s3 + $0x10] sm:$0xff]  }
  0xf8   : > { %v4686_v33 = vld.sshfl [vmem:[#allocation2] sm:$0xf pattern:$0x76325410] }
  0xf9   : > { %v508_v37 = vcombine.high %v495_v34, %v495_v34  ;;  %v4224_v38 = vpack.c.bf16 %v495_v34, %v495_v34  ;;  %v496_v39 = vmax.f32 %v492_v35, 0.0  ;;  %v4543_v35 = vld [vmem:[%s5653_s3 + $0x18] sm:$0xff]  }
  0xfb   : > { %v4225_v42 = vpack.c.bf16 %v508_v37, %v508_v37  ;;  %v528_v43 = vrot.slane %v4224_v38, 7  ;;  %v509_v44 = vcombine.high %v496_v39, %v496_v39  ;;  %v4226_v45 = vpack.c.bf16 %v496_v39, %v496_v39  ;;  %v4546_v37 = vld [vmem:[%s5653_s3 + $0x40] sm:$0xff]   ;;  %v4547_v39 = vld [vmem:[%s5653_s3 + $0x48] sm:$0xff]  }
  0xfd   : > { %v529_v47 = vrot.slane %v4225_v42, 7  ;;  %538 = vst.msk [vmem:[#allocation2 + $0x8] sm:$0x6] %vm537_vm3, %v528_v43  ;;  %v4227_v48 = vpack.c.bf16 %v509_v44, %v509_v44  ;;  %v530_v49 = vrot.slane %v4226_v45, 7  ;;  %v4548_v43 = vld [vmem:[%s5653_s3 + $0x50] sm:$0xff]   ;;  %v3883_v45 = vcombine.high %v3871_v40, %v3872_v41  ;;  %v4568_v40 = vld [vmem:[%s5655_s5] sm:$0xff]  }
  0xfe   : > { %v4569_v41 = vld [vmem:[%s5655_s5 + $0x8] sm:$0xff]  }
  0xff   : > { %539 = vst.msk [vmem:[#allocation2 + $0xc] sm:$0x6] %vm537_vm3, %v529_v47  ;;  %v531_v51 = vrot.slane %v4227_v48, 7  ;;  %540 = vst.msk [vmem:[#allocation2 + $0x10] sm:$0x6] %vm537_vm3, %v530_v49  ;;  %v4549_v47 = vld [vmem:[%s5653_s3 + $0x58] sm:$0xff]   ;;  %v857_v48 = vrot.slane %v3883_v45, %v4897_v15 }
 0x101   : > { %541 = vst.msk [vmem:[#allocation2 + $0x14] sm:$0x6] %vm537_vm3, %v531_v51 }
 0x104   : > { %v3847_v57 = vld.sshfl [vmem:[#allocation2 + $0x8] sm:$0x12 pattern:$0x76325410] }
 0x105   : > { %v585_v59 = vcombine.high %v3847_v57, %v3847_v57  ;;  %v3851_v4 = vrot.slane %v3847_v57, 9  ;;  %v3873_v44 = vld.sshfl [vmem:[#allocation2 + $0x8] sm:$0x30 pattern:$0x76325410]  ;;  %v4553_v57 = vld [vmem:[%s5653_s3 + $0x78] sm:$0xff]  }
 0x106   : > { %v3848_v62 = vld.sshfl [vmem:[#allocation2 + $0xc] sm:$0x12 pattern:$0x76325410] }
 0x107   : > { %v593_v63 = vcombine.high %v3848_v62, %v3848_v62  ;;  %v611_v0 = vrot.slane %v585_v59, 7  ;;  %v3852_v6 = vrot.slane %v3848_v62, 9  ;;  %v3977_v26 = vld.sshfl [vmem:[#allocation2 + $0x10] sm:$0x30 pattern:$0x76325410] }
 0x108   : > { %v4685_v1 = vld.sshfl [vmem:[#allocation2 + $0x10] sm:$0xf pattern:$0x76325410]  ;;  %v4556_v62 = vld [vmem:[%s5653_s3 + $0x80] sm:$0xff]  }
 0x109   : > { %v615_v7 = vrot.slane %v593_v63, 7  ;;  %v612_v9 = vsel %vm4956_vm10, %v3851_v4, %v611_v0  ;;  %v1362_v11 = vcombine.low %v4685_v1, %v4684_v56  ;;  %v3978_v23 = vld.sshfl [vmem:[#allocation2 + $0x14] sm:$0x30 pattern:$0x76325410] }
 0x10a   : > { %v3989_v27 = vcombine.high %v3977_v26, %v3978_v23  ;;  %v4687_v34 = vld.sshfl [vmem:[#allocation2 + $0x8] sm:$0xf pattern:$0x76325410]  ;;  %v4563_v23 = vld [vmem:[%s5653_s3 + $0xb8] sm:$0xff]   ;;  %v4564_v26 = vld [vmem:[%s5653_s3 + $0xe0] sm:$0xff]  }
 0x10b   : > { %v616_v10 = vsel %vm4956_vm10, %v3852_v6, %v615_v7  ;;  %4386 = vmatmul.mubr.msk.bf16.vlgmr.msra.gmra.mrb[0].mxu1 %vm450_vm1, %v1362_v11  ;;  %v731_v38 = vcombine.low %v4686_v33, %v4687_v34  ;;  %v3874_v42 = vld.sshfl [vmem:[#allocation2 + $0xc] sm:$0x30 pattern:$0x76325410] }
 0x10c   : > { %v627_v12 = vcombine.low %v612_v9, %v616_v10  ;;  %4402 = vmatpush3.bf16.msra.mxu1 %v4536_v8  ;;  %4409 = vmatprep.mubr.msk.bf16.mxu1 %vm4755_vm0, %v4754_v2  ;;  %v5009_v31 = vrot.slane %v3989_v27, %v4897_v15  ;;  %v3884_v46 = vcombine.high %v3873_v44, %v3874_v42  ;;  %v4688_v54 = vld.sshfl [vmem:[#allocation2 + $0x10] sm:$0xf pattern:$0x76325410]  ;;  %v4565_v33 = vld [vmem:[%s5653_s3 + $0xe8] sm:$0xff]  }
 0x10d   : > { %4403 = vmatprep.subr.bf16.mxu1 %v4754_v2  ;;  %v4689_v55 = vld.sshfl [vmem:[#allocation2 + $0x8] sm:$0xf pattern:$0x76325410]  ;;  %v4558_v9 = vld [vmem:[%s5653_s3 + $0x90] sm:$0xff]  }
 0x10e   : > { %v4977_v14 = vrot.slane %v627_v12, %v4897_v15  ;;  %v1650_v36 = vcombine.low %v5009_v31, %v1649_v32  ;;  %v5040_v49 = vrot.slane %v3884_v46, %v4897_v15  ;;  %v3906_v56 = vld.sshfl [vmem:[#allocation2 + $0x14] sm:$0x12 pattern:$0x76325410]  ;;  %v969_v0 = vcombine.low %v4689_v55, %v4688_v54  ;;  %v4559_v12 = vld [vmem:[%s5653_s3 + $0x98] sm:$0xff]  }
 0x10f   : > { %v3905_v59 = vld.sshfl [vmem:[#allocation2 + $0x10] sm:$0x12 pattern:$0x76325410]  ;;  %v1079_v60 = vcombine.high %v3906_v56, %v3906_v56  ;;  %v3910_v6 = vrot.slane %v3906_v56, 9 }
 0x110   : > { %v642_v21 = vcombine.low %v634_v13, %v4977_v14  ;;  %4404 = vmatpush3.bf16.msra.mxu1 %v4538_v17  ;;  %v865_v51 = vcombine.low %v857_v48, %v5040_v49  ;;  %v1071_v63 = vcombine.high %v3905_v59, %v3905_v59  ;;  %v3909_v7 = vrot.slane %v3905_v59, 9  ;;  %v4570_v42 = vld [vmem:[%s5655_s5 + $0x10] sm:$0xff]  }
 0x111   : > { %4405 = vmatprep.subr.bf16.mxu1 %v4754_v2  ;;  %v1094_v1 = vrot.slane %v1079_v60, 7  ;;  %v1257_v27 = vcombine.low %v5040_v49, %v5009_v31 }
 0x112   : > { %4314 = vmatmul.mubr.msk.bf16.vlgmr.msra.gmra.mrb[4].mxu0 %vm450_vm1, %v642_v21  ;;  %v1090_v4 = vrot.slane %v1071_v63, 7  ;;  %v4562_v21 = vld [vmem:[%s5653_s3 + $0xb0] sm:$0xff]  }
 0x113   : > { %4318 = vmatpush3.bf16.msra.mxu0 %v4537_v16  ;;  %4325 = vmatprep.mubr.msk.bf16.mxu0 %vm4755_vm0, %v4754_v2  ;;  %v1095_v8 = vsel %vm4956_vm10, %v3910_v6, %v1094_v1  ;;  %v4560_v16 = vld [vmem:[%s5653_s3 + $0xa0] sm:$0xff]  }
 0x114   : > { %4319 = vmatprep.subr.bf16.mxu0 %v4754_v2  ;;  %4406 = vmatpush3.bf16.msra.mxu1 %v4540_v25  ;;  %v1091_v10 = vsel %vm4956_vm10, %v3909_v7, %v1090_v4  ;;  %v1472_v25 = vcombine.high %v3959_v22, %v3959_v22 }
 0x115   : > { %4407 = vmatprep.subr.bf16.mxu1 %v4754_v2  ;;  %v1106_v11 = vcombine.low %v1091_v10, %v1095_v8 }
 0x116   : > { %v1487_v32 = vrot.slane %v1472_v25, 7 }
 0x117   : > { %4320 = vmatpush3.bf16.msra.mxu0 %v4539_v24  ;;  %v1120_v13 = vrot.slane %v1106_v11, %v4897_v15 }
 0x118   : > { %4321 = vmatprep.subr.bf16.mxu0 %v4754_v2  ;;  %4408 = vmatpush3.bf16.msra.mxu1 %v4542_v30  ;;  %v3963_v30 = vrot.slane %v3959_v22, 9 }
 0x119   : > { %v1121_v17 = vcombine.low %v4977_v14, %v1120_v13  ;;  %v3958_v14 = vld.sshfl [vmem:[#allocation2 + $0x18] sm:$0x12 pattern:$0x76325410] }
 0x11a   : > { %v1464_v24 = vcombine.high %v3958_v14, %v3958_v14  ;;  %v3962_v28 = vrot.slane %v3958_v14, 9  ;;  %v1488_v34 = vsel %vm4956_vm10, %v3963_v30, %v1487_v32 }
 0x11b   : > { %4322 = vmatpush3.bf16.msra.mxu0 %v4541_v29  ;;  %4410 = vmatmul.mubr.msk.bf16.vlgmr.msra.gmra.mrb[4].mxu1 %vm450_vm1, %v1650_v36 }
 0x11c   : > { %4323 = vmatprep.subr.bf16.mxu0 %v4754_v2  ;;  %2203 = vmatprep.mubr.bf16.mxu1 %v4757_v20  ;;  %v1483_v29 = vrot.slane %v1464_v24, 7 }
 0x11e   : > { %v1484_v31 = vsel %vm4956_vm10, %v3962_v28, %v1483_v29 }
 0x11f   : > { %4324 = vmatpush3.bf16.msra.mxu0 %v4543_v35  ;;  %v4566_v35 = vld [vmem:[%s5653_s3 + $0xf0] sm:$0xff]   ;;  %v1499_v36 = vcombine.low %v1484_v31, %v1488_v34  ;;  %v3996_v34 = vld [vmem:[%s5654_s4] ss:$0 sm:$0xff] }
 0x120   : > { %4329 = vmatprep.subr.bf16.mxu0 %v4754_v2 }
 0x122   : > { %4326 = vmatmul.mubr.msk.bf16.vlgmr.msra.gmra.mrb[8].mxu0 %vm450_vm1, %v731_v38  ;;  %v1513_v38 = vrot.slane %v1499_v36, %v4897_v15 }
 0x123   : > { %4330 = vmatpush3.bf16.msra.mxu0 %v4546_v37  ;;  %4337 = vmatprep.mubr.msk.bf16.mxu0 %vm4755_vm0, %v4754_v2  ;;  %v4567_v37 = vld [vmem:[%s5653_s3 + $0xf8] sm:$0xff]  }
 0x124   : > { %4331 = vmatprep.subr.bf16.mxu0 %v4754_v2 }
 0x127   : > { %4332 = vmatpush3.bf16.msra.mxu0 %v4547_v39  ;;  %v1514_v39 = vcombine.low %v1120_v13, %v1513_v38 }
 0x128   : > { %4333 = vmatprep.subr.bf16.mxu0 %v4754_v2 }
 0x12b   : > { %4334 = vmatpush3.bf16.msra.mxu0 %v4548_v43  ;;  %v4571_v43 = vld [vmem:[%s5655_s5 + $0x18] sm:$0xff]  }
 0x12c   : > { %4335 = vmatprep.subr.bf16.mxu0 %v4754_v2 }
 0x12f   : > { %4336 = vmatpush3.bf16.msra.mxu0 %v4549_v47 }
 0x130   : > { %4341 = vmatprep.subr.bf16.mxu0 %v4754_v2 }
 0x132   : > { %4338 = vmatmul.mubr.msk.bf16.vlgmr.msra.gmra.mrb[12].mxu0 %vm450_vm1, %v865_v51 }
 0x133   : > { %4342 = vmatpush3.bf16.msra.mxu0 %v4550_v50  ;;  %4349 = vmatprep.mubr.msk.bf16.mxu0 %vm4755_vm0, %v4754_v2 }
 0x134   : > { %4343 = vmatprep.subr.bf16.mxu0 %v4754_v2 }
 0x137   : > { %4344 = vmatpush3.bf16.msra.mxu0 %v4551_v52 }
 0x138   : > { %4345 = vmatprep.subr.bf16.mxu0 %v4754_v2 }
 0x13b   : > { %4346 = vmatpush3.bf16.msra.mxu0 %v4552_v53 }
 0x13c   : > { %4347 = vmatprep.subr.bf16.mxu0 %v4754_v2 }
 0x13f   : > { %4348 = vmatpush3.bf16.msra.mxu0 %v4553_v57 }
 0x140   : > { %4353 = vmatprep.subr.bf16.mxu0 %v4754_v2 }
 0x142   : > { %4350 = vmatmul.mubr.msk.bf16.vlgmr.msra.gmra.mrb[16].mxu0 %vm450_vm1, %v969_v0 }
 0x143   : > { %4354 = vmatpush3.bf16.msra.mxu0 %v4556_v62  ;;  %4361 = vmatprep.mubr.msk.bf16.mxu0 %vm4755_vm0, %v4754_v2 }
 0x144   : > { %4355 = vmatprep.subr.bf16.mxu0 %v4754_v2 }
 0x147   : > { %4356 = vmatpush3.bf16.msra.mxu0 %v4557_v3 }
 0x148   : > { %4357 = vmatprep.subr.bf16.mxu0 %v4754_v2 }
 0x14b   : > { %4358 = vmatpush3.bf16.msra.mxu0 %v4558_v9 }
 0x14c   : > { %4359 = vmatprep.subr.bf16.mxu0 %v4754_v2 }
 0x14f   : > { %4360 = vmatpush3.bf16.msra.mxu0 %v4559_v12 }
 0x150   : > { %4365 = vmatprep.subr.bf16.mxu0 %v4754_v2 }
 0x152   : > { %4362 = vmatmul.mubr.msk.bf16.vlgmr.msra.gmra.mrb[20].mxu0 %vm450_vm1, %v1121_v17 }
 0x153   : > { %4366 = vmatpush3.bf16.msra.mxu0 %v4560_v16  ;;  %4373 = vmatprep.mubr.msk.bf16.mxu0 %vm4755_vm0, %v4754_v2 }
 0x154   : > { %4367 = vmatprep.subr.bf16.mxu0 %v4754_v2 }
 0x157   : > { %4368 = vmatpush3.bf16.msra.mxu0 %v4561_v18 }
 0x158   : > { %4369 = vmatprep.subr.bf16.mxu0 %v4754_v2 }
 0x15b   : > { %4370 = vmatpush3.bf16.msra.mxu0 %v4562_v21 }
 0x15c   : > { %4371 = vmatprep.subr.bf16.mxu0 %v4754_v2 }
 0x15f   : > { %4372 = vmatpush3.bf16.msra.mxu0 %v4563_v23 }
 0x160   : > { %4389 = vmatprep.subr.bf16.mxu0 %v4754_v2 }
 0x162   : > { %4374 = vmatmul.mubr.msk.bf16.vlgmr.msra.gmra.mrb[24].mxu0 %vm450_vm1, %v1257_v27 }
 0x163   : > { %4390 = vmatpush3.bf16.msra.mxu0 %v4564_v26  ;;  %4397 = vmatprep.mubr.msk.bf16.mxu0 %vm4755_vm0, %v4754_v2 }
 0x164   : > { %4391 = vmatprep.subr.bf16.mxu0 %v4754_v2 }
 0x167   : > { %4392 = vmatpush3.bf16.msra.mxu0 %v4565_v33 }
 0x168   : > { %4393 = vmatprep.subr.bf16.mxu0 %v4754_v2 }
 0x16b   : > { %4394 = vmatpush3.bf16.msra.mxu0 %v4566_v35 }
 0x16c   : > { %4395 = vmatprep.subr.bf16.mxu0 %v4754_v2 }
 0x16f   : > { %4396 = vmatpush3.bf16.msra.mxu0 %v4567_v37 }
 0x170   : > { %4413 = vmatprep.subr.bf16.mxu0 %v4754_v2 }
 0x172   : > { %4398 = vmatmul.mubr.msk.bf16.vlgmr.msra.gmra.mrb[28].mxu0 %vm450_vm1, %v1514_v39 }
 0x173   : > { %4421 = vmatprep.mubr.msk.bf16.mxu0 %vm4755_vm0, %v4754_v2  ;;  %4414 = vmatpush3.bf16.msra.mxu0 %v4568_v40 }
 0x174   : > { %4415 = vmatprep.subr.bf16.mxu0 %v4754_v2 }
 0x177   : > { %4416 = vmatpush3.bf16.msra.mxu0 %v4569_v41 }
 0x178   : > { %4417 = vmatprep.subr.bf16.mxu0 %v4754_v2 }
 0x17b   : > { %4418 = vmatpush3.bf16.msra.mxu0 %v4570_v42 }
 0x17c   : > { %4419 = vmatprep.subr.bf16.mxu0 %v4754_v2 }
 0x17f   : > { %4420 = vmatpush3.bf16.msra.mxu0 %v4571_v43 }
 0x180   : > { %4425 = vmatprep.subr.bf16.mxu0 %v4754_v2 }
 0x1de   : > { %v1424_v44 = vpop.f32.mrb[0].mxu1 }
 0x1df   : > { %v4387_v45 = vpop.f32.mrb[1].mxu1 }
 0x1e0   : > { %v1427_v46 = vpop.f32.mrb[2].mxu1 }
 0x1e1   : > { %v4388_v47 = vpop.f32.mrb[3].mxu1 }
 0x1e2   : > { %v4574_v47 = vld [vmem:[%s5657_s7 + $0x10] sm:$0xff]  }
 0x1e5   : > { %v704_v48 = vpop.f32.mrb[4].mxu0 }
 0x1e6   : > { %v4315_v49 = vpop.f32.mrb[5].mxu0 }
 0x1e7   : > { %v707_v50 = vpop.f32.mrb[6].mxu0  ;;  %v4576_v49 = vld [vmem:[%s5659_s9 + $0x40] ss:$8 sps:$4 sm:$0xff]  }
 0x1e8   : > { %v4316_v51 = vpop.f32.mrb[7].mxu0 }
 0x1e9   : > { %v4581_v51 = vld [vmem:[%s5659_s9 + $0x54] ss:$8 sps:$4 sm:$0xff]  }
 0x1ee   : > { %v1712_v52 = vpop.f32.mrb[4].mxu1 }
 0x1ef   : > { %v4411_v53 = vpop.f32.mrb[5].mxu1 }
 0x1f0   : > { %v1715_v54 = vpop.f32.mrb[6].mxu1  ;;  %v4587_v53 = vld [vmem:[%s5659_s9 + $0x74] ss:$8 sps:$4 sm:$0xff]  }
 0x1f1   : > { %v4412_v55 = vpop.f32.mrb[7].mxu1 }
 0x1f2   : > { %v4590_v55 = vld [vmem:[%s5659_s9 + $0x4] ss:$8 sps:$4 sm:$0xff]  }
 0x1f5   : > { %v793_v56 = vpop.f32.mrb[8].mxu0 }
 0x1f6   : > { %v794_v57 = vadd.f32 %v793_v56, %v704_v48  ;;  %v4327_v59 = vpop.f32.mrb[9].mxu0  ;;  %v4575_v48 = vld [vmem:[%s5657_s7 + $0x18] sm:$0xff]   ;;  %v3997_v56 = vld [vmem:[%s5656_s6] ss:$0 sm:$0xff] }
 0x1f7   : > { %v796_v60 = vpop.f32.mrb[10].mxu0 }
 0x1f8   : > { %v797_v62 = vadd.f32 %v796_v60, %v707_v50  ;;  %v4328_v63 = vpop.f32.mrb[11].mxu0  ;;  %v4578_v50 = vld [vmem:[%s5659_s9 + $0x44] ss:$8 sps:$4 sm:$0xff]  }
 0x1f9   : > { %2171 = vmatprep.subr.bf16.mxu1 %v4578_v50 }
 0x1fa   : > { %2172 = vmatpush1.bf16.msra.mxu1 %v4576_v49 }
 0x1fb   : > { %2173 = vmatprep.subr.bf16.mxu1 %v4581_v51 }
 0x205   : > { %v927_v0 = vpop.f32.mrb[12].mxu0 }
 0x206   : > { %v934_v1 = vadd.f32 %v927_v0, %v794_v57  ;;  %v4339_v3 = vpop.f32.mrb[13].mxu0  ;;  %v4003_v57 = vld [vmem:[%s5658_s8] ss:$0 sm:$0xff] }
 0x207   : > { %v930_v4 = vpop.f32.mrb[14].mxu0  ;;  %v4437_v59 = vadd.f32 %v4003_v57, %v3997_v56 }
 0x208   : > { %v935_v6 = vadd.f32 %v930_v4, %v797_v62  ;;  %v4340_v7 = vpop.f32.mrb[15].mxu0 }
 0x215   : > { %v1031_v8 = vpop.f32.mrb[16].mxu0 }
 0x216   : > { %v1038_v9 = vadd.f32 %v1031_v8, %v934_v1  ;;  %v4351_v10 = vpop.f32.mrb[17].mxu0 }
 0x217   : > { %v1034_v11 = vpop.f32.mrb[18].mxu0 }
 0x218   : > { %v1039_v12 = vadd.f32 %v1034_v11, %v935_v6  ;;  %v4352_v13 = vpop.f32.mrb[19].mxu0 }
 0x225   : > { %v1183_v16 = vpop.f32.mrb[20].mxu0 }
 0x226   : > { %v1190_v17 = vadd.f32 %v1183_v16, %v1038_v9  ;;  %v4363_v18 = vpop.f32.mrb[21].mxu0 }
 0x227   : > { %v1186_v21 = vpop.f32.mrb[22].mxu0  ;;  %v4013_v18 = vld.sshfl [vmem:[#allocation2 + $0x4] sm:$0x13 pattern:$0x76325410] }
 0x228   : > { %v1191_v14 = vadd.f32 %v1186_v21, %v1039_v12  ;;  %v4364_v22 = vpop.f32.mrb[23].mxu0 }
 0x229   : > { %v1986_v22 = vshll.u32 %v4013_v18, 16 }
 0x235   : > { %v1319_v23 = vpop.f32.mrb[24].mxu0 }
 0x236   : > { %v1326_v24 = vadd.f32 %v1319_v23, %v1190_v17  ;;  %v4375_v25 = vpop.f32.mrb[25].mxu0 }
 0x237   : > { %v1322_v26 = vpop.f32.mrb[26].mxu0  ;;  %v1988_v25 = vrot.slane %v1986_v22, 7  ;;  %v4591_v22 = vld [vmem:[%s5659_s9 + $0x10] ss:$8 sps:$4 sm:$0xff]  }
 0x238   : > { %v1327_v27 = vadd.f32 %v1322_v26, %v1191_v14  ;;  %v4376_v28 = vpop.f32.mrb[27].mxu0  ;;  %v1431_v29 = vadd.f32 %v1424_v44, %v1326_v24  ;;  %v4572_v44 = vld [vmem:[%s5657_s7] sm:$0xff]   ;;  %v1983_v14 = vshrl.u32 %v4013_v18, 16 }
 0x23a   : > { %v1432_v30 = vadd.f32 %v1427_v46, %v1327_v27  ;;  %v4573_v46 = vld [vmem:[%s5657_s7 + $0x8] sm:$0xff]   ;;  %v1985_v24 = vrot.slane %v1983_v14, 6 }
 0x245   : > { %v1576_v32 = vpop.f32.mrb[28].mxu0 }
 0x246   : > { %v1583_v33 = vadd.f32 %v1576_v32, %v1431_v29  ;;  %v4399_v31 = vpop.f32.mrb[29].mxu0 }
 0x247   : > { %v1579_v35 = vpop.f32.mrb[30].mxu0 }
 0x248   : > { %v1719_v36 = vadd.f32 %v1712_v52, %v1583_v33  ;;  %v1584_v37 = vadd.f32 %v1579_v35, %v1432_v30  ;;  %v4400_v38 = vpop.f32.mrb[31].mxu0  ;;  %v4582_v52 = vld [vmem:[%s5659_s9 + $0x60] ss:$8 sps:$4 sm:$0xff]  }
 0x24a   : > { %v1728_v39 = vadd.f32 %v3996_v34, %v1719_v36  ;;  %v1720_v40 = vadd.f32 %v1715_v54, %v1584_v37  ;;  %v4585_v54 = vld [vmem:[%s5659_s9 + $0x70] ss:$8 sps:$4 sm:$0xff]  }
 0x24c   : > { %v1729_v41 = vadd.f32 %v3996_v34, %v1720_v40  ;;  %v1730_v42 = vmax.f32 %v1728_v39, 0.0 }
 0x24e   : > { %v1731_v43 = vmax.f32 %v1729_v41, 0.0  ;;  %v1950_v41 = vcombine.high %v4013_v18, %v4013_v18 }
 0x250   : > { %v1732_v45 = vpack.c.bf16 %v1731_v43, %v1730_v42  ;;  %v1992_v56 = vshll.u32 %v1950_v41, 16  ;;  %v4599_v41 = vld [vmem:[%s5659_s9 + $0x34] ss:$8 sps:$4 sm:$0xff]  }
 0x252   : > { %4422 = vmatmul.mubr.msk.bf16.vlgmr.msra.gmra.mrb[32].mxu0 %vm450_vm1, %v1732_v45 }
 0x253   : > { %4426 = vmatpush3.bf16.msra.mxu0 %v4572_v44  ;;  %4433 = vmatprep.mubr.msk.bf16.mxu0 %vm4755_vm0, %v4754_v2  ;;  %vm5244_vm0 = vmor %vm1977_vm14, %vm1978_vm13 }
 0x254   : > { %4427 = vmatprep.subr.bf16.mxu0 %v4754_v2  ;;  %vm5265_vm2 = vmor %vm5244_vm0, %vm1980_vm15 }
 0x257   : > { %4428 = vmatpush3.bf16.msra.mxu0 %v4573_v46 }
 0x258   : > { %4429 = vmatprep.subr.bf16.mxu0 %v4754_v2 }
 0x25b   : > { %4430 = vmatpush3.bf16.msra.mxu0 %v4574_v47 }
 0x25c   : > { %4431 = vmatprep.subr.bf16.mxu0 %v4754_v2  ;;  %v4579_v2 = vld [vmem:[%s5659_s9 + $0x50] ss:$8 sps:$4 sm:$0xff]  }
 0x25d   : > { %2174 = vmatpush1.bf16.msra.mxu1 %v4579_v2 }
 0x25f   : > { %4432 = vmatpush3.bf16.msra.mxu0 %v4575_v48 }
 0x262   : > { %4434 = vmatmul.mubr.msk.bf16.vlgmr.msra.gmra.mrb[32].mxu0 %vm450_vm1, %v4902_v19  ;;  %v4584_v19 = vld [vmem:[%s5659_s9 + $0x64] ss:$8 sps:$4 sm:$0xff]  }
 0x263   : > { %2175 = vmatprep.subr.bf16.mxu1 %v4584_v19  ;;  %v1989_v19 = vor.u32 %v1988_v25, %v1985_v24 }
 0x264   : > { %2176 = vmatpush1.bf16.msra.mxu1 %v4582_v52 }
 0x265   : > { %2177 = vmatprep.subr.bf16.mxu1 %v4587_v53  ;;  %v1990_v18 = vrot.slane %v1989_v19, 2 }
 0x268   : > { %2178 = vmatpush1.bf16.msra.mxu1 %v4585_v54 }
 0x269   : > { %2274 = vmatprep.subr.bf16.mxu1 %v4590_v55 }
 0x335   : > { %v1889_v60 = vpop.f32.mrb[32].mxu0 }
 0x336   : > { %v4438_v62 = vadd.f32 %v4437_v59, %v1889_v60  ;;  %v4435_v63 = vpop.f32.mrb[33].mxu0 }
 0x337   : > { %v1892_v0 = vpop.f32.mrb[34].mxu0 }
 0x338   : > { %v1898_v1 = vmax.f32 %v4438_v62, 0.0  ;;  %v4440_v3 = vadd.f32 %v4437_v59, %v1892_v0  ;;  %v4436_v4 = vpop.f32.mrb[35].mxu0  ;;  %v4588_v0 = vld [vmem:[%s5659_s9] ss:$8 sps:$4 sm:$0xff]  }
 0x33a   : > { %v1902_v6 = vcombine.high %v1898_v1, %v1898_v1  ;;  %v4228_v7 = vpack.c.bf16 %v1898_v1, %v1898_v1  ;;  %v1899_v8 = vmax.f32 %v4440_v3, 0.0 }
 0x33c   : > { %v4229_v9 = vpack.c.bf16 %v1902_v6, %v1902_v6  ;;  %v1922_v10 = vrot.slane %v4228_v7, 7  ;;  %v1903_v11 = vcombine.high %v1899_v8, %v1899_v8  ;;  %v4230_v12 = vpack.c.bf16 %v1899_v8, %v1899_v8  ;;  %v5237_v7 = vld.sshfl [vmem:[#allocation2 + $0x4] sm:$0x32 pattern:$0x76325410] }
 0x33e   : > { %v1923_v13 = vrot.slane %v4229_v9, 7  ;;  %1930 = vst.msk [vmem:[#allocation2 + $0x8] sm:$0x6] %vm537_vm3, %v1922_v10  ;;  %v4231_v16 = vpack.c.bf16 %v1903_v11, %v1903_v11  ;;  %v1924_v17 = vrot.slane %v4230_v12, 7  ;;  %v4593_v9 = vld [vmem:[%s5659_s9 + $0x14] ss:$8 sps:$4 sm:$0xff]  }
 0x340   : > { %1931 = vst.msk [vmem:[#allocation2 + $0xc] sm:$0x6] %vm537_vm3, %v1923_v13  ;;  %v1925_v21 = vrot.slane %v4231_v16, 7  ;;  %1932 = vst.msk [vmem:[#allocation2 + $0x10] sm:$0x6] %vm537_vm3, %v1924_v17 }
 0x342   : > { %1933 = vst.msk [vmem:[#allocation2 + $0x14] sm:$0x6] %vm537_vm3, %v1925_v21  ;;  %v1994_v21 = vrot.slane %v1992_v56, 7  ;;  %vm2357_vm3 = vsmask.f32 256 }
 0x343   : > { %vm5315_vm6 = vmor %vm2357_vm3, %vm2358_vm4 }
 0x344   : > { %vm5338_vm8 = vmor %vm5315_vm6, %vm2360_vm5 }
 0x345   : > { %v4018_v23 = vld.sshfl [vmem:[#allocation2 + $0x8] sm:$0x12 pattern:$0x76325410]  ;;  %vm5361_vm9 = vmor %vm5338_vm8, %vm2362_vm7 }
 0x346   : > { %v2069_v26 = vcombine.high %v4018_v23, %v4018_v23  ;;  %v4014_v27 = vld.sshfl [vmem:[#allocation2 + $0x8] sm:$0x13 pattern:$0x76325410]  ;;  %v4022_v31 = vrot.slane %v4018_v23, 9 }
 0x347   : > { %v4019_v28 = vld.sshfl [vmem:[#allocation2 + $0xc] sm:$0x12 pattern:$0x76325410]  ;;  %v1997_v29 = vshrl.u32 %v4014_v27, 16  ;;  %v2000_v30 = vshll.u32 %v4014_v27, 16  ;;  %v1958_v53 = vcombine.high %v4014_v27, %v4014_v27 }
 0x348   : > { %v4020_v32 = vld.sshfl [vmem:[#allocation2 + $0x10] sm:$0x12 pattern:$0x76325410]  ;;  %v2077_v33 = vcombine.high %v4019_v28, %v4019_v28  ;;  %v2092_v34 = vrot.slane %v2069_v26, 7  ;;  %v4023_v38 = vrot.slane %v4019_v28, 9 }
 0x349   : > { %v2085_v35 = vcombine.high %v4020_v32, %v4020_v32  ;;  %v4015_v36 = vld.sshfl [vmem:[#allocation2 + $0xc] sm:$0x13 pattern:$0x76325410]  ;;  %v4024_v42 = vrot.slane %v4020_v32, 9  ;;  %v1999_v44 = vrot.slane %v1997_v29, 6 }
 0x34a   : > { %v5214_v37 = vsel %vm4956_vm10, %v4022_v31, %v2092_v34  ;;  %v2096_v39 = vrot.slane %v2077_v33, 7  ;;  %v4016_v40 = vld.sshfl [vmem:[#allocation2 + $0x10] sm:$0x13 pattern:$0x76325410]  ;;  %v2002_v45 = vrot.slane %v2000_v30, 7  ;;  %v1966_v51 = vcombine.high %v4015_v36, %v4015_v36 }
 0x34b   : > { %v2100_v43 = vrot.slane %v2085_v35, 7  ;;  %v2111_v47 = vcombine.low %v4964_v61, %v5214_v37  ;;  %v2011_v48 = vshrl.u32 %v4015_v36, 16  ;;  %v2014_v49 = vshll.u32 %v4015_v36, 16  ;;  %v4596_v27 = vld [vmem:[%s5659_s9 + $0x24] ss:$8 sps:$4 sm:$0xff]  }
 0x34c   : > { %v5218_v46 = vsel %vm4956_vm10, %v4023_v38, %v2096_v39  ;;  %v1974_v2 = vcombine.high %v4016_v40, %v4016_v40  ;;  %v2025_v57 = vshrl.u32 %v4016_v40, 16  ;;  %v2028_v59 = vshll.u32 %v4016_v40, 16  ;;  %v5248_v16 = vld.sshfl [vmem:[#allocation2 + $0x8] sm:$0x32 pattern:$0x76325410] }
 0x34d   : > { %v5224_v50 = vsel %vm4956_vm10, %v4024_v42, %v2100_v43  ;;  %v2013_v54 = vrot.slane %v2011_v48, 6  ;;  %v2016_v55 = vrot.slane %v2014_v49, 7  ;;  %v2119_v61 = vrot.slane %v2111_v47, %v4897_v15  ;;  %v5250_v17 = vld.sshfl [vmem:[#allocation2 + $0xc] sm:$0x32 pattern:$0x76325410] }
 0x34e   : > { %v2112_v52 = vcombine.low %v5218_v46, %v5224_v50  ;;  %v2003_v62 = vor.u32 %v2002_v45, %v1999_v44  ;;  %v2020_v1 = vshll.u32 %v1966_v51, 16  ;;  %v2027_v3 = vrot.slane %v2025_v57, 6  ;;  %v5253_v14 = vld.sshfl [vmem:[#allocation2 + $0x10] sm:$0x32 pattern:$0x76325410] }
 0x34f   : > { %v2017_v63 = vor.u32 %v2016_v55, %v2013_v54  ;;  %v2030_v4 = vrot.slane %v2028_v59, 7  ;;  %v2034_v6 = vshll.u32 %v1974_v2, 16  ;;  %v2006_v10 = vshll.u32 %v1958_v53, 16  ;;  %v4594_v36 = vld [vmem:[%s5659_s9 + $0x20] ss:$8 sps:$4 sm:$0xff]  }
 0x350   : > { %v5230_v60 = vrot.slane %v2112_v52, %v4897_v15  ;;  %v2004_v23 = vrot.slane %v2003_v62, 2  ;;  %v2022_v24 = vrot.slane %v2020_v1, 7  ;;  %v2332_v30 = vcombine.high %v5237_v7, %v5237_v7  ;;  %v4100_v40 = vld.sshfl [vmem:[#allocation2 + $0x14] sm:$0x12 pattern:$0x76325410] }
 0x351   : > { %v2018_v12 = vrot.slane %v2017_v63, 2  ;;  %v2031_v13 = vor.u32 %v2030_v4, %v2027_v3  ;;  %v2036_v26 = vrot.slane %v2034_v6, 7  ;;  %v2008_v29 = vrot.slane %v2006_v10, 7  ;;  %v4597_v51 = vld [vmem:[%s5659_s9 + $0x30] ss:$8 sps:$4 sm:$0xff]  }
 0x352   : > { %v2127_v8 = vcombine.low %v2119_v61, %v5230_v60  ;;  %v2348_v31 = vcombine.high %v5250_v17, %v5250_v17  ;;  %v2356_v34 = vcombine.high %v5253_v14, %v5253_v14  ;;  %v2340_v35 = vcombine.high %v5248_v16, %v5248_v16  ;;  %v4602_v52 = vld [vmem:[%s5659_s9 + $0x84] ss:$8 sps:$4 sm:$0xff]  }
 0x353   : > { %v2032_v25 = vrot.slane %v2031_v13, 2  ;;  %v5273_v32 = vsel %vm5265_vm2, %v2018_v12, %v2022_v24  ;;  %v1995_v38 = vsel %vm5265_vm2, %v1990_v18, %v1994_v21  ;;  %v5292_v39 = vsel %vm5265_vm2, %v2004_v23, %v2008_v29  ;;  %v4620_v63 = vld [vmem:[%s5659_s9 + $0xe4] ss:$8 sps:$4 sm:$0xff]  }
 0x354   : > { %4041 = vmatmul.mubr.msk.bf16.vlgmr.msra.gmra.mrb[8].mxu1 %vm450_vm1, %v2127_v8  ;;  %v2370_v43 = vshrl.u32 %v2332_v30, 16  ;;  %v2396_v44 = vshrl.u32 %v2348_v31, 16  ;;  %v2409_v45 = vshrl.u32 %v2356_v34, 16  ;;  %v2214_v47 = vcombine.low %v1995_v38, %v5292_v39  ;;  %v4606_v38 = vld [vmem:[%s5659_s9 + $0xa0] ss:$8 sps:$4 sm:$0xff]  }
 0x355   : > { %2275 = vmatpush1.bf16.msra.mxu1 %v4588_v0  ;;  %2306 = vmatprep.mubr.bf16.mxu1 %v4757_v20  ;;  %v5277_v33 = vsel %vm5265_vm2, %v2032_v25, %v2036_v26  ;;  %v2383_v48 = vshrl.u32 %v2340_v35, 16  ;;  %v2783_v49 = vcombine.high %v4100_v40, %v4100_v40  ;;  %v2365_v2 = vshrl.u32 %v5237_v7, 16  ;;  %v4632_v12 = vld [vmem:[%s5659_s9 + $0x124] ss:$8 sps:$4 sm:$0xff]  }
 0x356   : > { %2276 = vmatprep.subr.bf16.mxu1 %v4593_v9  ;;  %v2215_v42 = vcombine.low %v5273_v32, %v5277_v33  ;;  %v4104_v53 = vrot.slane %v4100_v40, 9  ;;  %v2809_v55 = vcombine.low %v5214_v37, %v5218_v46  ;;  %v2372_v56 = vrot.slane %v2370_v43, 7  ;;  %v4600_v37 = vld [vmem:[%s5659_s9 + $0x80] ss:$8 sps:$4 sm:$0xff]   ;;  %v4605_v9 = vld [vmem:[%s5659_s9 + $0x94] ss:$8 sps:$4 sm:$0xff]  }
 0x357   : > { %v2798_v54 = vrot.slane %v2783_v49, 7  ;;  %v2373_v57 = vshll.u32 %v2332_v30, 16  ;;  %v2398_v59 = vrot.slane %v2396_v44, 7  ;;  %v2411_v61 = vrot.slane %v2409_v45, 7 }
 0x358   : > { %v5305_v19 = vrot.slane %v2215_v42, %v4897_v15  ;;  %v2222_v62 = vrot.slane %v2214_v47, %v4897_v15  ;;  %v2385_v0 = vrot.slane %v2383_v48, 7  ;;  %v2391_v1 = vshrl.u32 %v5250_v17, 16  ;;  %v4611_v42 = vld [vmem:[%s5659_s9 + $0xb4] ss:$8 sps:$4 sm:$0xff]   ;;  %v4609_v48 = vld [vmem:[%s5659_s9 + $0xb0] ss:$8 sps:$4 sm:$0xff]  }
 0x359   : > { %2277 = vmatpush1.bf16.msra.mxu1 %v4591_v22  ;;  %v5322_v3 = vsel %vm4956_vm10, %v4104_v53, %v2798_v54  ;;  %v2399_v46 = vshll.u32 %v2348_v31, 16  ;;  %v2404_v4 = vshrl.u32 %v5253_v14, 16  ;;  %v2412_v6 = vshll.u32 %v2356_v34, 16  ;;  %v4603_v22 = vld [vmem:[%s5659_s9 + $0x90] ss:$8 sps:$4 sm:$0xff]  }
 0x35a   : > { %2278 = vmatprep.subr.bf16.mxu1 %v4596_v27  ;;  %v2810_v7 = vcombine.low %v5224_v50, %v5322_v3  ;;  %v2230_v8 = vcombine.low %v2222_v62, %v5305_v19  ;;  %v2378_v10 = vshrl.u32 %v5248_v16, 16  ;;  %v2386_v11 = vshll.u32 %v2340_v35, 16  ;;  %v4079_v14 = vld.sshfl [vmem:[#allocation2 + $0x14] sm:$0x13 pattern:$0x76325410] }
 0x35b   : > { %v2401_v13 = vor.u32 %v2399_v46, %v2398_v59  ;;  %v2414_v50 = vor.u32 %v2412_v6, %v2411_v61  ;;  %v5343_v17 = vrot.slane %v2809_v55, %v4897_v15  ;;  %v4055_v21 = vrot.slane %v2365_v2, 9  ;;  %v4608_v27 = vld [vmem:[%s5659_s9 + $0xa4] ss:$8 sps:$4 sm:$0xff]   ;;  %v4612_v54 = vld [vmem:[%s5659_s9 + $0xc0] ss:$8 sps:$4 sm:$0xff]  }
 0x35c   : > { %v5346_v18 = vrot.slane %v2810_v7, %v4897_v15  ;;  %v2375_v16 = vor.u32 %v2373_v57, %v2372_v56  ;;  %v2388_v23 = vor.u32 %v2386_v11, %v2385_v0  ;;  %v4057_v24 = vrot.slane %v2391_v1, 9  ;;  %v4614_v2 = vld [vmem:[%s5659_s9 + $0xc4] ss:$8 sps:$4 sm:$0xff]   ;;  %v4617_v57 = vld [vmem:[%s5659_s9 + $0xd4] ss:$8 sps:$4 sm:$0xff]  }
 0x35d   : > { %2279 = vmatpush1.bf16.msra.mxu1 %v4594_v36  ;;  %v4058_v25 = vrot.slane %v2404_v4, 9  ;;  %v4056_v30 = vrot.slane %v2378_v10, 9  ;;  %v2615_v35 = vshrl.u32 %v4079_v14, 16  ;;  %v2618_v36 = vshll.u32 %v4079_v14, 16  ;;  %v4615_v61 = vld [vmem:[%s5659_s9 + $0xd0] ss:$8 sps:$4 sm:$0xff]  }
 0x35e   : > { %2280 = vmatprep.subr.bf16.mxu1 %v4599_v41  ;;  %v2825_v26 = vcombine.low %v5343_v17, %v5346_v18  ;;  %v5367_v31 = vsel %vm5361_vm9, %v4057_v24, %v2401_v13  ;;  %v2376_v40 = vsel %vm5361_vm9, %v4055_v21, %v2375_v16  ;;  %v2571_v49 = vcombine.high %v4079_v14, %v4079_v14  ;;  %v4618_v1 = vld [vmem:[%s5659_s9 + $0xe0] ss:$8 sps:$4 sm:$0xff]   ;;  %v4621_v6 = vld [vmem:[%s5659_s9 + $0xf0] ss:$8 sps:$4 sm:$0xff]   ;;  %v4635_v21 = vld [vmem:[%s5659_s9 + $0x134] ss:$8 sps:$4 sm:$0xff]  }
 0x35f   : > { %v5371_v34 = vsel %vm5361_vm9, %v4058_v25, %v2414_v50  ;;  %v5380_v41 = vsel %vm5361_vm9, %v4056_v30, %v2388_v23  ;;  %v2617_v44 = vrot.slane %v2615_v35, 6  ;;  %v2620_v45 = vrot.slane %v2618_v36, 7  ;;  %v4125_v10 = vld.sshfl [vmem:[#allocation2 + $0x14] sm:$0x32 pattern:$0x76325410] }
 0x360   : > { %v2426_v43 = vcombine.low %v5367_v31, %v5371_v34  ;;  %v2425_v47 = vcombine.low %v2376_v40, %v5380_v41  ;;  %v2624_v55 = vshll.u32 %v2571_v49, 16  ;;  %v2637_v4 = vcombine.low %v5292_v39, %v5273_v32  ;;  %v4629_v39 = vld [vmem:[%s5659_s9 + $0x114] ss:$8 sps:$4 sm:$0xff]   ;;  %v4627_v11 = vld [vmem:[%s5659_s9 + $0x110] ss:$8 sps:$4 sm:$0xff]  }
 0x361   : > { %2281 = vmatpush1.bf16.msra.mxu1 %v4597_v51  ;;  %v2955_v13 = vcombine.high %v4125_v10, %v4125_v10  ;;  %v4630_v50 = vld [vmem:[%s5659_s9 + $0x120] ss:$8 sps:$4 sm:$0xff]   ;;  %v4633_v14 = vld [vmem:[%s5659_s9 + $0x130] ss:$8 sps:$4 sm:$0xff]   ;;  %v2996_v25 = vshrl.u32 %v4125_v10, 16 }
 0x362   : > { %2485 = vmatprep.subr.bf16.mxu1 %v4602_v52  ;;  %v5392_v51 = vrot.slane %v2426_v43, %v4897_v15  ;;  %v2621_v52 = vor.u32 %v2620_v45, %v2617_v44  ;;  %v2433_v53 = vrot.slane %v2425_v47, %v4897_v15  ;;  %v2626_v62 = vrot.slane %v2624_v55, 7  ;;  %v4636_v24 = vld [vmem:[%s5659_s9 + $0x140] ss:$8 sps:$4 sm:$0xff]   ;;  %v4641_v30 = vld [vmem:[%s5659_s9 + $0x154] ss:$8 sps:$4 sm:$0xff]  }
 0x363   : > { %v3001_v16 = vshrl.u32 %v2955_v13, 16  ;;  %v4150_v36 = vld.sshfl [vmem:[#allocation2 + $0x18] sm:$0x13 pattern:$0x76325410]  ;;  %v4129_v40 = vrot.slane %v2996_v25, 9 }
 0x364   : > { %4050 = vmatmul.mubr.msk.bf16.vlgmr.msra.gmra.mrb[8].mxu1 %vm450_vm1, %v2230_v8  ;;  %v2441_v56 = vcombine.low %v2433_v53, %v5392_v51  ;;  %v2622_v59 = vrot.slane %v2621_v52, 2  ;;  %v4626_v8 = vld [vmem:[%s5659_s9 + $0x104] ss:$8 sps:$4 sm:$0xff]   ;;  %v3208_v17 = vshrl.u32 %v4150_v36, 16  ;;  %v3211_v18 = vshll.u32 %v4150_v36, 16 }
 0x365   : > { %2486 = vmatpush1.bf16.msra.mxu1 %v4600_v37  ;;  %2517 = vmatprep.mubr.bf16.mxu1 %v4757_v20  ;;  %v4623_v37 = vld [vmem:[%s5659_s9 + $0xf4] ss:$8 sps:$4 sm:$0xff]   ;;  %v3003_v23 = vrot.slane %v3001_v16, 7  ;;  %v3164_v47 = vcombine.high %v4150_v36, %v4150_v36  ;;  %v4645_v52 = vld [vmem:[%s5659_s9 + $0x170] ss:$8 sps:$4 sm:$0xff]  }
 0x366   : > { %2487 = vmatprep.subr.bf16.mxu1 %v4605_v9  ;;  %v5415_v0 = vsel %vm5265_vm2, %v2622_v59, %v2626_v62  ;;  %v2645_v9 = vrot.slane %v2637_v4, %v4897_v15  ;;  %v4647_v44 = vld [vmem:[%s5659_s9 + $0x174] ss:$8 sps:$4 sm:$0xff]   ;;  %v3213_v49 = vrot.slane %v3211_v18, 7  ;;  %v4651_v62 = vld [vmem:[%s5659_s9 + $0x190] ss:$8 sps:$4 sm:$0xff]  }
 0x367   : > { %v2638_v46 = vcombine.low %v5277_v33, %v5415_v0  ;;  %v4624_v33 = vld [vmem:[%s5659_s9 + $0x100] ss:$8 sps:$4 sm:$0xff]   ;;  %v4671_v16 = vld [vmem:[%s5659_s9 + $0x1f4] ss:$8 sps:$4 sm:$0xff]  }
 0x368   : > { %v4677_v36 = vld [vmem:[%s5659_s9 + $0x214] ss:$8 sps:$4 sm:$0xff]   ;;  %v4678_v18 = vld [vmem:[%s5659_s9 + $0x220] ss:$8 sps:$4 sm:$0xff]  }
 0x369   : > { %2488 = vmatpush1.bf16.msra.mxu1 %v4603_v22  ;;  %v2652_v7 = vrot.slane %v2638_v46, %v4897_v15  ;;  %v4638_v22 = vld [vmem:[%s5659_s9 + $0x144] ss:$8 sps:$4 sm:$0xff]   ;;  %v4659_v46 = vld [vmem:[%s5659_s9 + $0x1b4] ss:$8 sps:$4 sm:$0xff]  }
 0x36a   : > { %2489 = vmatprep.subr.bf16.mxu1 %v4608_v27  ;;  %v3004_v27 = vshll.u32 %v2955_v13, 16 }
 0x36b   : > { %v2653_v32 = vcombine.low %v2645_v9, %v2652_v7  ;;  %v4657_v7 = vld [vmem:[%s5659_s9 + $0x1b0] ss:$8 sps:$4 sm:$0xff]  }
 0x36c   : > { %v3006_v35 = vor.u32 %v3004_v27, %v3003_v23 }
 0x36d   : > { %2490 = vmatpush1.bf16.msra.mxu1 %v4606_v38  ;;  %v4639_v38 = vld [vmem:[%s5659_s9 + $0x150] ss:$8 sps:$4 sm:$0xff]  }
 0x36e   : > { %2491 = vmatprep.subr.bf16.mxu1 %v4611_v42  ;;  %v4644_v42 = vld [vmem:[%s5659_s9 + $0x164] ss:$8 sps:$4 sm:$0xff]   ;;  %v5480_v43 = vsel %vm5361_vm9, %v4129_v40, %v3006_v35 }
 0x36f   : > { %v3018_v45 = vcombine.low %v5371_v34, %v5480_v43  ;;  %v3217_v34 = vshll.u32 %v3164_v47, 16  ;;  %v3721_v47 = vsub.s32 0, %v4887_v5 }
 0x371   : > { %2492 = vmatpush1.bf16.msra.mxu1 %v4609_v48  ;;  %v3210_v48 = vrot.slane %v3208_v17, 6  ;;  %v3032_v53 = vrot.slane %v3018_v45, %v4897_v15 }
 0x372   : > { %2697 = vmatprep.subr.bf16.mxu1 %v4614_v2  ;;  %v3017_v2 = vcombine.low %v5380_v41, %v5367_v31  ;;  %v4648_v31 = vld [vmem:[%s5659_s9 + $0x180] ss:$8 sps:$4 sm:$0xff]  }
 0x373   : > { %v3214_v55 = vor.u32 %v3213_v49, %v3210_v48  ;;  %v3725_v48 = vsub.s32 1, %v4887_v5 }
 0x374   : > { %4075 = vmatmul.mubr.msk.bf16.vlgmr.msra.gmra.mrb[8].mxu1 %vm450_vm1, %v2441_v56  ;;  %v3025_v56 = vrot.slane %v3017_v2, %v4897_v15 }
 0x375   : > { %2698 = vmatpush1.bf16.msra.mxu1 %v4612_v54  ;;  %2729 = vmatprep.mubr.bf16.mxu1 %v4757_v20  ;;  %v4650_v54 = vld [vmem:[%s5659_s9 + $0x184] ss:$8 sps:$4 sm:$0xff]   ;;  %v3215_v59 = vrot.slane %v3214_v55, 2 }
 0x376   : > { %2699 = vmatprep.subr.bf16.mxu1 %v4617_v57  ;;  %v3033_v41 = vcombine.low %v3025_v56, %v3032_v53  ;;  %v4653_v57 = vld [vmem:[%s5659_s9 + $0x194] ss:$8 sps:$4 sm:$0xff]  }
 0x379   : > { %2700 = vmatpush1.bf16.msra.mxu1 %v4615_v61  ;;  %v3219_v61 = vrot.slane %v3217_v34, 7 }
 0x37a   : > { %2701 = vmatprep.subr.bf16.mxu1 %v4620_v63  ;;  %v4656_v63 = vld [vmem:[%s5659_s9 + $0x1a4] ss:$8 sps:$4 sm:$0xff]  }
 0x37d   : > { %2702 = vmatpush1.bf16.msra.mxu1 %v4618_v1  ;;  %v3220_v1 = vsel %vm5265_vm2, %v3215_v59, %v3219_v61 }
 0x37e   : > { %2703 = vmatprep.subr.bf16.mxu1 %v4623_v37  ;;  %v4654_v37 = vld [vmem:[%s5659_s9 + $0x1a0] ss:$8 sps:$4 sm:$0xff]   ;;  %v3231_v4 = vcombine.low %v5415_v0, %v3220_v1 }
 0x380   : > { %v3245_v28 = vrot.slane %v3231_v4, %v4897_v15 }
 0x381   : > { %2704 = vmatpush1.bf16.msra.mxu1 %v4621_v6  ;;  %v4171_v6 = vld.sshfl [vmem:[#allocation2 + $0x18] sm:$0x12 pattern:$0x76325410] }
 0x382   : > { %2869 = vmatprep.subr.bf16.mxu1 %v4626_v8  ;;  %v4662_v8 = vld [vmem:[%s5659_s9 + $0x1c4] ss:$8 sps:$4 sm:$0xff]   ;;  %v3376_v9 = vcombine.high %v4171_v6, %v4171_v6  ;;  %v3246_v0 = vcombine.low %v5305_v19, %v3245_v28 }
 0x383   : > { %v4668_v19 = vld [vmem:[%s5659_s9 + $0x1e4] ss:$8 sps:$4 sm:$0xff]  }
 0x384   : > { %4096 = vmatmul.mubr.msk.bf16.vlgmr.msra.gmra.mrb[8].mxu1 %vm450_vm1, %v2653_v32  ;;  %v4665_v32 = vld [vmem:[%s5659_s9 + $0x1d4] ss:$8 sps:$4 sm:$0xff]   ;;  %v3391_v10 = vrot.slane %v3376_v9, 7 }
 0x385   : > { %2870 = vmatpush1.bf16.msra.mxu1 %v4624_v33  ;;  %2901 = vmatprep.mubr.bf16.mxu1 %v4757_v20  ;;  %v4660_v33 = vld [vmem:[%s5659_s9 + $0x1c0] ss:$8 sps:$4 sm:$0xff]  }
 0x386   : > { %2871 = vmatprep.subr.bf16.mxu1 %v4629_v39  ;;  %v4175_v39 = vrot.slane %v4171_v6, 9 }
 0x388   : > { %v3392_v13 = vsel %vm4956_vm10, %v4175_v39, %v3391_v10  ;;  %vm3745_vm10 = vcmask 1043456  }
 0x389   : > { %2872 = vmatpush1.bf16.msra.mxu1 %v4627_v11  ;;  %v4196_v11 = vld.sshfl [vmem:[#allocation2 + $0x18] sm:$0x32 pattern:$0x76325410] }
 0x38a   : > { %2873 = vmatprep.subr.bf16.mxu1 %v4632_v12  ;;  %v4663_v12 = vld [vmem:[%s5659_s9 + $0x1d0] ss:$8 sps:$4 sm:$0xff]   ;;  %v3589_v25 = vshrl.u32 %v4196_v11, 16 }
 0x38d   : > { %2874 = vmatpush1.bf16.msra.mxu1 %v4630_v50  ;;  %v3548_v50 = vcombine.high %v4196_v11, %v4196_v11 }
 0x38e   : > { %2875 = vmatprep.subr.bf16.mxu1 %v4635_v21  ;;  %v4666_v21 = vld [vmem:[%s5659_s9 + $0x1e0] ss:$8 sps:$4 sm:$0xff]  }
 0x391   : > { %2876 = vmatpush1.bf16.msra.mxu1 %v4633_v14  ;;  %v3403_v14 = vcombine.low %v5322_v3, %v3392_v13  ;;  %v4672_v3 = vld [vmem:[%s5659_s9 + $0x200] ss:$8 sps:$4 sm:$0xff]  }
 0x392   : > { %3077 = vmatprep.subr.bf16.mxu1 %v4638_v22  ;;  %v3594_v22 = vshrl.u32 %v3548_v50, 16 }
 0x393   : > { %v3417_v23 = vrot.slane %v3403_v14, %v4897_v15 }
 0x394   : > { %4121 = vmatmul.mubr.msk.bf16.vlgmr.msra.gmra.mrb[8].mxu1 %vm450_vm1, %v2825_v26  ;;  %v4642_v26 = vld [vmem:[%s5659_s9 + $0x160] ss:$8 sps:$4 sm:$0xff]   ;;  %v3596_v27 = vrot.slane %v3594_v22, 7 }
 0x395   : > { %3078 = vmatpush1.bf16.msra.mxu1 %v4636_v24  ;;  %3109 = vmatprep.mubr.bf16.mxu1 %v4757_v20  ;;  %v4674_v24 = vld [vmem:[%s5659_s9 + $0x204] ss:$8 sps:$4 sm:$0xff]   ;;  %v3418_v35 = vcombine.low %v5230_v60, %v3417_v23 }
 0x396   : > { %3079 = vmatprep.subr.bf16.mxu1 %v4641_v30  ;;  %v3597_v30 = vshll.u32 %v3548_v50, 16  ;;  %v4680_v60 = vld [vmem:[%s5659_s9 + $0x224] ss:$8 sps:$4 sm:$0xff]  }
 0x398   : > { %v3599_v40 = vor.u32 %v3597_v30, %v3596_v27 }
 0x399   : > { %3080 = vmatpush1.bf16.msra.mxu1 %v4639_v38  ;;  %v4200_v38 = vrot.slane %v3589_v25, 9 }
 0x39a   : > { %3081 = vmatprep.subr.bf16.mxu1 %v4644_v42  ;;  %v4675_v42 = vld [vmem:[%s5659_s9 + $0x210] ss:$8 sps:$4 sm:$0xff]  }
 0x39b   : > { %v3600_v17 = vsel %vm5361_vm9, %v4200_v38, %v3599_v40 }
 0x39d   : > { %3082 = vmatpush1.bf16.msra.mxu1 %v4642_v26  ;;  %v3611_v26 = vcombine.low %v5480_v43, %v3600_v17  ;;  %v3717_v43 = vld [vmem:[%s5660_s10] sm:$0x3] }
 0x39e   : > { %3083 = vmatprep.subr.bf16.mxu1 %v4647_v44  ;;  %v4681_v44 = vld [vmem:[%s5659_s9 + $0x230] ss:$8 sps:$4 sm:$0xff]   ;;  %v3722_v49 = vrot.slane %v3717_v43, %v3721_v47  ;;  %v3726_v2 = vrot.slane %v3717_v43, %v3725_v48 }
 0x39f   : > { %v3625_v29 = vrot.slane %v3611_v26, %v4897_v15 }
 0x3a1   : > { %3084 = vmatpush1.bf16.msra.mxu1 %v4645_v52  ;;  %v3626_v45 = vcombine.low %v5392_v51, %v3625_v29 }
 0x3a2   : > { %3290 = vmatprep.subr.bf16.mxu1 %v4650_v54 }
 0x3a4   : > { %4146 = vmatmul.mubr.msk.bf16.vlgmr.msra.gmra.mrb[8].mxu1 %vm450_vm1, %v3033_v41 }
 0x3a5   : > { %3291 = vmatpush1.bf16.msra.mxu1 %v4648_v31  ;;  %3322 = vmatprep.mubr.bf16.mxu1 %v4757_v20 }
 0x3a6   : > { %3292 = vmatprep.subr.bf16.mxu1 %v4653_v57 }
 0x3a9   : > { %3293 = vmatpush1.bf16.msra.mxu1 %v4651_v62 }
 0x3aa   : > { %3294 = vmatprep.subr.bf16.mxu1 %v4656_v63 }
 0x3ad   : > { %3295 = vmatpush1.bf16.msra.mxu1 %v4654_v37 }
 0x3ae   : > { %3296 = vmatprep.subr.bf16.mxu1 %v4659_v46 }
 0x3b1   : > { %3297 = vmatpush1.bf16.msra.mxu1 %v4657_v7 }
 0x3b2   : > { %3462 = vmatprep.subr.bf16.mxu1 %v4662_v8 }
 0x3b4   : > { %4167 = vmatmul.mubr.msk.bf16.vlgmr.msra.gmra.mrb[8].mxu1 %vm450_vm1, %v3246_v0 }
 0x3b5   : > { %3463 = vmatpush1.bf16.msra.mxu1 %v4660_v33  ;;  %3494 = vmatprep.mubr.bf16.mxu1 %v4757_v20 }
 0x3b6   : > { %3464 = vmatprep.subr.bf16.mxu1 %v4665_v32 }
 0x3b9   : > { %3465 = vmatpush1.bf16.msra.mxu1 %v4663_v12 }
 0x3ba   : > { %3466 = vmatprep.subr.bf16.mxu1 %v4668_v19 }
 0x3bd   : > { %3467 = vmatpush1.bf16.msra.mxu1 %v4666_v21 }
 0x3be   : > { %3468 = vmatprep.subr.bf16.mxu1 %v4671_v16 }
 0x3c1   : > { %3469 = vmatpush1.bf16.msra.mxu1 %v4669_v58 }
 0x3c2   : > { %3670 = vmatprep.subr.bf16.mxu1 %v4674_v24 }
 0x3c4   : > { %4192 = vmatmul.mubr.msk.bf16.vlgmr.msra.gmra.mrb[8].mxu1 %vm450_vm1, %v3418_v35 }
 0x3c5   : > { %3671 = vmatpush1.bf16.msra.mxu1 %v4672_v3  ;;  %3702 = vmatprep.mubr.bf16.mxu1 %v4757_v20  ;;  %v4683_v20 = vld [vmem:[%s5659_s9 + $0x234] ss:$8 sps:$4 sm:$0xff]  }
 0x3c6   : > { %3672 = vmatprep.subr.bf16.mxu1 %v4677_v36 }
 0x3c9   : > { %3673 = vmatpush1.bf16.msra.mxu1 %v4675_v42 }
 0x3ca   : > { %3674 = vmatprep.subr.bf16.mxu1 %v4680_v60 }
 0x3cd   : > { %3675 = vmatpush1.bf16.msra.mxu1 %v4678_v18 }
 0x3ce   : > { %3676 = vmatprep.subr.bf16.mxu1 %v4683_v20 }
 0x3d1   : > { %3677 = vmatpush1.bf16.msra.mxu1 %v4681_v44 }
 0x3d4   : > { %4217 = vmatmul.mubr.msk.bf16.vlgmr.msra.gmra.mrb[8].mxu1 %vm450_vm1, %v3626_v45  ;;  %vm3747_vm1 = vmor %vm3746_vm11, %vm3745_vm10 }
 0x4a7   : > { %v3704_v15 = vpop.f32.mrb[8].mxu1 }
 0x4a8   : > { %v3729_v51 = vadd.f32 %v3722_v49, %v3704_v15  ;;  %v3706_v52 = vpop.f32.mrb[9].mxu1 }
 0x4a9   : > { %v3730_v53 = vadd.f32 %v3726_v2, %v3706_v52  ;;  %v3708_v54 = vpop.f32.mrb[10].mxu1 }
 0x4aa   : > { %v3731_v55 = vadd.f32 %v3722_v49, %v3708_v54  ;;  %v3710_v34 = vpop.f32.mrb[11].mxu1 }
 0x4ab   : > { %v3737_v5 = vcombine.low %v3729_v51, %v3730_v53  ;;  %v3738_v56 = vcombine.high %v3729_v51, %v3730_v53  ;;  %v3732_v31 = vadd.f32 %v3726_v2, %v3710_v34 }
 0x4ad   : > { %3748 = vst.msk [vmem:[%s379_s22] sm:$0xff] %vm3747_vm1, %v3737_v5  ;;  %3749 = vst.msk [vmem:[%s379_s22 + $0x8] sm:$0xff] %vm3747_vm1, %v3738_v56  ;;  %v3739_v41 = vcombine.low %v3731_v55, %v3732_v31  ;;  %v3740_v57 = vcombine.high %v3731_v55, %v3732_v31 }
 0x4af   : > { %3750 = vst.msk [vmem:[%s379_s22 + $0x10] sm:$0xff] %vm3747_vm1, %v3739_v41  ;;  %3751 = vst.msk [vmem:[%s379_s22 + $0x18] sm:$0xff] %vm3747_vm1, %v3740_v57 }
 0x4b0   : > { %4703 = shalt.err (!%p4700_p3)
}
 0x4b1   : > { %s4704_s13 = scalar_lea.hbm %s5603_s12, 512  ;;  %s4708_s30 = scalar_lea.hbm %s5661_s11, 1024 }
 0x4b2   : > { %p4705_p4 = scmp.ne.s32.totalorder %s5603_s12, %s4704_s13  ;;  %p4709_p9 = scmp.lt.u32.totalorder %s5603_s12, %s5661_s11 }
 0x4b3   : > { %p4710_p10 = scmp.lt.u32.totalorder %s4708_s30, %s4704_s13  ;;  %p4712_p12 = scmp.lt.u32.totalorder %s4704_s13, %s5603_s12 }
 0x4b4   : > { %p4706_p7 = pnand %p4705_p4, %p4859_p5 }
 0x4b5   : > { %p4711_p11 = por %p4710_p10, %p4709_p9 }
 0x4b6   : > { %p4707_p8 = pneg %p4706_p7 }
 0x4b7   : > { %p4713_p13 = por %p4712_p12, %p4711_p11 }
 0x4b9   : > { %p4714_p0 = pnand %p4713_p13, %p4707_p8 }
 0x4bb   : > { %4717 = shalt.err (!%p4714_p0)
}
 0x4bc   : > { %s4759_s14 = smov 128   ;;  %s4760_s25 = smov 8  }
 0x4bd   : > { %4477 = dma.vmem_to_hbm [thread:$0]  (%p4859_p5), %s5605_s24, 512, %s5603_s12, %s5609_s21, %s4759_s14, %s4759_s14, %s4760_s25  }
 0x4be PF: > { %p4483_p1 = scmp.ge.s32.totalorder %s4752_s20, 2  ;;  %s3781_s22 = sand.u32 1, %s4740_s17  }
 0x4bf   : > { %s3782_s13 = scalar_lea.sflag [#allocation4], %s3781_s22 }
 0x4c0   : > { %p4480_p2 = pnand %p4483_p1, %p4863_p6 }
 0x4c2   : > { %4735 = dma.done.wait (!%p4480_p2), %s3782_s13, 512  }
 0x4c3   : > { %4737 = vsyncadd (!%p4480_p2), %s3782_s13, 4294966784  ;;  %p21_p3 = scmp.ge.s32.totalorder %s4846_s23, 4   ;;  %s5676_s17 = smov %s4744_s18 }
 0x4c4   : > { %s5677_s18 = smov %s4748_s19  ;;  %s5678_s19 = smov %s4857_s26 }
 0x4c5   : > { %s5679_s20 = smov %s4846_s23  ;;  %23 = sbr.rel (!%p21_p3) target bundleno = 3 (0x3), region = 119 }
 0x4cc   :  { %3787 = vsyncpa [#allocation4], 1 }
 0x4cd   :  { %3789 = vsyncpa [#allocation4 + $0x1], 1 }

</bundles_post_ra>
